<compile_context>
chip_gen: v5e
topology: v5e:2x2
jax: 0.10.0
libtpu: 0.0.40
codegen_flags: <defaults>
</compile_context>

<pallas_src>
import math
import jax
import jax.numpy as jnp
from jax.experimental import pallas as pl
from jax.experimental.pallas import tpu as pltpu

INPUT_SIZE = 28
HIDDEN = 64
HP = 128             # hidden padded to a full 128-lane vreg width per gate
NUM_CLASSES = 10
B_TILE = 8           # batch rows per grid step (per-TensorCore slice on v7x)
CHUNK = 4            # look-ahead window of x@U projection interleaved into the loop


def lstm_fc_kernel(x_ref, u_ref, b_ref, v_ref, w_ref, fcb_ref, out_ref, xu_ref):
    """Full LSTM recurrence + final linear layer for one batch block.

    x_ref  : (T, B, D)       time-major input block
    u_ref  : (D, 4*HP)       input->gate weights, gate order [i, f, c, o], lane-padded
    b_ref  : (1, 4*HP)       gate biases, lane-padded
    v_ref  : (HP, 4*HP)      hidden->gate weights, row- and lane-padded with zeros
    w_ref  : (HP, 10)        fc weight (in, out), rows >= HIDDEN are zero
    fcb_ref: (1, 10)         fc bias
    out_ref: (B, 10)         fc(h_n) for this batch block
    xu_ref : (T, B, 4*HP)    VMEM scratch holding the look-ahead input projection
    """
    T, B, D = x_ref.shape
    G = u_ref.shape[1]          # 4 * HP
    Hp = v_ref.shape[0]         # HP

    def project(t0, n):
        # Input projection for timesteps [t0, t0+n): independent of h/c, so the
        # scheduler can hide it under the recurrence's EUP/latency chains.
        xf = x_ref[pl.ds(t0, n)].reshape(n * B, D)
        xu = jnp.dot(xf, u_ref[...], preferred_element_type=jnp.float32) + b_ref[...]
        xu_ref[pl.ds(t0, n)] = xu.reshape(n, B, G)

    # Tiny prologue: only the first CHUNK timesteps; the rest is interleaved below.
    project(0, min(CHUNK, T))

    h = jnp.zeros((B, Hp), jnp.float32)
    c = jnp.zeros((B, Hp), jnp.float32)

    # T is static -> fully unrolled Python loop with static indices; per-step
    # critical path is one small (B,HP)@(HP,4*HP) dot + full-vreg VPU/EUP work.
    for t in range(T):
        if t % CHUNK == 0 and t + CHUNK < T:
            project(t + CHUNK, min(CHUNK, T - (t + CHUNK)))

        # RHS read straight from VMEM inside the dot (no long-lived V value).
        gates = xu_ref[t] + jnp.dot(h, v_ref[...], preferred_element_type=jnp.float32)
        act = jax.nn.sigmoid(gates)        # one EUP pass over the full gate tensor
        i_t = act[:, 0 * Hp:1 * Hp]
        f_t = act[:, 1 * Hp:2 * Hp]
        g_t = act[:, 2 * Hp:3 * Hp]        # sigmoid, matching the reference MyLSTM
        o_t = act[:, 3 * Hp:4 * Hp]
        c = f_t * c + i_t * g_t
        h = o_t * jnp.tanh(c)

    # Final fc: padded rows of w_ref are zero, so padded lanes of h are inert.
    out_ref[...] = (
        jnp.dot(h, w_ref[...], preferred_element_type=jnp.float32) + fcb_ref[...]
    ).astype(out_ref.dtype)


def _pad_gate_cols(m):
    """(rows, 4*HIDDEN) -> (rows, 4*HP): zero-pad each gate block from 64 to 128 lanes."""
    rows = m.shape[0]
    m4 = m.reshape(rows, 4, HIDDEN)
    return jnp.pad(m4, ((0, 0), (0, 0), (0, HP - HIDDEN))).reshape(rows, 4 * HP)


@jax.jit
def lstm_forward(x_nchw, params):
    """x_nchw: (B, 1, 28, 28) float32 -> (B, 10) float32."""
    u, v, b, w_fc, b_fc = params
    x = jnp.squeeze(x_nchw, axis=1)          # (B, 28, 28) == (B, T, D)
    B = x.shape[0]
    x_tbd = jnp.transpose(x, (1, 0, 2))      # (T, B, D) time-major
    T, _, D = x_tbd.shape

    # Pad the batch to a multiple of B_TILE (padded rows are zeros, discarded at the end).
    Bp = ((B + B_TILE - 1) // B_TILE) * B_TILE
    if Bp != B:
        x_tbd = jnp.pad(x_tbd, ((0, 0), (0, Bp - B), (0, 0)))

    # Zero-pad gate blocks (64 -> 128 lanes) and hidden rows (64 -> 128).  The zero
    # rows of v_p / w_p are what keeps the nonzero padded lanes of h/c inert.
    u_p = _pad_gate_cols(u)                                        # (D, 4*HP)
    v_p = jnp.pad(_pad_gate_cols(v), ((0, HP - HIDDEN), (0, 0)))   # (HP, 4*HP)
    b_p = _pad_gate_cols(b)                                        # (1, 4*HP)
    w_p = jnp.pad(w_fc, ((0, HP - HIDDEN), (0, 0)))                # (HP, 10)

    nb = Bp // B_TILE
    grid_spec = pltpu.PrefetchScalarGridSpec(
        num_scalar_prefetch=0,
        grid=(nb,),
        in_specs=[
            pl.BlockSpec((T, B_TILE, D), lambda i: (0, i, 0)),          # x (batch-blocked)
            pl.BlockSpec((D, 4 * HP), lambda i: (0, 0)),                # U
            pl.BlockSpec((1, 4 * HP), lambda i: (0, 0)),                # b
            pl.BlockSpec((HP, 4 * HP), lambda i: (0, 0)),               # V
            pl.BlockSpec((HP, NUM_CLASSES), lambda i: (0, 0)),          # W_fc
            pl.BlockSpec((1, NUM_CLASSES), lambda i: (0, 0)),           # b_fc
        ],
        out_specs=pl.BlockSpec((B_TILE, NUM_CLASSES), lambda i: (i, 0)),
        scratch_shapes=[pltpu.VMEM((T, B_TILE, 4 * HP), jnp.float32)],  # per-block xu
    )

    out = pl.pallas_call(
        lstm_fc_kernel,
        out_shape=jax.ShapeDtypeStruct((Bp, NUM_CLASSES), jnp.float32),
        grid_spec=grid_spec,
        compiler_params=pltpu.CompilerParams(
            dimension_semantics=("parallel",),      # batch blocks shard across TCs on v7x
            vmem_limit_bytes=32 * 1024 * 1024,
        ),
    )(x_tbd, u_p, b_p, v_p, w_p, b_fc)
    return out[:B]


def init_params(key):
    """Deterministic parameter init mirroring MyLSTM.init_params + nn.Linear shapes."""
    stdv = 1.0 / math.sqrt(HIDDEN)
    ks = jax.random.split(key, 14)
    uni = lambda k, shape, s: jax.random.uniform(k, shape, jnp.float32, -s, s)

    # gate order [i, f, c, o]
    U = jnp.concatenate(
        [uni(ks[j], (INPUT_SIZE, HIDDEN), stdv) for j in range(4)], axis=1
    )  # (28, 256)
    V = jnp.concatenate(
        [uni(ks[4 + j], (HIDDEN, HIDDEN), stdv) for j in range(4)], axis=1
    )  # (64, 256)
    bgate = jnp.concatenate(
        [uni(ks[8 + j], (HIDDEN,), stdv) for j in range(4)], axis=0
    ).reshape(1, 4 * HIDDEN)  # (1, 256)

    fc_bound = 1.0 / math.sqrt(HIDDEN)
    W_fc = uni(ks[12], (HIDDEN, NUM_CLASSES), fc_bound)          # (64, 10), (in, out)
    b_fc = uni(ks[13], (NUM_CLASSES,), fc_bound).reshape(1, -1)  # (1, 10)
    return (U, V, bgate, W_fc, b_fc)


def reference_forward(x_nchw, params):
    """Pure-JAX reference replicating the PyTorch forward for validation."""
    u, v, b, w_fc, b_fc = params
    x = jnp.squeeze(x_nchw, axis=1)  # (B, T, D)
    B, T, D = x.shape
    H = HIDDEN
    h = jnp.zeros((B, H), jnp.float32)
    c = jnp.zeros((B, H), jnp.float32)
    for t in range(T):
        x_t = x[:, t, :]
        gates = x_t @ u + h @ v + b
        i_t = jax.nn.sigmoid(gates[:, 0 * H:1 * H])
        f_t = jax.nn.sigmoid(gates[:, 1 * H:2 * H])
        g_t = jax.nn.sigmoid(gates[:, 2 * H:3 * H])
        o_t = jax.nn.sigmoid(gates[:, 3 * H:4 * H])
        c = f_t * c + i_t * g_t
        h = o_t * jnp.tanh(c)
    return h @ w_fc + b_fc


if __name__ == "__main__":
    key = jax.random.PRNGKey(0)
    k_param, k_x = jax.random.split(key)

    params = init_params(k_param)
    batch = 8
    x = jax.random.normal(k_x, (batch, 1, 28, 28), jnp.float32)

    out = jax.block_until_ready(lstm_forward(x, params))
    ref = reference_forward(x, params)

    assert out.shape == (batch, NUM_CLASSES)
    assert jnp.allclose(out, ref, atol=1e-4, rtol=1e-4), "mismatch vs pure-JAX reference"
    print("KERNEL_OK")
</pallas_src>

<mosaic_0001>
module attributes {stable_mosaic.version = 11 : i64} {
  func.func @lstm_fc_kernel(%arg0: i32, %arg1: memref<28x8x28xf32, #tpu.memory_space<vmem>>, %arg2: memref<28x512xf32, #tpu.memory_space<vmem>>, %arg3: memref<1x512xf32, #tpu.memory_space<vmem>>, %arg4: memref<128x512xf32, #tpu.memory_space<vmem>>, %arg5: memref<128x10xf32, #tpu.memory_space<vmem>>, %arg6: memref<1x10xf32, #tpu.memory_space<vmem>>, %arg7: memref<8x10xf32, #tpu.memory_space<vmem>>, %arg8: memref<28x8x512xf32, #tpu.memory_space<vmem>>) attributes {dimension_semantics = [#tpu.dimension_semantics<parallel>], iteration_bounds = array<i64: 1>, scalar_prefetch = 0 : i64, scratch_operands = 1 : i64, tpu.core_type = #tpu.core_type<tc>, window_params = [{transform_indices = @transform_0, window_bounds = array<i64: 28, 8, 28>}, {pipeline_mode = #tpu.pipeline_mode<synchronous>, transform_indices = @transform_1, window_bounds = array<i64: 28, 512>}, {pipeline_mode = #tpu.pipeline_mode<synchronous>, transform_indices = @transform_2, window_bounds = array<i64: 1, 512>}, {pipeline_mode = #tpu.pipeline_mode<synchronous>, transform_indices = @transform_3, window_bounds = array<i64: 128, 512>}, {pipeline_mode = #tpu.pipeline_mode<synchronous>, transform_indices = @transform_4, window_bounds = array<i64: 128, 10>}, {pipeline_mode = #tpu.pipeline_mode<synchronous>, transform_indices = @transform_5, window_bounds = array<i64: 1, 10>}, {transform_indices = @transform_6, window_bounds = array<i64: 8, 10>}]} {
    %c0 = arith.constant 0 : index
    %c0_0 = arith.constant 0 : index
    %c0_1 = arith.constant 0 : index
    %0 = vector.load %arg1[%c0, %c0_0, %c0_1] : memref<28x8x28xf32, #tpu.memory_space<vmem>>, vector<4x8x28xf32>
    %1 = vector.shape_cast %0 : vector<4x8x28xf32> to vector<32x28xf32>
    %c0_2 = arith.constant 0 : index
    %c0_3 = arith.constant 0 : index
    %2 = vector.load %arg2[%c0_2, %c0_3] : memref<28x512xf32, #tpu.memory_space<vmem>>, vector<28x512xf32>
    %cst = arith.constant dense<0.000000e+00> : vector<32x512xf32>
    %3 = tpu.matmul %1, %2, %cst {dimension_numbers = #tpu.dot_dimension_numbers<[1], [0], [0], [1], [0, 0, 1, 1], [], []>} : vector<32x28xf32>, vector<28x512xf32>, vector<32x512xf32> -> vector<32x512xf32>
    %c0_4 = arith.constant 0 : index
    %c0_5 = arith.constant 0 : index
    %4 = vector.load %arg3[%c0_4, %c0_5] : memref<1x512xf32, #tpu.memory_space<vmem>>, vector<1x512xf32>
    %5 = vector.broadcast %4 : vector<1x512xf32> to vector<32x512xf32>
    %6 = arith.addf %3, %5 : vector<32x512xf32>
    %7 = vector.shape_cast %6 : vector<32x512xf32> to vector<4x8x512xf32>
    %c0_6 = arith.constant 0 : index
    %c0_7 = arith.constant 0 : index
    %c0_8 = arith.constant 0 : index
    %8 = vector.load %arg8[%c0_6, %c0_7, %c0_8] : memref<28x8x512xf32, #tpu.memory_space<vmem>>, vector<4x8x512xf32>
    tpu.vector_store %arg8[%c0_6, %c0_7, %c0_8], %7 {strides = array<i32>} : memref<28x8x512xf32, #tpu.memory_space<vmem>>, vector<4x8x512xf32>,
    %cst_9 = arith.constant 0.000000e+00 : f32
    %9 = vector.broadcast %cst_9 : f32 to vector<8x128xf32>
    %cst_10 = arith.constant 0.000000e+00 : f32
    %10 = vector.broadcast %cst_10 : f32 to vector<8x128xf32>
    %c4 = arith.constant 4 : index
    %c0_11 = arith.constant 0 : index
    %c0_12 = arith.constant 0 : index
    %11 = vector.load %arg1[%c4, %c0_11, %c0_12] : memref<28x8x28xf32, #tpu.memory_space<vmem>>, vector<4x8x28xf32>
    %12 = vector.shape_cast %11 : vector<4x8x28xf32> to vector<32x28xf32>
    %c0_13 = arith.constant 0 : index
    %c0_14 = arith.constant 0 : index
    %13 = vector.load %arg2[%c0_13, %c0_14] : memref<28x512xf32, #tpu.memory_space<vmem>>, vector<28x512xf32>
    %cst_15 = arith.constant dense<0.000000e+00> : vector<32x512xf32>
    %14 = tpu.matmul %12, %13, %cst_15 {dimension_numbers = #tpu.dot_dimension_numbers<[1], [0], [0], [1], [0, 0, 1, 1], [], []>} : vector<32x28xf32>, vector<28x512xf32>, vector<32x512xf32> -> vector<32x512xf32>
    %c0_16 = arith.constant 0 : index
    %c0_17 = arith.constant 0 : index
    %15 = vector.load %arg3[%c0_16, %c0_17] : memref<1x512xf32, #tpu.memory_space<vmem>>, vector<1x512xf32>
    %16 = vector.broadcast %15 : vector<1x512xf32> to vector<32x512xf32>
    %17 = arith.addf %14, %16 : vector<32x512xf32>
    %18 = vector.shape_cast %17 : vector<32x512xf32> to vector<4x8x512xf32>
    %c4_18 = arith.constant 4 : index
    %c0_19 = arith.constant 0 : index
    %c0_20 = arith.constant 0 : index
    %19 = vector.load %arg8[%c4_18, %c0_19, %c0_20] : memref<28x8x512xf32, #tpu.memory_space<vmem>>, vector<4x8x512xf32>
    tpu.vector_store %arg8[%c4_18, %c0_19, %c0_20], %18 {strides = array<i32>} : memref<28x8x512xf32, #tpu.memory_space<vmem>>, vector<4x8x512xf32>,
    %c0_21 = arith.constant 0 : index
    %c0_22 = arith.constant 0 : index
    %c0_23 = arith.constant 0 : index
    %20 = vector.load %arg8[%c0_21, %c0_22, %c0_23] : memref<28x8x512xf32, #tpu.memory_space<vmem>>, vector<1x8x512xf32>
    %21 = vector.shape_cast %20 : vector<1x8x512xf32> to vector<8x512xf32>
    %c0_24 = arith.constant 0 : index
    %c0_25 = arith.constant 0 : index
    %22 = vector.load %arg4[%c0_24, %c0_25] : memref<128x512xf32, #tpu.memory_space<vmem>>, vector<128x512xf32>
    %cst_26 = arith.constant dense<0.000000e+00> : vector<8x512xf32>
    %23 = tpu.matmul %9, %22, %cst_26 {dimension_numbers = #tpu.dot_dimension_numbers<[1], [0], [0], [1], [0, 0, 1, 1], [], []>} : vector<8x128xf32>, vector<128x512xf32>, vector<8x512xf32> -> vector<8x512xf32>
    %24 = arith.addf %21, %23 : vector<8x512xf32>
    %25 = arith.negf %24 : vector<8x512xf32>
    %26 = math.exp %25 : vector<8x512xf32>
    %cst_27 = arith.constant 1.000000e+00 : f32
    %27 = vector.broadcast %cst_27 : f32 to vector<8x512xf32>
    %28 = arith.addf %27, %26 : vector<8x512xf32>
    %29 = arith.divf %27, %28 : vector<8x512xf32>
    %30 = vector.extract_strided_slice %29 {offsets = [0, 0], sizes = [8, 128], strides = [1, 1]} : vector<8x512xf32> to vector<8x128xf32>
    %31 = vector.extract_strided_slice %29 {offsets = [0, 128], sizes = [8, 128], strides = [1, 1]} : vector<8x512xf32> to vector<8x128xf32>
    %32 = vector.extract_strided_slice %29 {offsets = [0, 256], sizes = [8, 128], strides = [1, 1]} : vector<8x512xf32> to vector<8x128xf32>
    %33 = vector.extract_strided_slice %29 {offsets = [0, 384], sizes = [8, 128], strides = [1, 1]} : vector<8x512xf32> to vector<8x128xf32>
    %34 = arith.mulf %31, %10 : vector<8x128xf32>
    %35 = arith.mulf %30, %32 : vector<8x128xf32>
    %36 = arith.addf %34, %35 : vector<8x128xf32>
    %37 = math.tanh %36 : vector<8x128xf32>
    %38 = arith.mulf %33, %37 : vector<8x128xf32>
    %c1 = arith.constant 1 : index
    %c0_28 = arith.constant 0 : index
    %c0_29 = arith.constant 0 : index
    %39 = vector.load %arg8[%c1, %c0_28, %c0_29] : memref<28x8x512xf32, #tpu.memory_space<vmem>>, vector<1x8x512xf32>
    %40 = vector.shape_cast %39 : vector<1x8x512xf32> to vector<8x512xf32>
    %c0_30 = arith.constant 0 : index
    %c0_31 = arith.constant 0 : index
    %41 = vector.load %arg4[%c0_30, %c0_31] : memref<128x512xf32, #tpu.memory_space<vmem>>, vector<128x512xf32>
    %cst_32 = arith.constant dense<0.000000e+00> : vector<8x512xf32>
    %42 = tpu.matmul %38, %41, %cst_32 {dimension_numbers = #tpu.dot_dimension_numbers<[1], [0], [0], [1], [0, 0, 1, 1], [], []>} : vector<8x128xf32>, vector<128x512xf32>, vector<8x512xf32> -> vector<8x512xf32>
    %43 = arith.addf %40, %42 : vector<8x512xf32>
    %44 = arith.negf %43 : vector<8x512xf32>
    %45 = math.exp %44 : vector<8x512xf32>
    %cst_33 = arith.constant 1.000000e+00 : f32
    %46 = vector.broadcast %cst_33 : f32 to vector<8x512xf32>
    %47 = arith.addf %46, %45 : vector<8x512xf32>
    %48 = arith.divf %46, %47 : vector<8x512xf32>
    %49 = vector.extract_strided_slice %48 {offsets = [0, 0], sizes = [8, 128], strides = [1, 1]} : vector<8x512xf32> to vector<8x128xf32>
    %50 = vector.extract_strided_slice %48 {offsets = [0, 128], sizes = [8, 128], strides = [1, 1]} : vector<8x512xf32> to vector<8x128xf32>
    %51 = vector.extract_strided_slice %48 {offsets = [0, 256], sizes = [8, 128], strides = [1, 1]} : vector<8x512xf32> to vector<8x128xf32>
    %52 = vector.extract_strided_slice %48 {offsets = [0, 384], sizes = [8, 128], strides = [1, 1]} : vector<8x512xf32> to vector<8x128xf32>
    %53 = arith.mulf %50, %36 : vector<8x128xf32>
    %54 = arith.mulf %49, %51 : vector<8x128xf32>
    %55 = arith.addf %53, %54 : vector<8x128xf32>
    %56 = math.tanh %55 : vector<8x128xf32>
    %57 = arith.mulf %52, %56 : vector<8x128xf32>
    %c2 = arith.constant 2 : index
    %c0_34 = arith.constant 0 : index
    %c0_35 = arith.constant 0 : index
    %58 = vector.load %arg8[%c2, %c0_34, %c0_35] : memref<28x8x512xf32, #tpu.memory_space<vmem>>, vector<1x8x512xf32>
    %59 = vector.shape_cast %58 : vector<1x8x512xf32> to vector<8x512xf32>
    %c0_36 = arith.constant 0 : index
    %c0_37 = arith.constant 0 : index
    %60 = vector.load %arg4[%c0_36, %c0_37] : memref<128x512xf32, #tpu.memory_space<vmem>>, vector<128x512xf32>
    %cst_38 = arith.constant dense<0.000000e+00> : vector<8x512xf32>
    %61 = tpu.matmul %57, %60, %cst_38 {dimension_numbers = #tpu.dot_dimension_numbers<[1], [0], [0], [1], [0, 0, 1, 1], [], []>} : vector<8x128xf32>, vector<128x512xf32>, vector<8x512xf32> -> vector<8x512xf32>
    %62 = arith.addf %59, %61 : vector<8x512xf32>
    %63 = arith.negf %62 : vector<8x512xf32>
    %64 = math.exp %63 : vector<8x512xf32>
    %cst_39 = arith.constant 1.000000e+00 : f32
    %65 = vector.broadcast %cst_39 : f32 to vector<8x512xf32>
    %66 = arith.addf %65, %64 : vector<8x512xf32>
    %67 = arith.divf %65, %66 : vector<8x512xf32>
    %68 = vector.extract_strided_slice %67 {offsets = [0, 0], sizes = [8, 128], strides = [1, 1]} : vector<8x512xf32> to vector<8x128xf32>
    %69 = vector.extract_strided_slice %67 {offsets = [0, 128], sizes = [8, 128], strides = [1, 1]} : vector<8x512xf32> to vector<8x128xf32>
    %70 = vector.extract_strided_slice %67 {offsets = [0, 256], sizes = [8, 128], strides = [1, 1]} : vector<8x512xf32> to vector<8x128xf32>
    %71 = vector.extract_strided_slice %67 {offsets = [0, 384], sizes = [8, 128], strides = [1, 1]} : vector<8x512xf32> to vector<8x128xf32>
    %72 = arith.mulf %69, %55 : vector<8x128xf32>
    %73 = arith.mulf %68, %70 : vector<8x128xf32>
    %74 = arith.addf %72, %73 : vector<8x128xf32>
    %75 = math.tanh %74 : vector<8x128xf32>
    %76 = arith.mulf %71, %75 : vector<8x128xf32>
    %c3 = arith.constant 3 : index
    %c0_40 = arith.constant 0 : index
    %c0_41 = arith.constant 0 : index
    %77 = vector.load %arg8[%c3, %c0_40, %c0_41] : memref<28x8x512xf32, #tpu.memory_space<vmem>>, vector<1x8x512xf32>
    %78 = vector.shape_cast %77 : vector<1x8x512xf32> to vector<8x512xf32>
    %c0_42 = arith.constant 0 : index
    %c0_43 = arith.constant 0 : index
    %79 = vector.load %arg4[%c0_42, %c0_43] : memref<128x512xf32, #tpu.memory_space<vmem>>, vector<128x512xf32>
    %cst_44 = arith.constant dense<0.000000e+00> : vector<8x512xf32>
    %80 = tpu.matmul %76, %79, %cst_44 {dimension_numbers = #tpu.dot_dimension_numbers<[1], [0], [0], [1], [0, 0, 1, 1], [], []>} : vector<8x128xf32>, vector<128x512xf32>, vector<8x512xf32> -> vector<8x512xf32>
    %81 = arith.addf %78, %80 : vector<8x512xf32>
    %82 = arith.negf %81 : vector<8x512xf32>
    %83 = math.exp %82 : vector<8x512xf32>
    %cst_45 = arith.constant 1.000000e+00 : f32
    %84 = vector.broadcast %cst_45 : f32 to vector<8x512xf32>
    %85 = arith.addf %84, %83 : vector<8x512xf32>
    %86 = arith.divf %84, %85 : vector<8x512xf32>
    %87 = vector.extract_strided_slice %86 {offsets = [0, 0], sizes = [8, 128], strides = [1, 1]} : vector<8x512xf32> to vector<8x128xf32>
    %88 = vector.extract_strided_slice %86 {offsets = [0, 128], sizes = [8, 128], strides = [1, 1]} : vector<8x512xf32> to vector<8x128xf32>
    %89 = vector.extract_strided_slice %86 {offsets = [0, 256], sizes = [8, 128], strides = [1, 1]} : vector<8x512xf32> to vector<8x128xf32>
    %90 = vector.extract_strided_slice %86 {offsets = [0, 384], sizes = [8, 128], strides = [1, 1]} : vector<8x512xf32> to vector<8x128xf32>
    %91 = arith.mulf %88, %74 : vector<8x128xf32>
    %92 = arith.mulf %87, %89 : vector<8x128xf32>
    %93 = arith.addf %91, %92 : vector<8x128xf32>
    %94 = math.tanh %93 : vector<8x128xf32>
    %95 = arith.mulf %90, %94 : vector<8x128xf32>
    %c8 = arith.constant 8 : index
    %c0_46 = arith.constant 0 : index
    %c0_47 = arith.constant 0 : index
    %96 = vector.load %arg1[%c8, %c0_46, %c0_47] : memref<28x8x28xf32, #tpu.memory_space<vmem>>, vector<4x8x28xf32>
    %97 = vector.shape_cast %96 : vector<4x8x28xf32> to vector<32x28xf32>
    %c0_48 = arith.constant 0 : index
    %c0_49 = arith.constant 0 : index
    %98 = vector.load %arg2[%c0_48, %c0_49] : memref<28x512xf32, #tpu.memory_space<vmem>>, vector<28x512xf32>
    %cst_50 = arith.constant dense<0.000000e+00> : vector<32x512xf32>
    %99 = tpu.matmul %97, %98, %cst_50 {dimension_numbers = #tpu.dot_dimension_numbers<[1], [0], [0], [1], [0, 0, 1, 1], [], []>} : vector<32x28xf32>, vector<28x512xf32>, vector<32x512xf32> -> vector<32x512xf32>
    %c0_51 = arith.constant 0 : index
    %c0_52 = arith.constant 0 : index
    %100 = vector.load %arg3[%c0_51, %c0_52] : memref<1x512xf32, #tpu.memory_space<vmem>>, vector<1x512xf32>
    %101 = vector.broadcast %100 : vector<1x512xf32> to vector<32x512xf32>
    %102 = arith.addf %99, %101 : vector<32x512xf32>
    %103 = vector.shape_cast %102 : vector<32x512xf32> to vector<4x8x512xf32>
    %c8_53 = arith.constant 8 : index
    %c0_54 = arith.constant 0 : index
    %c0_55 = arith.constant 0 : index
    %104 = vector.load %arg8[%c8_53, %c0_54, %c0_55] : memref<28x8x512xf32, #tpu.memory_space<vmem>>, vector<4x8x512xf32>
    tpu.vector_store %arg8[%c8_53, %c0_54, %c0_55], %103 {strides = array<i32>} : memref<28x8x512xf32, #tpu.memory_space<vmem>>, vector<4x8x512xf32>,
    %c4_56 = arith.constant 4 : index
    %c0_57 = arith.constant 0 : index
    %c0_58 = arith.constant 0 : index
    %105 = vector.load %arg8[%c4_56, %c0_57, %c0_58] : memref<28x8x512xf32, #tpu.memory_space<vmem>>, vector<1x8x512xf32>
    %106 = vector.shape_cast %105 : vector<1x8x512xf32> to vector<8x512xf32>
    %c0_59 = arith.constant 0 : index
    %c0_60 = arith.constant 0 : index
    %107 = vector.load %arg4[%c0_59, %c0_60] : memref<128x512xf32, #tpu.memory_space<vmem>>, vector<128x512xf32>
    %cst_61 = arith.constant dense<0.000000e+00> : vector<8x512xf32>
    %108 = tpu.matmul %95, %107, %cst_61 {dimension_numbers = #tpu.dot_dimension_numbers<[1], [0], [0], [1], [0, 0, 1, 1], [], []>} : vector<8x128xf32>, vector<128x512xf32>, vector<8x512xf32> -> vector<8x512xf32>
    %109 = arith.addf %106, %108 : vector<8x512xf32>
    %110 = arith.negf %109 : vector<8x512xf32>
    %111 = math.exp %110 : vector<8x512xf32>
    %cst_62 = arith.constant 1.000000e+00 : f32
    %112 = vector.broadcast %cst_62 : f32 to vector<8x512xf32>
    %113 = arith.addf %112, %111 : vector<8x512xf32>
    %114 = arith.divf %112, %113 : vector<8x512xf32>
    %115 = vector.extract_strided_slice %114 {offsets = [0, 0], sizes = [8, 128], strides = [1, 1]} : vector<8x512xf32> to vector<8x128xf32>
    %116 = vector.extract_strided_slice %114 {offsets = [0, 128], sizes = [8, 128], strides = [1, 1]} : vector<8x512xf32> to vector<8x128xf32>
    %117 = vector.extract_strided_slice %114 {offsets = [0, 256], sizes = [8, 128], strides = [1, 1]} : vector<8x512xf32> to vector<8x128xf32>
    %118 = vector.extract_strided_slice %114 {offsets = [0, 384], sizes = [8, 128], strides = [1, 1]} : vector<8x512xf32> to vector<8x128xf32>
    %119 = arith.mulf %116, %93 : vector<8x128xf32>
    %120 = arith.mulf %115, %117 : vector<8x128xf32>
    %121 = arith.addf %119, %120 : vector<8x128xf32>
    %122 = math.tanh %121 : vector<8x128xf32>
    %123 = arith.mulf %118, %122 : vector<8x128xf32>
    %c5 = arith.constant 5 : index
    %c0_63 = arith.constant 0 : index
    %c0_64 = arith.constant 0 : index
    %124 = vector.load %arg8[%c5, %c0_63, %c0_64] : memref<28x8x512xf32, #tpu.memory_space<vmem>>, vector<1x8x512xf32>
    %125 = vector.shape_cast %124 : vector<1x8x512xf32> to vector<8x512xf32>
    %c0_65 = arith.constant 0 : index
    %c0_66 = arith.constant 0 : index
    %126 = vector.load %arg4[%c0_65, %c0_66] : memref<128x512xf32, #tpu.memory_space<vmem>>, vector<128x512xf32>
    %cst_67 = arith.constant dense<0.000000e+00> : vector<8x512xf32>
    %127 = tpu.matmul %123, %126, %cst_67 {dimension_numbers = #tpu.dot_dimension_numbers<[1], [0], [0], [1], [0, 0, 1, 1], [], []>} : vector<8x128xf32>, vector<128x512xf32>, vector<8x512xf32> -> vector<8x512xf32>
    %128 = arith.addf %125, %127 : vector<8x512xf32>
    %129 = arith.negf %128 : vector<8x512xf32>
    %130 = math.exp %129 : vector<8x512xf32>
    %cst_68 = arith.constant 1.000000e+00 : f32
    %131 = vector.broadcast %cst_68 : f32 to vector<8x512xf32>
    %132 = arith.addf %131, %130 : vector<8x512xf32>
    %133 = arith.divf %131, %132 : vector<8x512xf32>
    %134 = vector.extract_strided_slice %133 {offsets = [0, 0], sizes = [8, 128], strides = [1, 1]} : vector<8x512xf32> to vector<8x128xf32>
    %135 = vector.extract_strided_slice %133 {offsets = [0, 128], sizes = [8, 128], strides = [1, 1]} : vector<8x512xf32> to vector<8x128xf32>
    %136 = vector.extract_strided_slice %133 {offsets = [0, 256], sizes = [8, 128], strides = [1, 1]} : vector<8x512xf32> to vector<8x128xf32>
    %137 = vector.extract_strided_slice %133 {offsets = [0, 384], sizes = [8, 128], strides = [1, 1]} : vector<8x512xf32> to vector<8x128xf32>
    %138 = arith.mulf %135, %121 : vector<8x128xf32>
    %139 = arith.mulf %134, %136 : vector<8x128xf32>
    %140 = arith.addf %138, %139 : vector<8x128xf32>
    %141 = math.tanh %140 : vector<8x128xf32>
    %142 = arith.mulf %137, %141 : vector<8x128xf32>
    %c6 = arith.constant 6 : index
    %c0_69 = arith.constant 0 : index
    %c0_70 = arith.constant 0 : index
    %143 = vector.load %arg8[%c6, %c0_69, %c0_70] : memref<28x8x512xf32, #tpu.memory_space<vmem>>, vector<1x8x512xf32>
    %144 = vector.shape_cast %143 : vector<1x8x512xf32> to vector<8x512xf32>
    %c0_71 = arith.constant 0 : index
    %c0_72 = arith.constant 0 : index
    %145 = vector.load %arg4[%c0_71, %c0_72] : memref<128x512xf32, #tpu.memory_space<vmem>>, vector<128x512xf32>
    %cst_73 = arith.constant dense<0.000000e+00> : vector<8x512xf32>
    %146 = tpu.matmul %142, %145, %cst_73 {dimension_numbers = #tpu.dot_dimension_numbers<[1], [0], [0], [1], [0, 0, 1, 1], [], []>} : vector<8x128xf32>, vector<128x512xf32>, vector<8x512xf32> -> vector<8x512xf32>
    %147 = arith.addf %144, %146 : vector<8x512xf32>
    %148 = arith.negf %147 : vector<8x512xf32>
    %149 = math.exp %148 : vector<8x512xf32>
    %cst_74 = arith.constant 1.000000e+00 : f32
    %150 = vector.broadcast %cst_74 : f32 to vector<8x512xf32>
    %151 = arith.addf %150, %149 : vector<8x512xf32>
    %152 = arith.divf %150, %151 : vector<8x512xf32>
    %153 = vector.extract_strided_slice %152 {offsets = [0, 0], sizes = [8, 128], strides = [1, 1]} : vector<8x512xf32> to vector<8x128xf32>
    %154 = vector.extract_strided_slice %152 {offsets = [0, 128], sizes = [8, 128], strides = [1, 1]} : vector<8x512xf32> to vector<8x128xf32>
    %155 = vector.extract_strided_slice %152 {offsets = [0, 256], sizes = [8, 128], strides = [1, 1]} : vector<8x512xf32> to vector<8x128xf32>
    %156 = vector.extract_strided_slice %152 {offsets = [0, 384], sizes = [8, 128], strides = [1, 1]} : vector<8x512xf32> to vector<8x128xf32>
    %157 = arith.mulf %154, %140 : vector<8x128xf32>
    %158 = arith.mulf %153, %155 : vector<8x128xf32>
    %159 = arith.addf %157, %158 : vector<8x128xf32>
    %160 = math.tanh %159 : vector<8x128xf32>
    %161 = arith.mulf %156, %160 : vector<8x128xf32>
    %c7 = arith.constant 7 : index
    %c0_75 = arith.constant 0 : index
    %c0_76 = arith.constant 0 : index
    %162 = vector.load %arg8[%c7, %c0_75, %c0_76] : memref<28x8x512xf32, #tpu.memory_space<vmem>>, vector<1x8x512xf32>
    %163 = vector.shape_cast %162 : vector<1x8x512xf32> to vector<8x512xf32>
    %c0_77 = arith.constant 0 : index
    %c0_78 = arith.constant 0 : index
    %164 = vector.load %arg4[%c0_77, %c0_78] : memref<128x512xf32, #tpu.memory_space<vmem>>, vector<128x512xf32>
    %cst_79 = arith.constant dense<0.000000e+00> : vector<8x512xf32>
    %165 = tpu.matmul %161, %164, %cst_79 {dimension_numbers = #tpu.dot_dimension_numbers<[1], [0], [0], [1], [0, 0, 1, 1], [], []>} : vector<8x128xf32>, vector<128x512xf32>, vector<8x512xf32> -> vector<8x512xf32>
    %166 = arith.addf %163, %165 : vector<8x512xf32>
    %167 = arith.negf %166 : vector<8x512xf32>
    %168 = math.exp %167 : vector<8x512xf32>
    %cst_80 = arith.constant 1.000000e+00 : f32
    %169 = vector.broadcast %cst_80 : f32 to vector<8x512xf32>
    %170 = arith.addf %169, %168 : vector<8x512xf32>
    %171 = arith.divf %169, %170 : vector<8x512xf32>
    %172 = vector.extract_strided_slice %171 {offsets = [0, 0], sizes = [8, 128], strides = [1, 1]} : vector<8x512xf32> to vector<8x128xf32>
    %173 = vector.extract_strided_slice %171 {offsets = [0, 128], sizes = [8, 128], strides = [1, 1]} : vector<8x512xf32> to vector<8x128xf32>
    %174 = vector.extract_strided_slice %171 {offsets = [0, 256], sizes = [8, 128], strides = [1, 1]} : vector<8x512xf32> to vector<8x128xf32>
    %175 = vector.extract_strided_slice %171 {offsets = [0, 384], sizes = [8, 128], strides = [1, 1]} : vector<8x512xf32> to vector<8x128xf32>
    %176 = arith.mulf %173, %159 : vector<8x128xf32>
    %177 = arith.mulf %172, %174 : vector<8x128xf32>
    %178 = arith.addf %176, %177 : vector<8x128xf32>
    %179 = math.tanh %178 : vector<8x128xf32>
    %180 = arith.mulf %175, %179 : vector<8x128xf32>
    %c12 = arith.constant 12 : index
    %c0_81 = arith.constant 0 : index
    %c0_82 = arith.constant 0 : index
    %181 = vector.load %arg1[%c12, %c0_81, %c0_82] : memref<28x8x28xf32, #tpu.memory_space<vmem>>, vector<4x8x28xf32>
    %182 = vector.shape_cast %181 : vector<4x8x28xf32> to vector<32x28xf32>
    %c0_83 = arith.constant 0 : index
    %c0_84 = arith.constant 0 : index
    %183 = vector.load %arg2[%c0_83, %c0_84] : memref<28x512xf32, #tpu.memory_space<vmem>>, vector<28x512xf32>
    %cst_85 = arith.constant dense<0.000000e+00> : vector<32x512xf32>
    %184 = tpu.matmul %182, %183, %cst_85 {dimension_numbers = #tpu.dot_dimension_numbers<[1], [0], [0], [1], [0, 0, 1, 1], [], []>} : vector<32x28xf32>, vector<28x512xf32>, vector<32x512xf32> -> vector<32x512xf32>
    %c0_86 = arith.constant 0 : index
    %c0_87 = arith.constant 0 : index
    %185 = vector.load %arg3[%c0_86, %c0_87] : memref<1x512xf32, #tpu.memory_space<vmem>>, vector<1x512xf32>
    %186 = vector.broadcast %185 : vector<1x512xf32> to vector<32x512xf32>
    %187 = arith.addf %184, %186 : vector<32x512xf32>
    %188 = vector.shape_cast %187 : vector<32x512xf32> to vector<4x8x512xf32>
    %c12_88 = arith.constant 12 : index
    %c0_89 = arith.constant 0 : index
    %c0_90 = arith.constant 0 : index
    %189 = vector.load %arg8[%c12_88, %c0_89, %c0_90] : memref<28x8x512xf32, #tpu.memory_space<vmem>>, vector<4x8x512xf32>
    tpu.vector_store %arg8[%c12_88, %c0_89, %c0_90], %188 {strides = array<i32>} : memref<28x8x512xf32, #tpu.memory_space<vmem>>, vector<4x8x512xf32>,
    %c8_91 = arith.constant 8 : index
    %c0_92 = arith.constant 0 : index
    %c0_93 = arith.constant 0 : index
    %190 = vector.load %arg8[%c8_91, %c0_92, %c0_93] : memref<28x8x512xf32, #tpu.memory_space<vmem>>, vector<1x8x512xf32>
    %191 = vector.shape_cast %190 : vector<1x8x512xf32> to vector<8x512xf32>
    %c0_94 = arith.constant 0 : index
    %c0_95 = arith.constant 0 : index
    %192 = vector.load %arg4[%c0_94, %c0_95] : memref<128x512xf32, #tpu.memory_space<vmem>>, vector<128x512xf32>
    %cst_96 = arith.constant dense<0.000000e+00> : vector<8x512xf32>
    %193 = tpu.matmul %180, %192, %cst_96 {dimension_numbers = #tpu.dot_dimension_numbers<[1], [0], [0], [1], [0, 0, 1, 1], [], []>} : vector<8x128xf32>, vector<128x512xf32>, vector<8x512xf32> -> vector<8x512xf32>
    %194 = arith.addf %191, %193 : vector<8x512xf32>
    %195 = arith.negf %194 : vector<8x512xf32>
    %196 = math.exp %195 : vector<8x512xf32>
    %cst_97 = arith.constant 1.000000e+00 : f32
    %197 = vector.broadcast %cst_97 : f32 to vector<8x512xf32>
    %198 = arith.addf %197, %196 : vector<8x512xf32>
    %199 = arith.divf %197, %198 : vector<8x512xf32>
    %200 = vector.extract_strided_slice %199 {offsets = [0, 0], sizes = [8, 128], strides = [1, 1]} : vector<8x512xf32> to vector<8x128xf32>
    %201 = vector.extract_strided_slice %199 {offsets = [0, 128], sizes = [8, 128], strides = [1, 1]} : vector<8x512xf32> to vector<8x128xf32>
    %202 = vector.extract_strided_slice %199 {offsets = [0, 256], sizes = [8, 128], strides = [1, 1]} : vector<8x512xf32> to vector<8x128xf32>
    %203 = vector.extract_strided_slice %199 {offsets = [0, 384], sizes = [8, 128], strides = [1, 1]} : vector<8x512xf32> to vector<8x128xf32>
    %204 = arith.mulf %201, %178 : vector<8x128xf32>
    %205 = arith.mulf %200, %202 : vector<8x128xf32>
    %206 = arith.addf %204, %205 : vector<8x128xf32>
    %207 = math.tanh %206 : vector<8x128xf32>
    %208 = arith.mulf %203, %207 : vector<8x128xf32>
    %c9 = arith.constant 9 : index
    %c0_98 = arith.constant 0 : index
    %c0_99 = arith.constant 0 : index
    %209 = vector.load %arg8[%c9, %c0_98, %c0_99] : memref<28x8x512xf32, #tpu.memory_space<vmem>>, vector<1x8x512xf32>
    %210 = vector.shape_cast %209 : vector<1x8x512xf32> to vector<8x512xf32>
    %c0_100 = arith.constant 0 : index
    %c0_101 = arith.constant 0 : index
    %211 = vector.load %arg4[%c0_100, %c0_101] : memref<128x512xf32, #tpu.memory_space<vmem>>, vector<128x512xf32>
    %cst_102 = arith.constant dense<0.000000e+00> : vector<8x512xf32>
    %212 = tpu.matmul %208, %211, %cst_102 {dimension_numbers = #tpu.dot_dimension_numbers<[1], [0], [0], [1], [0, 0, 1, 1], [], []>} : vector<8x128xf32>, vector<128x512xf32>, vector<8x512xf32> -> vector<8x512xf32>
    %213 = arith.addf %210, %212 : vector<8x512xf32>
    %214 = arith.negf %213 : vector<8x512xf32>
    %215 = math.exp %214 : vector<8x512xf32>
    %cst_103 = arith.constant 1.000000e+00 : f32
    %216 = vector.broadcast %cst_103 : f32 to vector<8x512xf32>
    %217 = arith.addf %216, %215 : vector<8x512xf32>
    %218 = arith.divf %216, %217 : vector<8x512xf32>
    %219 = vector.extract_strided_slice %218 {offsets = [0, 0], sizes = [8, 128], strides = [1, 1]} : vector<8x512xf32> to vector<8x128xf32>
    %220 = vector.extract_strided_slice %218 {offsets = [0, 128], sizes = [8, 128], strides = [1, 1]} : vector<8x512xf32> to vector<8x128xf32>
    %221 = vector.extract_strided_slice %218 {offsets = [0, 256], sizes = [8, 128], strides = [1, 1]} : vector<8x512xf32> to vector<8x128xf32>
    %222 = vector.extract_strided_slice %218 {offsets = [0, 384], sizes = [8, 128], strides = [1, 1]} : vector<8x512xf32> to vector<8x128xf32>
    %223 = arith.mulf %220, %206 : vector<8x128xf32>
    %224 = arith.mulf %219, %221 : vector<8x128xf32>
    %225 = arith.addf %223, %224 : vector<8x128xf32>
    %226 = math.tanh %225 : vector<8x128xf32>
    %227 = arith.mulf %222, %226 : vector<8x128xf32>
    %c10 = arith.constant 10 : index
    %c0_104 = arith.constant 0 : index
    %c0_105 = arith.constant 0 : index
    %228 = vector.load %arg8[%c10, %c0_104, %c0_105] : memref<28x8x512xf32, #tpu.memory_space<vmem>>, vector<1x8x512xf32>
    %229 = vector.shape_cast %228 : vector<1x8x512xf32> to vector<8x512xf32>
    %c0_106 = arith.constant 0 : index
    %c0_107 = arith.constant 0 : index
    %230 = vector.load %arg4[%c0_106, %c0_107] : memref<128x512xf32, #tpu.memory_space<vmem>>, vector<128x512xf32>
    %cst_108 = arith.constant dense<0.000000e+00> : vector<8x512xf32>
    %231 = tpu.matmul %227, %230, %cst_108 {dimension_numbers = #tpu.dot_dimension_numbers<[1], [0], [0], [1], [0, 0, 1, 1], [], []>} : vector<8x128xf32>, vector<128x512xf32>, vector<8x512xf32> -> vector<8x512xf32>
    %232 = arith.addf %229, %231 : vector<8x512xf32>
    %233 = arith.negf %232 : vector<8x512xf32>
    %234 = math.exp %233 : vector<8x512xf32>
    %cst_109 = arith.constant 1.000000e+00 : f32
    %235 = vector.broadcast %cst_109 : f32 to vector<8x512xf32>
    %236 = arith.addf %235, %234 : vector<8x512xf32>
    %237 = arith.divf %235, %236 : vector<8x512xf32>
    %238 = vector.extract_strided_slice %237 {offsets = [0, 0], sizes = [8, 128], strides = [1, 1]} : vector<8x512xf32> to vector<8x128xf32>
    %239 = vector.extract_strided_slice %237 {offsets = [0, 128], sizes = [8, 128], strides = [1, 1]} : vector<8x512xf32> to vector<8x128xf32>
    %240 = vector.extract_strided_slice %237 {offsets = [0, 256], sizes = [8, 128], strides = [1, 1]} : vector<8x512xf32> to vector<8x128xf32>
    %241 = vector.extract_strided_slice %237 {offsets = [0, 384], sizes = [8, 128], strides = [1, 1]} : vector<8x512xf32> to vector<8x128xf32>
    %242 = arith.mulf %239, %225 : vector<8x128xf32>
    %243 = arith.mulf %238, %240 : vector<8x128xf32>
    %244 = arith.addf %242, %243 : vector<8x128xf32>
    %245 = math.tanh %244 : vector<8x128xf32>
    %246 = arith.mulf %241, %245 : vector<8x128xf32>
    %c11 = arith.constant 11 : index
    %c0_110 = arith.constant 0 : index
    %c0_111 = arith.constant 0 : index
    %247 = vector.load %arg8[%c11, %c0_110, %c0_111] : memref<28x8x512xf32, #tpu.memory_space<vmem>>, vector<1x8x512xf32>
    %248 = vector.shape_cast %247 : vector<1x8x512xf32> to vector<8x512xf32>
    %c0_112 = arith.constant 0 : index
    %c0_113 = arith.constant 0 : index
    %249 = vector.load %arg4[%c0_112, %c0_113] : memref<128x512xf32, #tpu.memory_space<vmem>>, vector<128x512xf32>
    %cst_114 = arith.constant dense<0.000000e+00> : vector<8x512xf32>
    %250 = tpu.matmul %246, %249, %cst_114 {dimension_numbers = #tpu.dot_dimension_numbers<[1], [0], [0], [1], [0, 0, 1, 1], [], []>} : vector<8x128xf32>, vector<128x512xf32>, vector<8x512xf32> -> vector<8x512xf32>
    %251 = arith.addf %248, %250 : vector<8x512xf32>
    %252 = arith.negf %251 : vector<8x512xf32>
    %253 = math.exp %252 : vector<8x512xf32>
    %cst_115 = arith.constant 1.000000e+00 : f32
    %254 = vector.broadcast %cst_115 : f32 to vector<8x512xf32>
    %255 = arith.addf %254, %253 : vector<8x512xf32>
    %256 = arith.divf %254, %255 : vector<8x512xf32>
    %257 = vector.extract_strided_slice %256 {offsets = [0, 0], sizes = [8, 128], strides = [1, 1]} : vector<8x512xf32> to vector<8x128xf32>
    %258 = vector.extract_strided_slice %256 {offsets = [0, 128], sizes = [8, 128], strides = [1, 1]} : vector<8x512xf32> to vector<8x128xf32>
    %259 = vector.extract_strided_slice %256 {offsets = [0, 256], sizes = [8, 128], strides = [1, 1]} : vector<8x512xf32> to vector<8x128xf32>
    %260 = vector.extract_strided_slice %256 {offsets = [0, 384], sizes = [8, 128], strides = [1, 1]} : vector<8x512xf32> to vector<8x128xf32>
    %261 = arith.mulf %258, %244 : vector<8x128xf32>
    %262 = arith.mulf %257, %259 : vector<8x128xf32>
    %263 = arith.addf %261, %262 : vector<8x128xf32>
    %264 = math.tanh %263 : vector<8x128xf32>
    %265 = arith.mulf %260, %264 : vector<8x128xf32>
    %c16 = arith.constant 16 : index
    %c0_116 = arith.constant 0 : index
    %c0_117 = arith.constant 0 : index
    %266 = vector.load %arg1[%c16, %c0_116, %c0_117] : memref<28x8x28xf32, #tpu.memory_space<vmem>>, vector<4x8x28xf32>
    %267 = vector.shape_cast %266 : vector<4x8x28xf32> to vector<32x28xf32>
    %c0_118 = arith.constant 0 : index
    %c0_119 = arith.constant 0 : index
    %268 = vector.load %arg2[%c0_118, %c0_119] : memref<28x512xf32, #tpu.memory_space<vmem>>, vector<28x512xf32>
    %cst_120 = arith.constant dense<0.000000e+00> : vector<32x512xf32>
    %269 = tpu.matmul %267, %268, %cst_120 {dimension_numbers = #tpu.dot_dimension_numbers<[1], [0], [0], [1], [0, 0, 1, 1], [], []>} : vector<32x28xf32>, vector<28x512xf32>, vector<32x512xf32> -> vector<32x512xf32>
    %c0_121 = arith.constant 0 : index
    %c0_122 = arith.constant 0 : index
    %270 = vector.load %arg3[%c0_121, %c0_122] : memref<1x512xf32, #tpu.memory_space<vmem>>, vector<1x512xf32>
    %271 = vector.broadcast %270 : vector<1x512xf32> to vector<32x512xf32>
    %272 = arith.addf %269, %271 : vector<32x512xf32>
    %273 = vector.shape_cast %272 : vector<32x512xf32> to vector<4x8x512xf32>
    %c16_123 = arith.constant 16 : index
    %c0_124 = arith.constant 0 : index
    %c0_125 = arith.constant 0 : index
    %274 = vector.load %arg8[%c16_123, %c0_124, %c0_125] : memref<28x8x512xf32, #tpu.memory_space<vmem>>, vector<4x8x512xf32>
    tpu.vector_store %arg8[%c16_123, %c0_124, %c0_125], %273 {strides = array<i32>} : memref<28x8x512xf32, #tpu.memory_space<vmem>>, vector<4x8x512xf32>,
    %c12_126 = arith.constant 12 : index
    %c0_127 = arith.constant 0 : index
    %c0_128 = arith.constant 0 : index
    %275 = vector.load %arg8[%c12_126, %c0_127, %c0_128] : memref<28x8x512xf32, #tpu.memory_space<vmem>>, vector<1x8x512xf32>
    %276 = vector.shape_cast %275 : vector<1x8x512xf32> to vector<8x512xf32>
    %c0_129 = arith.constant 0 : index
    %c0_130 = arith.constant 0 : index
    %277 = vector.load %arg4[%c0_129, %c0_130] : memref<128x512xf32, #tpu.memory_space<vmem>>, vector<128x512xf32>
    %cst_131 = arith.constant dense<0.000000e+00> : vector<8x512xf32>
    %278 = tpu.matmul %265, %277, %cst_131 {dimension_numbers = #tpu.dot_dimension_numbers<[1], [0], [0], [1], [0, 0, 1, 1], [], []>} : vector<8x128xf32>, vector<128x512xf32>, vector<8x512xf32> -> vector<8x512xf32>
    %279 = arith.addf %276, %278 : vector<8x512xf32>
    %280 = arith.negf %279 : vector<8x512xf32>
    %281 = math.exp %280 : vector<8x512xf32>
    %cst_132 = arith.constant 1.000000e+00 : f32
    %282 = vector.broadcast %cst_132 : f32 to vector<8x512xf32>
    %283 = arith.addf %282, %281 : vector<8x512xf32>
    %284 = arith.divf %282, %283 : vector<8x512xf32>
    %285 = vector.extract_strided_slice %284 {offsets = [0, 0], sizes = [8, 128], strides = [1, 1]} : vector<8x512xf32> to vector<8x128xf32>
    %286 = vector.extract_strided_slice %284 {offsets = [0, 128], sizes = [8, 128], strides = [1, 1]} : vector<8x512xf32> to vector<8x128xf32>
    %287 = vector.extract_strided_slice %284 {offsets = [0, 256], sizes = [8, 128], strides = [1, 1]} : vector<8x512xf32> to vector<8x128xf32>
    %288 = vector.extract_strided_slice %284 {offsets = [0, 384], sizes = [8, 128], strides = [1, 1]} : vector<8x512xf32> to vector<8x128xf32>
    %289 = arith.mulf %286, %263 : vector<8x128xf32>
    %290 = arith.mulf %285, %287 : vector<8x128xf32>
    %291 = arith.addf %289, %290 : vector<8x128xf32>
    %292 = math.tanh %291 : vector<8x128xf32>
    %293 = arith.mulf %288, %292 : vector<8x128xf32>
    %c13 = arith.constant 13 : index
    %c0_133 = arith.constant 0 : index
    %c0_134 = arith.constant 0 : index
    %294 = vector.load %arg8[%c13, %c0_133, %c0_134] : memref<28x8x512xf32, #tpu.memory_space<vmem>>, vector<1x8x512xf32>
    %295 = vector.shape_cast %294 : vector<1x8x512xf32> to vector<8x512xf32>
    %c0_135 = arith.constant 0 : index
    %c0_136 = arith.constant 0 : index
    %296 = vector.load %arg4[%c0_135, %c0_136] : memref<128x512xf32, #tpu.memory_space<vmem>>, vector<128x512xf32>
    %cst_137 = arith.constant dense<0.000000e+00> : vector<8x512xf32>
    %297 = tpu.matmul %293, %296, %cst_137 {dimension_numbers = #tpu.dot_dimension_numbers<[1], [0], [0], [1], [0, 0, 1, 1], [], []>} : vector<8x128xf32>, vector<128x512xf32>, vector<8x512xf32> -> vector<8x512xf32>
    %298 = arith.addf %295, %297 : vector<8x512xf32>
    %299 = arith.negf %298 : vector<8x512xf32>
    %300 = math.exp %299 : vector<8x512xf32>
    %cst_138 = arith.constant 1.000000e+00 : f32
    %301 = vector.broadcast %cst_138 : f32 to vector<8x512xf32>
    %302 = arith.addf %301, %300 : vector<8x512xf32>
    %303 = arith.divf %301, %302 : vector<8x512xf32>
    %304 = vector.extract_strided_slice %303 {offsets = [0, 0], sizes = [8, 128], strides = [1, 1]} : vector<8x512xf32> to vector<8x128xf32>
    %305 = vector.extract_strided_slice %303 {offsets = [0, 128], sizes = [8, 128], strides = [1, 1]} : vector<8x512xf32> to vector<8x128xf32>
    %306 = vector.extract_strided_slice %303 {offsets = [0, 256], sizes = [8, 128], strides = [1, 1]} : vector<8x512xf32> to vector<8x128xf32>
    %307 = vector.extract_strided_slice %303 {offsets = [0, 384], sizes = [8, 128], strides = [1, 1]} : vector<8x512xf32> to vector<8x128xf32>
    %308 = arith.mulf %305, %291 : vector<8x128xf32>
    %309 = arith.mulf %304, %306 : vector<8x128xf32>
    %310 = arith.addf %308, %309 : vector<8x128xf32>
    %311 = math.tanh %310 : vector<8x128xf32>
    %312 = arith.mulf %307, %311 : vector<8x128xf32>
    %c14 = arith.constant 14 : index
    %c0_139 = arith.constant 0 : index
    %c0_140 = arith.constant 0 : index
    %313 = vector.load %arg8[%c14, %c0_139, %c0_140] : memref<28x8x512xf32, #tpu.memory_space<vmem>>, vector<1x8x512xf32>
    %314 = vector.shape_cast %313 : vector<1x8x512xf32> to vector<8x512xf32>
    %c0_141 = arith.constant 0 : index
    %c0_142 = arith.constant 0 : index
    %315 = vector.load %arg4[%c0_141, %c0_142] : memref<128x512xf32, #tpu.memory_space<vmem>>, vector<128x512xf32>
    %cst_143 = arith.constant dense<0.000000e+00> : vector<8x512xf32>
    %316 = tpu.matmul %312, %315, %cst_143 {dimension_numbers = #tpu.dot_dimension_numbers<[1], [0], [0], [1], [0, 0, 1, 1], [], []>} : vector<8x128xf32>, vector<128x512xf32>, vector<8x512xf32> -> vector<8x512xf32>
    %317 = arith.addf %314, %316 : vector<8x512xf32>
    %318 = arith.negf %317 : vector<8x512xf32>
    %319 = math.exp %318 : vector<8x512xf32>
    %cst_144 = arith.constant 1.000000e+00 : f32
    %320 = vector.broadcast %cst_144 : f32 to vector<8x512xf32>
    %321 = arith.addf %320, %319 : vector<8x512xf32>
    %322 = arith.divf %320, %321 : vector<8x512xf32>
    %323 = vector.extract_strided_slice %322 {offsets = [0, 0], sizes = [8, 128], strides = [1, 1]} : vector<8x512xf32> to vector<8x128xf32>
    %324 = vector.extract_strided_slice %322 {offsets = [0, 128], sizes = [8, 128], strides = [1, 1]} : vector<8x512xf32> to vector<8x128xf32>
    %325 = vector.extract_strided_slice %322 {offsets = [0, 256], sizes = [8, 128], strides = [1, 1]} : vector<8x512xf32> to vector<8x128xf32>
    %326 = vector.extract_strided_slice %322 {offsets = [0, 384], sizes = [8, 128], strides = [1, 1]} : vector<8x512xf32> to vector<8x128xf32>
    %327 = arith.mulf %324, %310 : vector<8x128xf32>
    %328 = arith.mulf %323, %325 : vector<8x128xf32>
    %329 = arith.addf %327, %328 : vector<8x128xf32>
    %330 = math.tanh %329 : vector<8x128xf32>
    %331 = arith.mulf %326, %330 : vector<8x128xf32>
    %c15 = arith.constant 15 : index
    %c0_145 = arith.constant 0 : index
    %c0_146 = arith.constant 0 : index
    %332 = vector.load %arg8[%c15, %c0_145, %c0_146] : memref<28x8x512xf32, #tpu.memory_space<vmem>>, vector<1x8x512xf32>
    %333 = vector.shape_cast %332 : vector<1x8x512xf32> to vector<8x512xf32>
    %c0_147 = arith.constant 0 : index
    %c0_148 = arith.constant 0 : index
    %334 = vector.load %arg4[%c0_147, %c0_148] : memref<128x512xf32, #tpu.memory_space<vmem>>, vector<128x512xf32>
    %cst_149 = arith.constant dense<0.000000e+00> : vector<8x512xf32>
    %335 = tpu.matmul %331, %334, %cst_149 {dimension_numbers = #tpu.dot_dimension_numbers<[1], [0], [0], [1], [0, 0, 1, 1], [], []>} : vector<8x128xf32>, vector<128x512xf32>, vector<8x512xf32> -> vector<8x512xf32>
    %336 = arith.addf %333, %335 : vector<8x512xf32>
    %337 = arith.negf %336 : vector<8x512xf32>
    %338 = math.exp %337 : vector<8x512xf32>
    %cst_150 = arith.constant 1.000000e+00 : f32
    %339 = vector.broadcast %cst_150 : f32 to vector<8x512xf32>
    %340 = arith.addf %339, %338 : vector<8x512xf32>
    %341 = arith.divf %339, %340 : vector<8x512xf32>
    %342 = vector.extract_strided_slice %341 {offsets = [0, 0], sizes = [8, 128], strides = [1, 1]} : vector<8x512xf32> to vector<8x128xf32>
    %343 = vector.extract_strided_slice %341 {offsets = [0, 128], sizes = [8, 128], strides = [1, 1]} : vector<8x512xf32> to vector<8x128xf32>
    %344 = vector.extract_strided_slice %341 {offsets = [0, 256], sizes = [8, 128], strides = [1, 1]} : vector<8x512xf32> to vector<8x128xf32>
    %345 = vector.extract_strided_slice %341 {offsets = [0, 384], sizes = [8, 128], strides = [1, 1]} : vector<8x512xf32> to vector<8x128xf32>
    %346 = arith.mulf %343, %329 : vector<8x128xf32>
    %347 = arith.mulf %342, %344 : vector<8x128xf32>
    %348 = arith.addf %346, %347 : vector<8x128xf32>
    %349 = math.tanh %348 : vector<8x128xf32>
    %350 = arith.mulf %345, %349 : vector<8x128xf32>
    %c20 = arith.constant 20 : index
    %c0_151 = arith.constant 0 : index
    %c0_152 = arith.constant 0 : index
    %351 = vector.load %arg1[%c20, %c0_151, %c0_152] : memref<28x8x28xf32, #tpu.memory_space<vmem>>, vector<4x8x28xf32>
    %352 = vector.shape_cast %351 : vector<4x8x28xf32> to vector<32x28xf32>
    %c0_153 = arith.constant 0 : index
    %c0_154 = arith.constant 0 : index
    %353 = vector.load %arg2[%c0_153, %c0_154] : memref<28x512xf32, #tpu.memory_space<vmem>>, vector<28x512xf32>
    %cst_155 = arith.constant dense<0.000000e+00> : vector<32x512xf32>
    %354 = tpu.matmul %352, %353, %cst_155 {dimension_numbers = #tpu.dot_dimension_numbers<[1], [0], [0], [1], [0, 0, 1, 1], [], []>} : vector<32x28xf32>, vector<28x512xf32>, vector<32x512xf32> -> vector<32x512xf32>
    %c0_156 = arith.constant 0 : index
    %c0_157 = arith.constant 0 : index
    %355 = vector.load %arg3[%c0_156, %c0_157] : memref<1x512xf32, #tpu.memory_space<vmem>>, vector<1x512xf32>
    %356 = vector.broadcast %355 : vector<1x512xf32> to vector<32x512xf32>
    %357 = arith.addf %354, %356 : vector<32x512xf32>
    %358 = vector.shape_cast %357 : vector<32x512xf32> to vector<4x8x512xf32>
    %c20_158 = arith.constant 20 : index
    %c0_159 = arith.constant 0 : index
    %c0_160 = arith.constant 0 : index
    %359 = vector.load %arg8[%c20_158, %c0_159, %c0_160] : memref<28x8x512xf32, #tpu.memory_space<vmem>>, vector<4x8x512xf32>
    tpu.vector_store %arg8[%c20_158, %c0_159, %c0_160], %358 {strides = array<i32>} : memref<28x8x512xf32, #tpu.memory_space<vmem>>, vector<4x8x512xf32>,
    %c16_161 = arith.constant 16 : index
    %c0_162 = arith.constant 0 : index
    %c0_163 = arith.constant 0 : index
    %360 = vector.load %arg8[%c16_161, %c0_162, %c0_163] : memref<28x8x512xf32, #tpu.memory_space<vmem>>, vector<1x8x512xf32>
    %361 = vector.shape_cast %360 : vector<1x8x512xf32> to vector<8x512xf32>
    %c0_164 = arith.constant 0 : index
    %c0_165 = arith.constant 0 : index
    %362 = vector.load %arg4[%c0_164, %c0_165] : memref<128x512xf32, #tpu.memory_space<vmem>>, vector<128x512xf32>
    %cst_166 = arith.constant dense<0.000000e+00> : vector<8x512xf32>
    %363 = tpu.matmul %350, %362, %cst_166 {dimension_numbers = #tpu.dot_dimension_numbers<[1], [0], [0], [1], [0, 0, 1, 1], [], []>} : vector<8x128xf32>, vector<128x512xf32>, vector<8x512xf32> -> vector<8x512xf32>
    %364 = arith.addf %361, %363 : vector<8x512xf32>
    %365 = arith.negf %364 : vector<8x512xf32>
    %366 = math.exp %365 : vector<8x512xf32>
    %cst_167 = arith.constant 1.000000e+00 : f32
    %367 = vector.broadcast %cst_167 : f32 to vector<8x512xf32>
    %368 = arith.addf %367, %366 : vector<8x512xf32>
    %369 = arith.divf %367, %368 : vector<8x512xf32>
    %370 = vector.extract_strided_slice %369 {offsets = [0, 0], sizes = [8, 128], strides = [1, 1]} : vector<8x512xf32> to vector<8x128xf32>
    %371 = vector.extract_strided_slice %369 {offsets = [0, 128], sizes = [8, 128], strides = [1, 1]} : vector<8x512xf32> to vector<8x128xf32>
    %372 = vector.extract_strided_slice %369 {offsets = [0, 256], sizes = [8, 128], strides = [1, 1]} : vector<8x512xf32> to vector<8x128xf32>
    %373 = vector.extract_strided_slice %369 {offsets = [0, 384], sizes = [8, 128], strides = [1, 1]} : vector<8x512xf32> to vector<8x128xf32>
    %374 = arith.mulf %371, %348 : vector<8x128xf32>
    %375 = arith.mulf %370, %372 : vector<8x128xf32>
    %376 = arith.addf %374, %375 : vector<8x128xf32>
    %377 = math.tanh %376 : vector<8x128xf32>
    %378 = arith.mulf %373, %377 : vector<8x128xf32>
    %c17 = arith.constant 17 : index
    %c0_168 = arith.constant 0 : index
    %c0_169 = arith.constant 0 : index
    %379 = vector.load %arg8[%c17, %c0_168, %c0_169] : memref<28x8x512xf32, #tpu.memory_space<vmem>>, vector<1x8x512xf32>
    %380 = vector.shape_cast %379 : vector<1x8x512xf32> to vector<8x512xf32>
    %c0_170 = arith.constant 0 : index
    %c0_171 = arith.constant 0 : index
    %381 = vector.load %arg4[%c0_170, %c0_171] : memref<128x512xf32, #tpu.memory_space<vmem>>, vector<128x512xf32>
    %cst_172 = arith.constant dense<0.000000e+00> : vector<8x512xf32>
    %382 = tpu.matmul %378, %381, %cst_172 {dimension_numbers = #tpu.dot_dimension_numbers<[1], [0], [0], [1], [0, 0, 1, 1], [], []>} : vector<8x128xf32>, vector<128x512xf32>, vector<8x512xf32> -> vector<8x512xf32>
    %383 = arith.addf %380, %382 : vector<8x512xf32>
    %384 = arith.negf %383 : vector<8x512xf32>
    %385 = math.exp %384 : vector<8x512xf32>
    %cst_173 = arith.constant 1.000000e+00 : f32
    %386 = vector.broadcast %cst_173 : f32 to vector<8x512xf32>
    %387 = arith.addf %386, %385 : vector<8x512xf32>
    %388 = arith.divf %386, %387 : vector<8x512xf32>
    %389 = vector.extract_strided_slice %388 {offsets = [0, 0], sizes = [8, 128], strides = [1, 1]} : vector<8x512xf32> to vector<8x128xf32>
    %390 = vector.extract_strided_slice %388 {offsets = [0, 128], sizes = [8, 128], strides = [1, 1]} : vector<8x512xf32> to vector<8x128xf32>
    %391 = vector.extract_strided_slice %388 {offsets = [0, 256], sizes = [8, 128], strides = [1, 1]} : vector<8x512xf32> to vector<8x128xf32>
    %392 = vector.extract_strided_slice %388 {offsets = [0, 384], sizes = [8, 128], strides = [1, 1]} : vector<8x512xf32> to vector<8x128xf32>
    %393 = arith.mulf %390, %376 : vector<8x128xf32>
    %394 = arith.mulf %389, %391 : vector<8x128xf32>
    %395 = arith.addf %393, %394 : vector<8x128xf32>
    %396 = math.tanh %395 : vector<8x128xf32>
    %397 = arith.mulf %392, %396 : vector<8x128xf32>
    %c18 = arith.constant 18 : index
    %c0_174 = arith.constant 0 : index
    %c0_175 = arith.constant 0 : index
    %398 = vector.load %arg8[%c18, %c0_174, %c0_175] : memref<28x8x512xf32, #tpu.memory_space<vmem>>, vector<1x8x512xf32>
    %399 = vector.shape_cast %398 : vector<1x8x512xf32> to vector<8x512xf32>
    %c0_176 = arith.constant 0 : index
    %c0_177 = arith.constant 0 : index
    %400 = vector.load %arg4[%c0_176, %c0_177] : memref<128x512xf32, #tpu.memory_space<vmem>>, vector<128x512xf32>
    %cst_178 = arith.constant dense<0.000000e+00> : vector<8x512xf32>
    %401 = tpu.matmul %397, %400, %cst_178 {dimension_numbers = #tpu.dot_dimension_numbers<[1], [0], [0], [1], [0, 0, 1, 1], [], []>} : vector<8x128xf32>, vector<128x512xf32>, vector<8x512xf32> -> vector<8x512xf32>
    %402 = arith.addf %399, %401 : vector<8x512xf32>
    %403 = arith.negf %402 : vector<8x512xf32>
    %404 = math.exp %403 : vector<8x512xf32>
    %cst_179 = arith.constant 1.000000e+00 : f32
    %405 = vector.broadcast %cst_179 : f32 to vector<8x512xf32>
    %406 = arith.addf %405, %404 : vector<8x512xf32>
    %407 = arith.divf %405, %406 : vector<8x512xf32>
    %408 = vector.extract_strided_slice %407 {offsets = [0, 0], sizes = [8, 128], strides = [1, 1]} : vector<8x512xf32> to vector<8x128xf32>
    %409 = vector.extract_strided_slice %407 {offsets = [0, 128], sizes = [8, 128], strides = [1, 1]} : vector<8x512xf32> to vector<8x128xf32>
    %410 = vector.extract_strided_slice %407 {offsets = [0, 256], sizes = [8, 128], strides = [1, 1]} : vector<8x512xf32> to vector<8x128xf32>
    %411 = vector.extract_strided_slice %407 {offsets = [0, 384], sizes = [8, 128], strides = [1, 1]} : vector<8x512xf32> to vector<8x128xf32>
    %412 = arith.mulf %409, %395 : vector<8x128xf32>
    %413 = arith.mulf %408, %410 : vector<8x128xf32>
    %414 = arith.addf %412, %413 : vector<8x128xf32>
    %415 = math.tanh %414 : vector<8x128xf32>
    %416 = arith.mulf %411, %415 : vector<8x128xf32>
    %c19 = arith.constant 19 : index
    %c0_180 = arith.constant 0 : index
    %c0_181 = arith.constant 0 : index
    %417 = vector.load %arg8[%c19, %c0_180, %c0_181] : memref<28x8x512xf32, #tpu.memory_space<vmem>>, vector<1x8x512xf32>
    %418 = vector.shape_cast %417 : vector<1x8x512xf32> to vector<8x512xf32>
    %c0_182 = arith.constant 0 : index
    %c0_183 = arith.constant 0 : index
    %419 = vector.load %arg4[%c0_182, %c0_183] : memref<128x512xf32, #tpu.memory_space<vmem>>, vector<128x512xf32>
    %cst_184 = arith.constant dense<0.000000e+00> : vector<8x512xf32>
    %420 = tpu.matmul %416, %419, %cst_184 {dimension_numbers = #tpu.dot_dimension_numbers<[1], [0], [0], [1], [0, 0, 1, 1], [], []>} : vector<8x128xf32>, vector<128x512xf32>, vector<8x512xf32> -> vector<8x512xf32>
    %421 = arith.addf %418, %420 : vector<8x512xf32>
    %422 = arith.negf %421 : vector<8x512xf32>
    %423 = math.exp %422 : vector<8x512xf32>
    %cst_185 = arith.constant 1.000000e+00 : f32
    %424 = vector.broadcast %cst_185 : f32 to vector<8x512xf32>
    %425 = arith.addf %424, %423 : vector<8x512xf32>
    %426 = arith.divf %424, %425 : vector<8x512xf32>
    %427 = vector.extract_strided_slice %426 {offsets = [0, 0], sizes = [8, 128], strides = [1, 1]} : vector<8x512xf32> to vector<8x128xf32>
    %428 = vector.extract_strided_slice %426 {offsets = [0, 128], sizes = [8, 128], strides = [1, 1]} : vector<8x512xf32> to vector<8x128xf32>
    %429 = vector.extract_strided_slice %426 {offsets = [0, 256], sizes = [8, 128], strides = [1, 1]} : vector<8x512xf32> to vector<8x128xf32>
    %430 = vector.extract_strided_slice %426 {offsets = [0, 384], sizes = [8, 128], strides = [1, 1]} : vector<8x512xf32> to vector<8x128xf32>
    %431 = arith.mulf %428, %414 : vector<8x128xf32>
    %432 = arith.mulf %427, %429 : vector<8x128xf32>
    %433 = arith.addf %431, %432 : vector<8x128xf32>
    %434 = math.tanh %433 : vector<8x128xf32>
    %435 = arith.mulf %430, %434 : vector<8x128xf32>
    %c24 = arith.constant 24 : index
    %c0_186 = arith.constant 0 : index
    %c0_187 = arith.constant 0 : index
    %436 = vector.load %arg1[%c24, %c0_186, %c0_187] : memref<28x8x28xf32, #tpu.memory_space<vmem>>, vector<4x8x28xf32>
    %437 = vector.shape_cast %436 : vector<4x8x28xf32> to vector<32x28xf32>
    %c0_188 = arith.constant 0 : index
    %c0_189 = arith.constant 0 : index
    %438 = vector.load %arg2[%c0_188, %c0_189] : memref<28x512xf32, #tpu.memory_space<vmem>>, vector<28x512xf32>
    %cst_190 = arith.constant dense<0.000000e+00> : vector<32x512xf32>
    %439 = tpu.matmul %437, %438, %cst_190 {dimension_numbers = #tpu.dot_dimension_numbers<[1], [0], [0], [1], [0, 0, 1, 1], [], []>} : vector<32x28xf32>, vector<28x512xf32>, vector<32x512xf32> -> vector<32x512xf32>
    %c0_191 = arith.constant 0 : index
    %c0_192 = arith.constant 0 : index
    %440 = vector.load %arg3[%c0_191, %c0_192] : memref<1x512xf32, #tpu.memory_space<vmem>>, vector<1x512xf32>
    %441 = vector.broadcast %440 : vector<1x512xf32> to vector<32x512xf32>
    %442 = arith.addf %439, %441 : vector<32x512xf32>
    %443 = vector.shape_cast %442 : vector<32x512xf32> to vector<4x8x512xf32>
    %c24_193 = arith.constant 24 : index
    %c0_194 = arith.constant 0 : index
    %c0_195 = arith.constant 0 : index
    %444 = vector.load %arg8[%c24_193, %c0_194, %c0_195] : memref<28x8x512xf32, #tpu.memory_space<vmem>>, vector<4x8x512xf32>
    tpu.vector_store %arg8[%c24_193, %c0_194, %c0_195], %443 {strides = array<i32>} : memref<28x8x512xf32, #tpu.memory_space<vmem>>, vector<4x8x512xf32>,
    %c20_196 = arith.constant 20 : index
    %c0_197 = arith.constant 0 : index
    %c0_198 = arith.constant 0 : index
    %445 = vector.load %arg8[%c20_196, %c0_197, %c0_198] : memref<28x8x512xf32, #tpu.memory_space<vmem>>, vector<1x8x512xf32>
    %446 = vector.shape_cast %445 : vector<1x8x512xf32> to vector<8x512xf32>
    %c0_199 = arith.constant 0 : index
    %c0_200 = arith.constant 0 : index
    %447 = vector.load %arg4[%c0_199, %c0_200] : memref<128x512xf32, #tpu.memory_space<vmem>>, vector<128x512xf32>
    %cst_201 = arith.constant dense<0.000000e+00> : vector<8x512xf32>
    %448 = tpu.matmul %435, %447, %cst_201 {dimension_numbers = #tpu.dot_dimension_numbers<[1], [0], [0], [1], [0, 0, 1, 1], [], []>} : vector<8x128xf32>, vector<128x512xf32>, vector<8x512xf32> -> vector<8x512xf32>
    %449 = arith.addf %446, %448 : vector<8x512xf32>
    %450 = arith.negf %449 : vector<8x512xf32>
    %451 = math.exp %450 : vector<8x512xf32>
    %cst_202 = arith.constant 1.000000e+00 : f32
    %452 = vector.broadcast %cst_202 : f32 to vector<8x512xf32>
    %453 = arith.addf %452, %451 : vector<8x512xf32>
    %454 = arith.divf %452, %453 : vector<8x512xf32>
    %455 = vector.extract_strided_slice %454 {offsets = [0, 0], sizes = [8, 128], strides = [1, 1]} : vector<8x512xf32> to vector<8x128xf32>
    %456 = vector.extract_strided_slice %454 {offsets = [0, 128], sizes = [8, 128], strides = [1, 1]} : vector<8x512xf32> to vector<8x128xf32>
    %457 = vector.extract_strided_slice %454 {offsets = [0, 256], sizes = [8, 128], strides = [1, 1]} : vector<8x512xf32> to vector<8x128xf32>
    %458 = vector.extract_strided_slice %454 {offsets = [0, 384], sizes = [8, 128], strides = [1, 1]} : vector<8x512xf32> to vector<8x128xf32>
    %459 = arith.mulf %456, %433 : vector<8x128xf32>
    %460 = arith.mulf %455, %457 : vector<8x128xf32>
    %461 = arith.addf %459, %460 : vector<8x128xf32>
    %462 = math.tanh %461 : vector<8x128xf32>
    %463 = arith.mulf %458, %462 : vector<8x128xf32>
    %c21 = arith.constant 21 : index
    %c0_203 = arith.constant 0 : index
    %c0_204 = arith.constant 0 : index
    %464 = vector.load %arg8[%c21, %c0_203, %c0_204] : memref<28x8x512xf32, #tpu.memory_space<vmem>>, vector<1x8x512xf32>
    %465 = vector.shape_cast %464 : vector<1x8x512xf32> to vector<8x512xf32>
    %c0_205 = arith.constant 0 : index
    %c0_206 = arith.constant 0 : index
    %466 = vector.load %arg4[%c0_205, %c0_206] : memref<128x512xf32, #tpu.memory_space<vmem>>, vector<128x512xf32>
    %cst_207 = arith.constant dense<0.000000e+00> : vector<8x512xf32>
    %467 = tpu.matmul %463, %466, %cst_207 {dimension_numbers = #tpu.dot_dimension_numbers<[1], [0], [0], [1], [0, 0, 1, 1], [], []>} : vector<8x128xf32>, vector<128x512xf32>, vector<8x512xf32> -> vector<8x512xf32>
    %468 = arith.addf %465, %467 : vector<8x512xf32>
    %469 = arith.negf %468 : vector<8x512xf32>
    %470 = math.exp %469 : vector<8x512xf32>
    %cst_208 = arith.constant 1.000000e+00 : f32
    %471 = vector.broadcast %cst_208 : f32 to vector<8x512xf32>
    %472 = arith.addf %471, %470 : vector<8x512xf32>
    %473 = arith.divf %471, %472 : vector<8x512xf32>
    %474 = vector.extract_strided_slice %473 {offsets = [0, 0], sizes = [8, 128], strides = [1, 1]} : vector<8x512xf32> to vector<8x128xf32>
    %475 = vector.extract_strided_slice %473 {offsets = [0, 128], sizes = [8, 128], strides = [1, 1]} : vector<8x512xf32> to vector<8x128xf32>
    %476 = vector.extract_strided_slice %473 {offsets = [0, 256], sizes = [8, 128], strides = [1, 1]} : vector<8x512xf32> to vector<8x128xf32>
    %477 = vector.extract_strided_slice %473 {offsets = [0, 384], sizes = [8, 128], strides = [1, 1]} : vector<8x512xf32> to vector<8x128xf32>
    %478 = arith.mulf %475, %461 : vector<8x128xf32>
    %479 = arith.mulf %474, %476 : vector<8x128xf32>
    %480 = arith.addf %478, %479 : vector<8x128xf32>
    %481 = math.tanh %480 : vector<8x128xf32>
    %482 = arith.mulf %477, %481 : vector<8x128xf32>
    %c22 = arith.constant 22 : index
    %c0_209 = arith.constant 0 : index
    %c0_210 = arith.constant 0 : index
    %483 = vector.load %arg8[%c22, %c0_209, %c0_210] : memref<28x8x512xf32, #tpu.memory_space<vmem>>, vector<1x8x512xf32>
    %484 = vector.shape_cast %483 : vector<1x8x512xf32> to vector<8x512xf32>
    %c0_211 = arith.constant 0 : index
    %c0_212 = arith.constant 0 : index
    %485 = vector.load %arg4[%c0_211, %c0_212] : memref<128x512xf32, #tpu.memory_space<vmem>>, vector<128x512xf32>
    %cst_213 = arith.constant dense<0.000000e+00> : vector<8x512xf32>
    %486 = tpu.matmul %482, %485, %cst_213 {dimension_numbers = #tpu.dot_dimension_numbers<[1], [0], [0], [1], [0, 0, 1, 1], [], []>} : vector<8x128xf32>, vector<128x512xf32>, vector<8x512xf32> -> vector<8x512xf32>
    %487 = arith.addf %484, %486 : vector<8x512xf32>
    %488 = arith.negf %487 : vector<8x512xf32>
    %489 = math.exp %488 : vector<8x512xf32>
    %cst_214 = arith.constant 1.000000e+00 : f32
    %490 = vector.broadcast %cst_214 : f32 to vector<8x512xf32>
    %491 = arith.addf %490, %489 : vector<8x512xf32>
    %492 = arith.divf %490, %491 : vector<8x512xf32>
    %493 = vector.extract_strided_slice %492 {offsets = [0, 0], sizes = [8, 128], strides = [1, 1]} : vector<8x512xf32> to vector<8x128xf32>
    %494 = vector.extract_strided_slice %492 {offsets = [0, 128], sizes = [8, 128], strides = [1, 1]} : vector<8x512xf32> to vector<8x128xf32>
    %495 = vector.extract_strided_slice %492 {offsets = [0, 256], sizes = [8, 128], strides = [1, 1]} : vector<8x512xf32> to vector<8x128xf32>
    %496 = vector.extract_strided_slice %492 {offsets = [0, 384], sizes = [8, 128], strides = [1, 1]} : vector<8x512xf32> to vector<8x128xf32>
    %497 = arith.mulf %494, %480 : vector<8x128xf32>
    %498 = arith.mulf %493, %495 : vector<8x128xf32>
    %499 = arith.addf %497, %498 : vector<8x128xf32>
    %500 = math.tanh %499 : vector<8x128xf32>
    %501 = arith.mulf %496, %500 : vector<8x128xf32>
    %c23 = arith.constant 23 : index
    %c0_215 = arith.constant 0 : index
    %c0_216 = arith.constant 0 : index
    %502 = vector.load %arg8[%c23, %c0_215, %c0_216] : memref<28x8x512xf32, #tpu.memory_space<vmem>>, vector<1x8x512xf32>
    %503 = vector.shape_cast %502 : vector<1x8x512xf32> to vector<8x512xf32>
    %c0_217 = arith.constant 0 : index
    %c0_218 = arith.constant 0 : index
    %504 = vector.load %arg4[%c0_217, %c0_218] : memref<128x512xf32, #tpu.memory_space<vmem>>, vector<128x512xf32>
    %cst_219 = arith.constant dense<0.000000e+00> : vector<8x512xf32>
    %505 = tpu.matmul %501, %504, %cst_219 {dimension_numbers = #tpu.dot_dimension_numbers<[1], [0], [0], [1], [0, 0, 1, 1], [], []>} : vector<8x128xf32>, vector<128x512xf32>, vector<8x512xf32> -> vector<8x512xf32>
    %506 = arith.addf %503, %505 : vector<8x512xf32>
    %507 = arith.negf %506 : vector<8x512xf32>
    %508 = math.exp %507 : vector<8x512xf32>
    %cst_220 = arith.constant 1.000000e+00 : f32
    %509 = vector.broadcast %cst_220 : f32 to vector<8x512xf32>
    %510 = arith.addf %509, %508 : vector<8x512xf32>
    %511 = arith.divf %509, %510 : vector<8x512xf32>
    %512 = vector.extract_strided_slice %511 {offsets = [0, 0], sizes = [8, 128], strides = [1, 1]} : vector<8x512xf32> to vector<8x128xf32>
    %513 = vector.extract_strided_slice %511 {offsets = [0, 128], sizes = [8, 128], strides = [1, 1]} : vector<8x512xf32> to vector<8x128xf32>
    %514 = vector.extract_strided_slice %511 {offsets = [0, 256], sizes = [8, 128], strides = [1, 1]} : vector<8x512xf32> to vector<8x128xf32>
    %515 = vector.extract_strided_slice %511 {offsets = [0, 384], sizes = [8, 128], strides = [1, 1]} : vector<8x512xf32> to vector<8x128xf32>
    %516 = arith.mulf %513, %499 : vector<8x128xf32>
    %517 = arith.mulf %512, %514 : vector<8x128xf32>
    %518 = arith.addf %516, %517 : vector<8x128xf32>
    %519 = math.tanh %518 : vector<8x128xf32>
    %520 = arith.mulf %515, %519 : vector<8x128xf32>
    %c24_221 = arith.constant 24 : index
    %c0_222 = arith.constant 0 : index
    %c0_223 = arith.constant 0 : index
    %521 = vector.load %arg8[%c24_221, %c0_222, %c0_223] : memref<28x8x512xf32, #tpu.memory_space<vmem>>, vector<1x8x512xf32>
    %522 = vector.shape_cast %521 : vector<1x8x512xf32> to vector<8x512xf32>
    %c0_224 = arith.constant 0 : index
    %c0_225 = arith.constant 0 : index
    %523 = vector.load %arg4[%c0_224, %c0_225] : memref<128x512xf32, #tpu.memory_space<vmem>>, vector<128x512xf32>
    %cst_226 = arith.constant dense<0.000000e+00> : vector<8x512xf32>
    %524 = tpu.matmul %520, %523, %cst_226 {dimension_numbers = #tpu.dot_dimension_numbers<[1], [0], [0], [1], [0, 0, 1, 1], [], []>} : vector<8x128xf32>, vector<128x512xf32>, vector<8x512xf32> -> vector<8x512xf32>
    %525 = arith.addf %522, %524 : vector<8x512xf32>
    %526 = arith.negf %525 : vector<8x512xf32>
    %527 = math.exp %526 : vector<8x512xf32>
    %cst_227 = arith.constant 1.000000e+00 : f32
    %528 = vector.broadcast %cst_227 : f32 to vector<8x512xf32>
    %529 = arith.addf %528, %527 : vector<8x512xf32>
    %530 = arith.divf %528, %529 : vector<8x512xf32>
    %531 = vector.extract_strided_slice %530 {offsets = [0, 0], sizes = [8, 128], strides = [1, 1]} : vector<8x512xf32> to vector<8x128xf32>
    %532 = vector.extract_strided_slice %530 {offsets = [0, 128], sizes = [8, 128], strides = [1, 1]} : vector<8x512xf32> to vector<8x128xf32>
    %533 = vector.extract_strided_slice %530 {offsets = [0, 256], sizes = [8, 128], strides = [1, 1]} : vector<8x512xf32> to vector<8x128xf32>
    %534 = vector.extract_strided_slice %530 {offsets = [0, 384], sizes = [8, 128], strides = [1, 1]} : vector<8x512xf32> to vector<8x128xf32>
    %535 = arith.mulf %532, %518 : vector<8x128xf32>
    %536 = arith.mulf %531, %533 : vector<8x128xf32>
    %537 = arith.addf %535, %536 : vector<8x128xf32>
    %538 = math.tanh %537 : vector<8x128xf32>
    %539 = arith.mulf %534, %538 : vector<8x128xf32>
    %c25 = arith.constant 25 : index
    %c0_228 = arith.constant 0 : index
    %c0_229 = arith.constant 0 : index
    %540 = vector.load %arg8[%c25, %c0_228, %c0_229] : memref<28x8x512xf32, #tpu.memory_space<vmem>>, vector<1x8x512xf32>
    %541 = vector.shape_cast %540 : vector<1x8x512xf32> to vector<8x512xf32>
    %c0_230 = arith.constant 0 : index
    %c0_231 = arith.constant 0 : index
    %542 = vector.load %arg4[%c0_230, %c0_231] : memref<128x512xf32, #tpu.memory_space<vmem>>, vector<128x512xf32>
    %cst_232 = arith.constant dense<0.000000e+00> : vector<8x512xf32>
    %543 = tpu.matmul %539, %542, %cst_232 {dimension_numbers = #tpu.dot_dimension_numbers<[1], [0], [0], [1], [0, 0, 1, 1], [], []>} : vector<8x128xf32>, vector<128x512xf32>, vector<8x512xf32> -> vector<8x512xf32>
    %544 = arith.addf %541, %543 : vector<8x512xf32>
    %545 = arith.negf %544 : vector<8x512xf32>
    %546 = math.exp %545 : vector<8x512xf32>
    %cst_233 = arith.constant 1.000000e+00 : f32
    %547 = vector.broadcast %cst_233 : f32 to vector<8x512xf32>
    %548 = arith.addf %547, %546 : vector<8x512xf32>
    %549 = arith.divf %547, %548 : vector<8x512xf32>
    %550 = vector.extract_strided_slice %549 {offsets = [0, 0], sizes = [8, 128], strides = [1, 1]} : vector<8x512xf32> to vector<8x128xf32>
    %551 = vector.extract_strided_slice %549 {offsets = [0, 128], sizes = [8, 128], strides = [1, 1]} : vector<8x512xf32> to vector<8x128xf32>
    %552 = vector.extract_strided_slice %549 {offsets = [0, 256], sizes = [8, 128], strides = [1, 1]} : vector<8x512xf32> to vector<8x128xf32>
    %553 = vector.extract_strided_slice %549 {offsets = [0, 384], sizes = [8, 128], strides = [1, 1]} : vector<8x512xf32> to vector<8x128xf32>
    %554 = arith.mulf %551, %537 : vector<8x128xf32>
    %555 = arith.mulf %550, %552 : vector<8x128xf32>
    %556 = arith.addf %554, %555 : vector<8x128xf32>
    %557 = math.tanh %556 : vector<8x128xf32>
    %558 = arith.mulf %553, %557 : vector<8x128xf32>
    %c26 = arith.constant 26 : index
    %c0_234 = arith.constant 0 : index
    %c0_235 = arith.constant 0 : index
    %559 = vector.load %arg8[%c26, %c0_234, %c0_235] : memref<28x8x512xf32, #tpu.memory_space<vmem>>, vector<1x8x512xf32>
    %560 = vector.shape_cast %559 : vector<1x8x512xf32> to vector<8x512xf32>
    %c0_236 = arith.constant 0 : index
    %c0_237 = arith.constant 0 : index
    %561 = vector.load %arg4[%c0_236, %c0_237] : memref<128x512xf32, #tpu.memory_space<vmem>>, vector<128x512xf32>
    %cst_238 = arith.constant dense<0.000000e+00> : vector<8x512xf32>
    %562 = tpu.matmul %558, %561, %cst_238 {dimension_numbers = #tpu.dot_dimension_numbers<[1], [0], [0], [1], [0, 0, 1, 1], [], []>} : vector<8x128xf32>, vector<128x512xf32>, vector<8x512xf32> -> vector<8x512xf32>
    %563 = arith.addf %560, %562 : vector<8x512xf32>
    %564 = arith.negf %563 : vector<8x512xf32>
    %565 = math.exp %564 : vector<8x512xf32>
    %cst_239 = arith.constant 1.000000e+00 : f32
    %566 = vector.broadcast %cst_239 : f32 to vector<8x512xf32>
    %567 = arith.addf %566, %565 : vector<8x512xf32>
    %568 = arith.divf %566, %567 : vector<8x512xf32>
    %569 = vector.extract_strided_slice %568 {offsets = [0, 0], sizes = [8, 128], strides = [1, 1]} : vector<8x512xf32> to vector<8x128xf32>
    %570 = vector.extract_strided_slice %568 {offsets = [0, 128], sizes = [8, 128], strides = [1, 1]} : vector<8x512xf32> to vector<8x128xf32>
    %571 = vector.extract_strided_slice %568 {offsets = [0, 256], sizes = [8, 128], strides = [1, 1]} : vector<8x512xf32> to vector<8x128xf32>
    %572 = vector.extract_strided_slice %568 {offsets = [0, 384], sizes = [8, 128], strides = [1, 1]} : vector<8x512xf32> to vector<8x128xf32>
    %573 = arith.mulf %570, %556 : vector<8x128xf32>
    %574 = arith.mulf %569, %571 : vector<8x128xf32>
    %575 = arith.addf %573, %574 : vector<8x128xf32>
    %576 = math.tanh %575 : vector<8x128xf32>
    %577 = arith.mulf %572, %576 : vector<8x128xf32>
    %c27 = arith.constant 27 : index
    %c0_240 = arith.constant 0 : index
    %c0_241 = arith.constant 0 : index
    %578 = vector.load %arg8[%c27, %c0_240, %c0_241] : memref<28x8x512xf32, #tpu.memory_space<vmem>>, vector<1x8x512xf32>
    %579 = vector.shape_cast %578 : vector<1x8x512xf32> to vector<8x512xf32>
    %c0_242 = arith.constant 0 : index
    %c0_243 = arith.constant 0 : index
    %580 = vector.load %arg4[%c0_242, %c0_243] : memref<128x512xf32, #tpu.memory_space<vmem>>, vector<128x512xf32>
    %cst_244 = arith.constant dense<0.000000e+00> : vector<8x512xf32>
    %581 = tpu.matmul %577, %580, %cst_244 {dimension_numbers = #tpu.dot_dimension_numbers<[1], [0], [0], [1], [0, 0, 1, 1], [], []>} : vector<8x128xf32>, vector<128x512xf32>, vector<8x512xf32> -> vector<8x512xf32>
    %582 = arith.addf %579, %581 : vector<8x512xf32>
    %583 = arith.negf %582 : vector<8x512xf32>
    %584 = math.exp %583 : vector<8x512xf32>
    %cst_245 = arith.constant 1.000000e+00 : f32
    %585 = vector.broadcast %cst_245 : f32 to vector<8x512xf32>
    %586 = arith.addf %585, %584 : vector<8x512xf32>
    %587 = arith.divf %585, %586 : vector<8x512xf32>
    %588 = vector.extract_strided_slice %587 {offsets = [0, 0], sizes = [8, 128], strides = [1, 1]} : vector<8x512xf32> to vector<8x128xf32>
    %589 = vector.extract_strided_slice %587 {offsets = [0, 128], sizes = [8, 128], strides = [1, 1]} : vector<8x512xf32> to vector<8x128xf32>
    %590 = vector.extract_strided_slice %587 {offsets = [0, 256], sizes = [8, 128], strides = [1, 1]} : vector<8x512xf32> to vector<8x128xf32>
    %591 = vector.extract_strided_slice %587 {offsets = [0, 384], sizes = [8, 128], strides = [1, 1]} : vector<8x512xf32> to vector<8x128xf32>
    %592 = arith.mulf %589, %575 : vector<8x128xf32>
    %593 = arith.mulf %588, %590 : vector<8x128xf32>
    %594 = arith.addf %592, %593 : vector<8x128xf32>
    %595 = math.tanh %594 : vector<8x128xf32>
    %596 = arith.mulf %591, %595 : vector<8x128xf32>
    %c0_246 = arith.constant 0 : index
    %c0_247 = arith.constant 0 : index
    %597 = vector.load %arg5[%c0_246, %c0_247] : memref<128x10xf32, #tpu.memory_space<vmem>>, vector<128x10xf32>
    %cst_248 = arith.constant dense<0.000000e+00> : vector<8x10xf32>
    %598 = tpu.matmul %596, %597, %cst_248 {dimension_numbers = #tpu.dot_dimension_numbers<[1], [0], [0], [1], [0, 0, 1, 1], [], []>} : vector<8x128xf32>, vector<128x10xf32>, vector<8x10xf32> -> vector<8x10xf32>
    %c0_249 = arith.constant 0 : index
    %c0_250 = arith.constant 0 : index
    %599 = vector.load %arg6[%c0_249, %c0_250] : memref<1x10xf32, #tpu.memory_space<vmem>>, vector<1x10xf32>
    %600 = vector.broadcast %599 : vector<1x10xf32> to vector<8x10xf32>
    %601 = arith.addf %598, %600 : vector<8x10xf32>
    %c0_251 = arith.constant 0 : index
    %c0_252 = arith.constant 0 : index
    %602 = vector.load %arg7[%c0_251, %c0_252] : memref<8x10xf32, #tpu.memory_space<vmem>>, vector<8x10xf32>
    tpu.vector_store %arg7[%c0_251, %c0_252], %601 {strides = array<i32>} : memref<8x10xf32, #tpu.memory_space<vmem>>, vector<8x10xf32>,
    return
  }
  func.func @transform_0(%arg0: i32) -> (i32, i32, i32) {
    %c0_i32 = arith.constant 0 : i32
    %c0_i32_0 = arith.constant 0 : i32
    %c0_i32_1 = arith.constant 0 : i32
    return %c0_i32, %arg0, %c0_i32_0 : i32, i32, i32
  }
  func.func @transform_1(%arg0: i32) -> (i32, i32) {
    %c0_i32 = arith.constant 0 : i32
    %c0_i32_0 = arith.constant 0 : i32
    %c0_i32_1 = arith.constant 0 : i32
    return %c0_i32, %c0_i32_0 : i32, i32
  }
  func.func @transform_2(%arg0: i32) -> (i32, i32) {
    %c0_i32 = arith.constant 0 : i32
    %c0_i32_0 = arith.constant 0 : i32
    %c0_i32_1 = arith.constant 0 : i32
    return %c0_i32, %c0_i32_0 : i32, i32
  }
  func.func @transform_3(%arg0: i32) -> (i32, i32) {
    %c0_i32 = arith.constant 0 : i32
    %c0_i32_0 = arith.constant 0 : i32
    %c0_i32_1 = arith.constant 0 : i32
    return %c0_i32, %c0_i32_0 : i32, i32
  }
  func.func @transform_4(%arg0: i32) -> (i32, i32) {
    %c0_i32 = arith.constant 0 : i32
    %c0_i32_0 = arith.constant 0 : i32
    %c0_i32_1 = arith.constant 0 : i32
    return %c0_i32, %c0_i32_0 : i32, i32
  }
  func.func @transform_5(%arg0: i32) -> (i32, i32) {
    %c0_i32 = arith.constant 0 : i32
    %c0_i32_0 = arith.constant 0 : i32
    %c0_i32_1 = arith.constant 0 : i32
    return %c0_i32, %c0_i32_0 : i32, i32
  }
  func.func @transform_6(%arg0: i32) -> (i32, i32) {
    %c0_i32 = arith.constant 0 : i32
    %c0_i32_0 = arith.constant 0 : i32
    return %arg0, %c0_i32 : i32, i32
  }
}

</mosaic_0001>

<bundles_post_ra>
// kernel: lstm_forward.1
= control target key start
LH: loop header
LB: loop body
LE: loop exit
PB: predicated region body
PF: predicated region fallthrough
CT: control target
= control target key end

     0   :  { %vm67_vm0 = vcmask 1043456   ;;  %vm54_vm1 = vcmask 228352   ;;  %s13123_s0 = inlined_call_operand.vmem [shape: f32[28,8,28], index: 0, kind: input, shape index: {}]   ;;  %s13124_s1 = inlined_call_operand.vmem [shape: f32[28,512], index: 1, kind: input, shape index: {}]   ;;  %s13125_s2 = inlined_call_operand.vmem [shape: f32[1,512], index: 2, kind: input, shape index: {}]   ;;  %s13126_s3 = inlined_call_operand.vmem [shape: f32[128,512], index: 3, kind: input, shape index: {}]   ;;  %s13127_s4 = inlined_call_operand.vmem [shape: f32[128,10], index: 4, kind: input, shape index: {}]   ;;  %s13128_s5 = inlined_call_operand.vmem [shape: f32[1,10], index: 5, kind: input, shape index: {}]   ;;  %s13129_s6 = inlined_call_operand.hbm [shape: f32[8,10], index: 6, kind: output, shape index: {}]  }
   0x1   :  { %v40_v0 = vld [vmem:[%s13124_s1 + $0x60] sm:$0xf]  ;;  %v7479_v5 = vld [vmem:[%s13123_s0 + $0x8] sm:$0xff]  ;;  %v7484_v6 = vld [vmem:[%s13123_s0 + $0x10] sm:$0xff] }
   0x2   :  { %v36_v1 = vld [vmem:[%s13124_s1 + $0x40] sm:$0xff]  ;;  %6535 = vmatpush.msk.msra.mxu0 %vm67_vm0, %v40_v0  ;;  %6811 = vmatpush.msk.msra.mxu1 %vm67_vm0, %v40_v0  ;;  %v7489_v7 = vld [vmem:[%s13123_s0 + $0x18] sm:$0xff]  ;;  %v42_v8 = vld [vmem:[%s13124_s1 + $0x70] sm:$0xf] }
   0x3   :  { %6812 = vmatpush.msk.msra.mxu2 %vm67_vm0, %v40_v0  ;;  %6813 = vmatpush.msk.msra.mxu3 %vm67_vm0, %v40_v0  ;;  %v32_v2 = vld [vmem:[%s13124_s1 + $0x20] sm:$0xff]  ;;  %v41_v9 = vld [vmem:[%s13124_s1 + $0x68] sm:$0xf]  ;;  %v43_v10 = vld [vmem:[%s13124_s1 + $0x78] sm:$0xf] }
   0x4   :  { %93 = vmatpush.msra.mxu0 %v36_v1  ;;  %6814 = vmatpush.msra.mxu1 %v36_v1  ;;  %v28_v3 = vld [vmem:[%s13124_s1] sm:$0xff]  ;;  %v38_v12 = vld [vmem:[%s13124_s1 + $0x50] sm:$0xff]  ;;  %v37_v13 = vld [vmem:[%s13124_s1 + $0x48] sm:$0xff] }
   0x5   :  { %6815 = vmatpush.msra.mxu2 %v36_v1  ;;  %6816 = vmatpush.msra.mxu3 %v36_v1  ;;  %v24_v4 = vld [vmem:[%s13123_s0] sm:$0xff]  ;;  %v39_v14 = vld [vmem:[%s13124_s1 + $0x58] sm:$0xff]  ;;  %v34_v15 = vld [vmem:[%s13124_s1 + $0x30] sm:$0xff] }
   0x6   :  { %94 = vmatpush.msra.mxu0 %v32_v2  ;;  %6817 = vmatpush.msra.mxu1 %v32_v2  ;;  %v229_v11 = vld [vmem:[%s13124_s1 + $0x60] sm:$0xf]  ;;  %v33_v16 = vld [vmem:[%s13124_s1 + $0x28] sm:$0xff]  ;;  %v35_v17 = vld [vmem:[%s13124_s1 + $0x38] sm:$0xff] }
   0x7   :  { %6818 = vmatpush.msra.mxu2 %v32_v2  ;;  %6819 = vmatpush.msra.mxu3 %v32_v2  ;;  %v30_v18 = vld [vmem:[%s13124_s1 + $0x10] sm:$0xff]  ;;  %v29_v19 = vld [vmem:[%s13124_s1 + $0x8] sm:$0xff] }
   0x8   :  { %95 = vmatpush.msra.mxu0 %v28_v3  ;;  %6820 = vmatpush.msra.mxu1 %v28_v3 }
   0x9   :  { %6821 = vmatpush.msra.mxu2 %v28_v3  ;;  %6822 = vmatpush.msra.mxu3 %v28_v3 }
   0xa   :  { %6536 = vmatmul.msk.f32.vlgmr.msra.gmra.mxu0 %vm54_vm1, %v24_v4  ;;  %6537 = vmatmul.msk.f32.vlgmr.msra.gmra.mxu1 %vm54_vm1, %v7479_v5 }
   0xb   :  { %6538 = vmatmul.msk.f32.vlgmr.msra.gmra.mxu2 %vm54_vm1, %v7484_v6  ;;  %6539 = vmatmul.msk.f32.vlgmr.msra.gmra.mxu3 %vm54_vm1, %v7489_v7 }
   0xc   :  { %6545 = vmatpush.msk.msrb.mxu2 %vm67_vm0, %v42_v8  ;;  %6540 = vmatpush.msk.msrb.mxu1 %vm67_vm0, %v41_v9 }
   0xd   :  { %6550 = vmatpush.msk.msrb.mxu3 %vm67_vm0, %v43_v10  ;;  %6559 = vmatpush.msk.msrb.mxu0 %vm67_vm0, %v229_v11 }
   0xe   :  { %151 = vmatpush.msrb.mxu2 %v38_v12  ;;  %122 = vmatpush.msrb.mxu1 %v37_v13 }
   0xf   :  { %180 = vmatpush.msrb.mxu3 %v39_v14  ;;  %280 = vmatpush.msrb.mxu0 %v36_v1 }
  0x10   :  { %11 = vsyncpa [#allocation4], 0  ;;  %152 = vmatpush.msrb.mxu2 %v34_v15  ;;  %123 = vmatpush.msrb.mxu1 %v33_v16  ;;  %v31_v20 = vld [vmem:[%s13124_s1 + $0x18] sm:$0xff]  ;;  %v7544_v21 = vld [vmem:[%s13123_s0 + $0x20] sm:$0xff]  ;;  %s7421_s16 = smov [#allocation3]   ;;  %s6526_s19 = sshll.u32 %s13129_s6, 4  ;;  %s6527_s19 = int_to_ptr.hbm [resolvable:$true] %s6526_s19 }
  0x11   :  { %181 = vmatpush.msrb.mxu3 %v35_v17  ;;  %281 = vmatpush.msrb.mxu0 %v32_v2  ;;  %v231_v22 = vld [vmem:[%s13124_s1 + $0x70] sm:$0xf]  ;;  %v7552_v23 = vld [vmem:[%s13126_s3 + $0x1e0] sm:$0xff]  ;;  %v230_v24 = vld [vmem:[%s13124_s1 + $0x68] sm:$0xf]  ;;  %s6524_s17 = sshll.u32 %s7421_s16, 4  ;;  %s6525_s17 = int_to_ptr.vmem [resolvable:$true] %s6524_s17 }
  0x12   :  { %153 = vmatpush.msrb.mxu2 %v30_v18  ;;  %124 = vmatpush.msrb.mxu1 %v29_v19  ;;  %v232_v25 = vld [vmem:[%s13124_s1 + $0x78] sm:$0xf]  ;;  %v7568_v26 = vld [vmem:[%s13126_s3 + $0x1c0] sm:$0xff]  ;;  %v7589_v29 = vld [vmem:[%s13123_s0 + $0x28] sm:$0xff] }
  0x13   :  { %182 = vmatpush.msrb.mxu3 %v31_v20  ;;  %282 = vmatpush.msrb.mxu0 %v28_v3  ;;  %v7575_v27 = vld [vmem:[%s13126_s3 + $0x1a0] sm:$0xff]  ;;  %v7606_v31 = vld [vmem:[%s13126_s3 + $0x1f0] sm:$0xff]  ;;  %v7618_v33 = vld [vmem:[%s13126_s3 + $0x1e8] sm:$0xff] }
  0x14   :  { %6541 = vmatmul.msk.f32.vlgmr.msrb.gmra.mxu1 %vm54_vm1, %v24_v4  ;;  %6546 = vmatmul.msk.f32.vlgmr.msrb.gmra.mxu2 %vm54_vm1, %v24_v4  ;;  %13658 = vst [vmem:[#allocation6_spill] sm:$0xff] %v7575_v27  ;;  %v7583_v28 = vld [vmem:[%s13126_s3 + $0x180] sm:$0xff]  ;;  %v7624_v34 = vld [vmem:[%s13126_s3 + $0x1f8] sm:$0xff]  ;;  %v7629_v35 = vld [vmem:[%s13126_s3 + $0x1d0] sm:$0xff] }
  0x15   :  { %6551 = vmatmul.msk.f32.vlgmr.msrb.gmra.mxu3 %vm54_vm1, %v24_v4  ;;  %6560 = vmatmul.msk.f32.vlgmr.msrb.gmra.mxu0 %vm54_vm1, %v7544_v21  ;;  %13659 = vst [vmem:[#allocation7_spill] sm:$0xff] %v7583_v28  ;;  %v7597_v30 = vld [vmem:[%s13126_s3 + $0x160] sm:$0xff]  ;;  %v7640_v37 = vld [vmem:[%s13126_s3 + $0x1c8] sm:$0xff]  ;;  %v7647_v38 = vld [vmem:[%s13126_s3 + $0x1d8] sm:$0xff] }
  0x16   :  { %6569 = vmatpush.msk.msra.mxu2 %vm67_vm0, %v231_v22  ;;  %468 = vmatpush.msra.mxu0 %v7552_v23  ;;  %v7613_v32 = vld [vmem:[%s13126_s3 + $0x140] sm:$0xff]  ;;  %v7660_v40 = vld [vmem:[%s13123_s0 + $0x30] sm:$0xff]  ;;  %v7682_v43 = vld [vmem:[%s13126_s3 + $0x1a8] sm:$0xff] }
  0x17   :  { %6564 = vmatpush.msk.msra.mxu1 %vm67_vm0, %v230_v24  ;;  %6574 = vmatpush.msk.msra.mxu3 %vm67_vm0, %v232_v25  ;;  %v7634_v36 = vld [vmem:[%s13126_s3 + $0x120] sm:$0xff]  ;;  %v7674_v42 = vld [vmem:[%s13126_s3 + $0x1b0] sm:$0xff]  ;;  %v7687_v44 = vld [vmem:[%s13126_s3 + $0x1b8] sm:$0xff] }
  0x18   :  { %469 = vmatpush.msra.mxu0 %v7568_v26  ;;  %338 = vmatpush.msra.mxu2 %v38_v12  ;;  %v7652_v39 = vld [vmem:[%s13126_s3 + $0x100] sm:$0xff]  ;;  %v7701_v46 = vld [vmem:[%s13126_s3 + $0x190] sm:$0xff]  ;;  %v7708_v47 = vld [vmem:[%s13126_s3 + $0x188] sm:$0xff] }
  0x19   :  { %309 = vmatpush.msra.mxu1 %v37_v13  ;;  %367 = vmatpush.msra.mxu3 %v39_v14  ;;  %v7668_v41 = vld [vmem:[%s13126_s3 + $0xe0] sm:$0xff]  ;;  %v7713_v48 = vld [vmem:[%s13126_s3 + $0x198] sm:$0xff]  ;;  %v7725_v50 = vld [vmem:[%s13126_s3 + $0x170] sm:$0xff] }
  0x1a   :  { %470 = vmatpush.msra.mxu0 %v7575_v27  ;;  %339 = vmatpush.msra.mxu2 %v34_v15  ;;  %v7696_v45 = vld [vmem:[%s13126_s3 + $0xc0] sm:$0xff]  ;;  %v7732_v51 = vld [vmem:[%s13126_s3 + $0x178] sm:$0xff]  ;;  %v7758_v55 = vld [vmem:[%s13126_s3 + $0x168] sm:$0xff] }
  0x1b   :  { %310 = vmatpush.msra.mxu1 %v33_v16  ;;  %368 = vmatpush.msra.mxu3 %v35_v17  ;;  %13660 = vst [vmem:[#allocation8_spill] sm:$0xff] %v7696_v45  ;;  %v7718_v49 = vld [vmem:[%s13126_s3 + $0xa0] sm:$0xff]  ;;  %v7745_v53 = vld [vmem:[%s13123_s0 + $0x38] sm:$0xff]  ;;  %v7767_v56 = vld [vmem:[%s13126_s3 + $0x150] sm:$0xff] }
  0x1c   :  { %471 = vmatpush.msra.mxu0 %v7583_v28  ;;  %6542 = vmatmul.msk.f32.gmra.mxu1 %vm54_vm1, %v7479_v5  ;;  %13661 = vst [vmem:[#allocation9_spill] sm:$0xff] %v7718_v49  ;;  %v7737_v52 = vld [vmem:[%s13126_s3 + $0x80] sm:$0xff]  ;;  %v7772_v57 = vld [vmem:[%s13126_s3 + $0x158] sm:$0xff]  ;;  %v7786_v59 = vld [vmem:[%s13126_s3 + $0x148] sm:$0xff] }
  0x1d   :  { %6547 = vmatmul.msk.f32.gmra.mxu2 %vm54_vm1, %v7479_v5  ;;  %6552 = vmatmul.msk.f32.gmra.mxu3 %vm54_vm1, %v7479_v5  ;;  %13662 = vst [vmem:[#allocation10_spill] sm:$0xff] %v7737_v52  ;;  %v7753_v54 = vld [vmem:[%s13126_s3 + $0x60] sm:$0xff]  ;;  %v7793_v60 = vld [vmem:[%s13126_s3 + $0x130] sm:$0xff]  ;;  %v7798_v61 = vld [vmem:[%s13126_s3 + $0x138] sm:$0xff]  ;;  %v13130_v5 = vmov 0.0  }
  0x1e   :  { %6561 = vmatmul.msk.f32.gmra.mxu0 %vm54_vm1, %v7589_v29  ;;  %340 = vmatpush.msra.mxu2 %v30_v18  ;;  %13663 = vst [vmem:[#allocation11_spill] sm:$0xff] %v7753_v54  ;;  %v7781_v58 = vld [vmem:[%s13126_s3 + $0x40] sm:$0xff]  ;;  %v7810_v63 = vld [vmem:[%s13126_s3 + $0x128] sm:$0xff]  ;;  %v7817_v0 = vld [vmem:[%s13126_s3 + $0x110] sm:$0xff] }
  0x1f   :  { %472 = vmatpush.msra.mxu0 %v7597_v30  ;;  %311 = vmatpush.msra.mxu1 %v29_v19  ;;  %13664 = vst [vmem:[#allocation12_spill] sm:$0xff] %v7781_v58  ;;  %v7803_v62 = vld [vmem:[%s13126_s3 + $0x20] sm:$0xff]  ;;  %v7834_v2 = vld [vmem:[%s13126_s3 + $0x108] sm:$0xff]  ;;  %v7839_v3 = vld [vmem:[%s13126_s3 + $0x118] sm:$0xff] }
  0x20   :  { %369 = vmatpush.msra.mxu3 %v31_v20  ;;  %508 = vmatpush.msrb.mxu2 %v7606_v31  ;;  %13665 = vst [vmem:[#allocation13_spill] sm:$0xff] %v7803_v62  ;;  %v7822_v1 = vld [vmem:[%s13126_s3] sm:$0xff]  ;;  %v7847_v4 = vld [vmem:[%s13126_s3 + $0xf0] sm:$0xff]  ;;  %v7873_v9 = vld [vmem:[%s13126_s3 + $0xc8] sm:$0xff] }
  0x21   :  { %473 = vmatpush.msra.mxu0 %v7613_v32  ;;  %488 = vmatpush.msrb.mxu1 %v7618_v33  ;;  %13666 = vst [vmem:[#allocation14_spill] sm:$0xff] %v7822_v1  ;;  %v7867_v8 = vld [vmem:[%s13126_s3 + $0xd0] sm:$0xff]  ;;  %v7878_v10 = vld [vmem:[%s13126_s3 + $0xd8] sm:$0xff]  ;;  %v7892_v12 = vld [vmem:[%s13126_s3 + $0xa8] sm:$0xff] }
  0x22   :  { %528 = vmatpush.msrb.mxu3 %v7624_v34  ;;  %509 = vmatpush.msrb.mxu2 %v7629_v35  ;;  %13668 = vst [vmem:[#allocation16_spill] sm:$0xff] %v7867_v8  ;;  %v7886_v11 = vld [vmem:[%s13126_s3 + $0xb0] sm:$0xff]  ;;  %v7908_v14 = vld [vmem:[%s13126_s3 + $0xb8] sm:$0xff]  ;;  %v7913_v15 = vld [vmem:[%s13126_s3 + $0x88] sm:$0xff] }
  0x23   :  { %474 = vmatpush.msra.mxu0 %v7634_v36  ;;  %489 = vmatpush.msrb.mxu1 %v7640_v37  ;;  %13669 = vst [vmem:[#allocation17_spill] sm:$0xff] %v7873_v9  ;;  %v7900_v13 = vld [vmem:[%s13126_s3 + $0x90] sm:$0xff]  ;;  %v7929_v17 = vld [vmem:[%s13126_s3 + $0x98] sm:$0xff]  ;;  %v7934_v18 = vld [vmem:[%s13126_s3 + $0x68] sm:$0xff] }
  0x24   :  { %6543 = vmatmul.msk.f32.gmra.mxu1 %vm54_vm1, %v7484_v6  ;;  %529 = vmatpush.msrb.mxu3 %v7647_v38  ;;  %13670 = vst [vmem:[#allocation18_spill] sm:$0xff] %v7878_v10  ;;  %v7921_v16 = vld [vmem:[%s13126_s3 + $0x70] sm:$0xff]  ;;  %v7947_v20 = vld [vmem:[%s13126_s3 + $0x78] sm:$0xff]  ;;  %v7974_v25 = vld [vmem:[%s13126_s3 + $0x28] sm:$0xff] }
  0x25   :  { %475 = vmatpush.msra.mxu0 %v7652_v39  ;;  %6548 = vmatmul.msk.f32.gmra.mxu2 %vm54_vm1, %v7484_v6  ;;  %13671 = vst [vmem:[#allocation19_spill] sm:$0xff] %v7886_v11  ;;  %v7941_v19 = vld [vmem:[%s13126_s3 + $0x50] sm:$0xff]  ;;  %v7966_v24 = vld [vmem:[%s13126_s3 + $0x58] sm:$0xff] }
  0x26   :  { %6553 = vmatmul.msk.f32.gmra.mxu3 %vm54_vm1, %v7484_v6  ;;  %6562 = vmatmul.msk.f32.gmra.mxu0 %vm54_vm1, %v7660_v40  ;;  %v7855_v6 = vld [vmem:[%s13126_s3 + $0xe8] sm:$0xff]  ;;  %13672 = vst [vmem:[#allocation20_spill] sm:$0xff] %v7892_v12  ;;  %v7960_v22 = vld [vmem:[%s13126_s3 + $0x30] sm:$0xff] }
  0x27   :  { %476 = vmatpush.msra.mxu0 %v7668_v41  ;;  %510 = vmatpush.msrb.mxu2 %v7674_v42  ;;  %13673 = vst [vmem:[#allocation21_spill] sm:$0xff] %v7900_v13 }
  0x28   :  { %490 = vmatpush.msrb.mxu1 %v7682_v43  ;;  %530 = vmatpush.msrb.mxu3 %v7687_v44  ;;  %13674 = vst [vmem:[#allocation22_spill] sm:$0xff] %v7908_v14 }
  0x29   :  { %477 = vmatpush.msra.mxu0 %v7696_v45  ;;  %511 = vmatpush.msrb.mxu2 %v7701_v46  ;;  %13675 = vst [vmem:[#allocation23_spill] sm:$0xff] %v7913_v15 }
  0x2a   :  { %491 = vmatpush.msrb.mxu1 %v7708_v47  ;;  %531 = vmatpush.msrb.mxu3 %v7713_v48  ;;  %13676 = vst [vmem:[#allocation24_spill] sm:$0xff] %v7921_v16 }
  0x2b   :  { %478 = vmatpush.msra.mxu0 %v7718_v49  ;;  %512 = vmatpush.msrb.mxu2 %v7725_v50  ;;  %13677 = vst [vmem:[#allocation25_spill] sm:$0xff] %v7929_v17 }
  0x2c   :  { %6544 = vmatmul.msk.f32.gmra.mxu1 %vm54_vm1, %v7489_v7  ;;  %532 = vmatpush.msrb.mxu3 %v7732_v51  ;;  %13678 = vst [vmem:[#allocation26_spill] sm:$0xff] %v7934_v18 }
  0x2d   :  { %479 = vmatpush.msra.mxu0 %v7737_v52  ;;  %6549 = vmatmul.msk.f32.gmra.mxu2 %vm54_vm1, %v7489_v7  ;;  %13679 = vst [vmem:[#allocation27_spill] sm:$0xff] %v7941_v19 }
  0x2e   :  { %6554 = vmatmul.msk.f32.gmra.mxu3 %vm54_vm1, %v7489_v7  ;;  %6563 = vmatmul.msk.f32.gmra.mxu0 %vm54_vm1, %v7745_v53  ;;  %v7860_v7 = vld [vmem:[%s13126_s3 + $0xf8] sm:$0xff]  ;;  %13680 = vst [vmem:[#allocation28_spill] sm:$0xff] %v7947_v20 }
  0x2f   :  { %480 = vmatpush.msra.mxu0 %v7753_v54  ;;  %492 = vmatpush.msrb.mxu1 %v7758_v55  ;;  %13667 = vst [vmem:[#allocation15_spill] sm:$0xff] %v7860_v7 }
  0x30   :  { %513 = vmatpush.msrb.mxu2 %v7767_v56  ;;  %533 = vmatpush.msrb.mxu3 %v7772_v57  ;;  %13682 = vst [vmem:[#allocation30_spill] sm:$0xff] %v7960_v22 }
  0x31   :  { %481 = vmatpush.msra.mxu0 %v7781_v58  ;;  %493 = vmatpush.msrb.mxu1 %v7786_v59  ;;  %13683 = vst [vmem:[#allocation31_spill] sm:$0xff] %v7966_v24 }
  0x32   :  { %514 = vmatpush.msrb.mxu2 %v7793_v60  ;;  %534 = vmatpush.msrb.mxu3 %v7798_v61  ;;  %13684 = vst [vmem:[#allocation32_spill] sm:$0xff] %v7974_v25 }
  0x33   :  { %482 = vmatpush.msra.mxu0 %v7803_v62  ;;  %494 = vmatpush.msrb.mxu1 %v7810_v63 }
  0x34   :  { %6565 = vmatmul.msk.f32.vlgmr.msra.gmra.mxu1 %vm54_vm1, %v7544_v21  ;;  %515 = vmatpush.msrb.mxu2 %v7817_v0 }
  0x35   :  { %483 = vmatpush.msra.mxu0 %v7822_v1  ;;  %6570 = vmatmul.msk.f32.vlgmr.msra.gmra.mxu2 %vm54_vm1, %v7544_v21 }
  0x36   :  { %6575 = vmatmul.msk.f32.vlgmr.msra.gmra.mxu3 %vm54_vm1, %v7544_v21  ;;  %484 = vmatmul.f32.vlgmr.msra.gmra.mxu0 %v13130_v5  ;;  %v7952_v21 = vld [vmem:[%s13126_s3 + $0x48] sm:$0xff]  ;;  %v7987_v5 = vld [vmem:[%s13126_s3 + $0x10] sm:$0xff] }
  0x37   :  { %495 = vmatpush.msrb.mxu1 %v7834_v2  ;;  %535 = vmatpush.msrb.mxu3 %v7839_v3  ;;  %13681 = vst [vmem:[#allocation29_spill] sm:$0xff] %v7952_v21 }
  0x38   :  { %516 = vmatpush.msrb.mxu2 %v7847_v4  ;;  %638 = vmatpush.msrb.mxu0 %v7552_v23  ;;  %13686 = vst [vmem:[#allocation34_spill] sm:$0xff] %v7987_v5 }
  0x39   :  { %496 = vmatpush.msrb.mxu1 %v7855_v6  ;;  %536 = vmatpush.msrb.mxu3 %v7860_v7 }
  0x3a   :  { %517 = vmatpush.msrb.mxu2 %v7867_v8  ;;  %639 = vmatpush.msrb.mxu0 %v7568_v26 }
  0x3b   :  { %497 = vmatpush.msrb.mxu1 %v7873_v9  ;;  %537 = vmatpush.msrb.mxu3 %v7878_v10 }
  0x3c   :  { %6566 = vmatmul.msk.f32.gmra.mxu1 %vm54_vm1, %v7589_v29  ;;  %518 = vmatpush.msrb.mxu2 %v7886_v11 }
  0x3d   :  { %6571 = vmatmul.msk.f32.gmra.mxu2 %vm54_vm1, %v7589_v29  ;;  %498 = vmatpush.msrb.mxu1 %v7892_v12 }
  0x3e   :  { %6576 = vmatmul.msk.f32.gmra.mxu3 %vm54_vm1, %v7589_v29  ;;  %519 = vmatpush.msrb.mxu2 %v7900_v13  ;;  %v7982_v29 = vld [vmem:[%s13126_s3 + $0x38] sm:$0xff] }
  0x3f   :  { %538 = vmatpush.msrb.mxu3 %v7908_v14  ;;  %499 = vmatpush.msrb.mxu1 %v7913_v15  ;;  %13685 = vst [vmem:[#allocation33_spill] sm:$0xff] %v7982_v29 }
  0x40   :  { %520 = vmatpush.msrb.mxu2 %v7921_v16  ;;  %640 = vmatpush.msrb.mxu0 %v7575_v27  ;;  %v8003_v27 = vld [vmem:[%s13126_s3 + $0x18] sm:$0xff] }
  0x41   :  { %539 = vmatpush.msrb.mxu3 %v7929_v17  ;;  %500 = vmatpush.msrb.mxu1 %v7934_v18  ;;  %13688 = vst [vmem:[#allocation36_spill] sm:$0xff] %v8003_v27 }
  0x42   :  { %521 = vmatpush.msrb.mxu2 %v7941_v19  ;;  %641 = vmatpush.msrb.mxu0 %v7583_v28  ;;  %v7995_v28 = vld [vmem:[%s13126_s3 + $0x8] sm:$0xff] }
  0x43   :  { %540 = vmatpush.msrb.mxu3 %v7947_v20  ;;  %501 = vmatpush.msrb.mxu1 %v7952_v21  ;;  %13687 = vst [vmem:[#allocation35_spill] sm:$0xff] %v7995_v28 }
  0x44   :  { %6567 = vmatmul.msk.f32.gmra.mxu1 %vm54_vm1, %v7660_v40  ;;  %522 = vmatpush.msrb.mxu2 %v7960_v22 }
  0x45   :  { %6572 = vmatmul.msk.f32.gmra.mxu2 %vm54_vm1, %v7660_v40  ;;  %541 = vmatpush.msrb.mxu3 %v7966_v24 }
  0x46   :  { %6577 = vmatmul.msk.f32.gmra.mxu3 %vm54_vm1, %v7660_v40  ;;  %502 = vmatpush.msrb.mxu1 %v7974_v25  ;;  %v13689_v40 = vmov 0.0  }
  0x47   :  { %542 = vmatpush.msrb.mxu3 %v7982_v29  ;;  %523 = vmatpush.msrb.mxu2 %v7987_v5 }
  0x48   :  { %503 = vmatpush.msrb.mxu1 %v7995_v28  ;;  %642 = vmatpush.msrb.mxu0 %v7597_v30 }
  0x49   :  { %678 = vmatpush.msra.mxu2 %v7606_v31  ;;  %543 = vmatpush.msrb.mxu3 %v8003_v27 }
  0x4a   :  { %658 = vmatpush.msra.mxu1 %v7618_v33  ;;  %643 = vmatpush.msrb.mxu0 %v7613_v32 }
  0x4b   :  { %698 = vmatpush.msra.mxu3 %v7624_v34  ;;  %679 = vmatpush.msra.mxu2 %v7629_v35 }
  0x4c   :  { %659 = vmatpush.msra.mxu1 %v7640_v37  ;;  %644 = vmatpush.msrb.mxu0 %v7634_v36 }
  0x4d   :  { %6568 = vmatmul.msk.f32.gmra.mxu1 %vm54_vm1, %v7745_v53  ;;  %699 = vmatpush.msra.mxu3 %v7647_v38 }
  0x4e   :  { %6573 = vmatmul.msk.f32.gmra.mxu2 %vm54_vm1, %v7745_v53  ;;  %660 = vmatpush.msra.mxu1 %v7682_v43 }
  0x4f   :  { %6578 = vmatmul.msk.f32.gmra.mxu3 %vm54_vm1, %v7745_v53  ;;  %680 = vmatpush.msra.mxu2 %v7674_v42  ;;  %v13690_v53 = vld [vmem:[#allocation6_spill] sm:$0xff] }
  0x50   :  { %700 = vmatpush.msra.mxu3 %v7687_v44  ;;  %661 = vmatpush.msra.mxu1 %v7708_v47 }
  0x51   :  { %681 = vmatpush.msra.mxu2 %v7701_v46  ;;  %645 = vmatpush.msrb.mxu0 %v7652_v39 }
  0x52   :  { %701 = vmatpush.msra.mxu3 %v7713_v48  ;;  %662 = vmatpush.msra.mxu1 %v7758_v55 }
  0x53   :  { %682 = vmatpush.msra.mxu2 %v7725_v50  ;;  %646 = vmatpush.msrb.mxu0 %v7668_v41 }
  0x54   :  { %702 = vmatpush.msra.mxu3 %v7732_v51  ;;  %663 = vmatpush.msra.mxu1 %v7786_v59 }
  0x55   :  { %504 = vmatmul.f32.vlgmr.msrb.gmra.mxu1 %v13689_v40  ;;  %683 = vmatpush.msra.mxu2 %v7767_v56 }
  0x56   :  { %524 = vmatmul.f32.vlgmr.msrb.gmra.mxu2 %v13689_v40  ;;  %703 = vmatpush.msra.mxu3 %v7772_v57 }
  0x57   :  { %544 = vmatmul.f32.vlgmr.msrb.gmra.mxu3 %v13689_v40  ;;  %664 = vmatpush.msra.mxu1 %v7810_v63  ;;  %v13691_v40 = vld [vmem:[#allocation7_spill] sm:$0xff] }
  0x58   :  { %684 = vmatpush.msra.mxu2 %v7793_v60  ;;  %704 = vmatpush.msra.mxu3 %v7798_v61 }
  0x59   :  { %665 = vmatpush.msra.mxu1 %v7834_v2  ;;  %647 = vmatpush.msrb.mxu0 %v7696_v45 }
  0x5a   :  { %685 = vmatpush.msra.mxu2 %v7817_v0  ;;  %705 = vmatpush.msra.mxu3 %v7839_v3 }
  0x5b   :  { %666 = vmatpush.msra.mxu1 %v7855_v6  ;;  %648 = vmatpush.msrb.mxu0 %v7718_v49 }
  0x5c   :  { %686 = vmatpush.msra.mxu2 %v7847_v4  ;;  %706 = vmatpush.msra.mxu3 %v7860_v7 }
  0x5d   :  { %667 = vmatpush.msra.mxu1 %v7873_v9  ;;  %649 = vmatpush.msrb.mxu0 %v7737_v52 }
  0x5e   :  { %687 = vmatpush.msra.mxu2 %v7867_v8  ;;  %707 = vmatpush.msra.mxu3 %v7878_v10 }
  0x5f   :  { %668 = vmatpush.msra.mxu1 %v7892_v12  ;;  %650 = vmatpush.msrb.mxu0 %v7753_v54 }
  0x60   :  { %688 = vmatpush.msra.mxu2 %v7886_v11  ;;  %708 = vmatpush.msra.mxu3 %v7908_v14 }
  0x61   :  { %669 = vmatpush.msra.mxu1 %v7913_v15  ;;  %651 = vmatpush.msrb.mxu0 %v7781_v58 }
  0x62   :  { %689 = vmatpush.msra.mxu2 %v7900_v13  ;;  %709 = vmatpush.msra.mxu3 %v7929_v17 }
  0x63   :  { %670 = vmatpush.msra.mxu1 %v7934_v18  ;;  %652 = vmatpush.msrb.mxu0 %v7803_v62 }
  0x64   :  { %690 = vmatpush.msra.mxu2 %v7921_v16  ;;  %710 = vmatpush.msra.mxu3 %v7947_v20 }
  0x65   :  { %671 = vmatpush.msra.mxu1 %v7952_v21  ;;  %653 = vmatpush.msrb.mxu0 %v7822_v1 }
  0x66   :  { %691 = vmatpush.msra.mxu2 %v7941_v19  ;;  %711 = vmatpush.msra.mxu3 %v7966_v24 }
  0x67   :  { %672 = vmatpush.msra.mxu1 %v7974_v25  ;;  %808 = vmatpush.msra.mxu0 %v7552_v23 }
  0x68   :  { %692 = vmatpush.msra.mxu2 %v7960_v22  ;;  %712 = vmatpush.msra.mxu3 %v7982_v29 }
  0x69   :  { %673 = vmatpush.msra.mxu1 %v7995_v28  ;;  %809 = vmatpush.msra.mxu0 %v7568_v26 }
  0x6a   :  { %693 = vmatpush.msra.mxu2 %v7987_v5  ;;  %713 = vmatpush.msra.mxu3 %v8003_v27 }
  0x6b   :  { %828 = vmatpush.msrb.mxu1 %v7618_v33  ;;  %810 = vmatpush.msra.mxu0 %v13690_v53 }
  0x6c   :  { %848 = vmatpush.msrb.mxu2 %v7606_v31  ;;  %868 = vmatpush.msrb.mxu3 %v7624_v34 }
  0x6d   :  { %829 = vmatpush.msrb.mxu1 %v7640_v37  ;;  %811 = vmatpush.msra.mxu0 %v13691_v40 }
  0x6e   :  { %849 = vmatpush.msrb.mxu2 %v7629_v35  ;;  %869 = vmatpush.msrb.mxu3 %v7647_v38 }
  0x6f   :  { %830 = vmatpush.msrb.mxu1 %v7682_v43  ;;  %812 = vmatpush.msra.mxu0 %v7597_v30 }
  0x70   :  { %850 = vmatpush.msrb.mxu2 %v7674_v42  ;;  %870 = vmatpush.msrb.mxu3 %v7687_v44 }
  0x71   :  { %831 = vmatpush.msrb.mxu1 %v7708_v47  ;;  %813 = vmatpush.msra.mxu0 %v7613_v32 }
  0x72   :  { %851 = vmatpush.msrb.mxu2 %v7701_v46  ;;  %871 = vmatpush.msrb.mxu3 %v7713_v48 }
  0x73   :  { %832 = vmatpush.msrb.mxu1 %v7758_v55  ;;  %814 = vmatpush.msra.mxu0 %v7634_v36 }
  0x74   :  { %852 = vmatpush.msrb.mxu2 %v7725_v50  ;;  %872 = vmatpush.msrb.mxu3 %v7732_v51 }
  0x75   :  { %833 = vmatpush.msrb.mxu1 %v7786_v59  ;;  %815 = vmatpush.msra.mxu0 %v7652_v39 }
  0x76   :  { %853 = vmatpush.msrb.mxu2 %v7767_v56  ;;  %873 = vmatpush.msrb.mxu3 %v7772_v57 }
  0x77   :  { %834 = vmatpush.msrb.mxu1 %v7810_v63  ;;  %816 = vmatpush.msra.mxu0 %v7668_v41 }
  0x78   :  { %854 = vmatpush.msrb.mxu2 %v7793_v60  ;;  %874 = vmatpush.msrb.mxu3 %v7798_v61 }
  0x79   :  { %835 = vmatpush.msrb.mxu1 %v7834_v2  ;;  %817 = vmatpush.msra.mxu0 %v7696_v45 }
  0x7a   :  { %855 = vmatpush.msrb.mxu2 %v7817_v0  ;;  %875 = vmatpush.msrb.mxu3 %v7839_v3 }
  0x7b   :  { %836 = vmatpush.msrb.mxu1 %v7855_v6  ;;  %818 = vmatpush.msra.mxu0 %v7718_v49 }
  0x7c   :  { %856 = vmatpush.msrb.mxu2 %v7847_v4  ;;  %876 = vmatpush.msrb.mxu3 %v7860_v7 }
  0x7d   :  { %837 = vmatpush.msrb.mxu1 %v7873_v9  ;;  %819 = vmatpush.msra.mxu0 %v7737_v52 }
  0x7e   :  { %857 = vmatpush.msrb.mxu2 %v7867_v8  ;;  %877 = vmatpush.msrb.mxu3 %v7878_v10 }
  0x7f   :  { %838 = vmatpush.msrb.mxu1 %v7892_v12  ;;  %820 = vmatpush.msra.mxu0 %v7753_v54 }
  0x80   :  { %858 = vmatpush.msrb.mxu2 %v7886_v11  ;;  %878 = vmatpush.msrb.mxu3 %v7908_v14 }
  0x81   :  { %839 = vmatpush.msrb.mxu1 %v7913_v15  ;;  %821 = vmatpush.msra.mxu0 %v7781_v58 }
  0x82   :  { %859 = vmatpush.msrb.mxu2 %v7900_v13  ;;  %879 = vmatpush.msrb.mxu3 %v7929_v17 }
  0x83   :  { %840 = vmatpush.msrb.mxu1 %v7934_v18  ;;  %822 = vmatpush.msra.mxu0 %v7803_v62 }
  0x84   :  { %860 = vmatpush.msrb.mxu2 %v7921_v16  ;;  %880 = vmatpush.msrb.mxu3 %v7947_v20 }
  0x85   :  { %841 = vmatpush.msrb.mxu1 %v7952_v21  ;;  %823 = vmatpush.msra.mxu0 %v7822_v1 }
  0x86   :  { %861 = vmatpush.msrb.mxu2 %v7941_v19  ;;  %881 = vmatpush.msrb.mxu3 %v7966_v24 }
  0x87   :  { %842 = vmatpush.msrb.mxu1 %v7974_v25  ;;  %v8136_v17 = vpop.f32.mrf.mxu1  ;;  %v97_v62 = vpop.f32.mrf.mxu0 }
  0x88   :  { %13692 = vst [vmem:[#allocation6_spill] sm:$0xff] %v8136_v17  ;;  %862 = vmatpush.msrb.mxu2 %v7960_v22  ;;  %882 = vmatpush.msrb.mxu3 %v7982_v29 }
  0x89   :  { %843 = vmatpush.msrb.mxu1 %v7995_v28 }
  0x8a   :  { %863 = vmatpush.msrb.mxu2 %v7987_v5  ;;  %883 = vmatpush.msrb.mxu3 %v8003_v27 }
  0x8e   :  { %v8144_v19 = vpop.f32.mrf.mxu2  ;;  %v8146_v24 = vpop.f32.mrf.mxu3 }
  0x8f   :  { %13693 = vst [vmem:[#allocation7_spill] sm:$0xff] %v8144_v19 }
  0x90   :  { %13694 = vst [vmem:[#allocation37_spill] sm:$0xff] %v8146_v24 }
  0x91   :  { %v126_v25 = vpop.f32.mrf.mxu1 }
  0x92   :  { %v8150_v22 = vpop.f32.mrf.mxu0 }
  0x93   :  { %13696 = vst [vmem:[#allocation39_spill] sm:$0xff] %v8150_v22 }
  0x97   :  { %v155_v21 = vpop.f32.mrf.mxu2 }
  0x98   :  { %v184_v17 = vpop.f32.mrf.mxu3 }
  0x99   :  { %v8148_v58 = vpop.f32.mrf.mxu1 }
  0x9a   :  { %13695 = vst [vmem:[#allocation38_spill] sm:$0xff] %v8148_v58 }
  0x9b   :  { %v8158_v5 = vpop.f32.mrf.mxu0 }
  0x9c   :  { %13700 = vst [vmem:[#allocation43_spill] sm:$0xff] %v8158_v5 }
  0xa0   :  { %v8152_v29 = vpop.f32.mrf.mxu2  ;;  %v8154_v1 = vpop.f32.mrf.mxu3 }
  0xa1   :  { %13697 = vst [vmem:[#allocation40_spill] sm:$0xff] %v8152_v29  ;;  %v8156_v28 = vpop.f32.mrf.mxu1 }
  0xa2   :  { %13698 = vst [vmem:[#allocation41_spill] sm:$0xff] %v8154_v1 }
  0xa3   :  { %13699 = vst [vmem:[#allocation42_spill] sm:$0xff] %v8156_v28  ;;  %v8166_v20 = vpop.f32.mrf.mxu0 }
  0xa4   :  { %13704 = vst [vmem:[#allocation47_spill] sm:$0xff] %v8166_v20 }
  0xa8   :  { %v8160_v27 = vpop.f32.mrf.mxu2 }
  0xa9   :  { %13701 = vst [vmem:[#allocation44_spill] sm:$0xff] %v8160_v27  ;;  %v8162_v19 = vpop.f32.mrf.mxu3  ;;  %v8164_v24 = vpop.f32.mrf.mxu1 }
  0xaa   :  { %13702 = vst [vmem:[#allocation45_spill] sm:$0xff] %v8162_v19 }
  0xab   :  { %13703 = vst [vmem:[#allocation46_spill] sm:$0xff] %v8164_v24  ;;  %v8174_v29 = vpop.f32.mrf.mxu0  ;;  %v44_v24 = vld [vmem:[%s13125_s2] sm:$0xf] }
  0xac   :  { %13708 = vst [vmem:[#allocation51_spill] sm:$0xff] %v8174_v29  ;;  %v8185_v19 = vperm.slane %v44_v24, 0  ;;  %v8200_v54 = vperm.slane %v44_v24, 1 }
  0xae   :  { %13712 = vst [vmem:[#allocation55_spill] sm:$0xff] %v8185_v19 }
  0xaf   :  { %13719 = vst [vmem:[#allocation62_spill] sm:$0xff] %v8200_v54 }
  0xb0   :  { %v8168_v16 = vpop.f32.mrf.mxu2 }
  0xb1   :  { %13705 = vst [vmem:[#allocation48_spill] sm:$0xff] %v8168_v16  ;;  %v8170_v58 = vpop.f32.mrf.mxu3  ;;  %v8172_v22 = vpop.f32.mrf.mxu1 }
  0xb2   :  { %13706 = vst [vmem:[#allocation49_spill] sm:$0xff] %v8170_v58  ;;  %v98_v58 = vadd.f32 %v97_v62, %v8185_v19 }
  0xb3   :  { %13707 = vst [vmem:[#allocation50_spill] sm:$0xff] %v8172_v22  ;;  %v485_v29 = vpop.f32.mrf.mxu0 }
  0xb8   :  { %v8176_v1 = vpop.f32.mrf.mxu2 }
  0xb9   :  { %13709 = vst [vmem:[#allocation52_spill] sm:$0xff] %v8176_v1  ;;  %v8178_v28 = vpop.f32.mrf.mxu3  ;;  %v8180_v5 = vpop.f32.mrf.mxu1  ;;  %v548_v1 = vadd.f32 %v485_v29, %v98_v58  ;;  %v8207_v58 = vperm.slane %v44_v24, 2  ;;  %v8209_v29 = vperm.slane %v44_v24, 3 }
  0xba   :  { %13710 = vst [vmem:[#allocation53_spill] sm:$0xff] %v8178_v28 }
  0xbb   :  { %13711 = vst [vmem:[#allocation54_spill] sm:$0xff] %v8180_v5  ;;  %v6579_v28 = vmul.f32 -1.442695, %v548_v1 }
  0xbc   :  { %13722 = vst [vmem:[#allocation65_spill] sm:$0xff] %v8207_v58 }
  0xbd   :  { %6826 = vpow2.f32 %v6579_v28  ;;  %13723 = vst [vmem:[#allocation66_spill] sm:$0xff] %v8209_v29  ;;  %v185_v28 = vadd.f32 %v184_v17, %v8209_v29 }
  0xc0   :  { %v8187_v20 = vpop.f32.mrf.mxu2 }
  0xc1   :  { %13713 = vst [vmem:[#allocation56_spill] sm:$0xff] %v8187_v20  ;;  %v8190_v16 = vpop.f32.mrf.mxu3  ;;  %v8192_v22 = vpop.f32.mrf.mxu1  ;;  %v127_v20 = vadd.f32 %v126_v25, %v8200_v54 }
  0xc2   :  { %13714 = vst [vmem:[#allocation57_spill] sm:$0xff] %v8190_v16 }
  0xc3   :  { %13715 = vst [vmem:[#allocation58_spill] sm:$0xff] %v8192_v22  ;;  %v6827_v19 = vpop.eup %6826 }
  0xc8   :  { %v8194_v27 = vpop.f32.mrf.mxu2 }
  0xc9   :  { %13716 = vst [vmem:[#allocation59_spill] sm:$0xff] %v8194_v27  ;;  %v8196_v5 = vpop.f32.mrf.mxu3 }
  0xca   :  { %13717 = vst [vmem:[#allocation60_spill] sm:$0xff] %v8196_v5  ;;  %v8198_v18 = vpop.f32.mrf.mxu1  ;;  %v8211_v5 = vadd.f32 1.0, %v6827_v19 }
  0xcb   :  { %13718 = vst [vmem:[#allocation61_spill] sm:$0xff] %v8198_v18  ;;  %v156_v18 = vadd.f32 %v155_v21, %v8207_v58 }
  0xcc   :  { %vm573_vm5 = vweird.f32 %v8211_v5 }
  0xd1   :  { %v8203_v13 = vpop.f32.mrf.mxu2 }
  0xd2   :  { %13720 = vst [vmem:[#allocation63_spill] sm:$0xff] %v8203_v13  ;;  %v8205_v62 = vpop.f32.mrf.mxu3  ;;  %v505_v16 = vpop.f32.mrf.mxu1 }
  0xd3   :  { %13721 = vst [vmem:[#allocation64_spill] sm:$0xff] %v8205_v62  ;;  %v549_v22 = vadd.f32 %v505_v16, %v127_v20 }
  0xd5   :  { %v6580_v1 = vmul.f32 -1.442695, %v549_v22 }
  0xd7   :  { %6828 = vpow2.f32 %v6580_v1 }
  0xd8   :  { %6830 = vrcp.f32 %v8211_v5 }
  0xd9   :  { %v525_v25 = vpop.f32.mrf.mxu2 }
  0xda   :  { %v550_v27 = vadd.f32 %v525_v25, %v156_v18  ;;  %v545_v13 = vpop.f32.mrf.mxu3 }
  0xdb   :  { %v551_v62 = vadd.f32 %v545_v13, %v185_v28 }
  0xdc   :  { %v6581_v16 = vmul.f32 -1.442695, %v550_v27 }
  0xdd   :  { %v6829_v20 = vpop.eup %6828  ;;  %v6582_v54 = vmul.f32 -1.442695, %v551_v62 }
  0xde   :  { %v565_v15 = vadd.f32 1.0, %v6829_v20  ;;  %6832 = vpow2.f32 %v6581_v16  ;;  %v6831_v19 = vpop.eup %6830 }
  0xdf   :  { %6834 = vpow2.f32 %v6582_v54  ;;  %v569_v24 = vmul.f32 %v6831_v19, %v8211_v5  ;;  %vm574_vm3 = vweird.f32 %v6831_v19 }
  0xe0   :  { %6836 = vrcp.f32 %v565_v15  ;;  %v594_v58 = vand.u32 2147483648, %v565_v15  ;;  %vm588_vm4 = vweird.f32 %v565_v15  ;;  %vm575_vm8 = vmor %vm573_vm5, %vm574_vm3 }
  0xe1   :  { %v570_v25 = vsub.f32 1.0, %v569_v24  ;;  %v577_v24 = vand.u32 2147483647, %v8211_v5 }
  0xe3   :  { %v571_v28 = vmul.f32 %v6831_v19, %v570_v25  ;;  %vm578_vm12 = vcmp.eq.f32.partialorder %v577_v24, 8.507059e+37  ;;  %v13760_v24 = vld [vmem:[#allocation40_spill] sm:$0xff] }
  0xe4   :  { %v6833_v22 = vpop.eup %6832 }
  0xe5   :  { %v6835_v21 = vpop.eup %6834  ;;  %v566_v1 = vadd.f32 1.0, %v6833_v22  ;;  %v572_v14 = vadd.f32 %v6831_v19, %v571_v28  ;;  %v592_v22 = vand.u32 2147483647, %v565_v15 }
  0xe6   :  { %v6837_v17 = vpop.eup %6836  ;;  %v567_v29 = vadd.f32 1.0, %v6835_v21  ;;  %v579_v21 = vand.u32 2147483648, %v8211_v5 }
  0xe7   :  { %v584_v18 = vmul.f32 %v6837_v17, %v565_v15  ;;  %6838 = vrcp.f32 %v566_v1  ;;  %vm589_vm2 = vweird.f32 %v6837_v17  ;;  %v609_v25 = vand.u32 2147483648, %v566_v1 }
  0xe8   :  { %6840 = vrcp.f32 %v567_v29  ;;  %vm8220_vm6 = vmor %vm588_vm4, %vm589_vm2  ;;  %v607_v28 = vand.u32 2147483647, %v566_v1  ;;  %v595_v15 = vor.u32 1.1754944e-38, %v594_v58  ;;  %v576_v12 = vsel %vm575_vm8, %v6831_v19, %v572_v14 }
  0xe9   :  { %v585_v13 = vsub.f32 1.0, %v584_v18  ;;  %vm593_vm9 = vcmp.eq.f32.partialorder %v592_v22, 8.507059e+37  ;;  %vm603_vm10 = vweird.f32 %v566_v1  ;;  %v580_v5 = vor.u32 1.1754944e-38, %v579_v21  ;;  %v13759_v22 = vld [vmem:[#allocation65_spill] sm:$0xff] }
  0xea   :  { %v610_v10 = vor.u32 1.1754944e-38, %v609_v25  ;;  %vm608_vm13 = vcmp.eq.f32.partialorder %v607_v28, 8.507059e+37  ;;  %vm618_vm15 = vweird.f32 %v567_v29  ;;  %v622_v14 = vand.u32 2147483647, %v567_v29  ;;  %v13761_v25 = vld [vmem:[#allocation66_spill] sm:$0xff] }
  0xeb   :  { %v586_v27 = vmul.f32 %v6837_v17, %v585_v13  ;;  %v581_v18 = vsel %vm578_vm12, %v580_v5, %v576_v12  ;;  %v159_v21 = vadd.f32 %v13760_v24, %v13759_v22 }
  0xec   :  { %vm623_vm3 = vcmp.eq.f32.partialorder %v622_v14, 8.507059e+37 }
  0xed   :  { %v6839_v62 = vpop.eup %6838  ;;  %v587_v16 = vadd.f32 %v6837_v17, %v586_v27 }
  0xee   :  { %v6841_v20 = vpop.eup %6840  ;;  %v599_v54 = vmul.f32 %v6839_v62, %v566_v1  ;;  %vm604_vm7 = vweird.f32 %v6839_v62 }
  0xef   :  { %v614_v52 = vmul.f32 %v6841_v20, %v567_v29  ;;  %v591_v13 = vsel %vm8220_vm6, %v6837_v17, %v587_v16  ;;  %vm605_vm11 = vmor %vm603_vm10, %vm604_vm7  ;;  %vm619_vm14 = vweird.f32 %v6841_v20 }
  0xf0   :  { %v600_v11 = vsub.f32 1.0, %v599_v54  ;;  %v596_v8 = vsel %vm593_vm9, %v595_v15, %v591_v13  ;;  %vm620_vm2 = vmor %vm618_vm15, %vm619_vm14  ;;  %v13762_v13 = vld [vmem:[#allocation41_spill] sm:$0xff] }
  0xf1   :  { %v615_v54 = vsub.f32 1.0, %v614_v52  ;;  %v628_v16 = vmul.f32 0.0, %v596_v8  ;;  %v624_v52 = vand.u32 2147483648, %v567_v29 }
  0xf2   :  { %v601_v27 = vmul.f32 %v6839_v62, %v600_v11 }
  0xf3   :  { %v616_v11 = vmul.f32 %v6841_v20, %v615_v54  ;;  %v625_v1 = vor.u32 1.1754944e-38, %v624_v52 }
  0xf4   :  { %v602_v49 = vadd.f32 %v6839_v62, %v601_v27  ;;  %v188_v27 = vadd.f32 %v13762_v13, %v13761_v25 }
  0xf5   :  { %v617_v58 = vadd.f32 %v6841_v20, %v616_v11 }
  0xf6   :  { %v606_v9 = vsel %vm605_vm11, %v6839_v62, %v602_v49 }
  0xf7   :  { %v611_v17 = vsel %vm608_vm13, %v610_v10, %v606_v9  ;;  %v621_v19 = vsel %vm620_vm2, %v6841_v20, %v617_v58 }
  0xf8   :  { %v629_v45 = vmul.f32 %v611_v17, %v581_v18  ;;  %v626_v62 = vsel %vm623_vm3, %v625_v1, %v621_v19 }
  0xfa   :  { %v8227_v7 = vadd.f32 %v629_v45, %v628_v16  ;;  %v13742_v45 = vld [vmem:[#allocation28_spill] sm:$0xff] }
  0xfc   :  { %6842 = vtanh.f32 %v8227_v7 }
 0x102   :  { %v6843_v49 = vpop.eup %6842 }
 0x103   :  { %v632_v12 = vmul.f32 %v6843_v49, %v626_v62 }
 0x105   :  { %654 = vmatmul.f32.vlgmr.msrb.gmra.mxu0 %v632_v12  ;;  %674 = vmatmul.f32.vlgmr.msra.gmra.mxu1 %v632_v12 }
 0x106   :  { %694 = vmatmul.f32.vlgmr.msra.gmra.mxu2 %v632_v12  ;;  %714 = vmatmul.f32.vlgmr.msra.gmra.mxu3 %v632_v12 }
 0x107   :  { %978 = vmatpush.msrb.mxu0 %v7552_v23  ;;  %998 = vmatpush.msra.mxu1 %v7618_v33  ;;  %v13726_v23 = vld [vmem:[#allocation15_spill] sm:$0xff]  ;;  %v13731_v33 = vld [vmem:[#allocation9_spill] sm:$0xff] }
 0x108   :  { %1018 = vmatpush.msra.mxu2 %v7606_v31  ;;  %1038 = vmatpush.msra.mxu3 %v7624_v34  ;;  %v13729_v31 = vld [vmem:[#allocation16_spill] sm:$0xff] }
 0x109   :  { %979 = vmatpush.msrb.mxu0 %v7568_v26  ;;  %999 = vmatpush.msra.mxu1 %v7640_v37  ;;  %v13727_v26 = vld [vmem:[#allocation8_spill] sm:$0xff]  ;;  %v13735_v37 = vld [vmem:[#allocation10_spill] sm:$0xff] }
 0x10a   :  { %1019 = vmatpush.msra.mxu2 %v7629_v35  ;;  %1039 = vmatpush.msra.mxu3 %v7647_v38  ;;  %v13732_v34 = vld [vmem:[#allocation20_spill] sm:$0xff]  ;;  %v13733_v35 = vld [vmem:[#allocation19_spill] sm:$0xff] }
 0x10b   :  { %980 = vmatpush.msrb.mxu0 %v13690_v53  ;;  %1000 = vmatpush.msra.mxu1 %v7682_v43  ;;  %v13736_v38 = vld [vmem:[#allocation23_spill] sm:$0xff]  ;;  %v13740_v43 = vld [vmem:[#allocation26_spill] sm:$0xff] }
 0x10c   :  { %1020 = vmatpush.msra.mxu2 %v7674_v42  ;;  %1040 = vmatpush.msra.mxu3 %v7687_v44  ;;  %v13739_v42 = vld [vmem:[#allocation11_spill] sm:$0xff]  ;;  %v13741_v44 = vld [vmem:[#allocation24_spill] sm:$0xff] }
 0x10d   :  { %981 = vmatpush.msrb.mxu0 %v13691_v40  ;;  %1001 = vmatpush.msra.mxu1 %v7708_v47  ;;  %v13744_v47 = vld [vmem:[#allocation29_spill] sm:$0xff] }
 0x10e   :  { %1021 = vmatpush.msra.mxu2 %v7701_v46  ;;  %1041 = vmatpush.msra.mxu3 %v7713_v48  ;;  %v13743_v46 = vld [vmem:[#allocation12_spill] sm:$0xff]  ;;  %v13745_v48 = vld [vmem:[#allocation27_spill] sm:$0xff] }
 0x10f   :  { %982 = vmatpush.msrb.mxu0 %v7597_v30  ;;  %1002 = vmatpush.msra.mxu1 %v7758_v55  ;;  %v13728_v30 = vld [vmem:[#allocation17_spill] sm:$0xff]  ;;  %v13748_v55 = vld [vmem:[#allocation32_spill] sm:$0xff] }
 0x110   :  { %1022 = vmatpush.msra.mxu2 %v7725_v50  ;;  %1042 = vmatpush.msra.mxu3 %v7732_v51  ;;  %v13746_v50 = vld [vmem:[#allocation31_spill] sm:$0xff]  ;;  %v13747_v51 = vld [vmem:[#allocation13_spill] sm:$0xff] }
 0x111   :  { %983 = vmatpush.msrb.mxu0 %v7613_v32  ;;  %1003 = vmatpush.msra.mxu1 %v7786_v59  ;;  %v13730_v32 = vld [vmem:[#allocation18_spill] sm:$0xff] }
 0x112   :  { %1023 = vmatpush.msra.mxu2 %v7767_v56  ;;  %1043 = vmatpush.msra.mxu3 %v7772_v57  ;;  %v13749_v56 = vld [vmem:[#allocation30_spill] sm:$0xff]  ;;  %v13750_v57 = vld [vmem:[#allocation33_spill] sm:$0xff] }
 0x113   :  { %984 = vmatpush.msrb.mxu0 %v7634_v36  ;;  %1004 = vmatpush.msra.mxu1 %v7810_v63  ;;  %v13734_v36 = vld [vmem:[#allocation22_spill] sm:$0xff]  ;;  %v13754_v63 = vld [vmem:[#allocation36_spill] sm:$0xff] }
 0x114   :  { %1024 = vmatpush.msra.mxu2 %v7793_v60  ;;  %1044 = vmatpush.msra.mxu3 %v7798_v61  ;;  %v13751_v59 = vld [vmem:[#allocation14_spill] sm:$0xff]  ;;  %v13752_v60 = vld [vmem:[#allocation35_spill] sm:$0xff] }
 0x115   :  { %985 = vmatpush.msrb.mxu0 %v7652_v39  ;;  %1005 = vmatpush.msra.mxu1 %v7834_v2  ;;  %v13737_v39 = vld [vmem:[#allocation21_spill] sm:$0xff]  ;;  %v13753_v61 = vld [vmem:[#allocation34_spill] sm:$0xff] }
 0x116   :  { %1025 = vmatpush.msra.mxu2 %v7817_v0  ;;  %1045 = vmatpush.msra.mxu3 %v7839_v3  ;;  %v13755_v0 = vld [vmem:[#allocation55_spill] sm:$0xff]  ;;  %v13756_v2 = vld [vmem:[#allocation6_spill] sm:$0xff] }
 0x117   :  { %986 = vmatpush.msrb.mxu0 %v7668_v41  ;;  %1006 = vmatpush.msra.mxu1 %v7855_v6  ;;  %v13738_v41 = vld [vmem:[#allocation25_spill] sm:$0xff]  ;;  %v101_v3 = vadd.f32 %v13756_v2, %v13755_v0  ;;  %v13758_v6 = vld [vmem:[#allocation38_spill] sm:$0xff] }
 0x118   :  { %1026 = vmatpush.msra.mxu2 %v7847_v4  ;;  %1046 = vmatpush.msra.mxu3 %v13726_v23  ;;  %v13757_v4 = vld [vmem:[#allocation62_spill] sm:$0xff] }
 0x119   :  { %987 = vmatpush.msrb.mxu0 %v13727_v26  ;;  %1007 = vmatpush.msra.mxu1 %v13728_v30  ;;  %v130_v8 = vadd.f32 %v13758_v6, %v13757_v4 }
 0x11a   :  { %1027 = vmatpush.msra.mxu2 %v13729_v31  ;;  %1047 = vmatpush.msra.mxu3 %v13730_v32 }
 0x11b   :  { %988 = vmatpush.msrb.mxu0 %v13731_v33  ;;  %1008 = vmatpush.msra.mxu1 %v13732_v34 }
 0x11c   :  { %1028 = vmatpush.msra.mxu2 %v13733_v35  ;;  %1048 = vmatpush.msra.mxu3 %v13734_v36 }
 0x11d   :  { %989 = vmatpush.msrb.mxu0 %v13735_v37  ;;  %1009 = vmatpush.msra.mxu1 %v13736_v38 }
 0x11e   :  { %1029 = vmatpush.msra.mxu2 %v13737_v39  ;;  %1049 = vmatpush.msra.mxu3 %v13738_v41 }
 0x11f   :  { %990 = vmatpush.msrb.mxu0 %v13739_v42  ;;  %1010 = vmatpush.msra.mxu1 %v13740_v43 }
 0x120   :  { %1030 = vmatpush.msra.mxu2 %v13741_v44  ;;  %1050 = vmatpush.msra.mxu3 %v13742_v45 }
 0x121   :  { %991 = vmatpush.msrb.mxu0 %v13743_v46  ;;  %1011 = vmatpush.msra.mxu1 %v13744_v47 }
 0x122   :  { %1031 = vmatpush.msra.mxu2 %v13745_v48  ;;  %1051 = vmatpush.msra.mxu3 %v13746_v50 }
 0x123   :  { %992 = vmatpush.msrb.mxu0 %v13747_v51  ;;  %1012 = vmatpush.msra.mxu1 %v13748_v55 }
 0x124   :  { %1032 = vmatpush.msra.mxu2 %v13749_v56  ;;  %1052 = vmatpush.msra.mxu3 %v13750_v57 }
 0x125   :  { %993 = vmatpush.msrb.mxu0 %v13751_v59  ;;  %1013 = vmatpush.msra.mxu1 %v13752_v60 }
 0x126   :  { %1033 = vmatpush.msra.mxu2 %v13753_v61  ;;  %1053 = vmatpush.msra.mxu3 %v13754_v63 }
 0x182   :  { %v655_v9 = vpop.f32.mrf.mxu0  ;;  %v675_v10 = vpop.f32.mrf.mxu1 }
 0x183   :  { %v718_v53 = vadd.f32 %v655_v9, %v101_v3  ;;  %v719_v40 = vadd.f32 %v675_v10, %v130_v8 }
 0x185   :  { %v6583_v29 = vmul.f32 -1.442695, %v718_v53  ;;  %v6584_v20 = vmul.f32 -1.442695, %v719_v40 }
 0x187   :  { %6844 = vpow2.f32 %v6583_v29 }
 0x188   :  { %6846 = vpow2.f32 %v6584_v20 }
 0x189   :  { %v695_v28 = vpop.f32.mrf.mxu2  ;;  %v715_v15 = vpop.f32.mrf.mxu3 }
 0x18a   :  { %v720_v54 = vadd.f32 %v695_v28, %v159_v21  ;;  %v721_v5 = vadd.f32 %v715_v15, %v188_v27 }
 0x18c   :  { %v6585_v18 = vmul.f32 -1.442695, %v720_v54  ;;  %v6586_v17 = vmul.f32 -1.442695, %v721_v5  ;;  %v13766_v54 = vld [vmem:[#allocation42_spill] sm:$0xff] }
 0x18d   :  { %v6845_v11 = vpop.eup %6844  ;;  %v133_v5 = vadd.f32 %v13766_v54, %v13757_v4 }
 0x18e   :  { %v6847_v16 = vpop.eup %6846  ;;  %v734_v58 = vadd.f32 1.0, %v6845_v11  ;;  %6848 = vpow2.f32 %v6585_v18 }
 0x18f   :  { %v735_v52 = vadd.f32 1.0, %v6847_v16  ;;  %6850 = vpow2.f32 %v6586_v17 }
 0x190   :  { %6852 = vrcp.f32 %v734_v58  ;;  %vm743_vm7 = vweird.f32 %v734_v58  ;;  %v747_v44 = vand.u32 2147483647, %v734_v58  ;;  %v749_v45 = vand.u32 2147483648, %v734_v58 }
 0x191   :  { %6854 = vrcp.f32 %v735_v52  ;;  %vm758_vm5 = vweird.f32 %v735_v52  ;;  %v762_v38 = vand.u32 2147483647, %v735_v52  ;;  %v764_v39 = vand.u32 2147483648, %v735_v52 }
 0x192   :  { %v750_v60 = vor.u32 1.1754944e-38, %v749_v45  ;;  %vm748_vm14 = vcmp.eq.f32.partialorder %v747_v44, 8.507059e+37 }
 0x193   :  { %v765_v55 = vor.u32 1.1754944e-38, %v764_v39  ;;  %vm763_vm11 = vcmp.eq.f32.partialorder %v762_v38, 8.507059e+37 }
 0x194   :  { %v6849_v14 = vpop.eup %6848 }
 0x195   :  { %v6851_v19 = vpop.eup %6850  ;;  %v736_v1 = vadd.f32 1.0, %v6849_v14  ;;  %v13767_v14 = vld [vmem:[#allocation44_spill] sm:$0xff] }
 0x196   :  { %v6853_v49 = vpop.eup %6852  ;;  %v737_v62 = vadd.f32 1.0, %v6851_v19  ;;  %v162_v19 = vadd.f32 %v13767_v14, %v13759_v22 }
 0x197   :  { %v6855_v12 = vpop.eup %6854  ;;  %v739_v23 = vmul.f32 %v6853_v49, %v734_v58  ;;  %6856 = vrcp.f32 %v736_v1  ;;  %vm744_vm6 = vweird.f32 %v6853_v49  ;;  %v779_v47 = vand.u32 2147483648, %v736_v1 }
 0x198   :  { %v754_v26 = vmul.f32 %v6855_v12, %v735_v52  ;;  %6858 = vrcp.f32 %v737_v62  ;;  %vm759_vm4 = vweird.f32 %v6855_v12  ;;  %v777_v51 = vand.u32 2147483647, %v736_v1  ;;  %vm745_vm10 = vmor %vm743_vm7, %vm744_vm6 }
 0x199   :  { %v740_v30 = vsub.f32 1.0, %v739_v23  ;;  %vm8302_vm8 = vmor %vm758_vm5, %vm759_vm4  ;;  %vm773_vm12 = vweird.f32 %v736_v1  ;;  %v780_v61 = vor.u32 1.1754944e-38, %v779_v47  ;;  %v794_v29 = vand.u32 2147483648, %v737_v62 }
 0x19a   :  { %v755_v31 = vsub.f32 1.0, %v754_v26  ;;  %vm778_vm15 = vcmp.eq.f32.partialorder %v777_v51, 8.507059e+37  ;;  %vm788_vm3 = vweird.f32 %v737_v62  ;;  %v792_v20 = vand.u32 2147483647, %v737_v62 }
 0x19b   :  { %v741_v32 = vmul.f32 %v6853_v49, %v740_v30  ;;  %v795_v21 = vor.u32 1.1754944e-38, %v794_v29 }
 0x19c   :  { %v756_v33 = vmul.f32 %v6855_v12, %v755_v31  ;;  %vm793_vm5 = vcmp.eq.f32.partialorder %v792_v20, 8.507059e+37 }
 0x19d   :  { %v6857_v34 = vpop.eup %6856  ;;  %v742_v41 = vadd.f32 %v6853_v49, %v741_v32 }
 0x19e   :  { %v757_v35 = vadd.f32 %v6855_v12, %v756_v33  ;;  %v769_v36 = vmul.f32 %v6857_v34, %v736_v1  ;;  %v6859_v37 = vpop.eup %6858  ;;  %vm774_vm9 = vweird.f32 %v6857_v34  ;;  %v13768_v1 = vld [vmem:[#allocation45_spill] sm:$0xff] }
 0x19f   :  { %v784_v43 = vmul.f32 %v6859_v37, %v737_v62  ;;  %v746_v57 = vsel %vm745_vm10, %v6853_v49, %v742_v41  ;;  %vm775_vm13 = vmor %vm773_vm12, %vm774_vm9  ;;  %vm789_vm2 = vweird.f32 %v6859_v37  ;;  %v191_v49 = vadd.f32 %v13768_v1, %v13761_v25 }
 0x1a0   :  { %v770_v42 = vsub.f32 1.0, %v769_v36  ;;  %v761_v48 = vsel %vm8302_vm8, %v6855_v12, %v757_v35  ;;  %v751_v3 = vsel %vm748_vm14, %v750_v60, %v746_v57  ;;  %vm790_vm4 = vmor %vm788_vm3, %vm789_vm2 }
 0x1a1   :  { %v785_v56 = vsub.f32 1.0, %v784_v43  ;;  %v766_v63 = vsel %vm763_vm11, %v765_v55, %v761_v48 }
 0x1a2   :  { %v771_v50 = vmul.f32 %v6857_v34, %v770_v42  ;;  %v798_v9 = vmul.f32 %v766_v63, %v8227_v7  ;;  %v13765_v7 = vld [vmem:[#allocation7_spill] sm:$0xff] }
 0x1a3   :  { %v786_v8 = vmul.f32 %v6859_v37, %v785_v56  ;;  %v104_v15 = vadd.f32 %v13765_v7, %v13755_v0 }
 0x1a4   :  { %v772_v59 = vadd.f32 %v6857_v34, %v771_v50 }
 0x1a5   :  { %v787_v40 = vadd.f32 %v6859_v37, %v786_v8 }
 0x1a6   :  { %v776_v2 = vsel %vm775_vm13, %v6857_v34, %v772_v59 }
 0x1a7   :  { %v781_v6 = vsel %vm778_vm15, %v780_v61, %v776_v2  ;;  %v791_v24 = vsel %vm790_vm4, %v6859_v37, %v787_v40 }
 0x1a8   :  { %v799_v10 = vmul.f32 %v781_v6, %v751_v3  ;;  %v796_v27 = vsel %vm793_vm5, %v795_v21, %v791_v24  ;;  %v6596_v6 = vld [vmem:[%s13123_s0 + $0x48] sm:$0xff] }
 0x1aa   :  { %v8309_v53 = vadd.f32 %v799_v10, %v798_v9 }
 0x1ac   :  { %6860 = vtanh.f32 %v8309_v53 }
 0x1b2   :  { %v6861_v13 = vpop.eup %6860 }
 0x1b3   :  { %v802_v28 = vmul.f32 %v6861_v13, %v796_v27 }
 0x1b5   :  { %824 = vmatmul.f32.vlgmr.msra.gmra.mxu0 %v802_v28  ;;  %844 = vmatmul.f32.vlgmr.msrb.gmra.mxu1 %v802_v28 }
 0x1b6   :  { %864 = vmatmul.f32.vlgmr.msrb.gmra.mxu2 %v802_v28  ;;  %884 = vmatmul.f32.vlgmr.msrb.gmra.mxu3 %v802_v28 }
 0x232   :  { %v825_v18 = vpop.f32.mrf.mxu0  ;;  %v845_v17 = vpop.f32.mrf.mxu1 }
 0x233   :  { %v888_v11 = vadd.f32 %v825_v18, %v104_v15  ;;  %v889_v16 = vadd.f32 %v845_v17, %v133_v5 }
 0x235   :  { %v6587_v58 = vmul.f32 -1.442695, %v888_v11  ;;  %v6588_v52 = vmul.f32 -1.442695, %v889_v16 }
 0x237   :  { %6862 = vpow2.f32 %v6587_v58 }
 0x238   :  { %6864 = vpow2.f32 %v6588_v52 }
 0x239   :  { %v865_v62 = vpop.f32.mrf.mxu2  ;;  %v885_v12 = vpop.f32.mrf.mxu3 }
 0x23a   :  { %v890_v23 = vadd.f32 %v865_v62, %v162_v19  ;;  %v891_v26 = vadd.f32 %v885_v12, %v191_v49  ;;  %v1160_v12 = vld [vmem:[%s13124_s1 + $0x60] sm:$0xf] }
 0x23b   :  { %6599 = vmatpush.msk.msra.mxu0 %vm67_vm0, %v1160_v12  ;;  %v8583_v12 = vld [vmem:[%s13126_s3 + $0x108] sm:$0xff] }
 0x23c   :  { %v6589_v30 = vmul.f32 -1.442695, %v890_v23  ;;  %v6590_v31 = vmul.f32 -1.442695, %v891_v26  ;;  %v1161_v23 = vld [vmem:[%s13124_s1 + $0x68] sm:$0xf] }
 0x23d   :  { %v6863_v32 = vpop.eup %6862  ;;  %v1163_v26 = vld [vmem:[%s13124_s1 + $0x78] sm:$0xf]  ;;  %6604 = vmatpush.msk.msrb.mxu1 %vm67_vm0, %v1161_v23 }
 0x23e   :  { %v6865_v33 = vpop.eup %6864  ;;  %v904_v34 = vadd.f32 1.0, %v6863_v32  ;;  %6866 = vpow2.f32 %v6589_v30  ;;  %6614 = vmatpush.msk.msrb.mxu3 %vm67_vm0, %v1163_v26  ;;  %v1158_v30 = vld [vmem:[%s13124_s1 + $0x50] sm:$0xff]  ;;  %v1157_v32 = vld [vmem:[%s13124_s1 + $0x48] sm:$0xff]  ;;  %v8588_v23 = vld [vmem:[%s13126_s3 + $0x118] sm:$0xff] }
 0x23f   :  { %v905_v35 = vadd.f32 1.0, %v6865_v33  ;;  %6868 = vpow2.f32 %v6590_v31  ;;  %v1156_v31 = vld [vmem:[%s13124_s1 + $0x40] sm:$0xff]  ;;  %v1159_v33 = vld [vmem:[%s13124_s1 + $0x58] sm:$0xff]  ;;  %1240 = vmatpush.msrb.mxu1 %v1157_v32  ;;  %v8602_v32 = vld [vmem:[%s13126_s3 + $0xf0] sm:$0xff] }
 0x240   :  { %6870 = vrcp.f32 %v904_v34  ;;  %vm913_vm9 = vweird.f32 %v904_v34  ;;  %v917_v2 = vand.u32 2147483647, %v904_v34  ;;  %v919_v3 = vand.u32 2147483648, %v904_v34  ;;  %1211 = vmatpush.msra.mxu0 %v1156_v31  ;;  %1298 = vmatpush.msrb.mxu3 %v1159_v33  ;;  %13779 = vst [vmem:[#allocation18_spill] sm:$0xff] %v8602_v32  ;;  %v8607_v33 = vld [vmem:[%s13126_s3 + $0xe0] sm:$0xff] }
 0x241   :  { %6872 = vrcp.f32 %v905_v35  ;;  %vm928_vm7 = vweird.f32 %v905_v35  ;;  %v932_v57 = vand.u32 2147483647, %v905_v35  ;;  %v934_v59 = vand.u32 2147483648, %v905_v35 }
 0x242   :  { %v920_v13 = vor.u32 1.1754944e-38, %v919_v3  ;;  %vm918_vm2 = vcmp.eq.f32.partialorder %v917_v2, 8.507059e+37  ;;  %v8472_v2 = vld [vmem:[%s13126_s3 + $0x188] sm:$0xff]  ;;  %v8477_v3 = vld [vmem:[%s13126_s3 + $0x198] sm:$0xff] }
 0x243   :  { %v935_v29 = vor.u32 1.1754944e-38, %v934_v59  ;;  %vm933_vm13 = vcmp.eq.f32.partialorder %v932_v57, 8.507059e+37  ;;  %v8441_v57 = vld [vmem:[%s13126_s3 + $0x1a0] sm:$0xff]  ;;  %v8448_v59 = vld [vmem:[%s13126_s3 + $0x1a8] sm:$0xff] }
 0x244   :  { %v6867_v36 = vpop.eup %6866 }
 0x245   :  { %v6869_v37 = vpop.eup %6868  ;;  %v906_v38 = vadd.f32 1.0, %v6867_v36  ;;  %v1153_v36 = vld [vmem:[%s13124_s1 + $0x28] sm:$0xff] }
 0x246   :  { %v6871_v39 = vpop.eup %6870  ;;  %v907_v41 = vadd.f32 1.0, %v6869_v37  ;;  %v1155_v37 = vld [vmem:[%s13124_s1 + $0x38] sm:$0xff]  ;;  %1241 = vmatpush.msrb.mxu1 %v1153_v36  ;;  %v8614_v36 = vld [vmem:[%s13126_s3 + $0xe8] sm:$0xff] }
 0x247   :  { %v6873_v42 = vpop.eup %6872  ;;  %v909_v43 = vmul.f32 %v6871_v39, %v904_v34  ;;  %6874 = vrcp.f32 %v906_v38  ;;  %vm914_vm8 = vweird.f32 %v6871_v39  ;;  %v949_v8 = vand.u32 2147483648, %v906_v38  ;;  %v1154_v34 = vld [vmem:[%s13124_s1 + $0x30] sm:$0xff]  ;;  %1299 = vmatpush.msrb.mxu3 %v1155_v37  ;;  %v8619_v37 = vld [vmem:[%s13126_s3 + $0xf8] sm:$0xff] }
 0x248   :  { %v924_v44 = vmul.f32 %v6873_v42, %v905_v35  ;;  %6876 = vrcp.f32 %v907_v41  ;;  %vm929_vm6 = vweird.f32 %v6873_v42  ;;  %v947_v40 = vand.u32 2147483647, %v906_v38  ;;  %vm915_vm12 = vmor %vm913_vm9, %vm914_vm8  ;;  %v1152_v35 = vld [vmem:[%s13124_s1 + $0x20] sm:$0xff]  ;;  %13780 = vst [vmem:[#allocation9_spill] sm:$0xff] %v8619_v37 }
 0x249   :  { %v910_v45 = vsub.f32 1.0, %v909_v43  ;;  %vm8320_vm10 = vmor %vm928_vm7, %vm929_vm6  ;;  %vm943_vm14 = vweird.f32 %v906_v38  ;;  %v950_v27 = vor.u32 1.1754944e-38, %v949_v8  ;;  %v964_v58 = vand.u32 2147483648, %v907_v41  ;;  %1212 = vmatpush.msra.mxu0 %v1152_v35  ;;  %v6595_v43 = vld [vmem:[%s13123_s0 + $0x40] sm:$0xff] }
 0x24a   :  { %v925_v46 = vsub.f32 1.0, %v924_v44  ;;  %vm948_vm3 = vcmp.eq.f32.partialorder %v947_v40, 8.507059e+37  ;;  %vm958_vm5 = vweird.f32 %v907_v41  ;;  %v962_v52 = vand.u32 2147483647, %v907_v41  ;;  %v8388_v44 = vld [vmem:[%s13126_s3 + $0x1f0] sm:$0xff]  ;;  %v13775_v8 = vld [vmem:[#allocation37_spill] sm:$0xff] }
 0x24b   :  { %v911_v47 = vmul.f32 %v6871_v39, %v910_v45  ;;  %v965_v19 = vor.u32 1.1754944e-38, %v964_v58  ;;  %13771 = vst [vmem:[#allocation15_spill] sm:$0xff] %v8388_v44  ;;  %v8393_v45 = vld [vmem:[%s13126_s3 + $0x1e0] sm:$0xff]  ;;  %v8555_v58 = vld [vmem:[%s13126_s3 + $0x128] sm:$0xff] }
 0x24c   :  { %v926_v48 = vmul.f32 %v6873_v42, %v925_v46  ;;  %vm963_vm7 = vcmp.eq.f32.partialorder %v962_v52, 8.507059e+37  ;;  %13772 = vst [vmem:[#allocation8_spill] sm:$0xff] %v8393_v45  ;;  %v8400_v46 = vld [vmem:[%s13126_s3 + $0x1e8] sm:$0xff]  ;;  %v8560_v52 = vld [vmem:[%s13126_s3 + $0x138] sm:$0xff] }
 0x24d   :  { %v6875_v50 = vpop.eup %6874  ;;  %v912_v60 = vadd.f32 %v6871_v39, %v911_v47  ;;  %13773 = vst [vmem:[#allocation17_spill] sm:$0xff] %v8400_v46  ;;  %v8405_v47 = vld [vmem:[%s13126_s3 + $0x1f8] sm:$0xff] }
 0x24e   :  { %v927_v51 = vadd.f32 %v6873_v42, %v926_v48  ;;  %v939_v55 = vmul.f32 %v6875_v50, %v906_v38  ;;  %v6877_v56 = vpop.eup %6876  ;;  %vm944_vm11 = vweird.f32 %v6875_v50  ;;  %v1150_v38 = vld [vmem:[%s13124_s1 + $0x10] sm:$0xff]  ;;  %13774 = vst [vmem:[#allocation16_spill] sm:$0xff] %v8405_v47 }
 0x24f   :  { %v954_v63 = vmul.f32 %v6877_v56, %v907_v41  ;;  %v916_v24 = vsel %vm915_vm12, %v6871_v39, %v912_v60  ;;  %vm945_vm15 = vmor %vm943_vm14, %vm944_vm11  ;;  %vm959_vm4 = vweird.f32 %v6877_v56  ;;  %v1148_v39 = vld [vmem:[%s13124_s1] sm:$0xff]  ;;  %v1149_v41 = vld [vmem:[%s13124_s1 + $0x8] sm:$0xff] }
 0x250   :  { %v940_v61 = vsub.f32 1.0, %v939_v55  ;;  %v931_v9 = vsel %vm8320_vm10, %v6873_v42, %v927_v51  ;;  %v921_v15 = vsel %vm918_vm2, %v920_v13, %v916_v24  ;;  %vm960_vm6 = vmor %vm958_vm5, %vm959_vm4  ;;  %1213 = vmatpush.msra.mxu0 %v1148_v39  ;;  %v1151_v42 = vld [vmem:[%s13124_s1 + $0x18] sm:$0xff]  ;;  %1242 = vmatpush.msrb.mxu1 %v1149_v41  ;;  %v8412_v48 = vld [vmem:[%s13126_s3 + $0x1d0] sm:$0xff] }
 0x251   :  { %v955_v20 = vsub.f32 1.0, %v954_v63  ;;  %v936_v28 = vsel %vm933_vm13, %v935_v29, %v931_v9  ;;  %1300 = vmatpush.msrb.mxu3 %v1151_v42  ;;  %v8424_v51 = vld [vmem:[%s13126_s3 + $0x1c8] sm:$0xff]  ;;  %v8429_v55 = vld [vmem:[%s13126_s3 + $0x1d8] sm:$0xff]  ;;  %v8465_v63 = vld [vmem:[%s13126_s3 + $0x180] sm:$0xff]  ;;  %v107_v9 = vadd.f32 %v13775_v8, %v13755_v0 }
 0x252   :  { %v941_v10 = vmul.f32 %v6875_v50, %v940_v61  ;;  %v968_v18 = vmul.f32 %v936_v28, %v8309_v53  ;;  %v1162_v53 = vld [vmem:[%s13124_s1 + $0x70] sm:$0xf]  ;;  %v8453_v60 = vld [vmem:[%s13126_s3 + $0x1b8] sm:$0xff]  ;;  %v8507_v0 = vld [vmem:[%s13126_s3 + $0x168] sm:$0xff] }
 0x253   :  { %v956_v5 = vmul.f32 %v6877_v56, %v955_v20  ;;  %6609 = vmatpush.msk.msrb.mxu2 %vm67_vm0, %v1162_v53  ;;  %v8460_v61 = vld [vmem:[%s13126_s3 + $0x190] sm:$0xff]  ;;  %v8500_v20 = vld [vmem:[%s13126_s3 + $0x160] sm:$0xff]  ;;  %v8645_v8 = vld [vmem:[%s13126_s3 + $0xd8] sm:$0xff] }
 0x254   :  { %v942_v21 = vadd.f32 %v6875_v50, %v941_v10  ;;  %v13776_v10 = vld [vmem:[#allocation46_spill] sm:$0xff]  ;;  %v8495_v29 = vld [vmem:[%s13126_s3 + $0x170] sm:$0xff]  ;;  %v8631_v41 = vld [vmem:[%s13126_s3 + $0xc0] sm:$0xff]  ;;  %13784 = vst [vmem:[#allocation10_spill] sm:$0xff] %v8645_v8 }
 0x255   :  { %v957_v16 = vadd.f32 %v6877_v56, %v956_v5  ;;  %1269 = vmatpush.msrb.mxu2 %v1158_v30  ;;  %v136_v40 = vadd.f32 %v13776_v10, %v13757_v4  ;;  %v8512_v4 = vld [vmem:[%s13126_s3 + $0x178] sm:$0xff]  ;;  %v8519_v28 = vld [vmem:[%s13126_s3 + $0x150] sm:$0xff]  ;;  %13782 = vst [vmem:[#allocation19_spill] sm:$0xff] %v8631_v41 }
 0x256   :  { %v946_v7 = vsel %vm945_vm15, %v6875_v50, %v942_v21  ;;  %v8417_v50 = vld [vmem:[%s13126_s3 + $0x1c0] sm:$0xff]  ;;  %v8626_v39 = vld [vmem:[%s13126_s3 + $0xd0] sm:$0xff] }
 0x257   :  { %v951_v54 = vsel %vm948_vm3, %v950_v27, %v946_v7  ;;  %v961_v14 = vsel %vm960_vm6, %v6877_v56, %v957_v16  ;;  %1270 = vmatpush.msrb.mxu2 %v1154_v34  ;;  %v8436_v56 = vld [vmem:[%s13126_s3 + $0x1b0] sm:$0xff]  ;;  %v8524_v7 = vld [vmem:[%s13126_s3 + $0x140] sm:$0xff]  ;;  %13781 = vst [vmem:[#allocation20_spill] sm:$0xff] %v8626_v39 }
 0x258   :  { %v969_v17 = vmul.f32 %v951_v54, %v921_v15  ;;  %v966_v49 = vsel %vm963_vm7, %v965_v19, %v961_v14  ;;  %v8531_v15 = vld [vmem:[%s13126_s3 + $0x148] sm:$0xff]  ;;  %v8536_v54 = vld [vmem:[%s13126_s3 + $0x158] sm:$0xff]  ;;  %v8548_v16 = vld [vmem:[%s13126_s3 + $0x120] sm:$0xff] }
 0x259   :  { %1271 = vmatpush.msrb.mxu2 %v1150_v38  ;;  %v8567_v14 = vld [vmem:[%s13126_s3 + $0x110] sm:$0xff]  ;;  %v8572_v19 = vld [vmem:[%s13126_s3 + $0x100] sm:$0xff] }
 0x25a   :  { %v8327_v11 = vadd.f32 %v969_v17, %v968_v18  ;;  %v8543_v17 = vld [vmem:[%s13126_s3 + $0x130] sm:$0xff] }
 0x25b   :  { %v8654_v10 = vld [vmem:[%s13126_s3 + $0xb0] sm:$0xff] }
 0x25c   :  { %6878 = vtanh.f32 %v8327_v11  ;;  %13785 = vst [vmem:[#allocation23_spill] sm:$0xff] %v8654_v10 }
 0x262   :  { %v6879_v1 = vpop.eup %6878 }
 0x263   :  { %v972_v62 = vmul.f32 %v6879_v1, %v966_v49  ;;  %v13777_v1 = vld [vmem:[#allocation48_spill] sm:$0xff] }
 0x264   :  { %v165_v49 = vadd.f32 %v13777_v1, %v13759_v22  ;;  %v6598_v1 = vld [vmem:[%s13123_s0 + $0x58] sm:$0xff] }
 0x265   :  { %994 = vmatmul.f32.vlgmr.msrb.gmra.mxu0 %v972_v62  ;;  %1014 = vmatmul.f32.vlgmr.msra.gmra.mxu1 %v972_v62 }
 0x266   :  { %1034 = vmatmul.f32.vlgmr.msra.gmra.mxu2 %v972_v62  ;;  %1054 = vmatmul.f32.vlgmr.msra.gmra.mxu3 %v972_v62  ;;  %v13778_v62 = vld [vmem:[#allocation49_spill] sm:$0xff] }
 0x267   :  { %1439 = vmatpush.msra.mxu2 %v8388_v44  ;;  %1399 = vmatpush.msrb.mxu0 %v8393_v45  ;;  %v194_v53 = vadd.f32 %v13778_v62, %v13761_v25  ;;  %v6597_v25 = vld [vmem:[%s13123_s0 + $0x50] sm:$0xff] }
 0x268   :  { %1419 = vmatpush.msra.mxu1 %v8400_v46  ;;  %1459 = vmatpush.msra.mxu3 %v8405_v47 }
 0x269   :  { %1440 = vmatpush.msra.mxu2 %v8412_v48  ;;  %1400 = vmatpush.msrb.mxu0 %v8417_v50 }
 0x26a   :  { %1420 = vmatpush.msra.mxu1 %v8424_v51  ;;  %1460 = vmatpush.msra.mxu3 %v8429_v55 }
 0x26b   :  { %1441 = vmatpush.msra.mxu2 %v8436_v56  ;;  %1401 = vmatpush.msrb.mxu0 %v8441_v57 }
 0x26c   :  { %1421 = vmatpush.msra.mxu1 %v8448_v59  ;;  %1461 = vmatpush.msra.mxu3 %v8453_v60 }
 0x26d   :  { %6600 = vmatmul.msk.f32.vlgmr.msra.gmra.mxu0 %vm54_vm1, %v6595_v43  ;;  %6605 = vmatmul.msk.f32.vlgmr.msrb.gmra.mxu1 %vm54_vm1, %v6595_v43 }
 0x26e   :  { %6610 = vmatmul.msk.f32.vlgmr.msrb.gmra.mxu2 %vm54_vm1, %v6595_v43  ;;  %6615 = vmatmul.msk.f32.vlgmr.msrb.gmra.mxu3 %vm54_vm1, %v6595_v43 }
 0x26f   :  { %1442 = vmatpush.msra.mxu2 %v8460_v61  ;;  %1402 = vmatpush.msrb.mxu0 %v8465_v63 }
 0x270   :  { %1422 = vmatpush.msra.mxu1 %v8472_v2  ;;  %1462 = vmatpush.msra.mxu3 %v8477_v3 }
 0x271   :  { %1443 = vmatpush.msra.mxu2 %v8495_v29  ;;  %1403 = vmatpush.msrb.mxu0 %v8500_v20 }
 0x272   :  { %1423 = vmatpush.msra.mxu1 %v8507_v0  ;;  %1463 = vmatpush.msra.mxu3 %v8512_v4 }
 0x273   :  { %1444 = vmatpush.msra.mxu2 %v8519_v28  ;;  %1404 = vmatpush.msrb.mxu0 %v8524_v7 }
 0x274   :  { %1424 = vmatpush.msra.mxu1 %v8531_v15  ;;  %1464 = vmatpush.msra.mxu3 %v8536_v54 }
 0x275   :  { %6601 = vmatmul.msk.f32.gmra.mxu0 %vm54_vm1, %v6596_v6  ;;  %6606 = vmatmul.msk.f32.gmra.mxu1 %vm54_vm1, %v6596_v6 }
 0x276   :  { %6611 = vmatmul.msk.f32.gmra.mxu2 %vm54_vm1, %v6596_v6  ;;  %6616 = vmatmul.msk.f32.gmra.mxu3 %vm54_vm1, %v6596_v6  ;;  %v8640_v6 = vld [vmem:[%s13126_s3 + $0xc8] sm:$0xff] }
 0x277   :  { %1445 = vmatpush.msra.mxu2 %v8543_v17  ;;  %1405 = vmatpush.msrb.mxu0 %v8548_v16  ;;  %13783 = vst [vmem:[#allocation22_spill] sm:$0xff] %v8640_v6 }
 0x278   :  { %1425 = vmatpush.msra.mxu1 %v8555_v58  ;;  %1465 = vmatpush.msra.mxu3 %v8560_v52 }
 0x279   :  { %1446 = vmatpush.msra.mxu2 %v8567_v14  ;;  %1406 = vmatpush.msrb.mxu0 %v8572_v19 }
 0x27a   :  { %1426 = vmatpush.msra.mxu1 %v8583_v12  ;;  %1466 = vmatpush.msra.mxu3 %v8588_v23 }
 0x27b   :  { %1447 = vmatpush.msra.mxu2 %v8602_v32  ;;  %1407 = vmatpush.msrb.mxu0 %v8607_v33 }
 0x27c   :  { %1427 = vmatpush.msra.mxu1 %v8614_v36  ;;  %1467 = vmatpush.msra.mxu3 %v8619_v37 }
 0x27d   :  { %6602 = vmatmul.msk.f32.gmra.mxu0 %vm54_vm1, %v6597_v25  ;;  %6607 = vmatmul.msk.f32.gmra.mxu1 %vm54_vm1, %v6597_v25 }
 0x27e   :  { %6612 = vmatmul.msk.f32.gmra.mxu2 %vm54_vm1, %v6597_v25  ;;  %6617 = vmatmul.msk.f32.gmra.mxu3 %vm54_vm1, %v6597_v25 }
 0x27f   :  { %1448 = vmatpush.msra.mxu2 %v8626_v39  ;;  %1408 = vmatpush.msrb.mxu0 %v8631_v41 }
 0x280   :  { %1428 = vmatpush.msra.mxu1 %v8640_v6  ;;  %1468 = vmatpush.msra.mxu3 %v8645_v8 }
 0x281   :  { %1449 = vmatpush.msra.mxu2 %v8654_v10 }
 0x285   :  { %6603 = vmatmul.msk.f32.gmra.mxu0 %vm54_vm1, %v6598_v1  ;;  %6608 = vmatmul.msk.f32.gmra.mxu1 %vm54_vm1, %v6598_v1 }
 0x286   :  { %6613 = vmatmul.msk.f32.gmra.mxu2 %vm54_vm1, %v6598_v1  ;;  %6618 = vmatmul.msk.f32.gmra.mxu3 %vm54_vm1, %v6598_v1  ;;  %v8760_v1 = vld [vmem:[%s13126_s3 + $0x48] sm:$0xff] }
 0x287   :  { %13799 = vst [vmem:[#allocation33_spill] sm:$0xff] %v8760_v1 }
 0x2e2   :  { %v995_v24 = vpop.f32.mrf.mxu0  ;;  %v1015_v21 = vpop.f32.mrf.mxu1 }
 0x2e3   :  { %v1058_v13 = vadd.f32 %v995_v24, %v107_v9  ;;  %v1059_v27 = vadd.f32 %v1015_v21, %v136_v40  ;;  %v8659_v40 = vld [vmem:[%s13126_s3 + $0xa0] sm:$0xff]  ;;  %v8667_v24 = vld [vmem:[%s13126_s3 + $0xa8] sm:$0xff]  ;;  %v8672_v21 = vld [vmem:[%s13126_s3 + $0xb8] sm:$0xff] }
 0x2e4   :  { %13786 = vst [vmem:[#allocation21_spill] sm:$0xff] %v8659_v40  ;;  %1409 = vmatpush.msrb.mxu0 %v8659_v40  ;;  %1429 = vmatpush.msra.mxu1 %v8667_v24 }
 0x2e5   :  { %v6591_v5 = vmul.f32 -1.442695, %v1058_v13  ;;  %v6592_v18 = vmul.f32 -1.442695, %v1059_v27  ;;  %13787 = vst [vmem:[#allocation25_spill] sm:$0xff] %v8667_v24  ;;  %v8680_v13 = vld [vmem:[%s13126_s3 + $0x90] sm:$0xff]  ;;  %1469 = vmatpush.msra.mxu3 %v8672_v21 }
 0x2e6   :  { %13788 = vst [vmem:[#allocation11_spill] sm:$0xff] %v8672_v21  ;;  %v8685_v27 = vld [vmem:[%s13126_s3 + $0x80] sm:$0xff]  ;;  %1450 = vmatpush.msra.mxu2 %v8680_v13 }
 0x2e7   :  { %6880 = vpow2.f32 %v6591_v5  ;;  %13789 = vst [vmem:[#allocation26_spill] sm:$0xff] %v8680_v13  ;;  %v8692_v5 = vld [vmem:[%s13126_s3 + $0x88] sm:$0xff]  ;;  %1410 = vmatpush.msrb.mxu0 %v8685_v27 }
 0x2e8   :  { %6882 = vpow2.f32 %v6592_v18  ;;  %13790 = vst [vmem:[#allocation24_spill] sm:$0xff] %v8685_v27  ;;  %v8697_v18 = vld [vmem:[%s13126_s3 + $0x98] sm:$0xff]  ;;  %1430 = vmatpush.msra.mxu1 %v8692_v5 }
 0x2e9   :  { %v1035_v26 = vpop.f32.mrf.mxu2  ;;  %v1055_v22 = vpop.f32.mrf.mxu3  ;;  %13791 = vst [vmem:[#allocation28_spill] sm:$0xff] %v8692_v5  ;;  %1470 = vmatpush.msra.mxu3 %v8697_v18 }
 0x2ea   :  { %v1060_v30 = vadd.f32 %v1035_v26, %v165_v49  ;;  %v1061_v31 = vadd.f32 %v1055_v22, %v194_v53  ;;  %13792 = vst [vmem:[#allocation12_spill] sm:$0xff] %v8697_v18  ;;  %v8713_v26 = vld [vmem:[%s13126_s3 + $0x70] sm:$0xff]  ;;  %v8718_v22 = vld [vmem:[%s13126_s3 + $0x60] sm:$0xff]  ;;  %v8765_v18 = vld [vmem:[%s13126_s3 + $0x58] sm:$0xff] }
 0x2eb   :  { %13793 = vst [vmem:[#allocation29_spill] sm:$0xff] %v8713_v26  ;;  %1451 = vmatpush.msra.mxu2 %v8713_v26  ;;  %1411 = vmatpush.msrb.mxu0 %v8718_v22  ;;  %v8773_v26 = vld [vmem:[%s13126_s3 + $0x30] sm:$0xff] }
 0x2ec   :  { %v6593_v34 = vmul.f32 -1.442695, %v1060_v30  ;;  %v6594_v35 = vmul.f32 -1.442695, %v1061_v31  ;;  %13794 = vst [vmem:[#allocation27_spill] sm:$0xff] %v8718_v22  ;;  %v8729_v31 = vld [vmem:[%s13126_s3 + $0x68] sm:$0xff] }
 0x2ed   :  { %v6881_v38 = vpop.eup %6880  ;;  %13795 = vst [vmem:[#allocation31_spill] sm:$0xff] %v8729_v31  ;;  %1431 = vmatpush.msra.mxu1 %v8729_v31  ;;  %v8778_v22 = vld [vmem:[%s13126_s3 + $0x20] sm:$0xff] }
 0x2ee   :  { %v6883_v42 = vpop.eup %6882  ;;  %v8633_v43 = vadd.f32 1.0, %v6881_v38  ;;  %6884 = vpow2.f32 %v6593_v34  ;;  %v8734_v34 = vld [vmem:[%s13126_s3 + $0x78] sm:$0xff]  ;;  %13800 = vst [vmem:[#allocation14_spill] sm:$0xff] %v8765_v18 }
 0x2ef   :  { %v8647_v9 = vadd.f32 1.0, %v6883_v42  ;;  %6886 = vpow2.f32 %v6594_v35  ;;  %13796 = vst [vmem:[#allocation13_spill] sm:$0xff] %v8734_v34  ;;  %v8746_v42 = vld [vmem:[%s13126_s3 + $0x50] sm:$0xff]  ;;  %1471 = vmatpush.msra.mxu3 %v8734_v34  ;;  %v8790_v34 = vld [vmem:[%s13126_s3 + $0x38] sm:$0xff]  ;;  %1432 = vmatpush.msra.mxu1 %v8760_v1 }
 0x2f0   :  { %6888 = vrcp.f32 %v8633_v43  ;;  %13797 = vst [vmem:[#allocation32_spill] sm:$0xff] %v8746_v42  ;;  %1452 = vmatpush.msra.mxu2 %v8746_v42  ;;  %v8802_v42 = vld [vmem:[%s13126_s3] sm:$0xff]  ;;  %v8816_v1 = vld [vmem:[%s13126_s3 + $0x18] sm:$0xff]  ;;  %vm1083_vm11 = vweird.f32 %v8633_v43 }
 0x2f1   :  { %6890 = vrcp.f32 %v8647_v9  ;;  %13801 = vst [vmem:[#allocation35_spill] sm:$0xff] %v8773_v26  ;;  %1472 = vmatpush.msra.mxu3 %v8765_v18  ;;  %v8811_v18 = vld [vmem:[%s13126_s3 + $0x8] sm:$0xff]  ;;  %vm1098_vm9 = vweird.f32 %v8647_v9 }
 0x2f2   :  { %13802 = vst [vmem:[#allocation34_spill] sm:$0xff] %v8778_v22  ;;  %1453 = vmatpush.msra.mxu2 %v8773_v26 }
 0x2f3   :  { %13804 = vst [vmem:[#allocation55_spill] sm:$0xff] %v8790_v34  ;;  %1473 = vmatpush.msra.mxu3 %v8790_v34 }
 0x2f4   :  { %v6885_v49 = vpop.eup %6884  ;;  %13806 = vst [vmem:[#allocation62_spill] sm:$0xff] %v8802_v42 }
 0x2f5   :  { %v6887_v62 = vpop.eup %6886  ;;  %v8706_v53 = vadd.f32 1.0, %v6885_v49  ;;  %v8751_v49 = vld [vmem:[%s13126_s3 + $0x40] sm:$0xff]  ;;  %13807 = vst [vmem:[#allocation38_spill] sm:$0xff] %v8811_v18  ;;  %1474 = vmatpush.msra.mxu3 %v8816_v1 }
 0x2f6   :  { %v8720_v25 = vpop.eup %6888  ;;  %v8722_v30 = vadd.f32 1.0, %v6887_v62  ;;  %13798 = vst [vmem:[#allocation30_spill] sm:$0xff] %v8751_v49  ;;  %1412 = vmatpush.msrb.mxu0 %v8751_v49 }
 0x2f7   :  { %v8736_v35 = vpop.eup %6890  ;;  %v1079_v38 = vmul.f32 %v8720_v25, %v8633_v43  ;;  %6892 = vrcp.f32 %v8706_v53  ;;  %13808 = vst [vmem:[#allocation65_spill] sm:$0xff] %v8816_v1  ;;  %vm1084_vm10 = vweird.f32 %v8720_v25  ;;  %1629 = vmatpush.msrb.mxu3 %v8405_v47  ;;  %vm1113_vm2 = vweird.f32 %v8706_v53 }
 0x2f8   :  { %v1094_v62 = vmul.f32 %v8736_v35, %v8647_v9  ;;  %6894 = vrcp.f32 %v8722_v30  ;;  %1413 = vmatpush.msrb.mxu0 %v8778_v22  ;;  %vm1099_vm8 = vweird.f32 %v8736_v35  ;;  %v1102_v22 = vand.u32 2147483647, %v8647_v9  ;;  %vm8858_vm14 = vmor %vm1083_vm11, %vm1084_vm10 }
 0x2f9   :  { %v1080_v13 = vsub.f32 1.0, %v1079_v38  ;;  %v8785_v38 = vld [vmem:[%s13126_s3 + $0x28] sm:$0xff]  ;;  %vm8843_vm12 = vmor %vm1098_vm9, %vm1099_vm8  ;;  %1630 = vmatpush.msrb.mxu3 %v8429_v55  ;;  %vm1128_vm7 = vweird.f32 %v8722_v30 }
 0x2fa   :  { %v1095_v5 = vsub.f32 1.0, %v1094_v62  ;;  %13803 = vst [vmem:[#allocation36_spill] sm:$0xff] %v8785_v38  ;;  %v8797_v62 = vld [vmem:[%s13126_s3 + $0x10] sm:$0xff]  ;;  %1433 = vmatpush.msra.mxu1 %v8785_v38  ;;  %1414 = vmatpush.msrb.mxu0 %v8802_v42  ;;  %v1104_v38 = vand.u32 2147483648, %v8647_v9  ;;  %v1087_v9 = vand.u32 2147483647, %v8633_v43 }
 0x2fb   :  { %13805 = vst [vmem:[#allocation6_spill] sm:$0xff] %v8797_v62  ;;  %v1081_v49 = vmul.f32 %v8720_v25, %v1080_v13  ;;  %1454 = vmatpush.msra.mxu2 %v8797_v62  ;;  %vm1103_vm15 = vcmp.eq.f32.partialorder %v1102_v22, 8.507059e+37  ;;  %1631 = vmatpush.msrb.mxu3 %v8453_v60 }
 0x2fc   :  { %v1096_v31 = vmul.f32 %v8736_v35, %v1095_v5  ;;  %1434 = vmatpush.msra.mxu1 %v8811_v18  ;;  %1569 = vmatpush.msra.mxu0 %v8393_v45  ;;  %v1089_v18 = vand.u32 2147483648, %v8633_v43  ;;  %v1117_v43 = vand.u32 2147483647, %v8706_v53  ;;  %vm1088_vm4 = vcmp.eq.f32.partialorder %v1087_v9, 8.507059e+37 }
 0x2fd   :  { %v6893_v27 = vpop.eup %6892  ;;  %1609 = vmatpush.msrb.mxu2 %v8388_v44  ;;  %v1105_v44 = vor.u32 1.1754944e-38, %v1104_v38  ;;  %1632 = vmatpush.msrb.mxu3 %v8477_v3 }
 0x2fe   :  { %v1097_v13 = vadd.f32 %v8736_v35, %v1096_v31  ;;  %v1109_v5 = vmul.f32 %v6893_v27, %v8706_v53  ;;  %v8825_v26 = vpop.eup %6894  ;;  %v1082_v31 = vadd.f32 %v8720_v25, %v1081_v49  ;;  %1589 = vmatpush.msrb.mxu1 %v8400_v46  ;;  %vm1114_vm13 = vweird.f32 %v6893_v27  ;;  %1570 = vmatpush.msra.mxu0 %v8417_v50  ;;  %v13814_v49 = vld [vmem:[#allocation24_spill] sm:$0xff] }
 0x2ff   :  { %v1124_v62 = vmul.f32 %v8825_v26, %v8722_v30  ;;  %1610 = vmatpush.msrb.mxu2 %v8412_v48  ;;  %vm1115_vm3 = vmor %vm1113_vm2, %vm1114_vm13  ;;  %vm1118_vm5 = vcmp.eq.f32.partialorder %v1117_v43, 8.507059e+37  ;;  %1633 = vmatpush.msrb.mxu3 %v8512_v4  ;;  %vm1129_vm6 = vweird.f32 %v8825_v26  ;;  %v13816_v43 = vld [vmem:[#allocation26_spill] sm:$0xff] }
 0x300   :  { %v1110_v34 = vsub.f32 1.0, %v1109_v5  ;;  %v1119_v5 = vand.u32 2147483648, %v8706_v53  ;;  %v1101_v46 = vsel %vm8843_vm12, %v8736_v35, %v1097_v13  ;;  %1590 = vmatpush.msrb.mxu1 %v8424_v51  ;;  %1571 = vmatpush.msra.mxu0 %v8441_v57  ;;  %v1090_v13 = vor.u32 1.1754944e-38, %v1089_v18  ;;  %vm1130_vm8 = vmor %vm1128_vm7, %vm1129_vm6 }
 0x301   :  { %v1125_v47 = vsub.f32 1.0, %v1124_v62  ;;  %v1106_v62 = vsel %vm1103_vm15, %v1105_v44, %v1101_v46  ;;  %1611 = vmatpush.msrb.mxu2 %v8436_v56  ;;  %1634 = vmatpush.msrb.mxu3 %v8536_v54  ;;  %v1132_v18 = vand.u32 2147483647, %v8722_v30 }
 0x302   :  { %v1111_v45 = vmul.f32 %v6893_v27, %v1110_v34  ;;  %v1086_v34 = vsel %vm8858_vm14, %v8720_v25, %v1082_v31  ;;  %1591 = vmatpush.msrb.mxu1 %v8448_v59  ;;  %v1120_v38 = vor.u32 1.1754944e-38, %v1119_v5  ;;  %1572 = vmatpush.msra.mxu0 %v8465_v63  ;;  %v1138_v44 = vmul.f32 %v1106_v62, %v8327_v11  ;;  %v13815_v5 = vld [vmem:[#allocation28_spill] sm:$0xff]  ;;  %v13821_v62 = vld [vmem:[#allocation13_spill] sm:$0xff] }
 0x303   :  { %v1126_v22 = vmul.f32 %v8825_v26, %v1125_v47  ;;  %1612 = vmatpush.msrb.mxu2 %v8460_v61  ;;  %v1134_v11 = vand.u32 2147483648, %v8722_v30  ;;  %1635 = vmatpush.msrb.mxu3 %v8560_v52  ;;  %vm1133_vm9 = vcmp.eq.f32.partialorder %v1132_v18, 8.507059e+37  ;;  %v13830_v18 = vld [vmem:[#allocation38_spill] sm:$0xff] }
 0x304   :  { %v1112_v35 = vadd.f32 %v6893_v27, %v1111_v45  ;;  %1592 = vmatpush.msrb.mxu1 %v8472_v2  ;;  %v1091_v45 = vsel %vm1088_vm4, %v1090_v13, %v1086_v34  ;;  %1573 = vmatpush.msra.mxu0 %v8500_v20  ;;  %v13817_v34 = vld [vmem:[#allocation12_spill] sm:$0xff]  ;;  %v13819_v13 = vld [vmem:[#allocation31_spill] sm:$0xff] }
 0x305   :  { %1613 = vmatpush.msrb.mxu2 %v8495_v29  ;;  %v1127_v47 = vadd.f32 %v8825_v26, %v1126_v22  ;;  %1636 = vmatpush.msrb.mxu3 %v8588_v23  ;;  %v1135_v31 = vor.u32 1.1754944e-38, %v1134_v11  ;;  %v13825_v22 = vld [vmem:[#allocation14_spill] sm:$0xff]  ;;  %v13829_v11 = vld [vmem:[#allocation55_spill] sm:$0xff] }
 0x306   :  { %v1116_v1 = vsel %vm1115_vm3, %v6893_v27, %v1112_v35  ;;  %1593 = vmatpush.msrb.mxu1 %v8507_v0  ;;  %1574 = vmatpush.msra.mxu0 %v8524_v7  ;;  %v13818_v35 = vld [vmem:[#allocation27_spill] sm:$0xff] }
 0x307   :  { %v1121_v53 = vsel %vm1118_vm5, %v1120_v38, %v1116_v1  ;;  %1614 = vmatpush.msrb.mxu2 %v8519_v28  ;;  %v1131_v25 = vsel %vm1130_vm8, %v8825_v26, %v1127_v47  ;;  %1637 = vmatpush.msrb.mxu3 %v8619_v37  ;;  %v13820_v38 = vld [vmem:[#allocation29_spill] sm:$0xff]  ;;  %v13822_v1 = vld [vmem:[#allocation30_spill] sm:$0xff]  ;;  %v13828_v47 = vld [vmem:[#allocation35_spill] sm:$0xff] }
 0x308   :  { %v1139_v46 = vmul.f32 %v1121_v53, %v1091_v45  ;;  %1594 = vmatpush.msrb.mxu1 %v8531_v15  ;;  %1575 = vmatpush.msra.mxu0 %v8548_v16  ;;  %v1136_v9 = vsel %vm1133_vm9, %v1135_v31, %v1131_v25  ;;  %v13823_v45 = vld [vmem:[#allocation33_spill] sm:$0xff]  ;;  %v13824_v53 = vld [vmem:[#allocation32_spill] sm:$0xff]  ;;  %v13831_v25 = vld [vmem:[#allocation6_spill] sm:$0xff] }
 0x309   :  { %1615 = vmatpush.msrb.mxu2 %v8543_v17  ;;  %1638 = vmatpush.msrb.mxu3 %v8645_v8  ;;  %v13832_v31 = vld [vmem:[#allocation65_spill] sm:$0xff] }
 0x30a   :  { %v8883_v27 = vadd.f32 %v1139_v46, %v1138_v44  ;;  %1595 = vmatpush.msrb.mxu1 %v8555_v58  ;;  %1576 = vmatpush.msra.mxu0 %v8572_v19  ;;  %v13826_v44 = vld [vmem:[#allocation34_spill] sm:$0xff]  ;;  %v13827_v46 = vld [vmem:[#allocation36_spill] sm:$0xff] }
 0x30b   :  { %1616 = vmatpush.msrb.mxu2 %v8567_v14  ;;  %1639 = vmatpush.msrb.mxu3 %v8672_v21 }
 0x30c   :  { %13813 = vst [vmem:[#allocation40_spill] sm:$0xff] %v8883_v27  ;;  %6896 = vtanh.f32 %v8883_v27  ;;  %1596 = vmatpush.msrb.mxu1 %v8583_v12  ;;  %1577 = vmatpush.msra.mxu0 %v8607_v33  ;;  %v13836_v27 = vld [vmem:[#allocation16_spill] sm:$0xff] }
 0x30d   :  { %1617 = vmatpush.msrb.mxu2 %v8602_v32  ;;  %1640 = vmatpush.msrb.mxu3 %v13817_v34 }
 0x30e   :  { %1597 = vmatpush.msrb.mxu1 %v8614_v36  ;;  %1578 = vmatpush.msra.mxu0 %v8631_v41 }
 0x30f   :  { %1618 = vmatpush.msrb.mxu2 %v8626_v39  ;;  %1641 = vmatpush.msrb.mxu3 %v13821_v62 }
 0x310   :  { %1598 = vmatpush.msrb.mxu1 %v8640_v6  ;;  %1579 = vmatpush.msra.mxu0 %v8659_v40 }
 0x311   :  { %1619 = vmatpush.msrb.mxu2 %v8654_v10  ;;  %1642 = vmatpush.msrb.mxu3 %v13825_v22 }
 0x312   :  { %v6897_v30 = vpop.eup %6896  ;;  %1599 = vmatpush.msrb.mxu1 %v8667_v24  ;;  %1580 = vmatpush.msra.mxu0 %v13814_v49 }
 0x313   :  { %v1142_v26 = vmul.f32 %v6897_v30, %v1136_v9  ;;  %1620 = vmatpush.msrb.mxu2 %v13816_v43  ;;  %1643 = vmatpush.msrb.mxu3 %v13829_v11  ;;  %v13833_v30 = vld [vmem:[#allocation8_spill] sm:$0xff]  ;;  %v13834_v9 = vld [vmem:[#allocation17_spill] sm:$0xff] }
 0x314   :  { %1600 = vmatpush.msrb.mxu1 %v13815_v5  ;;  %1581 = vmatpush.msra.mxu0 %v13818_v35 }
 0x315   :  { %1415 = vmatmul.f32.vlgmr.msrb.gmra.mxu0 %v1142_v26  ;;  %1435 = vmatmul.f32.vlgmr.msra.gmra.mxu1 %v1142_v26 }
 0x316   :  { %1455 = vmatmul.f32.vlgmr.msra.gmra.mxu2 %v1142_v26  ;;  %1475 = vmatmul.f32.vlgmr.msra.gmra.mxu3 %v1142_v26  ;;  %v13835_v26 = vld [vmem:[#allocation15_spill] sm:$0xff] }
 0x317   :  { %1601 = vmatpush.msrb.mxu1 %v13819_v13  ;;  %1621 = vmatpush.msrb.mxu2 %v13820_v38 }
 0x318   :  { %1582 = vmatpush.msra.mxu0 %v13822_v1  ;;  %1644 = vmatpush.msrb.mxu3 %v13832_v31 }
 0x319   :  { %1602 = vmatpush.msrb.mxu1 %v13823_v45  ;;  %1622 = vmatpush.msrb.mxu2 %v13824_v53 }
 0x31a   :  { %1583 = vmatpush.msra.mxu0 %v13826_v44  ;;  %1799 = vmatpush.msra.mxu3 %v13836_v27 }
 0x31b   :  { %1603 = vmatpush.msrb.mxu1 %v13827_v46  ;;  %1623 = vmatpush.msrb.mxu2 %v13828_v47 }
 0x31c   :  { %1584 = vmatpush.msra.mxu0 %v8802_v42  ;;  %1800 = vmatpush.msra.mxu3 %v8429_v55 }
 0x31d   :  { %1604 = vmatpush.msrb.mxu1 %v13830_v18  ;;  %1624 = vmatpush.msrb.mxu2 %v13831_v25 }
 0x31e   :  { %1739 = vmatpush.msrb.mxu0 %v13833_v30  ;;  %1801 = vmatpush.msra.mxu3 %v8453_v60 }
 0x31f   :  { %1759 = vmatpush.msra.mxu1 %v13834_v9  ;;  %1779 = vmatpush.msra.mxu2 %v13835_v26 }
 0x320   :  { %1740 = vmatpush.msrb.mxu0 %v8417_v50  ;;  %1802 = vmatpush.msra.mxu3 %v8477_v3 }
 0x321   :  { %1760 = vmatpush.msra.mxu1 %v8424_v51  ;;  %1780 = vmatpush.msra.mxu2 %v8412_v48 }
 0x322   :  { %1741 = vmatpush.msrb.mxu0 %v8441_v57  ;;  %1803 = vmatpush.msra.mxu3 %v8512_v4 }
 0x323   :  { %1761 = vmatpush.msra.mxu1 %v8448_v59  ;;  %1781 = vmatpush.msra.mxu2 %v8436_v56 }
 0x324   :  { %1742 = vmatpush.msrb.mxu0 %v8465_v63  ;;  %1804 = vmatpush.msra.mxu3 %v8536_v54 }
 0x325   :  { %1762 = vmatpush.msra.mxu1 %v8472_v2  ;;  %1782 = vmatpush.msra.mxu2 %v8460_v61 }
 0x326   :  { %1743 = vmatpush.msrb.mxu0 %v8500_v20  ;;  %1805 = vmatpush.msra.mxu3 %v8560_v52 }
 0x327   :  { %1763 = vmatpush.msra.mxu1 %v8507_v0  ;;  %1783 = vmatpush.msra.mxu2 %v8495_v29 }
 0x328   :  { %1744 = vmatpush.msrb.mxu0 %v8524_v7  ;;  %1806 = vmatpush.msra.mxu3 %v8588_v23 }
 0x329   :  { %1764 = vmatpush.msra.mxu1 %v8531_v15  ;;  %1784 = vmatpush.msra.mxu2 %v8519_v28 }
 0x32a   :  { %1745 = vmatpush.msrb.mxu0 %v8548_v16  ;;  %1807 = vmatpush.msra.mxu3 %v8619_v37 }
 0x32b   :  { %1765 = vmatpush.msra.mxu1 %v8555_v58  ;;  %1785 = vmatpush.msra.mxu2 %v8543_v17 }
 0x32c   :  { %1746 = vmatpush.msrb.mxu0 %v8572_v19  ;;  %1808 = vmatpush.msra.mxu3 %v8645_v8 }
 0x32d   :  { %1766 = vmatpush.msra.mxu1 %v8583_v12  ;;  %1786 = vmatpush.msra.mxu2 %v8567_v14 }
 0x32e   :  { %1747 = vmatpush.msrb.mxu0 %v8607_v33  ;;  %1809 = vmatpush.msra.mxu3 %v8672_v21 }
 0x32f   :  { %1767 = vmatpush.msra.mxu1 %v8614_v36  ;;  %1787 = vmatpush.msra.mxu2 %v8602_v32 }
 0x330   :  { %1748 = vmatpush.msrb.mxu0 %v8631_v41  ;;  %1810 = vmatpush.msra.mxu3 %v13817_v34 }
 0x331   :  { %1768 = vmatpush.msra.mxu1 %v8640_v6  ;;  %1788 = vmatpush.msra.mxu2 %v8626_v39 }
 0x332   :  { %1749 = vmatpush.msrb.mxu0 %v8659_v40  ;;  %1811 = vmatpush.msra.mxu3 %v13821_v62 }
 0x333   :  { %1769 = vmatpush.msra.mxu1 %v8667_v24  ;;  %1789 = vmatpush.msra.mxu2 %v8654_v10 }
 0x334   :  { %1750 = vmatpush.msrb.mxu0 %v13814_v49  ;;  %1812 = vmatpush.msra.mxu3 %v13825_v22  ;;  %v9004_v22 = vpop.f32.mrf.mxu2 }
 0x335   :  { %1770 = vmatpush.msra.mxu1 %v13815_v5  ;;  %1790 = vmatpush.msra.mxu2 %v13816_v43  ;;  %13839 = vst [vmem:[#allocation7_spill] sm:$0xff] %v9004_v22  ;;  %v13860_v43 = vld [vmem:[#allocation53_spill] sm:$0xff] }
 0x336   :  { %1751 = vmatpush.msrb.mxu0 %v13818_v35  ;;  %1813 = vmatpush.msra.mxu3 %v13829_v11 }
 0x337   :  { %1771 = vmatpush.msra.mxu1 %v13819_v13  ;;  %1791 = vmatpush.msra.mxu2 %v13820_v38 }
 0x338   :  { %1752 = vmatpush.msrb.mxu0 %v13822_v1  ;;  %1814 = vmatpush.msra.mxu3 %v13832_v31 }
 0x339   :  { %1772 = vmatpush.msra.mxu1 %v13823_v45  ;;  %1792 = vmatpush.msra.mxu2 %v13824_v53  ;;  %v9000_v45 = vpop.f32.mrf.mxu0  ;;  %v9002_v53 = vpop.f32.mrf.mxu1 }
 0x33a   :  { %1753 = vmatpush.msrb.mxu0 %v13826_v44  ;;  %13837 = vst [vmem:[#allocation66_spill] sm:$0xff] %v9000_v45  ;;  %v9006_v44 = vpop.f32.mrf.mxu3 }
 0x33b   :  { %1773 = vmatpush.msra.mxu1 %v13827_v46  ;;  %1793 = vmatpush.msra.mxu2 %v13828_v47  ;;  %13838 = vst [vmem:[#allocation41_spill] sm:$0xff] %v9002_v53 }
 0x33c   :  { %1754 = vmatpush.msrb.mxu0 %v8802_v42  ;;  %13840 = vst [vmem:[#allocation42_spill] sm:$0xff] %v9006_v44  ;;  %v9012_v11 = vpop.f32.mrf.mxu2 }
 0x33d   :  { %1774 = vmatpush.msra.mxu1 %v13830_v18  ;;  %1794 = vmatpush.msra.mxu2 %v13831_v25  ;;  %13843 = vst [vmem:[#allocation37_spill] sm:$0xff] %v9012_v11 }
 0x341   :  { %v9008_v46 = vpop.f32.mrf.mxu0  ;;  %v9010_v47 = vpop.f32.mrf.mxu1 }
 0x342   :  { %13841 = vst [vmem:[#allocation44_spill] sm:$0xff] %v9008_v46  ;;  %v9014_v42 = vpop.f32.mrf.mxu3 }
 0x343   :  { %13842 = vst [vmem:[#allocation45_spill] sm:$0xff] %v9010_v47  ;;  %v233_v47 = vld [vmem:[%s13125_s2] sm:$0xf] }
 0x344   :  { %13844 = vst [vmem:[#allocation46_spill] sm:$0xff] %v9014_v42  ;;  %v9020_v31 = vpop.f32.mrf.mxu2  ;;  %v9031_v46 = vperm.slane %v233_v47, 0  ;;  %v9033_v11 = vperm.slane %v233_v47, 1  ;;  %v9043_v38 = vperm.slane %v233_v47, 2  ;;  %v9045_v13 = vperm.slane %v233_v47, 3 }
 0x345   :  { %13847 = vst [vmem:[#allocation8_spill] sm:$0xff] %v9020_v31  ;;  %v13855_v31 = vld [vmem:[#allocation39_spill] sm:$0xff] }
 0x346   :  { %13851 = vst [vmem:[#allocation67_spill] sm:$0xff] %v9031_v46 }
 0x347   :  { %13852 = vst [vmem:[#allocation68_spill] sm:$0xff] %v9033_v11 }
 0x348   :  { %13857 = vst [vmem:[#allocation39_spill] sm:$0xff] %v9043_v38 }
 0x349   :  { %v9016_v18 = vpop.f32.mrf.mxu0  ;;  %v9018_v25 = vpop.f32.mrf.mxu1 }
 0x34a   :  { %13845 = vst [vmem:[#allocation48_spill] sm:$0xff] %v9016_v18  ;;  %v9022_v45 = vpop.f32.mrf.mxu3 }
 0x34b   :  { %13846 = vst [vmem:[#allocation49_spill] sm:$0xff] %v9018_v25  ;;  %v285_v25 = vadd.f32 %v13855_v31, %v9031_v46  ;;  %v372_v31 = vadd.f32 %v13860_v43, %v9045_v13 }
 0x34c   :  { %13848 = vst [vmem:[#allocation17_spill] sm:$0xff] %v9022_v45  ;;  %v9035_v42 = vpop.f32.mrf.mxu2  ;;  %v13856_v45 = vld [vmem:[#allocation50_spill] sm:$0xff] }
 0x34d   :  { %13853 = vst [vmem:[#allocation69_spill] sm:$0xff] %v9035_v42  ;;  %v13859_v42 = vld [vmem:[#allocation52_spill] sm:$0xff] }
 0x34e   :  { %13858 = vst [vmem:[#allocation50_spill] sm:$0xff] %v9045_v13 }
 0x351   :  { %v9024_v53 = vpop.f32.mrf.mxu0  ;;  %v9026_v22 = vpop.f32.mrf.mxu1 }
 0x352   :  { %13849 = vst [vmem:[#allocation15_spill] sm:$0xff] %v9024_v53  ;;  %v9037_v18 = vpop.f32.mrf.mxu3  ;;  %v314_v53 = vadd.f32 %v13856_v45, %v9033_v11 }
 0x353   :  { %13850 = vst [vmem:[#allocation16_spill] sm:$0xff] %v9026_v22 }
 0x354   :  { %13854 = vst [vmem:[#allocation70_spill] sm:$0xff] %v9037_v18  ;;  %v343_v18 = vadd.f32 %v13859_v42, %v9043_v38 }
 0x392   :  { %v1416_v44 = vpop.f32.mrf.mxu0  ;;  %v1436_v22 = vpop.f32.mrf.mxu1 }
 0x393   :  { %v1479_v1 = vadd.f32 %v1416_v44, %v285_v25  ;;  %v1480_v62 = vadd.f32 %v1436_v22, %v314_v53 }
 0x395   :  { %v6619_v35 = vmul.f32 -1.442695, %v1479_v1  ;;  %v6620_v34 = vmul.f32 -1.442695, %v1480_v62 }
 0x397   :  { %6898 = vpow2.f32 %v6619_v35 }
 0x398   :  { %6900 = vpow2.f32 %v6620_v34 }
 0x399   :  { %v1456_v46 = vpop.f32.mrf.mxu2  ;;  %v1476_v45 = vpop.f32.mrf.mxu3 }
 0x39a   :  { %v1481_v11 = vadd.f32 %v1456_v46, %v343_v18  ;;  %v1482_v5 = vadd.f32 %v1476_v45, %v372_v31 }
 0x39c   :  { %v6621_v44 = vmul.f32 -1.442695, %v1481_v11  ;;  %v6622_v53 = vmul.f32 -1.442695, %v1482_v5 }
 0x39d   :  { %v6899_v22 = vpop.eup %6898 }
 0x39e   :  { %v6901_v25 = vpop.eup %6900  ;;  %v1495_v47 = vadd.f32 1.0, %v6899_v22  ;;  %6902 = vpow2.f32 %v6621_v44 }
 0x39f   :  { %v1496_v1 = vadd.f32 1.0, %v6901_v25  ;;  %6904 = vpow2.f32 %v6622_v53 }
 0x3a0   :  { %6906 = vrcp.f32 %v1495_v47  ;;  %vm1504_vm13 = vweird.f32 %v1495_v47  ;;  %v1508_v10 = vand.u32 2147483647, %v1495_v47  ;;  %v1510_v24 = vand.u32 2147483648, %v1495_v47 }
 0x3a1   :  { %6908 = vrcp.f32 %v1496_v1  ;;  %vm1519_vm11 = vweird.f32 %v1496_v1  ;;  %v1523_v25 = vand.u32 2147483647, %v1496_v1  ;;  %v1525_v49 = vand.u32 2147483648, %v1496_v1 }
 0x3a2   :  { %v1511_v8 = vor.u32 1.1754944e-38, %v1510_v24  ;;  %vm1509_vm6 = vcmp.eq.f32.partialorder %v1508_v10, 8.507059e+37 }
 0x3a3   :  { %vm1524_vm3 = vcmp.eq.f32.partialorder %v1523_v25, 8.507059e+37 }
 0x3a4   :  { %v6903_v35 = vpop.eup %6902 }
 0x3a5   :  { %v6905_v42 = vpop.eup %6904  ;;  %v1497_v62 = vadd.f32 1.0, %v6903_v35 }
 0x3a6   :  { %v6907_v38 = vpop.eup %6906  ;;  %v1498_v43 = vadd.f32 1.0, %v6905_v42 }
 0x3a7   :  { %v6909_v34 = vpop.eup %6908  ;;  %v1500_v13 = vmul.f32 %v6907_v38, %v1495_v47  ;;  %6910 = vrcp.f32 %v1497_v62  ;;  %vm1505_vm12 = vweird.f32 %v6907_v38  ;;  %vm1534_vm4 = vweird.f32 %v1497_v62 }
 0x3a8   :  { %v1515_v46 = vmul.f32 %v6909_v34, %v1496_v1  ;;  %6912 = vrcp.f32 %v1498_v43  ;;  %vm1520_vm10 = vweird.f32 %v6909_v34  ;;  %vm1506_vm2 = vmor %vm1504_vm13, %vm1505_vm12  ;;  %v1526_v1 = vor.u32 1.1754944e-38, %v1525_v49 }
 0x3a9   :  { %v1501_v18 = vsub.f32 1.0, %v1500_v13  ;;  %vm9051_vm14 = vmor %vm1519_vm11, %vm1520_vm10  ;;  %v1555_v49 = vand.u32 2147483648, %v1498_v43  ;;  %vm1549_vm9 = vweird.f32 %v1498_v43  ;;  %v1553_v24 = vand.u32 2147483647, %v1498_v43 }
 0x3aa   :  { %v1516_v5 = vsub.f32 1.0, %v1515_v46  ;;  %v1540_v46 = vand.u32 2147483648, %v1497_v62 }
 0x3ab   :  { %v1502_v11 = vmul.f32 %v6907_v38, %v1501_v18  ;;  %v1556_v10 = vor.u32 1.1754944e-38, %v1555_v49  ;;  %vm1554_vm11 = vcmp.eq.f32.partialorder %v1553_v24, 8.507059e+37 }
 0x3ac   :  { %v1517_v31 = vmul.f32 %v6909_v34, %v1516_v5  ;;  %v1541_v47 = vor.u32 1.1754944e-38, %v1540_v46  ;;  %v13899_v46 = vld [vmem:[#allocation56_spill] sm:$0xff] }
 0x3ad   :  { %v6911_v45 = vpop.eup %6910  ;;  %v1503_v35 = vadd.f32 %v6907_v38, %v1502_v11 }
 0x3ae   :  { %v1518_v44 = vadd.f32 %v6909_v34, %v1517_v31  ;;  %v1530_v53 = vmul.f32 %v6911_v45, %v1497_v62  ;;  %v6913_v22 = vpop.eup %6912  ;;  %vm1535_vm15 = vweird.f32 %v6911_v45  ;;  %v1538_v31 = vand.u32 2147483647, %v1497_v62 }
 0x3af   :  { %v1545_v21 = vmul.f32 %v6913_v22, %v1498_v43  ;;  %v1507_v40 = vsel %vm1506_vm2, %v6907_v38, %v1503_v35  ;;  %vm1536_vm5 = vmor %vm1534_vm4, %vm1535_vm15  ;;  %vm1550_vm8 = vweird.f32 %v6913_v22  ;;  %v13898_v35 = vld [vmem:[#allocation39_spill] sm:$0xff] }
 0x3b0   :  { %v1531_v42 = vsub.f32 1.0, %v1530_v53  ;;  %v1522_v18 = vsel %vm9051_vm14, %v6909_v34, %v1518_v44  ;;  %vm1539_vm7 = vcmp.eq.f32.partialorder %v1538_v31, 8.507059e+37  ;;  %v1512_v41 = vsel %vm1509_vm6, %v1511_v8, %v1507_v40  ;;  %v13863_v44 = vld [vmem:[#allocation40_spill] sm:$0xff]  ;;  %vm1551_vm10 = vmor %vm1549_vm9, %vm1550_vm8  ;;  %v13901_v31 = vld [vmem:[#allocation57_spill] sm:$0xff] }
 0x3b1   :  { %v1546_v11 = vsub.f32 1.0, %v1545_v21  ;;  %v1527_v39 = vsel %vm1524_vm3, %v1526_v1, %v1522_v18  ;;  %v13896_v40 = vld [vmem:[#allocation68_spill] sm:$0xff]  ;;  %v346_v18 = vadd.f32 %v13899_v46, %v13898_v35 }
 0x3b2   :  { %v1532_v5 = vmul.f32 %v6911_v45, %v1531_v42  ;;  %v1559_v42 = vmul.f32 %v1527_v39, %v13863_v44  ;;  %v13895_v39 = vld [vmem:[#allocation43_spill] sm:$0xff] }
 0x3b3   :  { %v1547_v34 = vmul.f32 %v6913_v22, %v1546_v11 }
 0x3b4   :  { %v1533_v53 = vadd.f32 %v6911_v45, %v1532_v5  ;;  %v13900_v5 = vld [vmem:[#allocation50_spill] sm:$0xff] }
 0x3b5   :  { %v1548_v21 = vadd.f32 %v6913_v22, %v1547_v34  ;;  %v375_v1 = vadd.f32 %v13901_v31, %v13900_v5 }
 0x3b6   :  { %v1537_v6 = vsel %vm1536_vm5, %v6911_v45, %v1533_v53 }
 0x3b7   :  { %v1542_v13 = vsel %vm1539_vm7, %v1541_v47, %v1537_v6  ;;  %v1552_v38 = vsel %vm1551_vm10, %v6913_v22, %v1548_v21 }
 0x3b8   :  { %v1560_v37 = vmul.f32 %v1542_v13, %v1512_v41  ;;  %v1557_v8 = vsel %vm1554_vm11, %v1556_v10, %v1552_v38 }
 0x3ba   :  { %v9058_v32 = vadd.f32 %v1560_v37, %v1559_v42  ;;  %v13894_v37 = vld [vmem:[#allocation67_spill] sm:$0xff] }
 0x3bb   :  { %v288_v41 = vadd.f32 %v13895_v39, %v13894_v37 }
 0x3bc   :  { %6914 = vtanh.f32 %v9058_v32 }
 0x3c2   :  { %v6915_v62 = vpop.eup %6914 }
 0x3c3   :  { %v1563_v6 = vmul.f32 %v6915_v62, %v1557_v8 }
 0x3c5   :  { %1585 = vmatmul.f32.vlgmr.msra.gmra.mxu0 %v1563_v6  ;;  %1605 = vmatmul.f32.vlgmr.msrb.gmra.mxu1 %v1563_v6 }
 0x3c6   :  { %1625 = vmatmul.f32.vlgmr.msrb.gmra.mxu2 %v1563_v6  ;;  %1645 = vmatmul.f32.vlgmr.msrb.gmra.mxu3 %v1563_v6 }
 0x3c7   :  { %1909 = vmatpush.msra.mxu0 %v13833_v30  ;;  %1929 = vmatpush.msrb.mxu1 %v13834_v9 }
 0x3c8   :  { %1949 = vmatpush.msrb.mxu2 %v13835_v26  ;;  %1969 = vmatpush.msrb.mxu3 %v13836_v27  ;;  %v13897_v27 = vld [vmem:[#allocation54_spill] sm:$0xff] }
 0x3c9   :  { %1910 = vmatpush.msra.mxu0 %v8417_v50  ;;  %1930 = vmatpush.msrb.mxu1 %v8424_v51  ;;  %v13865_v50 = vld [vmem:[#allocation9_spill] sm:$0xff]  ;;  %v13866_v51 = vld [vmem:[#allocation19_spill] sm:$0xff]  ;;  %v317_v30 = vadd.f32 %v13897_v27, %v13896_v40 }
 0x3ca   :  { %1950 = vmatpush.msrb.mxu2 %v8412_v48  ;;  %1970 = vmatpush.msrb.mxu3 %v8429_v55  ;;  %v13864_v48 = vld [vmem:[#allocation18_spill] sm:$0xff] }
 0x3cb   :  { %1911 = vmatpush.msra.mxu0 %v8441_v57  ;;  %1931 = vmatpush.msrb.mxu1 %v8448_v59  ;;  %v13867_v55 = vld [vmem:[#allocation22_spill] sm:$0xff]  ;;  %v13870_v59 = vld [vmem:[#allocation21_spill] sm:$0xff] }
 0x3cc   :  { %1951 = vmatpush.msrb.mxu2 %v8436_v56  ;;  %1971 = vmatpush.msrb.mxu3 %v8453_v60  ;;  %v13868_v56 = vld [vmem:[#allocation20_spill] sm:$0xff]  ;;  %v13869_v57 = vld [vmem:[#allocation10_spill] sm:$0xff]  ;;  %v13871_v60 = vld [vmem:[#allocation25_spill] sm:$0xff] }
 0x3cd   :  { %1912 = vmatpush.msra.mxu0 %v8465_v63  ;;  %1932 = vmatpush.msrb.mxu1 %v8472_v2  ;;  %v13873_v63 = vld [vmem:[#allocation11_spill] sm:$0xff]  ;;  %v13874_v2 = vld [vmem:[#allocation24_spill] sm:$0xff] }
 0x3ce   :  { %1952 = vmatpush.msrb.mxu2 %v8460_v61  ;;  %1972 = vmatpush.msrb.mxu3 %v8477_v3  ;;  %v13872_v61 = vld [vmem:[#allocation23_spill] sm:$0xff]  ;;  %v13875_v3 = vld [vmem:[#allocation28_spill] sm:$0xff] }
 0x3cf   :  { %1913 = vmatpush.msra.mxu0 %v8500_v20  ;;  %1933 = vmatpush.msrb.mxu1 %v8507_v0  ;;  %v13877_v20 = vld [vmem:[#allocation12_spill] sm:$0xff]  ;;  %v13878_v0 = vld [vmem:[#allocation27_spill] sm:$0xff] }
 0x3d0   :  { %1953 = vmatpush.msrb.mxu2 %v8495_v29  ;;  %1973 = vmatpush.msrb.mxu3 %v8512_v4  ;;  %v13876_v29 = vld [vmem:[#allocation26_spill] sm:$0xff]  ;;  %v13879_v4 = vld [vmem:[#allocation31_spill] sm:$0xff] }
 0x3d1   :  { %1914 = vmatpush.msra.mxu0 %v8524_v7  ;;  %1934 = vmatpush.msrb.mxu1 %v8531_v15  ;;  %v13881_v7 = vld [vmem:[#allocation13_spill] sm:$0xff]  ;;  %v13882_v15 = vld [vmem:[#allocation30_spill] sm:$0xff] }
 0x3d2   :  { %1954 = vmatpush.msrb.mxu2 %v8519_v28  ;;  %1974 = vmatpush.msrb.mxu3 %v8536_v54  ;;  %v13880_v28 = vld [vmem:[#allocation29_spill] sm:$0xff] }
 0x3d3   :  { %1915 = vmatpush.msra.mxu0 %v8548_v16  ;;  %1935 = vmatpush.msrb.mxu1 %v8555_v58  ;;  %v13883_v54 = vld [vmem:[#allocation33_spill] sm:$0xff]  ;;  %v13885_v16 = vld [vmem:[#allocation14_spill] sm:$0xff] }
 0x3d4   :  { %1955 = vmatpush.msrb.mxu2 %v8543_v17  ;;  %1975 = vmatpush.msrb.mxu3 %v8560_v52  ;;  %v13884_v17 = vld [vmem:[#allocation32_spill] sm:$0xff]  ;;  %v13886_v58 = vld [vmem:[#allocation34_spill] sm:$0xff] }
 0x3d5   :  { %1916 = vmatpush.msra.mxu0 %v8572_v19  ;;  %1936 = vmatpush.msrb.mxu1 %v8583_v12  ;;  %v13887_v52 = vld [vmem:[#allocation36_spill] sm:$0xff]  ;;  %v13889_v19 = vld [vmem:[#allocation55_spill] sm:$0xff]  ;;  %v13890_v12 = vld [vmem:[#allocation62_spill] sm:$0xff] }
 0x3d6   :  { %1956 = vmatpush.msrb.mxu2 %v8567_v14  ;;  %1976 = vmatpush.msrb.mxu3 %v8588_v23  ;;  %v13888_v14 = vld [vmem:[#allocation35_spill] sm:$0xff]  ;;  %v13891_v23 = vld [vmem:[#allocation38_spill] sm:$0xff] }
 0x3d7   :  { %1917 = vmatpush.msra.mxu0 %v8607_v33  ;;  %1937 = vmatpush.msrb.mxu1 %v8614_v36  ;;  %v13892_v33 = vld [vmem:[#allocation6_spill] sm:$0xff]  ;;  %v13893_v36 = vld [vmem:[#allocation65_spill] sm:$0xff] }
 0x3d8   :  { %1957 = vmatpush.msrb.mxu2 %v13864_v48  ;;  %1977 = vmatpush.msrb.mxu3 %v13865_v50 }
 0x3d9   :  { %1918 = vmatpush.msra.mxu0 %v13866_v51  ;;  %1938 = vmatpush.msrb.mxu1 %v13867_v55 }
 0x3da   :  { %1958 = vmatpush.msrb.mxu2 %v13868_v56  ;;  %1978 = vmatpush.msrb.mxu3 %v13869_v57 }
 0x3db   :  { %1919 = vmatpush.msra.mxu0 %v13870_v59  ;;  %1939 = vmatpush.msrb.mxu1 %v13871_v60 }
 0x3dc   :  { %1959 = vmatpush.msrb.mxu2 %v13872_v61  ;;  %1979 = vmatpush.msrb.mxu3 %v13873_v63 }
 0x3dd   :  { %1920 = vmatpush.msra.mxu0 %v13874_v2  ;;  %1940 = vmatpush.msrb.mxu1 %v13875_v3 }
 0x3de   :  { %1960 = vmatpush.msrb.mxu2 %v13876_v29  ;;  %1980 = vmatpush.msrb.mxu3 %v13877_v20 }
 0x3df   :  { %1921 = vmatpush.msra.mxu0 %v13878_v0  ;;  %1941 = vmatpush.msrb.mxu1 %v13879_v4 }
 0x3e0   :  { %1961 = vmatpush.msrb.mxu2 %v13880_v28  ;;  %1981 = vmatpush.msrb.mxu3 %v13881_v7 }
 0x3e1   :  { %1922 = vmatpush.msra.mxu0 %v13882_v15  ;;  %1942 = vmatpush.msrb.mxu1 %v13883_v54 }
 0x3e2   :  { %1962 = vmatpush.msrb.mxu2 %v13884_v17  ;;  %1982 = vmatpush.msrb.mxu3 %v13885_v16 }
 0x3e3   :  { %1923 = vmatpush.msra.mxu0 %v13886_v58  ;;  %1943 = vmatpush.msrb.mxu1 %v13887_v52 }
 0x3e4   :  { %1963 = vmatpush.msrb.mxu2 %v13888_v14  ;;  %1983 = vmatpush.msrb.mxu3 %v13889_v19 }
 0x3e5   :  { %1924 = vmatpush.msra.mxu0 %v13890_v12  ;;  %1944 = vmatpush.msrb.mxu1 %v13891_v23 }
 0x3e6   :  { %1964 = vmatpush.msrb.mxu2 %v13892_v33  ;;  %1984 = vmatpush.msrb.mxu3 %v13893_v36 }
 0x442   :  { %v1586_v9 = vpop.f32.mrf.mxu0  ;;  %v1606_v26 = vpop.f32.mrf.mxu1 }
 0x443   :  { %v1649_v43 = vadd.f32 %v1586_v9, %v288_v41  ;;  %v1650_v45 = vadd.f32 %v1606_v26, %v317_v30 }
 0x445   :  { %v6623_v22 = vmul.f32 -1.442695, %v1649_v43  ;;  %v6624_v25 = vmul.f32 -1.442695, %v1650_v45 }
 0x447   :  { %6916 = vpow2.f32 %v6623_v22 }
 0x448   :  { %6918 = vpow2.f32 %v6624_v25 }
 0x449   :  { %v1626_v11 = vpop.f32.mrf.mxu2  ;;  %v1646_v53 = vpop.f32.mrf.mxu3 }
 0x44a   :  { %v1651_v47 = vadd.f32 %v1626_v11, %v346_v18  ;;  %v1652_v13 = vadd.f32 %v1646_v53, %v375_v1 }
 0x44c   :  { %v6625_v34 = vmul.f32 -1.442695, %v1651_v47  ;;  %v6626_v44 = vmul.f32 -1.442695, %v1652_v13  ;;  %v13905_v47 = vld [vmem:[#allocation58_spill] sm:$0xff] }
 0x44d   :  { %v6917_v42 = vpop.eup %6916  ;;  %v320_v13 = vadd.f32 %v13905_v47, %v13896_v40 }
 0x44e   :  { %v6919_v21 = vpop.eup %6918  ;;  %v1665_v49 = vadd.f32 1.0, %v6917_v42  ;;  %6920 = vpow2.f32 %v6625_v34 }
 0x44f   :  { %v1666_v24 = vadd.f32 1.0, %v6919_v21  ;;  %6922 = vpow2.f32 %v6626_v44 }
 0x450   :  { %6924 = vrcp.f32 %v1665_v49  ;;  %vm1674_vm15 = vweird.f32 %v1665_v49  ;;  %v1678_v28 = vand.u32 2147483647, %v1665_v49  ;;  %v1680_v7 = vand.u32 2147483648, %v1665_v49 }
 0x451   :  { %6926 = vrcp.f32 %v1666_v24  ;;  %vm1689_vm13 = vweird.f32 %v1666_v24  ;;  %v1693_v3 = vand.u32 2147483647, %v1666_v24  ;;  %v1695_v29 = vand.u32 2147483648, %v1666_v24 }
 0x452   :  { %v1681_v23 = vor.u32 1.1754944e-38, %v1680_v7  ;;  %vm1679_vm8 = vcmp.eq.f32.partialorder %v1678_v28, 8.507059e+37 }
 0x453   :  { %v1696_v52 = vor.u32 1.1754944e-38, %v1695_v29  ;;  %vm1694_vm5 = vcmp.eq.f32.partialorder %v1693_v3, 8.507059e+37 }
 0x454   :  { %v6921_v38 = vpop.eup %6920 }
 0x455   :  { %v6923_v10 = vpop.eup %6922  ;;  %v1667_v62 = vadd.f32 1.0, %v6921_v38  ;;  %v13906_v38 = vld [vmem:[#allocation59_spill] sm:$0xff] }
 0x456   :  { %v6925_v8 = vpop.eup %6924  ;;  %v1668_v6 = vadd.f32 1.0, %v6923_v10  ;;  %v349_v10 = vadd.f32 %v13906_v38, %v13898_v35 }
 0x457   :  { %v6927_v48 = vpop.eup %6926  ;;  %v1670_v50 = vmul.f32 %v6925_v8, %v1665_v49  ;;  %6928 = vrcp.f32 %v1667_v62  ;;  %vm1675_vm14 = vweird.f32 %v6925_v8  ;;  %v1710_v54 = vand.u32 2147483648, %v1667_v62 }
 0x458   :  { %v1685_v51 = vmul.f32 %v6927_v48, %v1666_v24  ;;  %6930 = vrcp.f32 %v1668_v6  ;;  %vm1690_vm12 = vweird.f32 %v6927_v48  ;;  %v1708_v58 = vand.u32 2147483647, %v1667_v62  ;;  %vm1676_vm4 = vmor %vm1674_vm15, %vm1675_vm14 }
 0x459   :  { %v1671_v55 = vsub.f32 1.0, %v1670_v50  ;;  %vm9133_vm2 = vmor %vm1689_vm13, %vm1690_vm12  ;;  %vm1704_vm6 = vweird.f32 %v1667_v62  ;;  %v1711_v33 = vor.u32 1.1754944e-38, %v1710_v54  ;;  %v1725_v22 = vand.u32 2147483648, %v1668_v6 }
 0x45a   :  { %v1686_v56 = vsub.f32 1.0, %v1685_v51  ;;  %vm1709_vm9 = vcmp.eq.f32.partialorder %v1708_v58, 8.507059e+37  ;;  %vm1719_vm11 = vweird.f32 %v1668_v6  ;;  %v1723_v25 = vand.u32 2147483647, %v1668_v6 }
 0x45b   :  { %v1672_v57 = vmul.f32 %v6925_v8, %v1671_v55  ;;  %v1726_v18 = vor.u32 1.1754944e-38, %v1725_v22 }
 0x45c   :  { %v1687_v59 = vmul.f32 %v6927_v48, %v1686_v56  ;;  %vm1724_vm13 = vcmp.eq.f32.partialorder %v1723_v25, 8.507059e+37 }
 0x45d   :  { %v6929_v60 = vpop.eup %6928  ;;  %v1673_v20 = vadd.f32 %v6925_v8, %v1672_v57 }
 0x45e   :  { %v1688_v61 = vadd.f32 %v6927_v48, %v1687_v59  ;;  %v1700_v63 = vmul.f32 %v6929_v60, %v1667_v62  ;;  %v6931_v2 = vpop.eup %6930  ;;  %vm1705_vm3 = vweird.f32 %v6929_v60  ;;  %v13907_v62 = vld [vmem:[#allocation60_spill] sm:$0xff] }
 0x45f   :  { %v1715_v4 = vmul.f32 %v6931_v2, %v1668_v6  ;;  %v1677_v19 = vsel %vm1676_vm4, %v6925_v8, %v1673_v20  ;;  %vm1706_vm7 = vmor %vm1704_vm6, %vm1705_vm3  ;;  %vm1720_vm10 = vweird.f32 %v6931_v2  ;;  %v378_v8 = vadd.f32 %v13907_v62, %v13900_v5 }
 0x460   :  { %v1701_v0 = vsub.f32 1.0, %v1700_v63  ;;  %v1692_v17 = vsel %vm9133_vm2, %v6927_v48, %v1688_v61  ;;  %v1682_v41 = vsel %vm1679_vm8, %v1681_v23, %v1677_v19  ;;  %vm1721_vm12 = vmor %vm1719_vm11, %vm1720_vm10 }
 0x461   :  { %v1716_v14 = vsub.f32 1.0, %v1715_v4  ;;  %v1697_v36 = vsel %vm1694_vm5, %v1696_v52, %v1692_v17 }
 0x462   :  { %v1702_v16 = vmul.f32 %v6929_v60, %v1701_v0  ;;  %v1729_v9 = vmul.f32 %v1697_v36, %v9058_v32  ;;  %v13904_v32 = vld [vmem:[#allocation47_spill] sm:$0xff] }
 0x463   :  { %v1717_v30 = vmul.f32 %v6931_v2, %v1716_v14  ;;  %v291_v53 = vadd.f32 %v13904_v32, %v13894_v37 }
 0x464   :  { %v1703_v12 = vadd.f32 %v6929_v60, %v1702_v16 }
 0x465   :  { %v1718_v45 = vadd.f32 %v6931_v2, %v1717_v30 }
 0x466   :  { %v1707_v39 = vsel %vm1706_vm7, %v6929_v60, %v1703_v12 }
 0x467   :  { %v1712_v27 = vsel %vm1709_vm9, %v1711_v33, %v1707_v39  ;;  %v1722_v46 = vsel %vm1721_vm12, %v6931_v2, %v1718_v45 }
 0x468   :  { %v1730_v26 = vmul.f32 %v1712_v27, %v1682_v41  ;;  %v1727_v1 = vsel %vm1724_vm13, %v1726_v18, %v1722_v46  ;;  %v6636_v27 = vld [vmem:[%s13123_s0 + $0x68] sm:$0xff] }
 0x46a   :  { %v9140_v43 = vadd.f32 %v1730_v26, %v1729_v9 }
 0x46c   :  { %6932 = vtanh.f32 %v9140_v43 }
 0x472   :  { %v6933_v31 = vpop.eup %6932 }
 0x473   :  { %v1733_v11 = vmul.f32 %v6933_v31, %v1727_v1 }
 0x475   :  { %1755 = vmatmul.f32.vlgmr.msrb.gmra.mxu0 %v1733_v11  ;;  %1775 = vmatmul.f32.vlgmr.msra.gmra.mxu1 %v1733_v11 }
 0x476   :  { %1795 = vmatmul.f32.vlgmr.msra.gmra.mxu2 %v1733_v11  ;;  %1815 = vmatmul.f32.vlgmr.msra.gmra.mxu3 %v1733_v11 }
 0x4f2   :  { %v1756_v34 = vpop.f32.mrf.mxu0  ;;  %v1776_v44 = vpop.f32.mrf.mxu1 }
 0x4f3   :  { %v1819_v42 = vadd.f32 %v1756_v34, %v291_v53  ;;  %v1820_v21 = vadd.f32 %v1776_v44, %v320_v13 }
 0x4f5   :  { %v6627_v49 = vmul.f32 -1.442695, %v1819_v42  ;;  %v6628_v24 = vmul.f32 -1.442695, %v1820_v21 }
 0x4f7   :  { %6934 = vpow2.f32 %v6627_v49 }
 0x4f8   :  { %6936 = vpow2.f32 %v6628_v24 }
 0x4f9   :  { %v1796_v6 = vpop.f32.mrf.mxu2  ;;  %v1816_v48 = vpop.f32.mrf.mxu3 }
 0x4fa   :  { %v1821_v50 = vadd.f32 %v1796_v6, %v349_v10  ;;  %v1822_v51 = vadd.f32 %v1816_v48, %v378_v8  ;;  %v2091_v48 = vld [vmem:[%s13124_s1 + $0x60] sm:$0xf] }
 0x4fb   :  { %6639 = vmatpush.msk.msrb.mxu0 %vm67_vm0, %v2091_v48  ;;  %v9414_v48 = vld [vmem:[%s13126_s3 + $0x108] sm:$0xff] }
 0x4fc   :  { %v6629_v55 = vmul.f32 -1.442695, %v1821_v50  ;;  %v6630_v56 = vmul.f32 -1.442695, %v1822_v51  ;;  %v2092_v50 = vld [vmem:[%s13124_s1 + $0x68] sm:$0xf] }
 0x4fd   :  { %v6935_v57 = vpop.eup %6934  ;;  %v2094_v51 = vld [vmem:[%s13124_s1 + $0x78] sm:$0xf]  ;;  %6644 = vmatpush.msk.msra.mxu1 %vm67_vm0, %v2092_v50 }
 0x4fe   :  { %v6937_v59 = vpop.eup %6936  ;;  %v1835_v60 = vadd.f32 1.0, %v6935_v57  ;;  %6938 = vpow2.f32 %v6629_v55  ;;  %6654 = vmatpush.msk.msra.mxu3 %vm67_vm0, %v2094_v51  ;;  %v2089_v55 = vld [vmem:[%s13124_s1 + $0x50] sm:$0xff]  ;;  %v2088_v57 = vld [vmem:[%s13124_s1 + $0x48] sm:$0xff]  ;;  %v9419_v50 = vld [vmem:[%s13126_s3 + $0x118] sm:$0xff] }
 0x4ff   :  { %v1836_v61 = vadd.f32 1.0, %v6937_v59  ;;  %6940 = vpow2.f32 %v6630_v56  ;;  %v2087_v56 = vld [vmem:[%s13124_s1 + $0x40] sm:$0xff]  ;;  %v2090_v59 = vld [vmem:[%s13124_s1 + $0x58] sm:$0xff]  ;;  %2171 = vmatpush.msra.mxu1 %v2088_v57  ;;  %v9433_v57 = vld [vmem:[%s13126_s3 + $0xf0] sm:$0xff] }
 0x500   :  { %6942 = vrcp.f32 %v1835_v60  ;;  %vm1844_vm3 = vweird.f32 %v1835_v60  ;;  %v1848_v39 = vand.u32 2147483647, %v1835_v60  ;;  %v1850_v41 = vand.u32 2147483648, %v1835_v60  ;;  %2142 = vmatpush.msrb.mxu0 %v2087_v56  ;;  %2229 = vmatpush.msra.mxu3 %v2090_v59  ;;  %13918 = vst [vmem:[#allocation9_spill] sm:$0xff] %v9433_v57  ;;  %v9438_v59 = vld [vmem:[%s13126_s3 + $0xe0] sm:$0xff] }
 0x501   :  { %6944 = vrcp.f32 %v1836_v61  ;;  %vm1859_vm15 = vweird.f32 %v1836_v61  ;;  %v1863_v19 = vand.u32 2147483647, %v1836_v61  ;;  %v1865_v12 = vand.u32 2147483648, %v1836_v61 }
 0x502   :  { %v1851_v31 = vor.u32 1.1754944e-38, %v1850_v41  ;;  %vm1849_vm10 = vcmp.eq.f32.partialorder %v1848_v39, 8.507059e+37  ;;  %v9303_v39 = vld [vmem:[%s13126_s3 + $0x188] sm:$0xff]  ;;  %v9308_v41 = vld [vmem:[%s13126_s3 + $0x198] sm:$0xff] }
 0x503   :  { %v1866_v22 = vor.u32 1.1754944e-38, %v1865_v12  ;;  %vm1864_vm7 = vcmp.eq.f32.partialorder %v1863_v19, 8.507059e+37  ;;  %v9272_v19 = vld [vmem:[%s13126_s3 + $0x1a0] sm:$0xff]  ;;  %v9279_v12 = vld [vmem:[%s13126_s3 + $0x1a8] sm:$0xff] }
 0x504   :  { %v6939_v63 = vpop.eup %6938 }
 0x505   :  { %v6941_v2 = vpop.eup %6940  ;;  %v1837_v3 = vadd.f32 1.0, %v6939_v63  ;;  %v2084_v63 = vld [vmem:[%s13124_s1 + $0x28] sm:$0xff] }
 0x506   :  { %v6943_v29 = vpop.eup %6942  ;;  %v1838_v20 = vadd.f32 1.0, %v6941_v2  ;;  %v2086_v2 = vld [vmem:[%s13124_s1 + $0x38] sm:$0xff]  ;;  %2172 = vmatpush.msra.mxu1 %v2084_v63  ;;  %v9445_v63 = vld [vmem:[%s13126_s3 + $0xe8] sm:$0xff] }
 0x507   :  { %v6945_v0 = vpop.eup %6944  ;;  %v1840_v4 = vmul.f32 %v6943_v29, %v1835_v60  ;;  %6946 = vrcp.f32 %v1837_v3  ;;  %vm1845_vm2 = vweird.f32 %v6943_v29  ;;  %v1880_v30 = vand.u32 2147483648, %v1837_v3  ;;  %v2085_v60 = vld [vmem:[%s13124_s1 + $0x30] sm:$0xff]  ;;  %2230 = vmatpush.msra.mxu3 %v2086_v2  ;;  %v9450_v2 = vld [vmem:[%s13126_s3 + $0xf8] sm:$0xff] }
 0x508   :  { %v1855_v28 = vmul.f32 %v6945_v0, %v1836_v61  ;;  %6948 = vrcp.f32 %v1838_v20  ;;  %vm1860_vm14 = vweird.f32 %v6945_v0  ;;  %v1878_v45 = vand.u32 2147483647, %v1837_v3  ;;  %vm1846_vm6 = vmor %vm1844_vm3, %vm1845_vm2  ;;  %v2083_v61 = vld [vmem:[%s13124_s1 + $0x20] sm:$0xff]  ;;  %13919 = vst [vmem:[#allocation19_spill] sm:$0xff] %v9450_v2 }
 0x509   :  { %v1841_v7 = vsub.f32 1.0, %v1840_v4  ;;  %vm9151_vm4 = vmor %vm1859_vm15, %vm1860_vm14  ;;  %vm1874_vm8 = vweird.f32 %v1837_v3  ;;  %v1881_v1 = vor.u32 1.1754944e-38, %v1880_v30  ;;  %v1895_v49 = vand.u32 2147483648, %v1838_v20  ;;  %2143 = vmatpush.msrb.mxu0 %v2083_v61  ;;  %v6635_v4 = vld [vmem:[%s13123_s0 + $0x60] sm:$0xff]  ;;  %v13914_v30 = vld [vmem:[#allocation51_spill] sm:$0xff] }
 0x50a   :  { %v1856_v15 = vsub.f32 1.0, %v1855_v28  ;;  %vm1879_vm11 = vcmp.eq.f32.partialorder %v1878_v45, 8.507059e+37  ;;  %vm1889_vm13 = vweird.f32 %v1838_v20  ;;  %v1893_v24 = vand.u32 2147483647, %v1838_v20  ;;  %v9219_v28 = vld [vmem:[%s13126_s3 + $0x1f0] sm:$0xff] }
 0x50b   :  { %v1842_v54 = vmul.f32 %v6943_v29, %v1841_v7  ;;  %v1896_v10 = vor.u32 1.1754944e-38, %v1895_v49  ;;  %13910 = vst [vmem:[#allocation52_spill] sm:$0xff] %v9219_v28  ;;  %v9224_v7 = vld [vmem:[%s13126_s3 + $0x1e0] sm:$0xff]  ;;  %v9386_v49 = vld [vmem:[%s13126_s3 + $0x128] sm:$0xff] }
 0x50c   :  { %v1857_v17 = vmul.f32 %v6945_v0, %v1856_v15  ;;  %vm1894_vm15 = vcmp.eq.f32.partialorder %v1893_v24, 8.507059e+37  ;;  %13911 = vst [vmem:[#allocation53_spill] sm:$0xff] %v9224_v7  ;;  %v9231_v15 = vld [vmem:[%s13126_s3 + $0x1e8] sm:$0xff]  ;;  %v9391_v24 = vld [vmem:[%s13126_s3 + $0x138] sm:$0xff] }
 0x50d   :  { %v6947_v16 = vpop.eup %6946  ;;  %v1843_v23 = vadd.f32 %v6943_v29, %v1842_v54  ;;  %13912 = vst [vmem:[#allocation40_spill] sm:$0xff] %v9231_v15  ;;  %v9236_v54 = vld [vmem:[%s13126_s3 + $0x1f8] sm:$0xff] }
 0x50e   :  { %v1858_v58 = vadd.f32 %v6945_v0, %v1857_v17  ;;  %v1870_v52 = vmul.f32 %v6947_v16, %v1837_v3  ;;  %v6949_v14 = vpop.eup %6948  ;;  %vm1875_vm5 = vweird.f32 %v6947_v16  ;;  %v2081_v3 = vld [vmem:[%s13124_s1 + $0x10] sm:$0xff]  ;;  %13913 = vst [vmem:[#allocation18_spill] sm:$0xff] %v9236_v54 }
 0x50f   :  { %v1885_v36 = vmul.f32 %v6949_v14, %v1838_v20  ;;  %v1847_v46 = vsel %vm1846_vm6, %v6943_v29, %v1843_v23  ;;  %vm1876_vm9 = vmor %vm1874_vm8, %vm1875_vm5  ;;  %vm1890_vm12 = vweird.f32 %v6949_v14  ;;  %v2079_v29 = vld [vmem:[%s13124_s1] sm:$0xff]  ;;  %v2080_v20 = vld [vmem:[%s13124_s1 + $0x8] sm:$0xff] }
 0x510   :  { %v1871_v33 = vsub.f32 1.0, %v1870_v52  ;;  %v1862_v9 = vsel %vm9151_vm4, %v6945_v0, %v1858_v58  ;;  %v1852_v53 = vsel %vm1849_vm10, %v1851_v31, %v1847_v46  ;;  %vm1891_vm14 = vmor %vm1889_vm13, %vm1890_vm12  ;;  %2144 = vmatpush.msrb.mxu0 %v2079_v29  ;;  %v2082_v0 = vld [vmem:[%s13124_s1 + $0x18] sm:$0xff]  ;;  %2173 = vmatpush.msra.mxu1 %v2080_v20  ;;  %v9243_v17 = vld [vmem:[%s13126_s3 + $0x1d0] sm:$0xff] }
 0x511   :  { %v1886_v25 = vsub.f32 1.0, %v1885_v36  ;;  %v1867_v11 = vsel %vm1864_vm7, %v1866_v22, %v1862_v9  ;;  %2231 = vmatpush.msra.mxu3 %v2082_v0  ;;  %v9255_v58 = vld [vmem:[%s13126_s3 + $0x1c8] sm:$0xff]  ;;  %v9260_v52 = vld [vmem:[%s13126_s3 + $0x1d8] sm:$0xff]  ;;  %v9296_v36 = vld [vmem:[%s13126_s3 + $0x180] sm:$0xff]  ;;  %v294_v9 = vadd.f32 %v13914_v30, %v13894_v37 }
 0x512   :  { %v1872_v26 = vmul.f32 %v6947_v16, %v1871_v33  ;;  %v1899_v34 = vmul.f32 %v1867_v11, %v9140_v43  ;;  %v2093_v43 = vld [vmem:[%s13124_s1 + $0x70] sm:$0xf]  ;;  %v9284_v23 = vld [vmem:[%s13126_s3 + $0x1b8] sm:$0xff]  ;;  %v9338_v37 = vld [vmem:[%s13126_s3 + $0x168] sm:$0xff] }
 0x513   :  { %v1887_v13 = vmul.f32 %v6949_v14, %v1886_v25  ;;  %6649 = vmatpush.msk.msra.mxu2 %vm67_vm0, %v2093_v43  ;;  %v9291_v33 = vld [vmem:[%s13126_s3 + $0x190] sm:$0xff]  ;;  %v9331_v25 = vld [vmem:[%s13126_s3 + $0x160] sm:$0xff]  ;;  %v9476_v30 = vld [vmem:[%s13126_s3 + $0xd8] sm:$0xff] }
 0x514   :  { %v1873_v18 = vadd.f32 %v6947_v16, %v1872_v26  ;;  %v13915_v26 = vld [vmem:[#allocation61_spill] sm:$0xff]  ;;  %v9326_v22 = vld [vmem:[%s13126_s3 + $0x170] sm:$0xff]  ;;  %13923 = vst [vmem:[#allocation21_spill] sm:$0xff] %v9476_v30 }
 0x515   :  { %v1888_v21 = vadd.f32 %v6949_v14, %v1887_v13  ;;  %2200 = vmatpush.msra.mxu2 %v2089_v55  ;;  %v323_v45 = vadd.f32 %v13915_v26, %v13896_v40  ;;  %v9343_v40 = vld [vmem:[%s13126_s3 + $0x178] sm:$0xff]  ;;  %v9350_v11 = vld [vmem:[%s13126_s3 + $0x150] sm:$0xff]  ;;  %v9462_v20 = vld [vmem:[%s13126_s3 + $0xc0] sm:$0xff] }
 0x516   :  { %v1877_v32 = vsel %vm1876_vm9, %v6947_v16, %v1873_v18  ;;  %v9248_v16 = vld [vmem:[%s13126_s3 + $0x1c0] sm:$0xff]  ;;  %v9457_v29 = vld [vmem:[%s13126_s3 + $0xd0] sm:$0xff]  ;;  %13921 = vst [vmem:[#allocation20_spill] sm:$0xff] %v9462_v20 }
 0x517   :  { %v1882_v47 = vsel %vm1879_vm11, %v1881_v1, %v1877_v32  ;;  %v1892_v38 = vsel %vm1891_vm14, %v6949_v14, %v1888_v21  ;;  %2201 = vmatpush.msra.mxu2 %v2085_v60  ;;  %v9267_v14 = vld [vmem:[%s13126_s3 + $0x1b0] sm:$0xff]  ;;  %v9355_v32 = vld [vmem:[%s13126_s3 + $0x140] sm:$0xff]  ;;  %13920 = vst [vmem:[#allocation22_spill] sm:$0xff] %v9457_v29 }
 0x518   :  { %v1900_v44 = vmul.f32 %v1882_v47, %v1852_v53  ;;  %v1897_v8 = vsel %vm1894_vm15, %v1896_v10, %v1892_v38  ;;  %v9362_v53 = vld [vmem:[%s13126_s3 + $0x148] sm:$0xff]  ;;  %v9367_v47 = vld [vmem:[%s13126_s3 + $0x158] sm:$0xff]  ;;  %v9379_v21 = vld [vmem:[%s13126_s3 + $0x120] sm:$0xff] }
 0x519   :  { %2202 = vmatpush.msra.mxu2 %v2081_v3  ;;  %v9398_v38 = vld [vmem:[%s13126_s3 + $0x110] sm:$0xff]  ;;  %v9403_v10 = vld [vmem:[%s13126_s3 + $0x100] sm:$0xff] }
 0x51a   :  { %v9158_v42 = vadd.f32 %v1900_v44, %v1899_v34  ;;  %v9374_v44 = vld [vmem:[%s13126_s3 + $0x130] sm:$0xff] }
 0x51b   :  { %v9485_v26 = vld [vmem:[%s13126_s3 + $0xb0] sm:$0xff] }
 0x51c   :  { %6950 = vtanh.f32 %v9158_v42  ;;  %13924 = vst [vmem:[#allocation25_spill] sm:$0xff] %v9485_v26 }
 0x522   :  { %v6951_v62 = vpop.eup %6950 }
 0x523   :  { %v1903_v6 = vmul.f32 %v6951_v62, %v1897_v8  ;;  %v13916_v62 = vld [vmem:[#allocation63_spill] sm:$0xff] }
 0x524   :  { %v352_v8 = vadd.f32 %v13916_v62, %v13898_v35  ;;  %v6638_v62 = vld [vmem:[%s13123_s0 + $0x78] sm:$0xff] }
 0x525   :  { %1925 = vmatmul.f32.vlgmr.msra.gmra.mxu0 %v1903_v6  ;;  %1945 = vmatmul.f32.vlgmr.msrb.gmra.mxu1 %v1903_v6 }
 0x526   :  { %1965 = vmatmul.f32.vlgmr.msrb.gmra.mxu2 %v1903_v6  ;;  %1985 = vmatmul.f32.vlgmr.msrb.gmra.mxu3 %v1903_v6  ;;  %v13917_v6 = vld [vmem:[#allocation64_spill] sm:$0xff] }
 0x527   :  { %2370 = vmatpush.msrb.mxu2 %v9219_v28  ;;  %2330 = vmatpush.msra.mxu0 %v9224_v7  ;;  %v381_v43 = vadd.f32 %v13917_v6, %v13900_v5  ;;  %v6637_v5 = vld [vmem:[%s13123_s0 + $0x70] sm:$0xff] }
 0x528   :  { %2350 = vmatpush.msrb.mxu1 %v9231_v15  ;;  %2390 = vmatpush.msrb.mxu3 %v9236_v54 }
 0x529   :  { %2371 = vmatpush.msrb.mxu2 %v9243_v17  ;;  %2331 = vmatpush.msra.mxu0 %v9248_v16 }
 0x52a   :  { %2351 = vmatpush.msrb.mxu1 %v9255_v58  ;;  %2391 = vmatpush.msrb.mxu3 %v9260_v52 }
 0x52b   :  { %2372 = vmatpush.msrb.mxu2 %v9267_v14  ;;  %2332 = vmatpush.msra.mxu0 %v9272_v19 }
 0x52c   :  { %2352 = vmatpush.msrb.mxu1 %v9279_v12  ;;  %2392 = vmatpush.msrb.mxu3 %v9284_v23 }
 0x52d   :  { %6640 = vmatmul.msk.f32.vlgmr.msrb.gmra.mxu0 %vm54_vm1, %v6635_v4  ;;  %6645 = vmatmul.msk.f32.vlgmr.msra.gmra.mxu1 %vm54_vm1, %v6635_v4 }
 0x52e   :  { %6650 = vmatmul.msk.f32.vlgmr.msra.gmra.mxu2 %vm54_vm1, %v6635_v4  ;;  %6655 = vmatmul.msk.f32.vlgmr.msra.gmra.mxu3 %vm54_vm1, %v6635_v4 }
 0x52f   :  { %2373 = vmatpush.msrb.mxu2 %v9291_v33  ;;  %2333 = vmatpush.msra.mxu0 %v9296_v36 }
 0x530   :  { %2353 = vmatpush.msrb.mxu1 %v9303_v39  ;;  %2393 = vmatpush.msrb.mxu3 %v9308_v41 }
 0x531   :  { %2374 = vmatpush.msrb.mxu2 %v9326_v22  ;;  %2334 = vmatpush.msra.mxu0 %v9331_v25 }
 0x532   :  { %2354 = vmatpush.msrb.mxu1 %v9338_v37  ;;  %2394 = vmatpush.msrb.mxu3 %v9343_v40 }
 0x533   :  { %2375 = vmatpush.msrb.mxu2 %v9350_v11  ;;  %2335 = vmatpush.msra.mxu0 %v9355_v32 }
 0x534   :  { %2355 = vmatpush.msrb.mxu1 %v9362_v53  ;;  %2395 = vmatpush.msrb.mxu3 %v9367_v47 }
 0x535   :  { %6641 = vmatmul.msk.f32.gmra.mxu0 %vm54_vm1, %v6636_v27  ;;  %6646 = vmatmul.msk.f32.gmra.mxu1 %vm54_vm1, %v6636_v27 }
 0x536   :  { %6651 = vmatmul.msk.f32.gmra.mxu2 %vm54_vm1, %v6636_v27  ;;  %6656 = vmatmul.msk.f32.gmra.mxu3 %vm54_vm1, %v6636_v27  ;;  %v9471_v27 = vld [vmem:[%s13126_s3 + $0xc8] sm:$0xff] }
 0x537   :  { %2376 = vmatpush.msrb.mxu2 %v9374_v44  ;;  %2336 = vmatpush.msra.mxu0 %v9379_v21  ;;  %13922 = vst [vmem:[#allocation10_spill] sm:$0xff] %v9471_v27 }
 0x538   :  { %2356 = vmatpush.msrb.mxu1 %v9386_v49  ;;  %2396 = vmatpush.msrb.mxu3 %v9391_v24 }
 0x539   :  { %2377 = vmatpush.msrb.mxu2 %v9398_v38  ;;  %2337 = vmatpush.msra.mxu0 %v9403_v10 }
 0x53a   :  { %2357 = vmatpush.msrb.mxu1 %v9414_v48  ;;  %2397 = vmatpush.msrb.mxu3 %v9419_v50 }
 0x53b   :  { %2378 = vmatpush.msrb.mxu2 %v9433_v57  ;;  %2338 = vmatpush.msra.mxu0 %v9438_v59 }
 0x53c   :  { %2358 = vmatpush.msrb.mxu1 %v9445_v63  ;;  %2398 = vmatpush.msrb.mxu3 %v9450_v2 }
 0x53d   :  { %6642 = vmatmul.msk.f32.gmra.mxu0 %vm54_vm1, %v6637_v5  ;;  %6647 = vmatmul.msk.f32.gmra.mxu1 %vm54_vm1, %v6637_v5 }
 0x53e   :  { %6652 = vmatmul.msk.f32.gmra.mxu2 %vm54_vm1, %v6637_v5  ;;  %6657 = vmatmul.msk.f32.gmra.mxu3 %vm54_vm1, %v6637_v5 }
 0x53f   :  { %2379 = vmatpush.msrb.mxu2 %v9457_v29  ;;  %2339 = vmatpush.msra.mxu0 %v9462_v20 }
 0x540   :  { %2359 = vmatpush.msrb.mxu1 %v9471_v27  ;;  %2399 = vmatpush.msrb.mxu3 %v9476_v30 }
 0x541   :  { %2380 = vmatpush.msrb.mxu2 %v9485_v26 }
 0x545   :  { %6643 = vmatmul.msk.f32.gmra.mxu0 %vm54_vm1, %v6638_v62  ;;  %6648 = vmatmul.msk.f32.gmra.mxu1 %vm54_vm1, %v6638_v62 }
 0x546   :  { %6653 = vmatmul.msk.f32.gmra.mxu2 %vm54_vm1, %v6638_v62  ;;  %6658 = vmatmul.msk.f32.gmra.mxu3 %vm54_vm1, %v6638_v62  ;;  %v9591_v62 = vld [vmem:[%s13126_s3 + $0x48] sm:$0xff] }
 0x547   :  { %13938 = vst [vmem:[#allocation14_spill] sm:$0xff] %v9591_v62 }
 0x5a2   :  { %v1926_v46 = vpop.f32.mrf.mxu0  ;;  %v1946_v18 = vpop.f32.mrf.mxu1 }
 0x5a3   :  { %v1989_v31 = vadd.f32 %v1926_v46, %v294_v9  ;;  %v1990_v1 = vadd.f32 %v1946_v18, %v323_v45  ;;  %v9490_v45 = vld [vmem:[%s13126_s3 + $0xa0] sm:$0xff]  ;;  %v9498_v46 = vld [vmem:[%s13126_s3 + $0xa8] sm:$0xff]  ;;  %v9503_v18 = vld [vmem:[%s13126_s3 + $0xb8] sm:$0xff] }
 0x5a4   :  { %13925 = vst [vmem:[#allocation23_spill] sm:$0xff] %v9490_v45  ;;  %2340 = vmatpush.msra.mxu0 %v9490_v45  ;;  %2360 = vmatpush.msrb.mxu1 %v9498_v46 }
 0x5a5   :  { %v6631_v13 = vmul.f32 -1.442695, %v1989_v31  ;;  %v6632_v34 = vmul.f32 -1.442695, %v1990_v1  ;;  %13926 = vst [vmem:[#allocation11_spill] sm:$0xff] %v9498_v46  ;;  %v9511_v31 = vld [vmem:[%s13126_s3 + $0x90] sm:$0xff]  ;;  %2400 = vmatpush.msrb.mxu3 %v9503_v18 }
 0x5a6   :  { %13927 = vst [vmem:[#allocation24_spill] sm:$0xff] %v9503_v18  ;;  %v9516_v1 = vld [vmem:[%s13126_s3 + $0x80] sm:$0xff]  ;;  %2381 = vmatpush.msrb.mxu2 %v9511_v31 }
 0x5a7   :  { %6952 = vpow2.f32 %v6631_v13  ;;  %13928 = vst [vmem:[#allocation28_spill] sm:$0xff] %v9511_v31  ;;  %v9523_v13 = vld [vmem:[%s13126_s3 + $0x88] sm:$0xff]  ;;  %2341 = vmatpush.msra.mxu0 %v9516_v1 }
 0x5a8   :  { %6954 = vpow2.f32 %v6632_v34  ;;  %13929 = vst [vmem:[#allocation26_spill] sm:$0xff] %v9516_v1  ;;  %v9528_v34 = vld [vmem:[%s13126_s3 + $0x98] sm:$0xff]  ;;  %2361 = vmatpush.msrb.mxu1 %v9523_v13 }
 0x5a9   :  { %v1966_v51 = vpop.f32.mrf.mxu2  ;;  %v1986_v35 = vpop.f32.mrf.mxu3  ;;  %13930 = vst [vmem:[#allocation12_spill] sm:$0xff] %v9523_v13  ;;  %2401 = vmatpush.msrb.mxu3 %v9528_v34 }
 0x5aa   :  { %v1991_v55 = vadd.f32 %v1966_v51, %v352_v8  ;;  %v1992_v56 = vadd.f32 %v1986_v35, %v381_v43  ;;  %13931 = vst [vmem:[#allocation27_spill] sm:$0xff] %v9528_v34  ;;  %v9544_v51 = vld [vmem:[%s13126_s3 + $0x70] sm:$0xff]  ;;  %v9549_v35 = vld [vmem:[%s13126_s3 + $0x60] sm:$0xff]  ;;  %v9596_v34 = vld [vmem:[%s13126_s3 + $0x58] sm:$0xff] }
 0x5ab   :  { %13932 = vst [vmem:[#allocation31_spill] sm:$0xff] %v9544_v51  ;;  %2382 = vmatpush.msrb.mxu2 %v9544_v51  ;;  %2342 = vmatpush.msra.mxu0 %v9549_v35  ;;  %v9604_v51 = vld [vmem:[%s13126_s3 + $0x30] sm:$0xff] }
 0x5ac   :  { %v6633_v60 = vmul.f32 -1.442695, %v1991_v55  ;;  %v6634_v61 = vmul.f32 -1.442695, %v1992_v56  ;;  %13933 = vst [vmem:[#allocation29_spill] sm:$0xff] %v9549_v35  ;;  %v9560_v56 = vld [vmem:[%s13126_s3 + $0x68] sm:$0xff] }
 0x5ad   :  { %v6953_v3 = vpop.eup %6952  ;;  %13934 = vst [vmem:[#allocation13_spill] sm:$0xff] %v9560_v56  ;;  %2362 = vmatpush.msrb.mxu1 %v9560_v56  ;;  %v9609_v35 = vld [vmem:[%s13126_s3 + $0x20] sm:$0xff] }
 0x5ae   :  { %v6955_v0 = vpop.eup %6954  ;;  %v9464_v4 = vadd.f32 1.0, %v6953_v3  ;;  %6956 = vpow2.f32 %v6633_v60  ;;  %v9565_v60 = vld [vmem:[%s13126_s3 + $0x78] sm:$0xff]  ;;  %13939 = vst [vmem:[#allocation34_spill] sm:$0xff] %v9596_v34 }
 0x5af   :  { %v9478_v9 = vadd.f32 1.0, %v6955_v0  ;;  %6958 = vpow2.f32 %v6634_v61  ;;  %13935 = vst [vmem:[#allocation30_spill] sm:$0xff] %v9565_v60  ;;  %v9577_v0 = vld [vmem:[%s13126_s3 + $0x50] sm:$0xff]  ;;  %2402 = vmatpush.msrb.mxu3 %v9565_v60  ;;  %v9621_v60 = vld [vmem:[%s13126_s3 + $0x38] sm:$0xff]  ;;  %2363 = vmatpush.msrb.mxu1 %v9591_v62 }
 0x5b0   :  { %6960 = vrcp.f32 %v9464_v4  ;;  %13936 = vst [vmem:[#allocation33_spill] sm:$0xff] %v9577_v0  ;;  %2383 = vmatpush.msrb.mxu2 %v9577_v0  ;;  %v9633_v0 = vld [vmem:[%s13126_s3] sm:$0xff]  ;;  %v9647_v62 = vld [vmem:[%s13126_s3 + $0x18] sm:$0xff]  ;;  %vm2014_vm5 = vweird.f32 %v9464_v4 }
 0x5b1   :  { %6962 = vrcp.f32 %v9478_v9  ;;  %13940 = vst [vmem:[#allocation36_spill] sm:$0xff] %v9604_v51  ;;  %2403 = vmatpush.msrb.mxu3 %v9596_v34  ;;  %v9642_v34 = vld [vmem:[%s13126_s3 + $0x8] sm:$0xff]  ;;  %vm2029_vm3 = vweird.f32 %v9478_v9 }
 0x5b2   :  { %13941 = vst [vmem:[#allocation35_spill] sm:$0xff] %v9609_v35  ;;  %2384 = vmatpush.msrb.mxu2 %v9604_v51 }
 0x5b3   :  { %13943 = vst [vmem:[#allocation62_spill] sm:$0xff] %v9621_v60  ;;  %2404 = vmatpush.msrb.mxu3 %v9621_v60 }
 0x5b4   :  { %v6957_v8 = vpop.eup %6956  ;;  %13945 = vst [vmem:[#allocation6_spill] sm:$0xff] %v9633_v0 }
 0x5b5   :  { %v6959_v6 = vpop.eup %6958  ;;  %v9537_v43 = vadd.f32 1.0, %v6957_v8  ;;  %v9582_v8 = vld [vmem:[%s13126_s3 + $0x40] sm:$0xff]  ;;  %13946 = vst [vmem:[#allocation65_spill] sm:$0xff] %v9642_v34  ;;  %2405 = vmatpush.msrb.mxu3 %v9647_v62 }
 0x5b6   :  { %v9551_v5 = vpop.eup %6960  ;;  %v9553_v55 = vadd.f32 1.0, %v6959_v6  ;;  %13937 = vst [vmem:[#allocation32_spill] sm:$0xff] %v9582_v8  ;;  %2343 = vmatpush.msra.mxu0 %v9582_v8 }
 0x5b7   :  { %v9567_v61 = vpop.eup %6962  ;;  %v2010_v3 = vmul.f32 %v9551_v5, %v9464_v4  ;;  %6964 = vrcp.f32 %v9537_v43  ;;  %13947 = vst [vmem:[#allocation67_spill] sm:$0xff] %v9647_v62  ;;  %vm2015_vm4 = vweird.f32 %v9551_v5  ;;  %2560 = vmatpush.msra.mxu3 %v9236_v54  ;;  %vm2044_vm10 = vweird.f32 %v9537_v43 }
 0x5b8   :  { %v2025_v6 = vmul.f32 %v9567_v61, %v9478_v9  ;;  %6966 = vrcp.f32 %v9553_v55  ;;  %2344 = vmatpush.msra.mxu0 %v9609_v35  ;;  %vm2030_vm2 = vweird.f32 %v9567_v61  ;;  %v2033_v35 = vand.u32 2147483647, %v9478_v9  ;;  %vm9689_vm8 = vmor %vm2014_vm5, %vm2015_vm4 }
 0x5b9   :  { %v2011_v31 = vsub.f32 1.0, %v2010_v3  ;;  %v9616_v3 = vld [vmem:[%s13126_s3 + $0x28] sm:$0xff]  ;;  %vm9674_vm6 = vmor %vm2029_vm3, %vm2030_vm2  ;;  %2561 = vmatpush.msra.mxu3 %v9260_v52  ;;  %vm2059_vm15 = vweird.f32 %v9553_v55 }
 0x5ba   :  { %v2026_v13 = vsub.f32 1.0, %v2025_v6  ;;  %13942 = vst [vmem:[#allocation55_spill] sm:$0xff] %v9616_v3  ;;  %v9628_v6 = vld [vmem:[%s13126_s3 + $0x10] sm:$0xff]  ;;  %2364 = vmatpush.msrb.mxu1 %v9616_v3  ;;  %2345 = vmatpush.msra.mxu0 %v9633_v0  ;;  %v2035_v3 = vand.u32 2147483648, %v9478_v9  ;;  %v2018_v9 = vand.u32 2147483647, %v9464_v4 }
 0x5bb   :  { %13944 = vst [vmem:[#allocation38_spill] sm:$0xff] %v9628_v6  ;;  %v2012_v8 = vmul.f32 %v9551_v5, %v2011_v31  ;;  %2385 = vmatpush.msrb.mxu2 %v9628_v6  ;;  %vm2034_vm9 = vcmp.eq.f32.partialorder %v2033_v35, 8.507059e+37  ;;  %2562 = vmatpush.msra.mxu3 %v9284_v23 }
 0x5bc   :  { %v2027_v56 = vmul.f32 %v9567_v61, %v2026_v13  ;;  %2365 = vmatpush.msrb.mxu1 %v9642_v34  ;;  %2500 = vmatpush.msrb.mxu0 %v9224_v7  ;;  %v2020_v34 = vand.u32 2147483648, %v9464_v4  ;;  %v2048_v4 = vand.u32 2147483647, %v9537_v43  ;;  %vm2019_vm12 = vcmp.eq.f32.partialorder %v2018_v9, 8.507059e+37 }
 0x5bd   :  { %v6965_v1 = vpop.eup %6964  ;;  %2540 = vmatpush.msra.mxu2 %v9219_v28  ;;  %v2036_v28 = vor.u32 1.1754944e-38, %v2035_v3  ;;  %2563 = vmatpush.msra.mxu3 %v9308_v41 }
 0x5be   :  { %v2028_v31 = vadd.f32 %v9567_v61, %v2027_v56  ;;  %v2040_v13 = vmul.f32 %v6965_v1, %v9537_v43  ;;  %v9656_v51 = vpop.eup %6966  ;;  %v2013_v56 = vadd.f32 %v9551_v5, %v2012_v8  ;;  %2520 = vmatpush.msra.mxu1 %v9231_v15  ;;  %vm2045_vm7 = vweird.f32 %v6965_v1  ;;  %2501 = vmatpush.msrb.mxu0 %v9248_v16  ;;  %v13953_v8 = vld [vmem:[#allocation26_spill] sm:$0xff] }
 0x5bf   :  { %v2055_v6 = vmul.f32 %v9656_v51, %v9553_v55  ;;  %2541 = vmatpush.msra.mxu2 %v9243_v17  ;;  %vm2046_vm11 = vmor %vm2044_vm10, %vm2045_vm7  ;;  %vm2049_vm13 = vcmp.eq.f32.partialorder %v2048_v4, 8.507059e+37  ;;  %2564 = vmatpush.msra.mxu3 %v9343_v40  ;;  %vm2060_vm14 = vweird.f32 %v9656_v51  ;;  %v13955_v4 = vld [vmem:[#allocation28_spill] sm:$0xff] }
 0x5c0   :  { %v2041_v60 = vsub.f32 1.0, %v2040_v13  ;;  %v2050_v13 = vand.u32 2147483648, %v9537_v43  ;;  %v2032_v15 = vsel %vm9674_vm6, %v9567_v61, %v2028_v31  ;;  %2521 = vmatpush.msra.mxu1 %v9255_v58  ;;  %2502 = vmatpush.msrb.mxu0 %v9272_v19  ;;  %v2021_v31 = vor.u32 1.1754944e-38, %v2020_v34  ;;  %vm2061_vm2 = vmor %vm2059_vm15, %vm2060_vm14 }
 0x5c1   :  { %v2056_v54 = vsub.f32 1.0, %v2055_v6  ;;  %v2037_v6 = vsel %vm2034_vm9, %v2036_v28, %v2032_v15  ;;  %2542 = vmatpush.msra.mxu2 %v9267_v14  ;;  %2565 = vmatpush.msra.mxu3 %v9367_v47  ;;  %v2063_v34 = vand.u32 2147483647, %v9553_v55 }
 0x5c2   :  { %v2042_v7 = vmul.f32 %v6965_v1, %v2041_v60  ;;  %v2017_v60 = vsel %vm9689_vm8, %v9551_v5, %v2013_v56  ;;  %2522 = vmatpush.msra.mxu1 %v9279_v12  ;;  %v2051_v3 = vor.u32 1.1754944e-38, %v2050_v13  ;;  %2503 = vmatpush.msrb.mxu0 %v9296_v36  ;;  %v2069_v28 = vmul.f32 %v2037_v6, %v9158_v42  ;;  %v13954_v13 = vld [vmem:[#allocation12_spill] sm:$0xff]  ;;  %v13960_v6 = vld [vmem:[#allocation30_spill] sm:$0xff] }
 0x5c3   :  { %v2057_v35 = vmul.f32 %v9656_v51, %v2056_v54  ;;  %2543 = vmatpush.msra.mxu2 %v9291_v33  ;;  %v2065_v42 = vand.u32 2147483648, %v9553_v55  ;;  %2566 = vmatpush.msra.mxu3 %v9391_v24  ;;  %vm2064_vm3 = vcmp.eq.f32.partialorder %v2063_v34, 8.507059e+37  ;;  %v13969_v34 = vld [vmem:[#allocation65_spill] sm:$0xff] }
 0x5c4   :  { %v2043_v61 = vadd.f32 %v6965_v1, %v2042_v7  ;;  %2523 = vmatpush.msra.mxu1 %v9303_v39  ;;  %v2022_v7 = vsel %vm2019_vm12, %v2021_v31, %v2017_v60  ;;  %2504 = vmatpush.msrb.mxu0 %v9331_v25  ;;  %v13956_v60 = vld [vmem:[#allocation27_spill] sm:$0xff]  ;;  %v13958_v31 = vld [vmem:[#allocation13_spill] sm:$0xff] }
 0x5c5   :  { %2544 = vmatpush.msra.mxu2 %v9326_v22  ;;  %v2058_v54 = vadd.f32 %v9656_v51, %v2057_v35  ;;  %2567 = vmatpush.msra.mxu3 %v9419_v50  ;;  %v2066_v56 = vor.u32 1.1754944e-38, %v2065_v42  ;;  %v13964_v35 = vld [vmem:[#allocation34_spill] sm:$0xff] }
 0x5c6   :  { %v2047_v62 = vsel %vm2046_vm11, %v6965_v1, %v2043_v61  ;;  %2524 = vmatpush.msra.mxu1 %v9338_v37  ;;  %2505 = vmatpush.msrb.mxu0 %v9355_v32  ;;  %v13957_v61 = vld [vmem:[#allocation29_spill] sm:$0xff]  ;;  %v13968_v42 = vld [vmem:[#allocation62_spill] sm:$0xff] }
 0x5c7   :  { %v2052_v43 = vsel %vm2049_vm13, %v2051_v3, %v2047_v62  ;;  %2545 = vmatpush.msra.mxu2 %v9350_v11  ;;  %v2062_v5 = vsel %vm2061_vm2, %v9656_v51, %v2058_v54  ;;  %2568 = vmatpush.msra.mxu3 %v9450_v2  ;;  %v13959_v3 = vld [vmem:[#allocation31_spill] sm:$0xff]  ;;  %v13961_v62 = vld [vmem:[#allocation32_spill] sm:$0xff] }
 0x5c8   :  { %v2070_v15 = vmul.f32 %v2052_v43, %v2022_v7  ;;  %2525 = vmatpush.msra.mxu1 %v9362_v53  ;;  %2506 = vmatpush.msrb.mxu0 %v9379_v21  ;;  %v2067_v9 = vsel %vm2064_vm3, %v2066_v56, %v2062_v5  ;;  %v13962_v7 = vld [vmem:[#allocation14_spill] sm:$0xff]  ;;  %v13963_v43 = vld [vmem:[#allocation33_spill] sm:$0xff]  ;;  %v13967_v54 = vld [vmem:[#allocation36_spill] sm:$0xff] }
 0x5c9   :  { %2546 = vmatpush.msra.mxu2 %v9374_v44  ;;  %2569 = vmatpush.msra.mxu3 %v9476_v30  ;;  %v13970_v5 = vld [vmem:[#allocation38_spill] sm:$0xff]  ;;  %v13971_v56 = vld [vmem:[#allocation67_spill] sm:$0xff] }
 0x5ca   :  { %v9714_v1 = vadd.f32 %v2070_v15, %v2069_v28  ;;  %2526 = vmatpush.msra.mxu1 %v9386_v49  ;;  %2507 = vmatpush.msrb.mxu0 %v9403_v10  ;;  %v13965_v28 = vld [vmem:[#allocation35_spill] sm:$0xff] }
 0x5cb   :  { %2547 = vmatpush.msra.mxu2 %v9398_v38  ;;  %2570 = vmatpush.msra.mxu3 %v9503_v18  ;;  %v13966_v15 = vld [vmem:[#allocation55_spill] sm:$0xff] }
 0x5cc   :  { %13952 = vst [vmem:[#allocation43_spill] sm:$0xff] %v9714_v1  ;;  %6968 = vtanh.f32 %v9714_v1  ;;  %2527 = vmatpush.msra.mxu1 %v9414_v48  ;;  %2508 = vmatpush.msrb.mxu0 %v9438_v59  ;;  %v13975_v1 = vld [vmem:[#allocation18_spill] sm:$0xff] }
 0x5cd   :  { %2548 = vmatpush.msra.mxu2 %v9433_v57  ;;  %2571 = vmatpush.msra.mxu3 %v13956_v60 }
 0x5ce   :  { %2528 = vmatpush.msra.mxu1 %v9445_v63  ;;  %2509 = vmatpush.msrb.mxu0 %v9462_v20 }
 0x5cf   :  { %2549 = vmatpush.msra.mxu2 %v9457_v29  ;;  %2572 = vmatpush.msra.mxu3 %v13960_v6 }
 0x5d0   :  { %2529 = vmatpush.msra.mxu1 %v9471_v27  ;;  %2510 = vmatpush.msrb.mxu0 %v9490_v45 }
 0x5d1   :  { %2550 = vmatpush.msra.mxu2 %v9485_v26  ;;  %2573 = vmatpush.msra.mxu3 %v13964_v35 }
 0x5d2   :  { %v6969_v55 = vpop.eup %6968  ;;  %2530 = vmatpush.msra.mxu1 %v9498_v46  ;;  %2511 = vmatpush.msrb.mxu0 %v13953_v8 }
 0x5d3   :  { %v2073_v51 = vmul.f32 %v6969_v55, %v2067_v9  ;;  %2551 = vmatpush.msra.mxu2 %v13955_v4  ;;  %2574 = vmatpush.msra.mxu3 %v13968_v42  ;;  %v13972_v55 = vld [vmem:[#allocation53_spill] sm:$0xff]  ;;  %v13973_v9 = vld [vmem:[#allocation40_spill] sm:$0xff] }
 0x5d4   :  { %2531 = vmatpush.msra.mxu1 %v13954_v13  ;;  %2512 = vmatpush.msrb.mxu0 %v13957_v61 }
 0x5d5   :  { %2346 = vmatmul.f32.vlgmr.msra.gmra.mxu0 %v2073_v51  ;;  %2366 = vmatmul.f32.vlgmr.msrb.gmra.mxu1 %v2073_v51 }
 0x5d6   :  { %2386 = vmatmul.f32.vlgmr.msrb.gmra.mxu2 %v2073_v51  ;;  %2406 = vmatmul.f32.vlgmr.msrb.gmra.mxu3 %v2073_v51  ;;  %v13974_v51 = vld [vmem:[#allocation52_spill] sm:$0xff] }
 0x5d7   :  { %2532 = vmatpush.msra.mxu1 %v13958_v31  ;;  %2552 = vmatpush.msra.mxu2 %v13959_v3 }
 0x5d8   :  { %2513 = vmatpush.msrb.mxu0 %v13961_v62  ;;  %2575 = vmatpush.msra.mxu3 %v13971_v56 }
 0x5d9   :  { %2533 = vmatpush.msra.mxu1 %v13962_v7  ;;  %2553 = vmatpush.msra.mxu2 %v13963_v43 }
 0x5da   :  { %2514 = vmatpush.msrb.mxu0 %v13965_v28  ;;  %2730 = vmatpush.msrb.mxu3 %v13975_v1 }
 0x5db   :  { %2534 = vmatpush.msra.mxu1 %v13966_v15  ;;  %2554 = vmatpush.msra.mxu2 %v13967_v54 }
 0x5dc   :  { %2515 = vmatpush.msrb.mxu0 %v9633_v0  ;;  %2731 = vmatpush.msrb.mxu3 %v9260_v52 }
 0x5dd   :  { %2535 = vmatpush.msra.mxu1 %v13969_v34  ;;  %2555 = vmatpush.msra.mxu2 %v13970_v5 }
 0x5de   :  { %2670 = vmatpush.msra.mxu0 %v13972_v55  ;;  %2732 = vmatpush.msrb.mxu3 %v9284_v23 }
 0x5df   :  { %2690 = vmatpush.msrb.mxu1 %v13973_v9  ;;  %2710 = vmatpush.msrb.mxu2 %v13974_v51 }
 0x5e0   :  { %2671 = vmatpush.msra.mxu0 %v9248_v16  ;;  %2733 = vmatpush.msrb.mxu3 %v9308_v41 }
 0x5e1   :  { %2691 = vmatpush.msrb.mxu1 %v9255_v58  ;;  %2711 = vmatpush.msrb.mxu2 %v9243_v17 }
 0x5e2   :  { %2672 = vmatpush.msra.mxu0 %v9272_v19  ;;  %2734 = vmatpush.msrb.mxu3 %v9343_v40 }
 0x5e3   :  { %2692 = vmatpush.msrb.mxu1 %v9279_v12  ;;  %2712 = vmatpush.msrb.mxu2 %v9267_v14 }
 0x5e4   :  { %2673 = vmatpush.msra.mxu0 %v9296_v36  ;;  %2735 = vmatpush.msrb.mxu3 %v9367_v47 }
 0x5e5   :  { %2693 = vmatpush.msrb.mxu1 %v9303_v39  ;;  %2713 = vmatpush.msrb.mxu2 %v9291_v33 }
 0x5e6   :  { %2674 = vmatpush.msra.mxu0 %v9331_v25  ;;  %2736 = vmatpush.msrb.mxu3 %v9391_v24 }
 0x5e7   :  { %2694 = vmatpush.msrb.mxu1 %v9338_v37  ;;  %2714 = vmatpush.msrb.mxu2 %v9326_v22 }
 0x5e8   :  { %2675 = vmatpush.msra.mxu0 %v9355_v32  ;;  %2737 = vmatpush.msrb.mxu3 %v9419_v50 }
 0x5e9   :  { %2695 = vmatpush.msrb.mxu1 %v9362_v53  ;;  %2715 = vmatpush.msrb.mxu2 %v9350_v11 }
 0x5ea   :  { %2676 = vmatpush.msra.mxu0 %v9379_v21  ;;  %2738 = vmatpush.msrb.mxu3 %v9450_v2 }
 0x5eb   :  { %2696 = vmatpush.msrb.mxu1 %v9386_v49  ;;  %2716 = vmatpush.msrb.mxu2 %v9374_v44 }
 0x5ec   :  { %2677 = vmatpush.msra.mxu0 %v9403_v10  ;;  %2739 = vmatpush.msrb.mxu3 %v9476_v30 }
 0x5ed   :  { %2697 = vmatpush.msrb.mxu1 %v9414_v48  ;;  %2717 = vmatpush.msrb.mxu2 %v9398_v38 }
 0x5ee   :  { %2678 = vmatpush.msra.mxu0 %v9438_v59  ;;  %2740 = vmatpush.msrb.mxu3 %v9503_v18 }
 0x5ef   :  { %2698 = vmatpush.msrb.mxu1 %v9445_v63  ;;  %2718 = vmatpush.msrb.mxu2 %v9433_v57 }
 0x5f0   :  { %2679 = vmatpush.msra.mxu0 %v9462_v20  ;;  %2741 = vmatpush.msrb.mxu3 %v13956_v60 }
 0x5f1   :  { %2699 = vmatpush.msrb.mxu1 %v9471_v27  ;;  %2719 = vmatpush.msrb.mxu2 %v9457_v29 }
 0x5f2   :  { %2680 = vmatpush.msra.mxu0 %v9490_v45  ;;  %2742 = vmatpush.msrb.mxu3 %v13960_v6 }
 0x5f3   :  { %2700 = vmatpush.msrb.mxu1 %v9498_v46  ;;  %2720 = vmatpush.msrb.mxu2 %v9485_v26 }
 0x5f4   :  { %2681 = vmatpush.msra.mxu0 %v13953_v8  ;;  %2743 = vmatpush.msrb.mxu3 %v13964_v35  ;;  %v9835_v35 = vpop.f32.mrf.mxu2 }
 0x5f5   :  { %2701 = vmatpush.msrb.mxu1 %v13954_v13  ;;  %2721 = vmatpush.msrb.mxu2 %v13955_v4  ;;  %13978 = vst [vmem:[#allocation39_spill] sm:$0xff] %v9835_v35  ;;  %v13999_v4 = vld [vmem:[#allocation42_spill] sm:$0xff] }
 0x5f6   :  { %2682 = vmatpush.msra.mxu0 %v13957_v61  ;;  %2744 = vmatpush.msrb.mxu3 %v13968_v42 }
 0x5f7   :  { %2702 = vmatpush.msrb.mxu1 %v13958_v31  ;;  %2722 = vmatpush.msrb.mxu2 %v13959_v3 }
 0x5f8   :  { %2683 = vmatpush.msra.mxu0 %v13961_v62  ;;  %2745 = vmatpush.msrb.mxu3 %v13971_v56 }
 0x5f9   :  { %2703 = vmatpush.msrb.mxu1 %v13962_v7  ;;  %2723 = vmatpush.msrb.mxu2 %v13963_v43  ;;  %v9831_v7 = vpop.f32.mrf.mxu0  ;;  %v9833_v43 = vpop.f32.mrf.mxu1 }
 0x5fa   :  { %2684 = vmatpush.msra.mxu0 %v13965_v28  ;;  %13976 = vst [vmem:[#allocation68_spill] sm:$0xff] %v9831_v7  ;;  %v9837_v28 = vpop.f32.mrf.mxu3 }
 0x5fb   :  { %2704 = vmatpush.msrb.mxu1 %v13966_v15  ;;  %2724 = vmatpush.msrb.mxu2 %v13967_v54  ;;  %13977 = vst [vmem:[#allocation54_spill] sm:$0xff] %v9833_v43 }
 0x5fc   :  { %2685 = vmatpush.msra.mxu0 %v9633_v0  ;;  %13979 = vst [vmem:[#allocation56_spill] sm:$0xff] %v9837_v28  ;;  %v9843_v42 = vpop.f32.mrf.mxu2 }
 0x5fd   :  { %2705 = vmatpush.msrb.mxu1 %v13969_v34  ;;  %2725 = vmatpush.msrb.mxu2 %v13970_v5  ;;  %13982 = vst [vmem:[#allocation47_spill] sm:$0xff] %v9843_v42 }
 0x601   :  { %v9839_v15 = vpop.f32.mrf.mxu0  ;;  %v9841_v54 = vpop.f32.mrf.mxu1 }
 0x602   :  { %13980 = vst [vmem:[#allocation50_spill] sm:$0xff] %v9839_v15  ;;  %v9845_v0 = vpop.f32.mrf.mxu3 }
 0x603   :  { %13981 = vst [vmem:[#allocation57_spill] sm:$0xff] %v9841_v54  ;;  %v1164_v54 = vld [vmem:[%s13125_s2] sm:$0xf] }
 0x604   :  { %13983 = vst [vmem:[#allocation58_spill] sm:$0xff] %v9845_v0  ;;  %v9851_v56 = vpop.f32.mrf.mxu2  ;;  %v9862_v15 = vperm.slane %v1164_v54, 0  ;;  %v9864_v42 = vperm.slane %v1164_v54, 1  ;;  %v9874_v3 = vperm.slane %v1164_v54, 2  ;;  %v9876_v31 = vperm.slane %v1164_v54, 3 }
 0x605   :  { %13986 = vst [vmem:[#allocation51_spill] sm:$0xff] %v9851_v56  ;;  %v13994_v56 = vld [vmem:[#allocation66_spill] sm:$0xff] }
 0x606   :  { %13990 = vst [vmem:[#allocation53_spill] sm:$0xff] %v9862_v15 }
 0x607   :  { %13991 = vst [vmem:[#allocation40_spill] sm:$0xff] %v9864_v42 }
 0x608   :  { %13996 = vst [vmem:[#allocation66_spill] sm:$0xff] %v9874_v3 }
 0x609   :  { %v9847_v34 = vpop.f32.mrf.mxu0  ;;  %v9849_v5 = vpop.f32.mrf.mxu1 }
 0x60a   :  { %13984 = vst [vmem:[#allocation59_spill] sm:$0xff] %v9847_v34  ;;  %v9853_v7 = vpop.f32.mrf.mxu3 }
 0x60b   :  { %13985 = vst [vmem:[#allocation60_spill] sm:$0xff] %v9849_v5  ;;  %v1216_v5 = vadd.f32 %v13994_v56, %v9862_v15  ;;  %v1303_v56 = vadd.f32 %v13999_v4, %v9876_v31 }
 0x60c   :  { %13987 = vst [vmem:[#allocation61_spill] sm:$0xff] %v9853_v7  ;;  %v9866_v0 = vpop.f32.mrf.mxu2  ;;  %v13995_v7 = vld [vmem:[#allocation41_spill] sm:$0xff] }
 0x60d   :  { %13992 = vst [vmem:[#allocation52_spill] sm:$0xff] %v9866_v0  ;;  %v13998_v0 = vld [vmem:[#allocation7_spill] sm:$0xff] }
 0x60e   :  { %13997 = vst [vmem:[#allocation41_spill] sm:$0xff] %v9876_v31 }
 0x611   :  { %v9855_v43 = vpop.f32.mrf.mxu0  ;;  %v9857_v35 = vpop.f32.mrf.mxu1 }
 0x612   :  { %13988 = vst [vmem:[#allocation63_spill] sm:$0xff] %v9855_v43  ;;  %v9868_v34 = vpop.f32.mrf.mxu3  ;;  %v1245_v43 = vadd.f32 %v13995_v7, %v9864_v42 }
 0x613   :  { %13989 = vst [vmem:[#allocation64_spill] sm:$0xff] %v9857_v35 }
 0x614   :  { %13993 = vst [vmem:[#allocation18_spill] sm:$0xff] %v9868_v34  ;;  %v1274_v34 = vadd.f32 %v13998_v0, %v9874_v3 }
 0x652   :  { %v2347_v28 = vpop.f32.mrf.mxu0  ;;  %v2367_v35 = vpop.f32.mrf.mxu1 }
 0x653   :  { %v2410_v62 = vadd.f32 %v2347_v28, %v1216_v5  ;;  %v2411_v6 = vadd.f32 %v2367_v35, %v1245_v43 }
 0x655   :  { %v6659_v61 = vmul.f32 -1.442695, %v2410_v62  ;;  %v6660_v60 = vmul.f32 -1.442695, %v2411_v6 }
 0x657   :  { %6970 = vpow2.f32 %v6659_v61 }
 0x658   :  { %6972 = vpow2.f32 %v6660_v60 }
 0x659   :  { %v2387_v15 = vpop.f32.mrf.mxu2  ;;  %v2407_v7 = vpop.f32.mrf.mxu3 }
 0x65a   :  { %v2412_v42 = vadd.f32 %v2387_v15, %v1274_v34  ;;  %v2413_v13 = vadd.f32 %v2407_v7, %v1303_v56 }
 0x65c   :  { %v6661_v28 = vmul.f32 -1.442695, %v2412_v42  ;;  %v6662_v43 = vmul.f32 -1.442695, %v2413_v13 }
 0x65d   :  { %v6971_v35 = vpop.eup %6970 }
 0x65e   :  { %v6973_v5 = vpop.eup %6972  ;;  %v2426_v54 = vadd.f32 1.0, %v6971_v35  ;;  %6974 = vpow2.f32 %v6661_v28 }
 0x65f   :  { %v2427_v62 = vadd.f32 1.0, %v6973_v5  ;;  %6976 = vpow2.f32 %v6662_v43 }
 0x660   :  { %6978 = vrcp.f32 %v2426_v54  ;;  %vm2435_vm7 = vweird.f32 %v2426_v54  ;;  %v2439_v26 = vand.u32 2147483647, %v2426_v54  ;;  %v2441_v46 = vand.u32 2147483648, %v2426_v54 }
 0x661   :  { %6980 = vrcp.f32 %v2427_v62  ;;  %vm2450_vm5 = vweird.f32 %v2427_v62  ;;  %v2454_v5 = vand.u32 2147483647, %v2427_v62  ;;  %v2456_v8 = vand.u32 2147483648, %v2427_v62 }
 0x662   :  { %v2442_v30 = vor.u32 1.1754944e-38, %v2441_v46  ;;  %vm2440_vm14 = vcmp.eq.f32.partialorder %v2439_v26, 8.507059e+37 }
 0x663   :  { %vm2455_vm11 = vcmp.eq.f32.partialorder %v2454_v5, 8.507059e+37 }
 0x664   :  { %v6975_v61 = vpop.eup %6974 }
 0x665   :  { %v6977_v0 = vpop.eup %6976  ;;  %v2428_v6 = vadd.f32 1.0, %v6975_v61 }
 0x666   :  { %v6979_v3 = vpop.eup %6978  ;;  %v2429_v4 = vadd.f32 1.0, %v6977_v0 }
 0x667   :  { %v6981_v60 = vpop.eup %6980  ;;  %v2431_v31 = vmul.f32 %v6979_v3, %v2426_v54  ;;  %6982 = vrcp.f32 %v2428_v6  ;;  %vm2436_vm6 = vweird.f32 %v6979_v3  ;;  %vm2465_vm12 = vweird.f32 %v2428_v6 }
 0x668   :  { %v2446_v15 = vmul.f32 %v6981_v60, %v2427_v62  ;;  %6984 = vrcp.f32 %v2429_v4  ;;  %vm2451_vm4 = vweird.f32 %v6981_v60  ;;  %vm2437_vm10 = vmor %vm2435_vm7, %vm2436_vm6  ;;  %v2457_v62 = vor.u32 1.1754944e-38, %v2456_v8 }
 0x669   :  { %v2432_v34 = vsub.f32 1.0, %v2431_v31  ;;  %vm9882_vm8 = vmor %vm2450_vm5, %vm2451_vm4  ;;  %v2486_v8 = vand.u32 2147483648, %v2429_v4  ;;  %vm2480_vm3 = vweird.f32 %v2429_v4  ;;  %v2484_v46 = vand.u32 2147483647, %v2429_v4 }
 0x66a   :  { %v2447_v13 = vsub.f32 1.0, %v2446_v15  ;;  %v2471_v15 = vand.u32 2147483648, %v2428_v6 }
 0x66b   :  { %v2433_v42 = vmul.f32 %v6979_v3, %v2432_v34  ;;  %v2487_v26 = vor.u32 1.1754944e-38, %v2486_v8  ;;  %vm2485_vm5 = vcmp.eq.f32.partialorder %v2484_v46, 8.507059e+37 }
 0x66c   :  { %v2448_v56 = vmul.f32 %v6981_v60, %v2447_v13  ;;  %v2472_v54 = vor.u32 1.1754944e-38, %v2471_v15  ;;  %v14038_v15 = vld [vmem:[#allocation37_spill] sm:$0xff] }
 0x66d   :  { %v6983_v7 = vpop.eup %6982  ;;  %v2434_v61 = vadd.f32 %v6979_v3, %v2433_v42 }
 0x66e   :  { %v2449_v28 = vadd.f32 %v6981_v60, %v2448_v56  ;;  %v2461_v43 = vmul.f32 %v6983_v7, %v2428_v6  ;;  %v6985_v35 = vpop.eup %6984  ;;  %vm2466_vm9 = vweird.f32 %v6983_v7  ;;  %v2469_v56 = vand.u32 2147483647, %v2428_v6 }
 0x66f   :  { %v2476_v18 = vmul.f32 %v6985_v35, %v2429_v4  ;;  %v2438_v45 = vsel %vm2437_vm10, %v6979_v3, %v2434_v61  ;;  %vm2467_vm13 = vmor %vm2465_vm12, %vm2466_vm9  ;;  %vm2481_vm2 = vweird.f32 %v6985_v35  ;;  %v14037_v61 = vld [vmem:[#allocation66_spill] sm:$0xff] }
 0x670   :  { %v2462_v0 = vsub.f32 1.0, %v2461_v43  ;;  %v2453_v34 = vsel %vm9882_vm8, %v6981_v60, %v2449_v28  ;;  %vm2470_vm15 = vcmp.eq.f32.partialorder %v2469_v56, 8.507059e+37  ;;  %v2443_v20 = vsel %vm2440_vm14, %v2442_v30, %v2438_v45  ;;  %v14002_v28 = vld [vmem:[#allocation43_spill] sm:$0xff]  ;;  %vm2482_vm4 = vmor %vm2480_vm3, %vm2481_vm2  ;;  %v14035_v45 = vld [vmem:[#allocation40_spill] sm:$0xff] }
 0x671   :  { %v2477_v42 = vsub.f32 1.0, %v2476_v18  ;;  %v2458_v29 = vsel %vm2455_vm11, %v2457_v62, %v2453_v34  ;;  %v1277_v34 = vadd.f32 %v14038_v15, %v14037_v61  ;;  %v14040_v56 = vld [vmem:[#allocation46_spill] sm:$0xff] }
 0x672   :  { %v2463_v13 = vmul.f32 %v6983_v7, %v2462_v0  ;;  %v2490_v0 = vmul.f32 %v2458_v29, %v14002_v28  ;;  %v14034_v29 = vld [vmem:[#allocation44_spill] sm:$0xff] }
 0x673   :  { %v2478_v60 = vmul.f32 %v6985_v35, %v2477_v42 }
 0x674   :  { %v2464_v43 = vadd.f32 %v6983_v7, %v2463_v13  ;;  %v14039_v13 = vld [vmem:[#allocation41_spill] sm:$0xff] }
 0x675   :  { %v2479_v18 = vadd.f32 %v6985_v35, %v2478_v60  ;;  %v1306_v62 = vadd.f32 %v14040_v56, %v14039_v13 }
 0x676   :  { %v2468_v27 = vsel %vm2467_vm13, %v6983_v7, %v2464_v43 }
 0x677   :  { %v2473_v31 = vsel %vm2470_vm15, %v2472_v54, %v2468_v27  ;;  %v2483_v3 = vsel %vm2482_vm4, %v6985_v35, %v2479_v18 }
 0x678   :  { %v2491_v2 = vmul.f32 %v2473_v31, %v2443_v20  ;;  %v2488_v30 = vsel %vm2485_vm5, %v2487_v26, %v2483_v3 }
 0x67a   :  { %v9889_v57 = vadd.f32 %v2491_v2, %v2490_v0  ;;  %v14033_v2 = vld [vmem:[#allocation53_spill] sm:$0xff] }
 0x67b   :  { %v1219_v20 = vadd.f32 %v14034_v29, %v14033_v2 }
 0x67c   :  { %6986 = vtanh.f32 %v9889_v57 }
 0x682   :  { %v6987_v6 = vpop.eup %6986 }
 0x683   :  { %v2494_v27 = vmul.f32 %v6987_v6, %v2488_v30 }
 0x685   :  { %2516 = vmatmul.f32.vlgmr.msrb.gmra.mxu0 %v2494_v27  ;;  %2536 = vmatmul.f32.vlgmr.msra.gmra.mxu1 %v2494_v27 }
 0x686   :  { %2556 = vmatmul.f32.vlgmr.msra.gmra.mxu2 %v2494_v27  ;;  %2576 = vmatmul.f32.vlgmr.msra.gmra.mxu3 %v2494_v27 }
 0x687   :  { %2840 = vmatpush.msrb.mxu0 %v13972_v55  ;;  %2860 = vmatpush.msra.mxu1 %v13973_v9 }
 0x688   :  { %2880 = vmatpush.msra.mxu2 %v13974_v51  ;;  %2900 = vmatpush.msra.mxu3 %v13975_v1  ;;  %v14036_v1 = vld [vmem:[#allocation45_spill] sm:$0xff] }
 0x689   :  { %2841 = vmatpush.msrb.mxu0 %v9248_v16  ;;  %2861 = vmatpush.msra.mxu1 %v9255_v58  ;;  %v14004_v16 = vld [vmem:[#allocation19_spill] sm:$0xff]  ;;  %v14005_v58 = vld [vmem:[#allocation20_spill] sm:$0xff]  ;;  %v1248_v55 = vadd.f32 %v14036_v1, %v14035_v45 }
 0x68a   :  { %2881 = vmatpush.msra.mxu2 %v9243_v17  ;;  %2901 = vmatpush.msra.mxu3 %v9260_v52  ;;  %v14003_v17 = vld [vmem:[#allocation9_spill] sm:$0xff]  ;;  %v14006_v52 = vld [vmem:[#allocation10_spill] sm:$0xff] }
 0x68b   :  { %2842 = vmatpush.msrb.mxu0 %v9272_v19  ;;  %2862 = vmatpush.msra.mxu1 %v9279_v12  ;;  %v14008_v19 = vld [vmem:[#allocation21_spill] sm:$0xff]  ;;  %v14009_v12 = vld [vmem:[#allocation23_spill] sm:$0xff] }
 0x68c   :  { %2882 = vmatpush.msra.mxu2 %v9267_v14  ;;  %2902 = vmatpush.msra.mxu3 %v9284_v23  ;;  %v14007_v14 = vld [vmem:[#allocation22_spill] sm:$0xff]  ;;  %v14010_v23 = vld [vmem:[#allocation11_spill] sm:$0xff] }
 0x68d   :  { %2843 = vmatpush.msrb.mxu0 %v9296_v36  ;;  %2863 = vmatpush.msra.mxu1 %v9303_v39  ;;  %v14012_v36 = vld [vmem:[#allocation24_spill] sm:$0xff]  ;;  %v14013_v39 = vld [vmem:[#allocation26_spill] sm:$0xff] }
 0x68e   :  { %2883 = vmatpush.msra.mxu2 %v9291_v33  ;;  %2903 = vmatpush.msra.mxu3 %v9308_v41  ;;  %v14011_v33 = vld [vmem:[#allocation25_spill] sm:$0xff]  ;;  %v14014_v41 = vld [vmem:[#allocation12_spill] sm:$0xff] }
 0x68f   :  { %2844 = vmatpush.msrb.mxu0 %v9331_v25  ;;  %2864 = vmatpush.msra.mxu1 %v9338_v37  ;;  %v14016_v25 = vld [vmem:[#allocation27_spill] sm:$0xff]  ;;  %v14017_v37 = vld [vmem:[#allocation29_spill] sm:$0xff] }
 0x690   :  { %2884 = vmatpush.msra.mxu2 %v9326_v22  ;;  %2904 = vmatpush.msra.mxu3 %v9343_v40  ;;  %v14015_v22 = vld [vmem:[#allocation28_spill] sm:$0xff]  ;;  %v14018_v40 = vld [vmem:[#allocation13_spill] sm:$0xff] }
 0x691   :  { %2845 = vmatpush.msrb.mxu0 %v9355_v32  ;;  %2865 = vmatpush.msra.mxu1 %v9362_v53  ;;  %v14020_v32 = vld [vmem:[#allocation30_spill] sm:$0xff]  ;;  %v14021_v53 = vld [vmem:[#allocation32_spill] sm:$0xff] }
 0x692   :  { %2885 = vmatpush.msra.mxu2 %v9350_v11  ;;  %2905 = vmatpush.msra.mxu3 %v9367_v47  ;;  %v14019_v11 = vld [vmem:[#allocation31_spill] sm:$0xff]  ;;  %v14022_v47 = vld [vmem:[#allocation14_spill] sm:$0xff] }
 0x693   :  { %2846 = vmatpush.msrb.mxu0 %v9379_v21  ;;  %2866 = vmatpush.msra.mxu1 %v9386_v49  ;;  %v14024_v21 = vld [vmem:[#allocation34_spill] sm:$0xff]  ;;  %v14025_v49 = vld [vmem:[#allocation35_spill] sm:$0xff] }
 0x694   :  { %2886 = vmatpush.msra.mxu2 %v9374_v44  ;;  %2906 = vmatpush.msra.mxu3 %v9391_v24  ;;  %v14023_v44 = vld [vmem:[#allocation33_spill] sm:$0xff]  ;;  %v14026_v24 = vld [vmem:[#allocation55_spill] sm:$0xff] }
 0x695   :  { %2847 = vmatpush.msrb.mxu0 %v9403_v10  ;;  %2867 = vmatpush.msra.mxu1 %v9414_v48  ;;  %v14028_v10 = vld [vmem:[#allocation62_spill] sm:$0xff] }
 0x696   :  { %2887 = vmatpush.msra.mxu2 %v9398_v38  ;;  %2907 = vmatpush.msra.mxu3 %v9419_v50  ;;  %v14027_v38 = vld [vmem:[#allocation36_spill] sm:$0xff]  ;;  %v14029_v48 = vld [vmem:[#allocation6_spill] sm:$0xff]  ;;  %v14030_v50 = vld [vmem:[#allocation65_spill] sm:$0xff] }
 0x697   :  { %2848 = vmatpush.msrb.mxu0 %v9438_v59  ;;  %2868 = vmatpush.msra.mxu1 %v9445_v63  ;;  %v14031_v59 = vld [vmem:[#allocation38_spill] sm:$0xff]  ;;  %v14032_v63 = vld [vmem:[#allocation67_spill] sm:$0xff] }
 0x698   :  { %2888 = vmatpush.msra.mxu2 %v14003_v17  ;;  %2908 = vmatpush.msra.mxu3 %v14004_v16 }
 0x699   :  { %2849 = vmatpush.msrb.mxu0 %v14005_v58  ;;  %2869 = vmatpush.msra.mxu1 %v14006_v52 }
 0x69a   :  { %2889 = vmatpush.msra.mxu2 %v14007_v14  ;;  %2909 = vmatpush.msra.mxu3 %v14008_v19 }
 0x69b   :  { %2850 = vmatpush.msrb.mxu0 %v14009_v12  ;;  %2870 = vmatpush.msra.mxu1 %v14010_v23 }
 0x69c   :  { %2890 = vmatpush.msra.mxu2 %v14011_v33  ;;  %2910 = vmatpush.msra.mxu3 %v14012_v36 }
 0x69d   :  { %2851 = vmatpush.msrb.mxu0 %v14013_v39  ;;  %2871 = vmatpush.msra.mxu1 %v14014_v41 }
 0x69e   :  { %2891 = vmatpush.msra.mxu2 %v14015_v22  ;;  %2911 = vmatpush.msra.mxu3 %v14016_v25 }
 0x69f   :  { %2852 = vmatpush.msrb.mxu0 %v14017_v37  ;;  %2872 = vmatpush.msra.mxu1 %v14018_v40 }
 0x6a0   :  { %2892 = vmatpush.msra.mxu2 %v14019_v11  ;;  %2912 = vmatpush.msra.mxu3 %v14020_v32 }
 0x6a1   :  { %2853 = vmatpush.msrb.mxu0 %v14021_v53  ;;  %2873 = vmatpush.msra.mxu1 %v14022_v47 }
 0x6a2   :  { %2893 = vmatpush.msra.mxu2 %v14023_v44  ;;  %2913 = vmatpush.msra.mxu3 %v14024_v21 }
 0x6a3   :  { %2854 = vmatpush.msrb.mxu0 %v14025_v49  ;;  %2874 = vmatpush.msra.mxu1 %v14026_v24 }
 0x6a4   :  { %2894 = vmatpush.msra.mxu2 %v14027_v38  ;;  %2914 = vmatpush.msra.mxu3 %v14028_v10 }
 0x6a5   :  { %2855 = vmatpush.msrb.mxu0 %v14029_v48  ;;  %2875 = vmatpush.msra.mxu1 %v14030_v50 }
 0x6a6   :  { %2895 = vmatpush.msra.mxu2 %v14031_v59  ;;  %2915 = vmatpush.msra.mxu3 %v14032_v63 }
 0x702   :  { %v2517_v9 = vpop.f32.mrf.mxu0  ;;  %v2537_v51 = vpop.f32.mrf.mxu1 }
 0x703   :  { %v2580_v4 = vadd.f32 %v2517_v9, %v1219_v20  ;;  %v2581_v7 = vadd.f32 %v2537_v51, %v1248_v55 }
 0x705   :  { %v6663_v35 = vmul.f32 -1.442695, %v2580_v4  ;;  %v6664_v5 = vmul.f32 -1.442695, %v2581_v7 }
 0x707   :  { %6988 = vpow2.f32 %v6663_v35 }
 0x708   :  { %6990 = vpow2.f32 %v6664_v5 }
 0x709   :  { %v2557_v42 = vpop.f32.mrf.mxu2  ;;  %v2577_v43 = vpop.f32.mrf.mxu3 }
 0x70a   :  { %v2582_v54 = vadd.f32 %v2557_v42, %v1277_v34  ;;  %v2583_v31 = vadd.f32 %v2577_v43, %v1306_v62 }
 0x70c   :  { %v6665_v60 = vmul.f32 -1.442695, %v2582_v54  ;;  %v6666_v28 = vmul.f32 -1.442695, %v2583_v31  ;;  %v14044_v54 = vld [vmem:[#allocation49_spill] sm:$0xff] }
 0x70d   :  { %v6989_v0 = vpop.eup %6988  ;;  %v1251_v31 = vadd.f32 %v14044_v54, %v14035_v45 }
 0x70e   :  { %v6991_v18 = vpop.eup %6990  ;;  %v2596_v8 = vadd.f32 1.0, %v6989_v0  ;;  %6992 = vpow2.f32 %v6665_v60 }
 0x70f   :  { %v2597_v46 = vadd.f32 1.0, %v6991_v18  ;;  %6994 = vpow2.f32 %v6666_v28 }
 0x710   :  { %6996 = vrcp.f32 %v2596_v8  ;;  %vm2605_vm9 = vweird.f32 %v2596_v8  ;;  %v2609_v11 = vand.u32 2147483647, %v2596_v8  ;;  %v2611_v32 = vand.u32 2147483648, %v2596_v8 }
 0x711   :  { %6998 = vrcp.f32 %v2597_v46  ;;  %vm2620_vm7 = vweird.f32 %v2597_v46  ;;  %v2624_v41 = vand.u32 2147483647, %v2597_v46  ;;  %v2626_v22 = vand.u32 2147483648, %v2597_v46 }
 0x712   :  { %v2612_v50 = vor.u32 1.1754944e-38, %v2611_v32  ;;  %vm2610_vm2 = vcmp.eq.f32.partialorder %v2609_v11, 8.507059e+37 }
 0x713   :  { %v2627_v24 = vor.u32 1.1754944e-38, %v2626_v22  ;;  %vm2625_vm13 = vcmp.eq.f32.partialorder %v2624_v41, 8.507059e+37 }
 0x714   :  { %v6993_v3 = vpop.eup %6992 }
 0x715   :  { %v6995_v26 = vpop.eup %6994  ;;  %v2598_v6 = vadd.f32 1.0, %v6993_v3  ;;  %v14045_v3 = vld [vmem:[#allocation8_spill] sm:$0xff] }
 0x716   :  { %v6997_v30 = vpop.eup %6996  ;;  %v2599_v27 = vadd.f32 1.0, %v6995_v26  ;;  %v1280_v26 = vadd.f32 %v14045_v3, %v14037_v61 }
 0x717   :  { %v6999_v17 = vpop.eup %6998  ;;  %v2601_v16 = vmul.f32 %v6997_v30, %v2596_v8  ;;  %7000 = vrcp.f32 %v2598_v6  ;;  %vm2606_vm8 = vweird.f32 %v6997_v30  ;;  %v2641_v47 = vand.u32 2147483648, %v2598_v6 }
 0x718   :  { %v2616_v58 = vmul.f32 %v6999_v17, %v2597_v46  ;;  %7002 = vrcp.f32 %v2599_v27  ;;  %vm2621_vm6 = vweird.f32 %v6999_v17  ;;  %v2639_v49 = vand.u32 2147483647, %v2598_v6  ;;  %vm2607_vm12 = vmor %vm2605_vm9, %vm2606_vm8 }
 0x719   :  { %v2602_v52 = vsub.f32 1.0, %v2601_v16  ;;  %vm9964_vm10 = vmor %vm2620_vm7, %vm2621_vm6  ;;  %vm2635_vm14 = vweird.f32 %v2598_v6  ;;  %v2642_v59 = vor.u32 1.1754944e-38, %v2641_v47  ;;  %v2656_v35 = vand.u32 2147483648, %v2599_v27 }
 0x71a   :  { %v2617_v14 = vsub.f32 1.0, %v2616_v58  ;;  %vm2640_vm3 = vcmp.eq.f32.partialorder %v2639_v49, 8.507059e+37  ;;  %vm2650_vm5 = vweird.f32 %v2599_v27  ;;  %v2654_v5 = vand.u32 2147483647, %v2599_v27 }
 0x71b   :  { %v2603_v19 = vmul.f32 %v6997_v30, %v2602_v52  ;;  %v2657_v34 = vor.u32 1.1754944e-38, %v2656_v35 }
 0x71c   :  { %v2618_v12 = vmul.f32 %v6999_v17, %v2617_v14  ;;  %vm2655_vm7 = vcmp.eq.f32.partialorder %v2654_v5, 8.507059e+37 }
 0x71d   :  { %v7001_v23 = vpop.eup %7000  ;;  %v2604_v25 = vadd.f32 %v6997_v30, %v2603_v19 }
 0x71e   :  { %v2619_v33 = vadd.f32 %v6999_v17, %v2618_v12  ;;  %v2631_v36 = vmul.f32 %v7001_v23, %v2598_v6  ;;  %v7003_v39 = vpop.eup %7002  ;;  %vm2636_vm11 = vweird.f32 %v7001_v23  ;;  %v14046_v6 = vld [vmem:[#allocation17_spill] sm:$0xff] }
 0x71f   :  { %v2646_v40 = vmul.f32 %v7003_v39, %v2599_v27  ;;  %v2608_v10 = vsel %vm2607_vm12, %v6997_v30, %v2604_v25  ;;  %vm2637_vm15 = vmor %vm2635_vm14, %vm2636_vm11  ;;  %vm2651_vm4 = vweird.f32 %v7003_v39  ;;  %v1309_v30 = vadd.f32 %v14046_v6, %v14039_v13 }
 0x720   :  { %v2632_v37 = vsub.f32 1.0, %v2631_v36  ;;  %v2623_v44 = vsel %vm9964_vm10, %v6999_v17, %v2619_v33  ;;  %v2613_v20 = vsel %vm2610_vm2, %v2612_v50, %v2608_v10  ;;  %vm2652_vm6 = vmor %vm2650_vm5, %vm2651_vm4 }
 0x721   :  { %v2647_v38 = vsub.f32 1.0, %v2646_v40  ;;  %v2628_v63 = vsel %vm2625_vm13, %v2627_v24, %v2623_v44 }
 0x722   :  { %v2633_v21 = vmul.f32 %v7001_v23, %v2632_v37  ;;  %v2660_v9 = vmul.f32 %v2628_v63, %v9889_v57  ;;  %v14043_v57 = vld [vmem:[#allocation48_spill] sm:$0xff] }
 0x723   :  { %v2648_v55 = vmul.f32 %v7003_v39, %v2647_v38  ;;  %v1222_v43 = vadd.f32 %v14043_v57, %v14033_v2 }
 0x724   :  { %v2634_v48 = vadd.f32 %v7001_v23, %v2633_v21 }
 0x725   :  { %v2649_v7 = vadd.f32 %v7003_v39, %v2648_v55 }
 0x726   :  { %v2638_v29 = vsel %vm2637_vm15, %v7001_v23, %v2634_v48 }
 0x727   :  { %v2643_v1 = vsel %vm2640_vm3, %v2642_v59, %v2638_v29  ;;  %v2653_v15 = vsel %vm2652_vm6, %v7003_v39, %v2649_v7 }
 0x728   :  { %v2661_v51 = vmul.f32 %v2643_v1, %v2613_v20  ;;  %v2658_v62 = vsel %vm2655_vm7, %v2657_v34, %v2653_v15 }
 0x72a   :  { %v9971_v4 = vadd.f32 %v2661_v51, %v2660_v9 }
 0x72c   :  { %7004 = vtanh.f32 %v9971_v4 }
 0x732   :  { %v7005_v56 = vpop.eup %7004 }
 0x733   :  { %v2664_v42 = vmul.f32 %v7005_v56, %v2658_v62 }
 0x735   :  { %2686 = vmatmul.f32.vlgmr.msra.gmra.mxu0 %v2664_v42  ;;  %2706 = vmatmul.f32.vlgmr.msrb.gmra.mxu1 %v2664_v42 }
 0x736   :  { %2726 = vmatmul.f32.vlgmr.msrb.gmra.mxu2 %v2664_v42  ;;  %2746 = vmatmul.f32.vlgmr.msrb.gmra.mxu3 %v2664_v42 }
 0x7b2   :  { %v2687_v60 = vpop.f32.mrf.mxu0  ;;  %v2707_v28 = vpop.f32.mrf.mxu1 }
 0x7b3   :  { %v2750_v0 = vadd.f32 %v2687_v60, %v1222_v43  ;;  %v2751_v18 = vadd.f32 %v2707_v28, %v1251_v31 }
 0x7b5   :  { %v6667_v8 = vmul.f32 -1.442695, %v2750_v0  ;;  %v6668_v46 = vmul.f32 -1.442695, %v2751_v18 }
 0x7b7   :  { %7006 = vpow2.f32 %v6667_v8 }
 0x7b8   :  { %7008 = vpow2.f32 %v6668_v46 }
 0x7b9   :  { %v2727_v27 = vpop.f32.mrf.mxu2  ;;  %v2747_v17 = vpop.f32.mrf.mxu3 }
 0x7ba   :  { %v2752_v16 = vadd.f32 %v2727_v27, %v1280_v26  ;;  %v2753_v58 = vadd.f32 %v2747_v17, %v1309_v30  ;;  %v3022_v27 = vld [vmem:[%s13124_s1 + $0x60] sm:$0xf]  ;;  %v3023_v17 = vld [vmem:[%s13124_s1 + $0x68] sm:$0xf] }
 0x7bb   :  { %6679 = vmatpush.msk.msra.mxu0 %vm67_vm0, %v3022_v27  ;;  %6684 = vmatpush.msk.msrb.mxu1 %vm67_vm0, %v3023_v17  ;;  %v10239_v27 = vld [vmem:[%s13126_s3 + $0x108] sm:$0xff]  ;;  %v10244_v17 = vld [vmem:[%s13126_s3 + $0x118] sm:$0xff] }
 0x7bc   :  { %v6669_v52 = vmul.f32 -1.442695, %v2752_v16  ;;  %v6670_v14 = vmul.f32 -1.442695, %v2753_v58  ;;  %v3025_v16 = vld [vmem:[%s13124_s1 + $0x78] sm:$0xf] }
 0x7bd   :  { %v7007_v19 = vpop.eup %7006  ;;  %6694 = vmatpush.msk.msrb.mxu3 %vm67_vm0, %v3025_v16  ;;  %v3020_v58 = vld [vmem:[%s13124_s1 + $0x50] sm:$0xff] }
 0x7be   :  { %v7009_v12 = vpop.eup %7008  ;;  %v2766_v23 = vadd.f32 1.0, %v7007_v19  ;;  %7010 = vpow2.f32 %v6669_v52  ;;  %v3018_v52 = vld [vmem:[%s13124_s1 + $0x40] sm:$0xff]  ;;  %v3021_v19 = vld [vmem:[%s13124_s1 + $0x58] sm:$0xff] }
 0x7bf   :  { %v2767_v33 = vadd.f32 1.0, %v7009_v12  ;;  %7012 = vpow2.f32 %v6670_v14  ;;  %v3019_v14 = vld [vmem:[%s13124_s1 + $0x48] sm:$0xff]  ;;  %3073 = vmatpush.msra.mxu0 %v3018_v52  ;;  %3160 = vmatpush.msrb.mxu3 %v3021_v19  ;;  %v3016_v12 = vld [vmem:[%s13124_s1 + $0x30] sm:$0xff]  ;;  %v10263_v19 = vld [vmem:[%s13126_s3 + $0xe0] sm:$0xff] }
 0x7c0   :  { %7014 = vrcp.f32 %v2766_v23  ;;  %vm2775_vm11 = vweird.f32 %v2766_v23  ;;  %v2779_v29 = vand.u32 2147483647, %v2766_v23  ;;  %v2781_v20 = vand.u32 2147483648, %v2766_v23  ;;  %3102 = vmatpush.msrb.mxu1 %v3019_v14  ;;  %v10258_v14 = vld [vmem:[%s13126_s3 + $0xf0] sm:$0xff] }
 0x7c1   :  { %7016 = vrcp.f32 %v2767_v33  ;;  %vm2790_vm9 = vweird.f32 %v2767_v33  ;;  %v2794_v10 = vand.u32 2147483647, %v2767_v33  ;;  %v2796_v48 = vand.u32 2147483648, %v2767_v33  ;;  %14055 = vst [vmem:[#allocation19_spill] sm:$0xff] %v10258_v14 }
 0x7c2   :  { %v2782_v34 = vor.u32 1.1754944e-38, %v2781_v20  ;;  %vm2780_vm4 = vcmp.eq.f32.partialorder %v2779_v29, 8.507059e+37  ;;  %v10133_v29 = vld [vmem:[%s13126_s3 + $0x198] sm:$0xff]  ;;  %v6676_v20 = vld [vmem:[%s13123_s0 + $0x88] sm:$0xff] }
 0x7c3   :  { %v2797_v7 = vor.u32 1.1754944e-38, %v2796_v48  ;;  %vm2795_vm15 = vcmp.eq.f32.partialorder %v2794_v10, 8.507059e+37  ;;  %v10104_v10 = vld [vmem:[%s13126_s3 + $0x1a8] sm:$0xff]  ;;  %v10109_v48 = vld [vmem:[%s13126_s3 + $0x1b8] sm:$0xff] }
 0x7c4   :  { %v7011_v36 = vpop.eup %7010 }
 0x7c5   :  { %v7013_v39 = vpop.eup %7012  ;;  %v2768_v41 = vadd.f32 1.0, %v7011_v36  ;;  %v3017_v36 = vld [vmem:[%s13124_s1 + $0x38] sm:$0xff] }
 0x7c6   :  { %v7015_v22 = vpop.eup %7014  ;;  %v2769_v25 = vadd.f32 1.0, %v7013_v39  ;;  %3161 = vmatpush.msrb.mxu3 %v3017_v36  ;;  %v3012_v39 = vld [vmem:[%s13124_s1 + $0x10] sm:$0xff]  ;;  %v10275_v36 = vld [vmem:[%s13126_s3 + $0xf8] sm:$0xff] }
 0x7c7   :  { %v7017_v37 = vpop.eup %7016  ;;  %v2771_v40 = vmul.f32 %v7015_v22, %v2766_v23  ;;  %7018 = vrcp.f32 %v2768_v41  ;;  %vm2776_vm10 = vweird.f32 %v7015_v22  ;;  %v2811_v1 = vand.u32 2147483648, %v2768_v41  ;;  %v3014_v23 = vld [vmem:[%s13124_s1 + $0x20] sm:$0xff]  ;;  %14056 = vst [vmem:[#allocation20_spill] sm:$0xff] %v10275_v36 }
 0x7c8   :  { %v2786_v11 = vmul.f32 %v7017_v37, %v2767_v33  ;;  %7020 = vrcp.f32 %v2769_v25  ;;  %vm2791_vm8 = vweird.f32 %v7017_v37  ;;  %v2809_v51 = vand.u32 2147483647, %v2768_v41  ;;  %vm2777_vm14 = vmor %vm2775_vm11, %vm2776_vm10  ;;  %v3015_v33 = vld [vmem:[%s13124_s1 + $0x28] sm:$0xff]  ;;  %3074 = vmatpush.msra.mxu0 %v3014_v23 }
 0x7c9   :  { %v2772_v32 = vsub.f32 1.0, %v2771_v40  ;;  %vm2792_vm12 = vmor %vm2790_vm9, %vm2791_vm8  ;;  %vm2805_vm2 = vweird.f32 %v2768_v41  ;;  %v2812_v62 = vor.u32 1.1754944e-38, %v2811_v1  ;;  %v2826_v18 = vand.u32 2147483648, %v2769_v25  ;;  %3103 = vmatpush.msrb.mxu1 %v3015_v33  ;;  %v10044_v40 = vld [vmem:[%s13126_s3 + $0x1f0] sm:$0xff]  ;;  %v10270_v33 = vld [vmem:[%s13126_s3 + $0xe8] sm:$0xff] }
 0x7ca   :  { %v2787_v53 = vsub.f32 1.0, %v2786_v11  ;;  %vm2810_vm5 = vcmp.eq.f32.partialorder %v2809_v51, 8.507059e+37  ;;  %vm2820_vm7 = vweird.f32 %v2769_v25  ;;  %v2824_v8 = vand.u32 2147483647, %v2769_v25  ;;  %14047 = vst [vmem:[#allocation7_spill] sm:$0xff] %v10044_v40  ;;  %v10049_v11 = vld [vmem:[%s13126_s3 + $0x1e0] sm:$0xff] }
 0x7cb   :  { %v2773_v47 = vmul.f32 %v7015_v22, %v2772_v32  ;;  %v2827_v3 = vor.u32 1.1754944e-38, %v2826_v18  ;;  %14048 = vst [vmem:[#allocation42_spill] sm:$0xff] %v10049_v11  ;;  %v10056_v32 = vld [vmem:[%s13126_s3 + $0x1e8] sm:$0xff]  ;;  %v14051_v1 = vld [vmem:[#allocation15_spill] sm:$0xff] }
 0x7cc   :  { %v2788_v44 = vmul.f32 %v7017_v37, %v2787_v53  ;;  %vm2825_vm9 = vcmp.eq.f32.partialorder %v2824_v8, 8.507059e+37  ;;  %14049 = vst [vmem:[#allocation43_spill] sm:$0xff] %v10056_v32  ;;  %v10061_v53 = vld [vmem:[%s13126_s3 + $0x1f8] sm:$0xff]  ;;  %v10211_v18 = vld [vmem:[%s13126_s3 + $0x128] sm:$0xff] }
 0x7cd   :  { %v7019_v21 = vpop.eup %7018  ;;  %v2774_v50 = vadd.f32 %v7015_v22, %v2773_v47  ;;  %14050 = vst [vmem:[#allocation9_spill] sm:$0xff] %v10061_v53  ;;  %v10068_v47 = vld [vmem:[%s13126_s3 + $0x1d0] sm:$0xff]  ;;  %v10216_v8 = vld [vmem:[%s13126_s3 + $0x138] sm:$0xff] }
 0x7ce   :  { %v2789_v49 = vadd.f32 %v7017_v37, %v2788_v44  ;;  %v2801_v24 = vmul.f32 %v7019_v21, %v2768_v41  ;;  %v7021_v38 = vpop.eup %7020  ;;  %vm2806_vm13 = vweird.f32 %v7019_v21  ;;  %v3010_v41 = vld [vmem:[%s13124_s1] sm:$0xff] }
 0x7cf   :  { %v2816_v63 = vmul.f32 %v7021_v38, %v2769_v25  ;;  %v2778_v5 = vsel %vm2777_vm14, %v7015_v22, %v2774_v50  ;;  %vm2807_vm3 = vmor %vm2805_vm2, %vm2806_vm13  ;;  %vm2821_vm6 = vweird.f32 %v7021_v38  ;;  %v3011_v22 = vld [vmem:[%s13124_s1 + $0x8] sm:$0xff]  ;;  %3075 = vmatpush.msra.mxu0 %v3010_v41  ;;  %v3013_v25 = vld [vmem:[%s13124_s1 + $0x18] sm:$0xff] }
 0x7d0   :  { %v2802_v59 = vsub.f32 1.0, %v2801_v24  ;;  %v2793_v55 = vsel %vm2792_vm12, %v7017_v37, %v2789_v49  ;;  %v2783_v57 = vsel %vm2780_vm4, %v2782_v34, %v2778_v5  ;;  %vm2822_vm8 = vmor %vm2820_vm7, %vm2821_vm6  ;;  %v6675_v37 = vld [vmem:[%s13123_s0 + $0x80] sm:$0xff]  ;;  %3104 = vmatpush.msrb.mxu1 %v3011_v22  ;;  %3162 = vmatpush.msrb.mxu3 %v3013_v25  ;;  %v10085_v49 = vld [vmem:[%s13126_s3 + $0x1d8] sm:$0xff] }
 0x7d1   :  { %v2817_v35 = vsub.f32 1.0, %v2816_v63  ;;  %v2798_v56 = vsel %vm2795_vm15, %v2797_v7, %v2793_v55  ;;  %v10073_v44 = vld [vmem:[%s13126_s3 + $0x1c0] sm:$0xff]  ;;  %v10092_v24 = vld [vmem:[%s13126_s3 + $0x1b0] sm:$0xff]  ;;  %v10128_v63 = vld [vmem:[%s13126_s3 + $0x188] sm:$0xff]  ;;  %v1225_v55 = vadd.f32 %v14051_v1, %v14033_v2 }
 0x7d2   :  { %v2803_v9 = vmul.f32 %v7019_v21, %v2802_v59  ;;  %v2830_v31 = vmul.f32 %v2798_v56, %v9971_v4  ;;  %v3024_v4 = vld [vmem:[%s13124_s1 + $0x70] sm:$0xf]  ;;  %v10121_v59 = vld [vmem:[%s13126_s3 + $0x180] sm:$0xff]  ;;  %v10163_v2 = vld [vmem:[%s13126_s3 + $0x168] sm:$0xff] }
 0x7d3   :  { %v2818_v54 = vmul.f32 %v7021_v38, %v2817_v35  ;;  %6689 = vmatpush.msk.msrb.mxu2 %vm67_vm0, %v3024_v4  ;;  %v10116_v50 = vld [vmem:[%s13126_s3 + $0x190] sm:$0xff]  ;;  %v10156_v35 = vld [vmem:[%s13126_s3 + $0x160] sm:$0xff]  ;;  %v10301_v1 = vld [vmem:[%s13126_s3 + $0xd8] sm:$0xff] }
 0x7d4   :  { %v2804_v15 = vadd.f32 %v7019_v21, %v2803_v9  ;;  %v14052_v9 = vld [vmem:[#allocation16_spill] sm:$0xff]  ;;  %v10151_v7 = vld [vmem:[%s13126_s3 + $0x170] sm:$0xff]  ;;  %v10287_v22 = vld [vmem:[%s13126_s3 + $0xc0] sm:$0xff]  ;;  %14060 = vst [vmem:[#allocation23_spill] sm:$0xff] %v10301_v1 }
 0x7d5   :  { %v2819_v0 = vadd.f32 %v7021_v38, %v2818_v54  ;;  %3131 = vmatpush.msrb.mxu2 %v3020_v58  ;;  %v1254_v51 = vadd.f32 %v14052_v9, %v14035_v45  ;;  %v10168_v45 = vld [vmem:[%s13126_s3 + $0x178] sm:$0xff]  ;;  %v10282_v41 = vld [vmem:[%s13126_s3 + $0xd0] sm:$0xff]  ;;  %14058 = vst [vmem:[#allocation22_spill] sm:$0xff] %v10287_v22 }
 0x7d6   :  { %v2808_v42 = vsel %vm2807_vm3, %v7019_v21, %v2804_v15  ;;  %v10080_v21 = vld [vmem:[%s13126_s3 + $0x1c8] sm:$0xff]  ;;  %14057 = vst [vmem:[#allocation10_spill] sm:$0xff] %v10282_v41  ;;  %v10310_v9 = vld [vmem:[%s13126_s3 + $0xb0] sm:$0xff] }
 0x7d7   :  { %v2813_v43 = vsel %vm2810_vm5, %v2812_v62, %v2808_v42  ;;  %v2823_v46 = vsel %vm2822_vm8, %v7021_v38, %v2819_v0  ;;  %3132 = vmatpush.msrb.mxu2 %v3016_v12  ;;  %v10097_v38 = vld [vmem:[%s13126_s3 + $0x1a0] sm:$0xff]  ;;  %v10175_v62 = vld [vmem:[%s13126_s3 + $0x150] sm:$0xff]  ;;  %14061 = vst [vmem:[#allocation11_spill] sm:$0xff] %v10310_v9 }
 0x7d8   :  { %v2831_v60 = vmul.f32 %v2813_v43, %v2783_v57  ;;  %v2828_v6 = vsel %vm2825_vm9, %v2827_v3, %v2823_v46  ;;  %v10180_v42 = vld [vmem:[%s13126_s3 + $0x140] sm:$0xff]  ;;  %v10187_v57 = vld [vmem:[%s13126_s3 + $0x148] sm:$0xff]  ;;  %v10192_v43 = vld [vmem:[%s13126_s3 + $0x158] sm:$0xff] }
 0x7d9   :  { %3133 = vmatpush.msrb.mxu2 %v3012_v39  ;;  %v10204_v0 = vld [vmem:[%s13126_s3 + $0x120] sm:$0xff]  ;;  %v10223_v46 = vld [vmem:[%s13126_s3 + $0x110] sm:$0xff] }
 0x7da   :  { %v9983_v28 = vadd.f32 %v2831_v60, %v2830_v31  ;;  %v10199_v60 = vld [vmem:[%s13126_s3 + $0x130] sm:$0xff]  ;;  %v10228_v3 = vld [vmem:[%s13126_s3 + $0x100] sm:$0xff] }
 0x7dc   :  { %7022 = vtanh.f32 %v9983_v28 }
 0x7e2   :  { %v7023_v26 = vpop.eup %7022 }
 0x7e3   :  { %v2834_v30 = vmul.f32 %v7023_v26, %v2828_v6  ;;  %v14053_v26 = vld [vmem:[#allocation69_spill] sm:$0xff] }
 0x7e4   :  { %v1283_v6 = vadd.f32 %v14053_v26, %v14037_v61  ;;  %v6678_v26 = vld [vmem:[%s13123_s0 + $0x98] sm:$0xff] }
 0x7e5   :  { %2856 = vmatmul.f32.vlgmr.msrb.gmra.mxu0 %v2834_v30  ;;  %2876 = vmatmul.f32.vlgmr.msra.gmra.mxu1 %v2834_v30 }
 0x7e6   :  { %2896 = vmatmul.f32.vlgmr.msra.gmra.mxu2 %v2834_v30  ;;  %2916 = vmatmul.f32.vlgmr.msra.gmra.mxu3 %v2834_v30  ;;  %v14054_v30 = vld [vmem:[#allocation70_spill] sm:$0xff] }
 0x7e7   :  { %3301 = vmatpush.msra.mxu2 %v10044_v40  ;;  %3261 = vmatpush.msrb.mxu0 %v10049_v11  ;;  %v1312_v4 = vadd.f32 %v14054_v30, %v14039_v13  ;;  %v6677_v13 = vld [vmem:[%s13123_s0 + $0x90] sm:$0xff] }
 0x7e8   :  { %3281 = vmatpush.msra.mxu1 %v10056_v32  ;;  %3321 = vmatpush.msra.mxu3 %v10061_v53 }
 0x7e9   :  { %3302 = vmatpush.msra.mxu2 %v10068_v47  ;;  %3262 = vmatpush.msrb.mxu0 %v10073_v44 }
 0x7ea   :  { %3282 = vmatpush.msra.mxu1 %v10080_v21  ;;  %3322 = vmatpush.msra.mxu3 %v10085_v49 }
 0x7eb   :  { %3303 = vmatpush.msra.mxu2 %v10092_v24  ;;  %3263 = vmatpush.msrb.mxu0 %v10097_v38 }
 0x7ec   :  { %3283 = vmatpush.msra.mxu1 %v10104_v10  ;;  %3323 = vmatpush.msra.mxu3 %v10109_v48 }
 0x7ed   :  { %6680 = vmatmul.msk.f32.vlgmr.msra.gmra.mxu0 %vm54_vm1, %v6675_v37  ;;  %6685 = vmatmul.msk.f32.vlgmr.msrb.gmra.mxu1 %vm54_vm1, %v6675_v37 }
 0x7ee   :  { %6690 = vmatmul.msk.f32.vlgmr.msrb.gmra.mxu2 %vm54_vm1, %v6675_v37  ;;  %6695 = vmatmul.msk.f32.vlgmr.msrb.gmra.mxu3 %vm54_vm1, %v6675_v37 }
 0x7ef   :  { %3304 = vmatpush.msra.mxu2 %v10116_v50  ;;  %3264 = vmatpush.msrb.mxu0 %v10121_v59 }
 0x7f0   :  { %3284 = vmatpush.msra.mxu1 %v10128_v63  ;;  %3324 = vmatpush.msra.mxu3 %v10133_v29 }
 0x7f1   :  { %3305 = vmatpush.msra.mxu2 %v10151_v7  ;;  %3265 = vmatpush.msrb.mxu0 %v10156_v35 }
 0x7f2   :  { %3285 = vmatpush.msra.mxu1 %v10163_v2  ;;  %3325 = vmatpush.msra.mxu3 %v10168_v45 }
 0x7f3   :  { %3306 = vmatpush.msra.mxu2 %v10175_v62  ;;  %3266 = vmatpush.msrb.mxu0 %v10180_v42 }
 0x7f4   :  { %3286 = vmatpush.msra.mxu1 %v10187_v57  ;;  %3326 = vmatpush.msra.mxu3 %v10192_v43 }
 0x7f5   :  { %6681 = vmatmul.msk.f32.gmra.mxu0 %vm54_vm1, %v6676_v20  ;;  %6686 = vmatmul.msk.f32.gmra.mxu1 %vm54_vm1, %v6676_v20 }
 0x7f6   :  { %6691 = vmatmul.msk.f32.gmra.mxu2 %vm54_vm1, %v6676_v20  ;;  %6696 = vmatmul.msk.f32.gmra.mxu3 %vm54_vm1, %v6676_v20  ;;  %v10296_v20 = vld [vmem:[%s13126_s3 + $0xc8] sm:$0xff] }
 0x7f7   :  { %3307 = vmatpush.msra.mxu2 %v10199_v60  ;;  %3267 = vmatpush.msrb.mxu0 %v10204_v0  ;;  %14059 = vst [vmem:[#allocation21_spill] sm:$0xff] %v10296_v20 }
 0x7f8   :  { %3287 = vmatpush.msra.mxu1 %v10211_v18  ;;  %3327 = vmatpush.msra.mxu3 %v10216_v8 }
 0x7f9   :  { %3308 = vmatpush.msra.mxu2 %v10223_v46  ;;  %3268 = vmatpush.msrb.mxu0 %v10228_v3 }
 0x7fa   :  { %3288 = vmatpush.msra.mxu1 %v10239_v27  ;;  %3328 = vmatpush.msra.mxu3 %v10244_v17 }
 0x7fb   :  { %3309 = vmatpush.msra.mxu2 %v10258_v14  ;;  %3269 = vmatpush.msrb.mxu0 %v10263_v19 }
 0x7fc   :  { %3289 = vmatpush.msra.mxu1 %v10270_v33  ;;  %3329 = vmatpush.msra.mxu3 %v10275_v36 }
 0x7fd   :  { %6682 = vmatmul.msk.f32.gmra.mxu0 %vm54_vm1, %v6677_v13  ;;  %6687 = vmatmul.msk.f32.gmra.mxu1 %vm54_vm1, %v6677_v13 }
 0x7fe   :  { %6692 = vmatmul.msk.f32.gmra.mxu2 %vm54_vm1, %v6677_v13  ;;  %6697 = vmatmul.msk.f32.gmra.mxu3 %vm54_vm1, %v6677_v13 }
 0x7ff   :  { %3310 = vmatpush.msra.mxu2 %v10282_v41  ;;  %3270 = vmatpush.msrb.mxu0 %v10287_v22 }
 0x800   :  { %3290 = vmatpush.msra.mxu1 %v10296_v20  ;;  %3330 = vmatpush.msra.mxu3 %v10301_v1 }
 0x801   :  { %3311 = vmatpush.msra.mxu2 %v10310_v9 }
 0x805   :  { %6683 = vmatmul.msk.f32.gmra.mxu0 %vm54_vm1, %v6678_v26  ;;  %6688 = vmatmul.msk.f32.gmra.mxu1 %vm54_vm1, %v6678_v26 }
 0x806   :  { %6693 = vmatmul.msk.f32.gmra.mxu2 %vm54_vm1, %v6678_v26  ;;  %6698 = vmatmul.msk.f32.gmra.mxu3 %vm54_vm1, %v6678_v26  ;;  %v10416_v26 = vld [vmem:[%s13126_s3 + $0x48] sm:$0xff] }
 0x807   :  { %14075 = vst [vmem:[#allocation34_spill] sm:$0xff] %v10416_v26 }
 0x862   :  { %v2857_v5 = vpop.f32.mrf.mxu0  ;;  %v2877_v15 = vpop.f32.mrf.mxu1 }
 0x863   :  { %v2920_v34 = vadd.f32 %v2857_v5, %v1225_v55  ;;  %v2921_v56 = vadd.f32 %v2877_v15, %v1254_v51  ;;  %v10315_v51 = vld [vmem:[%s13126_s3 + $0xa0] sm:$0xff]  ;;  %v10323_v5 = vld [vmem:[%s13126_s3 + $0xa8] sm:$0xff]  ;;  %v10328_v15 = vld [vmem:[%s13126_s3 + $0xb8] sm:$0xff] }
 0x864   :  { %14062 = vst [vmem:[#allocation25_spill] sm:$0xff] %v10315_v51  ;;  %3271 = vmatpush.msrb.mxu0 %v10315_v51  ;;  %3291 = vmatpush.msra.mxu1 %v10323_v5 }
 0x865   :  { %v6671_v54 = vmul.f32 -1.442695, %v2920_v34  ;;  %v6672_v31 = vmul.f32 -1.442695, %v2921_v56  ;;  %14063 = vst [vmem:[#allocation24_spill] sm:$0xff] %v10323_v5  ;;  %v10336_v34 = vld [vmem:[%s13126_s3 + $0x90] sm:$0xff]  ;;  %3331 = vmatpush.msra.mxu3 %v10328_v15 }
 0x866   :  { %14064 = vst [vmem:[#allocation26_spill] sm:$0xff] %v10328_v15  ;;  %v10341_v56 = vld [vmem:[%s13126_s3 + $0x80] sm:$0xff]  ;;  %3312 = vmatpush.msra.mxu2 %v10336_v34 }
 0x867   :  { %7024 = vpow2.f32 %v6671_v54  ;;  %14065 = vst [vmem:[#allocation12_spill] sm:$0xff] %v10336_v34  ;;  %v10348_v54 = vld [vmem:[%s13126_s3 + $0x88] sm:$0xff]  ;;  %3272 = vmatpush.msrb.mxu0 %v10341_v56 }
 0x868   :  { %7026 = vpow2.f32 %v6672_v31  ;;  %14066 = vst [vmem:[#allocation28_spill] sm:$0xff] %v10341_v56  ;;  %v10353_v31 = vld [vmem:[%s13126_s3 + $0x98] sm:$0xff]  ;;  %3292 = vmatpush.msra.mxu1 %v10348_v54 }
 0x869   :  { %v2897_v16 = vpop.f32.mrf.mxu2  ;;  %v2917_v61 = vpop.f32.mrf.mxu3  ;;  %14067 = vst [vmem:[#allocation27_spill] sm:$0xff] %v10348_v54  ;;  %3332 = vmatpush.msra.mxu3 %v10353_v31 }
 0x86a   :  { %v2922_v58 = vadd.f32 %v2897_v16, %v1283_v6  ;;  %v2923_v52 = vadd.f32 %v2917_v61, %v1312_v4  ;;  %14068 = vst [vmem:[#allocation29_spill] sm:$0xff] %v10353_v31  ;;  %v10369_v16 = vld [vmem:[%s13126_s3 + $0x70] sm:$0xff]  ;;  %v10374_v61 = vld [vmem:[%s13126_s3 + $0x60] sm:$0xff]  ;;  %v10421_v31 = vld [vmem:[%s13126_s3 + $0x58] sm:$0xff] }
 0x86b   :  { %14069 = vst [vmem:[#allocation13_spill] sm:$0xff] %v10369_v16  ;;  %3313 = vmatpush.msra.mxu2 %v10369_v16  ;;  %3273 = vmatpush.msrb.mxu0 %v10374_v61  ;;  %v10429_v16 = vld [vmem:[%s13126_s3 + $0x30] sm:$0xff] }
 0x86c   :  { %v6673_v12 = vmul.f32 -1.442695, %v2922_v58  ;;  %v6674_v23 = vmul.f32 -1.442695, %v2923_v52  ;;  %14070 = vst [vmem:[#allocation31_spill] sm:$0xff] %v10374_v61  ;;  %v10385_v52 = vld [vmem:[%s13126_s3 + $0x68] sm:$0xff] }
 0x86d   :  { %v7025_v39 = vpop.eup %7024  ;;  %14071 = vst [vmem:[#allocation30_spill] sm:$0xff] %v10385_v52  ;;  %3293 = vmatpush.msra.mxu1 %v10385_v52  ;;  %v10434_v61 = vld [vmem:[%s13126_s3 + $0x20] sm:$0xff] }
 0x86e   :  { %v7027_v25 = vpop.eup %7026  ;;  %v10289_v37 = vadd.f32 1.0, %v7025_v39  ;;  %7028 = vpow2.f32 %v6673_v12  ;;  %v10390_v12 = vld [vmem:[%s13126_s3 + $0x78] sm:$0xff]  ;;  %14076 = vst [vmem:[#allocation35_spill] sm:$0xff] %v10421_v31 }
 0x86f   :  { %v10303_v55 = vadd.f32 1.0, %v7027_v25  ;;  %7030 = vpow2.f32 %v6674_v23  ;;  %14072 = vst [vmem:[#allocation32_spill] sm:$0xff] %v10390_v12  ;;  %v10402_v25 = vld [vmem:[%s13126_s3 + $0x50] sm:$0xff]  ;;  %3333 = vmatpush.msra.mxu3 %v10390_v12  ;;  %v10446_v12 = vld [vmem:[%s13126_s3 + $0x38] sm:$0xff]  ;;  %3294 = vmatpush.msra.mxu1 %v10416_v26 }
 0x870   :  { %7032 = vrcp.f32 %v10289_v37  ;;  %14073 = vst [vmem:[#allocation14_spill] sm:$0xff] %v10402_v25  ;;  %3314 = vmatpush.msra.mxu2 %v10402_v25  ;;  %v10458_v25 = vld [vmem:[%s13126_s3] sm:$0xff]  ;;  %v10472_v26 = vld [vmem:[%s13126_s3 + $0x18] sm:$0xff]  ;;  %vm2945_vm13 = vweird.f32 %v10289_v37 }
 0x871   :  { %7034 = vrcp.f32 %v10303_v55  ;;  %14077 = vst [vmem:[#allocation55_spill] sm:$0xff] %v10429_v16  ;;  %3334 = vmatpush.msra.mxu3 %v10421_v31  ;;  %v10467_v31 = vld [vmem:[%s13126_s3 + $0x8] sm:$0xff]  ;;  %vm2960_vm11 = vweird.f32 %v10303_v55 }
 0x872   :  { %14078 = vst [vmem:[#allocation36_spill] sm:$0xff] %v10434_v61  ;;  %3315 = vmatpush.msra.mxu2 %v10429_v16 }
 0x873   :  { %14080 = vst [vmem:[#allocation6_spill] sm:$0xff] %v10446_v12  ;;  %3335 = vmatpush.msra.mxu3 %v10446_v12 }
 0x874   :  { %v7029_v6 = vpop.eup %7028  ;;  %14082 = vst [vmem:[#allocation38_spill] sm:$0xff] %v10458_v25 }
 0x875   :  { %v7031_v30 = vpop.eup %7030  ;;  %v10362_v4 = vadd.f32 1.0, %v7029_v6  ;;  %v10407_v6 = vld [vmem:[%s13126_s3 + $0x40] sm:$0xff]  ;;  %14083 = vst [vmem:[#allocation67_spill] sm:$0xff] %v10467_v31  ;;  %3336 = vmatpush.msra.mxu3 %v10472_v26 }
 0x876   :  { %v10376_v13 = vpop.eup %7032  ;;  %v10378_v58 = vadd.f32 1.0, %v7031_v30  ;;  %14074 = vst [vmem:[#allocation33_spill] sm:$0xff] %v10407_v6  ;;  %3274 = vmatpush.msrb.mxu0 %v10407_v6 }
 0x877   :  { %v10392_v23 = vpop.eup %7034  ;;  %v2941_v39 = vmul.f32 %v10376_v13, %v10289_v37  ;;  %7036 = vrcp.f32 %v10362_v4  ;;  %14084 = vst [vmem:[#allocation53_spill] sm:$0xff] %v10472_v26  ;;  %vm2946_vm12 = vweird.f32 %v10376_v13  ;;  %3491 = vmatpush.msrb.mxu3 %v10061_v53  ;;  %vm2975_vm4 = vweird.f32 %v10362_v4 }
 0x878   :  { %v2956_v30 = vmul.f32 %v10392_v23, %v10303_v55  ;;  %7038 = vrcp.f32 %v10378_v58  ;;  %3275 = vmatpush.msrb.mxu0 %v10434_v61  ;;  %vm2961_vm10 = vweird.f32 %v10392_v23  ;;  %v2964_v61 = vand.u32 2147483647, %v10303_v55  ;;  %vm10514_vm2 = vmor %vm2945_vm13, %vm2946_vm12 }
 0x879   :  { %v2942_v34 = vsub.f32 1.0, %v2941_v39  ;;  %v10441_v39 = vld [vmem:[%s13126_s3 + $0x28] sm:$0xff]  ;;  %vm10499_vm14 = vmor %vm2960_vm11, %vm2961_vm10  ;;  %3492 = vmatpush.msrb.mxu3 %v10085_v49  ;;  %vm2990_vm9 = vweird.f32 %v10378_v58 }
 0x87a   :  { %v2957_v54 = vsub.f32 1.0, %v2956_v30  ;;  %14079 = vst [vmem:[#allocation62_spill] sm:$0xff] %v10441_v39  ;;  %v10453_v30 = vld [vmem:[%s13126_s3 + $0x10] sm:$0xff]  ;;  %3295 = vmatpush.msra.mxu1 %v10441_v39  ;;  %3276 = vmatpush.msrb.mxu0 %v10458_v25  ;;  %v2966_v39 = vand.u32 2147483648, %v10303_v55  ;;  %v2949_v55 = vand.u32 2147483647, %v10289_v37 }
 0x87b   :  { %14081 = vst [vmem:[#allocation65_spill] sm:$0xff] %v10453_v30  ;;  %v2943_v6 = vmul.f32 %v10376_v13, %v2942_v34  ;;  %3316 = vmatpush.msra.mxu2 %v10453_v30  ;;  %vm2965_vm3 = vcmp.eq.f32.partialorder %v2964_v61, 8.507059e+37  ;;  %3493 = vmatpush.msrb.mxu3 %v10109_v48 }
 0x87c   :  { %v2958_v52 = vmul.f32 %v10392_v23, %v2957_v54  ;;  %3296 = vmatpush.msra.mxu1 %v10467_v31  ;;  %3431 = vmatpush.msra.mxu0 %v10049_v11  ;;  %v2951_v31 = vand.u32 2147483648, %v10289_v37  ;;  %v2979_v37 = vand.u32 2147483647, %v10362_v4  ;;  %vm2950_vm6 = vcmp.eq.f32.partialorder %v2949_v55, 8.507059e+37  ;;  %v14090_v55 = vld [vmem:[#allocation28_spill] sm:$0xff] }
 0x87d   :  { %v7037_v56 = vpop.eup %7036  ;;  %3471 = vmatpush.msrb.mxu2 %v10044_v40  ;;  %v2967_v40 = vor.u32 1.1754944e-38, %v2966_v39  ;;  %3494 = vmatpush.msrb.mxu3 %v10133_v29 }
 0x87e   :  { %v2959_v34 = vadd.f32 %v10392_v23, %v2958_v52  ;;  %v2971_v54 = vmul.f32 %v7037_v56, %v10362_v4  ;;  %v10481_v16 = vpop.eup %7038  ;;  %v2944_v52 = vadd.f32 %v10376_v13, %v2943_v6  ;;  %3451 = vmatpush.msrb.mxu1 %v10056_v32  ;;  %vm2976_vm15 = vweird.f32 %v7037_v56  ;;  %3432 = vmatpush.msra.mxu0 %v10073_v44 }
 0x87f   :  { %v2986_v30 = vmul.f32 %v10481_v16, %v10378_v58  ;;  %3472 = vmatpush.msrb.mxu2 %v10068_v47  ;;  %vm2977_vm5 = vmor %vm2975_vm4, %vm2976_vm15  ;;  %vm2980_vm7 = vcmp.eq.f32.partialorder %v2979_v37, 8.507059e+37  ;;  %3495 = vmatpush.msrb.mxu3 %v10168_v45  ;;  %vm2991_vm8 = vweird.f32 %v10481_v16  ;;  %v14092_v37 = vld [vmem:[#allocation12_spill] sm:$0xff] }
 0x880   :  { %v2972_v12 = vsub.f32 1.0, %v2971_v54  ;;  %v2981_v54 = vand.u32 2147483648, %v10362_v4  ;;  %v2963_v32 = vsel %vm10499_vm14, %v10392_v23, %v2959_v34  ;;  %3452 = vmatpush.msrb.mxu1 %v10080_v21  ;;  %3433 = vmatpush.msra.mxu0 %v10097_v38  ;;  %v2952_v34 = vor.u32 1.1754944e-38, %v2951_v31  ;;  %vm2992_vm10 = vmor %vm2990_vm9, %vm2991_vm8 }
 0x881   :  { %v2987_v53 = vsub.f32 1.0, %v2986_v30  ;;  %v2968_v6 = vsel %vm2965_vm3, %v2967_v40, %v2963_v32  ;;  %3473 = vmatpush.msrb.mxu2 %v10092_v24  ;;  %3496 = vmatpush.msrb.mxu3 %v10192_v43  ;;  %v2994_v31 = vand.u32 2147483647, %v10378_v58 }
 0x882   :  { %v2973_v11 = vmul.f32 %v7037_v56, %v2972_v12  ;;  %v2948_v12 = vsel %vm10514_vm2, %v10376_v13, %v2944_v52  ;;  %3453 = vmatpush.msrb.mxu1 %v10104_v10  ;;  %v2982_v39 = vor.u32 1.1754944e-38, %v2981_v54  ;;  %3434 = vmatpush.msra.mxu0 %v10121_v59  ;;  %v3000_v40 = vmul.f32 %v2968_v6, %v9983_v28  ;;  %v14091_v54 = vld [vmem:[#allocation27_spill] sm:$0xff]  ;;  %v14096_v6 = vld [vmem:[#allocation13_spill] sm:$0xff] }
 0x883   :  { %v2988_v61 = vmul.f32 %v10481_v16, %v2987_v53  ;;  %3474 = vmatpush.msrb.mxu2 %v10116_v50  ;;  %v2996_v28 = vand.u32 2147483648, %v10378_v58  ;;  %3497 = vmatpush.msrb.mxu3 %v10216_v8  ;;  %vm2995_vm11 = vcmp.eq.f32.partialorder %v2994_v31, 8.507059e+37  ;;  %v14106_v31 = vld [vmem:[#allocation67_spill] sm:$0xff] }
 0x884   :  { %v2974_v23 = vadd.f32 %v7037_v56, %v2973_v11  ;;  %3454 = vmatpush.msrb.mxu1 %v10128_v63  ;;  %v2953_v11 = vsel %vm2950_vm6, %v2952_v34, %v2948_v12  ;;  %3435 = vmatpush.msra.mxu0 %v10156_v35  ;;  %v14093_v12 = vld [vmem:[#allocation29_spill] sm:$0xff]  ;;  %v14095_v34 = vld [vmem:[#allocation30_spill] sm:$0xff] }
 0x885   :  { %3475 = vmatpush.msrb.mxu2 %v10151_v7  ;;  %v2989_v53 = vadd.f32 %v10481_v16, %v2988_v61  ;;  %3498 = vmatpush.msrb.mxu3 %v10244_v17  ;;  %v2997_v30 = vor.u32 1.1754944e-38, %v2996_v28  ;;  %v14101_v61 = vld [vmem:[#allocation35_spill] sm:$0xff]  ;;  %v14105_v28 = vld [vmem:[#allocation6_spill] sm:$0xff] }
 0x886   :  { %v2978_v26 = vsel %vm2977_vm5, %v7037_v56, %v2974_v23  ;;  %3455 = vmatpush.msrb.mxu1 %v10163_v2  ;;  %3436 = vmatpush.msra.mxu0 %v10180_v42  ;;  %v14094_v23 = vld [vmem:[#allocation31_spill] sm:$0xff] }
 0x887   :  { %v2983_v4 = vsel %vm2980_vm7, %v2982_v39, %v2978_v26  ;;  %3476 = vmatpush.msrb.mxu2 %v10175_v62  ;;  %v2993_v13 = vsel %vm2992_vm10, %v10481_v16, %v2989_v53  ;;  %3499 = vmatpush.msrb.mxu3 %v10275_v36  ;;  %v14097_v39 = vld [vmem:[#allocation32_spill] sm:$0xff]  ;;  %v14098_v26 = vld [vmem:[#allocation33_spill] sm:$0xff]  ;;  %v14104_v53 = vld [vmem:[#allocation55_spill] sm:$0xff] }
 0x888   :  { %v3001_v32 = vmul.f32 %v2983_v4, %v2953_v11  ;;  %3456 = vmatpush.msrb.mxu1 %v10187_v57  ;;  %3437 = vmatpush.msra.mxu0 %v10204_v0  ;;  %v2998_v52 = vsel %vm2995_vm11, %v2997_v30, %v2993_v13  ;;  %v14099_v11 = vld [vmem:[#allocation34_spill] sm:$0xff]  ;;  %v14107_v13 = vld [vmem:[#allocation65_spill] sm:$0xff] }
 0x889   :  { %3477 = vmatpush.msrb.mxu2 %v10199_v60  ;;  %3500 = vmatpush.msrb.mxu3 %v10301_v1  ;;  %v14100_v4 = vld [vmem:[#allocation14_spill] sm:$0xff]  ;;  %v14108_v30 = vld [vmem:[#allocation53_spill] sm:$0xff] }
 0x88a   :  { %v10539_v56 = vadd.f32 %v3001_v32, %v3000_v40  ;;  %3457 = vmatpush.msrb.mxu1 %v10211_v18  ;;  %3438 = vmatpush.msra.mxu0 %v10228_v3  ;;  %v14102_v40 = vld [vmem:[#allocation36_spill] sm:$0xff]  ;;  %v14103_v32 = vld [vmem:[#allocation62_spill] sm:$0xff] }
 0x88b   :  { %3478 = vmatpush.msrb.mxu2 %v10223_v46  ;;  %3501 = vmatpush.msrb.mxu3 %v10328_v15 }
 0x88c   :  { %14089 = vst [vmem:[#allocation44_spill] sm:$0xff] %v10539_v56  ;;  %7040 = vtanh.f32 %v10539_v56  ;;  %3458 = vmatpush.msrb.mxu1 %v10239_v27  ;;  %3439 = vmatpush.msra.mxu0 %v10263_v19  ;;  %v14112_v56 = vld [vmem:[#allocation9_spill] sm:$0xff] }
 0x88d   :  { %3479 = vmatpush.msrb.mxu2 %v10258_v14  ;;  %3502 = vmatpush.msrb.mxu3 %v14093_v12 }
 0x88e   :  { %3459 = vmatpush.msrb.mxu1 %v10270_v33  ;;  %3440 = vmatpush.msra.mxu0 %v10287_v22 }
 0x88f   :  { %3480 = vmatpush.msrb.mxu2 %v10282_v41  ;;  %3503 = vmatpush.msrb.mxu3 %v14097_v39 }
 0x890   :  { %3460 = vmatpush.msrb.mxu1 %v10296_v20  ;;  %3441 = vmatpush.msra.mxu0 %v10315_v51 }
 0x891   :  { %3481 = vmatpush.msrb.mxu2 %v10310_v9  ;;  %3504 = vmatpush.msrb.mxu3 %v14101_v61 }
 0x892   :  { %v7041_v58 = vpop.eup %7040  ;;  %3461 = vmatpush.msrb.mxu1 %v10323_v5  ;;  %3442 = vmatpush.msra.mxu0 %v14090_v55 }
 0x893   :  { %v3004_v16 = vmul.f32 %v7041_v58, %v2998_v52  ;;  %3482 = vmatpush.msrb.mxu2 %v14092_v37  ;;  %3505 = vmatpush.msrb.mxu3 %v14105_v28  ;;  %v14109_v58 = vld [vmem:[#allocation42_spill] sm:$0xff]  ;;  %v14110_v52 = vld [vmem:[#allocation43_spill] sm:$0xff] }
 0x894   :  { %3462 = vmatpush.msrb.mxu1 %v14091_v54  ;;  %3443 = vmatpush.msra.mxu0 %v14094_v23 }
 0x895   :  { %3277 = vmatmul.f32.vlgmr.msrb.gmra.mxu0 %v3004_v16  ;;  %3297 = vmatmul.f32.vlgmr.msra.gmra.mxu1 %v3004_v16 }
 0x896   :  { %3317 = vmatmul.f32.vlgmr.msra.gmra.mxu2 %v3004_v16  ;;  %3337 = vmatmul.f32.vlgmr.msra.gmra.mxu3 %v3004_v16  ;;  %v14111_v16 = vld [vmem:[#allocation7_spill] sm:$0xff] }
 0x897   :  { %3463 = vmatpush.msrb.mxu1 %v14095_v34  ;;  %3483 = vmatpush.msrb.mxu2 %v14096_v6 }
 0x898   :  { %3444 = vmatpush.msra.mxu0 %v14098_v26  ;;  %3506 = vmatpush.msrb.mxu3 %v14108_v30 }
 0x899   :  { %3464 = vmatpush.msrb.mxu1 %v14099_v11  ;;  %3484 = vmatpush.msrb.mxu2 %v14100_v4 }
 0x89a   :  { %3445 = vmatpush.msra.mxu0 %v14102_v40  ;;  %3661 = vmatpush.msra.mxu3 %v14112_v56 }
 0x89b   :  { %3465 = vmatpush.msrb.mxu1 %v14103_v32  ;;  %3485 = vmatpush.msrb.mxu2 %v14104_v53 }
 0x89c   :  { %3446 = vmatpush.msra.mxu0 %v10458_v25  ;;  %3662 = vmatpush.msra.mxu3 %v10085_v49 }
 0x89d   :  { %3466 = vmatpush.msrb.mxu1 %v14106_v31  ;;  %3486 = vmatpush.msrb.mxu2 %v14107_v13 }
 0x89e   :  { %3601 = vmatpush.msrb.mxu0 %v14109_v58  ;;  %3663 = vmatpush.msra.mxu3 %v10109_v48 }
 0x89f   :  { %3621 = vmatpush.msra.mxu1 %v14110_v52  ;;  %3641 = vmatpush.msra.mxu2 %v14111_v16 }
 0x8a0   :  { %3602 = vmatpush.msrb.mxu0 %v10073_v44  ;;  %3664 = vmatpush.msra.mxu3 %v10133_v29 }
 0x8a1   :  { %3622 = vmatpush.msra.mxu1 %v10080_v21  ;;  %3642 = vmatpush.msra.mxu2 %v10068_v47 }
 0x8a2   :  { %3603 = vmatpush.msrb.mxu0 %v10097_v38  ;;  %3665 = vmatpush.msra.mxu3 %v10168_v45 }
 0x8a3   :  { %3623 = vmatpush.msra.mxu1 %v10104_v10  ;;  %3643 = vmatpush.msra.mxu2 %v10092_v24 }
 0x8a4   :  { %3604 = vmatpush.msrb.mxu0 %v10121_v59  ;;  %3666 = vmatpush.msra.mxu3 %v10192_v43 }
 0x8a5   :  { %3624 = vmatpush.msra.mxu1 %v10128_v63  ;;  %3644 = vmatpush.msra.mxu2 %v10116_v50 }
 0x8a6   :  { %3605 = vmatpush.msrb.mxu0 %v10156_v35  ;;  %3667 = vmatpush.msra.mxu3 %v10216_v8 }
 0x8a7   :  { %3625 = vmatpush.msra.mxu1 %v10163_v2  ;;  %3645 = vmatpush.msra.mxu2 %v10151_v7 }
 0x8a8   :  { %3606 = vmatpush.msrb.mxu0 %v10180_v42  ;;  %3668 = vmatpush.msra.mxu3 %v10244_v17 }
 0x8a9   :  { %3626 = vmatpush.msra.mxu1 %v10187_v57  ;;  %3646 = vmatpush.msra.mxu2 %v10175_v62 }
 0x8aa   :  { %3607 = vmatpush.msrb.mxu0 %v10204_v0  ;;  %3669 = vmatpush.msra.mxu3 %v10275_v36 }
 0x8ab   :  { %3627 = vmatpush.msra.mxu1 %v10211_v18  ;;  %3647 = vmatpush.msra.mxu2 %v10199_v60 }
 0x8ac   :  { %3608 = vmatpush.msrb.mxu0 %v10228_v3  ;;  %3670 = vmatpush.msra.mxu3 %v10301_v1 }
 0x8ad   :  { %3628 = vmatpush.msra.mxu1 %v10239_v27  ;;  %3648 = vmatpush.msra.mxu2 %v10223_v46 }
 0x8ae   :  { %3609 = vmatpush.msrb.mxu0 %v10263_v19  ;;  %3671 = vmatpush.msra.mxu3 %v10328_v15 }
 0x8af   :  { %3629 = vmatpush.msra.mxu1 %v10270_v33  ;;  %3649 = vmatpush.msra.mxu2 %v10258_v14 }
 0x8b0   :  { %3610 = vmatpush.msrb.mxu0 %v10287_v22  ;;  %3672 = vmatpush.msra.mxu3 %v14093_v12 }
 0x8b1   :  { %3630 = vmatpush.msra.mxu1 %v10296_v20  ;;  %3650 = vmatpush.msra.mxu2 %v10282_v41 }
 0x8b2   :  { %3611 = vmatpush.msrb.mxu0 %v10315_v51  ;;  %3673 = vmatpush.msra.mxu3 %v14097_v39 }
 0x8b3   :  { %3631 = vmatpush.msra.mxu1 %v10323_v5  ;;  %3651 = vmatpush.msra.mxu2 %v10310_v9 }
 0x8b4   :  { %3612 = vmatpush.msrb.mxu0 %v14090_v55  ;;  %3674 = vmatpush.msra.mxu3 %v14101_v61  ;;  %v10660_v61 = vpop.f32.mrf.mxu2 }
 0x8b5   :  { %3632 = vmatpush.msra.mxu1 %v14091_v54  ;;  %3652 = vmatpush.msra.mxu2 %v14092_v37  ;;  %14115 = vst [vmem:[#allocation66_spill] sm:$0xff] %v10660_v61  ;;  %v14136_v37 = vld [vmem:[#allocation56_spill] sm:$0xff] }
 0x8b6   :  { %3613 = vmatpush.msrb.mxu0 %v14094_v23  ;;  %3675 = vmatpush.msra.mxu3 %v14105_v28 }
 0x8b7   :  { %3633 = vmatpush.msra.mxu1 %v14095_v34  ;;  %3653 = vmatpush.msra.mxu2 %v14096_v6 }
 0x8b8   :  { %3614 = vmatpush.msrb.mxu0 %v14098_v26  ;;  %3676 = vmatpush.msra.mxu3 %v14108_v30 }
 0x8b9   :  { %3634 = vmatpush.msra.mxu1 %v14099_v11  ;;  %3654 = vmatpush.msra.mxu2 %v14100_v4  ;;  %v10656_v11 = vpop.f32.mrf.mxu0  ;;  %v10658_v4 = vpop.f32.mrf.mxu1 }
 0x8ba   :  { %3615 = vmatpush.msrb.mxu0 %v14102_v40  ;;  %14113 = vst [vmem:[#allocation40_spill] sm:$0xff] %v10656_v11  ;;  %v10662_v40 = vpop.f32.mrf.mxu3 }
 0x8bb   :  { %3635 = vmatpush.msra.mxu1 %v14103_v32  ;;  %3655 = vmatpush.msra.mxu2 %v14104_v53  ;;  %14114 = vst [vmem:[#allocation45_spill] sm:$0xff] %v10658_v4 }
 0x8bc   :  { %3616 = vmatpush.msrb.mxu0 %v10458_v25  ;;  %14116 = vst [vmem:[#allocation37_spill] sm:$0xff] %v10662_v40  ;;  %v10668_v28 = vpop.f32.mrf.mxu2 }
 0x8bd   :  { %3636 = vmatpush.msra.mxu1 %v14106_v31  ;;  %3656 = vmatpush.msra.mxu2 %v14107_v13  ;;  %14119 = vst [vmem:[#allocation48_spill] sm:$0xff] %v10668_v28 }
 0x8c1   :  { %v10664_v32 = vpop.f32.mrf.mxu0  ;;  %v10666_v53 = vpop.f32.mrf.mxu1 }
 0x8c2   :  { %14117 = vst [vmem:[#allocation41_spill] sm:$0xff] %v10664_v32  ;;  %v10670_v25 = vpop.f32.mrf.mxu3 }
 0x8c3   :  { %14118 = vst [vmem:[#allocation46_spill] sm:$0xff] %v10666_v53  ;;  %v2095_v53 = vld [vmem:[%s13125_s2] sm:$0xf] }
 0x8c4   :  { %14120 = vst [vmem:[#allocation49_spill] sm:$0xff] %v10670_v25  ;;  %v10676_v30 = vpop.f32.mrf.mxu2  ;;  %v10687_v32 = vperm.slane %v2095_v53, 0  ;;  %v10689_v28 = vperm.slane %v2095_v53, 1  ;;  %v10699_v6 = vperm.slane %v2095_v53, 2  ;;  %v10701_v34 = vperm.slane %v2095_v53, 3 }
 0x8c5   :  { %14123 = vst [vmem:[#allocation15_spill] sm:$0xff] %v10676_v30  ;;  %v14131_v30 = vld [vmem:[#allocation68_spill] sm:$0xff] }
 0x8c6   :  { %14127 = vst [vmem:[#allocation42_spill] sm:$0xff] %v10687_v32 }
 0x8c7   :  { %14128 = vst [vmem:[#allocation43_spill] sm:$0xff] %v10689_v28 }
 0x8c8   :  { %14133 = vst [vmem:[#allocation68_spill] sm:$0xff] %v10699_v6 }
 0x8c9   :  { %v10672_v31 = vpop.f32.mrf.mxu0  ;;  %v10674_v13 = vpop.f32.mrf.mxu1 }
 0x8ca   :  { %14121 = vst [vmem:[#allocation8_spill] sm:$0xff] %v10672_v31  ;;  %v10678_v11 = vpop.f32.mrf.mxu3 }
 0x8cb   :  { %14122 = vst [vmem:[#allocation17_spill] sm:$0xff] %v10674_v13  ;;  %v2147_v13 = vadd.f32 %v14131_v30, %v10687_v32  ;;  %v2234_v30 = vadd.f32 %v14136_v37, %v10701_v34 }
 0x8cc   :  { %14124 = vst [vmem:[#allocation16_spill] sm:$0xff] %v10678_v11  ;;  %v10691_v25 = vpop.f32.mrf.mxu2  ;;  %v14132_v11 = vld [vmem:[#allocation54_spill] sm:$0xff] }
 0x8cd   :  { %14129 = vst [vmem:[#allocation7_spill] sm:$0xff] %v10691_v25  ;;  %v14135_v25 = vld [vmem:[#allocation39_spill] sm:$0xff] }
 0x8ce   :  { %14134 = vst [vmem:[#allocation54_spill] sm:$0xff] %v10701_v34 }
 0x8d1   :  { %v10680_v4 = vpop.f32.mrf.mxu0  ;;  %v10682_v61 = vpop.f32.mrf.mxu1 }
 0x8d2   :  { %14125 = vst [vmem:[#allocation69_spill] sm:$0xff] %v10680_v4  ;;  %v10693_v31 = vpop.f32.mrf.mxu3  ;;  %v2176_v4 = vadd.f32 %v14132_v11, %v10689_v28 }
 0x8d3   :  { %14126 = vst [vmem:[#allocation70_spill] sm:$0xff] %v10682_v61 }
 0x8d4   :  { %14130 = vst [vmem:[#allocation9_spill] sm:$0xff] %v10693_v31  ;;  %v2205_v31 = vadd.f32 %v14135_v25, %v10699_v6 }
 0x912   :  { %v3278_v40 = vpop.f32.mrf.mxu0  ;;  %v3298_v61 = vpop.f32.mrf.mxu1 }
 0x913   :  { %v3341_v26 = vadd.f32 %v3278_v40, %v2147_v13  ;;  %v3342_v39 = vadd.f32 %v3298_v61, %v2176_v4 }
 0x915   :  { %v6699_v23 = vmul.f32 -1.442695, %v3341_v26  ;;  %v6700_v12 = vmul.f32 -1.442695, %v3342_v39 }
 0x917   :  { %7042 = vpow2.f32 %v6699_v23 }
 0x918   :  { %7044 = vpow2.f32 %v6700_v12 }
 0x919   :  { %v3318_v32 = vpop.f32.mrf.mxu2  ;;  %v3338_v11 = vpop.f32.mrf.mxu3 }
 0x91a   :  { %v3343_v28 = vadd.f32 %v3318_v32, %v2205_v31  ;;  %v3344_v54 = vadd.f32 %v3338_v11, %v2234_v30 }
 0x91c   :  { %v6701_v40 = vmul.f32 -1.442695, %v3343_v28  ;;  %v6702_v4 = vmul.f32 -1.442695, %v3344_v54 }
 0x91d   :  { %v7043_v61 = vpop.eup %7042 }
 0x91e   :  { %v7045_v13 = vpop.eup %7044  ;;  %v3357_v53 = vadd.f32 1.0, %v7043_v61  ;;  %7046 = vpow2.f32 %v6701_v40 }
 0x91f   :  { %v3358_v26 = vadd.f32 1.0, %v7045_v13  ;;  %7048 = vpow2.f32 %v6702_v4 }
 0x920   :  { %7050 = vrcp.f32 %v3357_v53  ;;  %vm3366_vm15 = vweird.f32 %v3357_v53  ;;  %v3370_v9 = vand.u32 2147483647, %v3357_v53  ;;  %v3372_v5 = vand.u32 2147483648, %v3357_v53 }
 0x921   :  { %7052 = vrcp.f32 %v3358_v26  ;;  %vm3381_vm13 = vweird.f32 %v3358_v26  ;;  %v3385_v13 = vand.u32 2147483647, %v3358_v26  ;;  %v3387_v55 = vand.u32 2147483648, %v3358_v26 }
 0x922   :  { %vm3371_vm8 = vcmp.eq.f32.partialorder %v3370_v9, 8.507059e+37 }
 0x923   :  { %vm3386_vm5 = vcmp.eq.f32.partialorder %v3385_v13, 8.507059e+37 }
 0x924   :  { %v7047_v23 = vpop.eup %7046 }
 0x925   :  { %v7049_v25 = vpop.eup %7048  ;;  %v3359_v39 = vadd.f32 1.0, %v7047_v23 }
 0x926   :  { %v7051_v6 = vpop.eup %7050  ;;  %v3360_v37 = vadd.f32 1.0, %v7049_v25 }
 0x927   :  { %v7053_v12 = vpop.eup %7052  ;;  %v3362_v34 = vmul.f32 %v7051_v6, %v3357_v53  ;;  %7054 = vrcp.f32 %v3359_v39  ;;  %vm3367_vm14 = vweird.f32 %v7051_v6  ;;  %vm3396_vm6 = vweird.f32 %v3359_v39 }
 0x928   :  { %v3377_v32 = vmul.f32 %v7053_v12, %v3358_v26  ;;  %7056 = vrcp.f32 %v3360_v37  ;;  %vm3382_vm12 = vweird.f32 %v7053_v12  ;;  %vm3368_vm4 = vmor %vm3366_vm15, %vm3367_vm14  ;;  %v3373_v26 = vor.u32 1.1754944e-38, %v3372_v5 }
 0x929   :  { %v3363_v31 = vsub.f32 1.0, %v3362_v34  ;;  %vm3383_vm2 = vmor %vm3381_vm13, %vm3382_vm12  ;;  %v3402_v34 = vand.u32 2147483648, %v3359_v39  ;;  %vm3411_vm11 = vweird.f32 %v3360_v37  ;;  %v3415_v5 = vand.u32 2147483647, %v3360_v37 }
 0x92a   :  { %v3378_v54 = vsub.f32 1.0, %v3377_v32 }
 0x92b   :  { %v3364_v28 = vmul.f32 %v7051_v6, %v3363_v31  ;;  %vm3416_vm13 = vcmp.eq.f32.partialorder %v3415_v5, 8.507059e+37 }
 0x92c   :  { %v3379_v30 = vmul.f32 %v7053_v12, %v3378_v54  ;;  %v3400_v54 = vand.u32 2147483647, %v3359_v39 }
 0x92d   :  { %v7055_v11 = vpop.eup %7054  ;;  %v3365_v23 = vadd.f32 %v7051_v6, %v3364_v28 }
 0x92e   :  { %v3380_v40 = vadd.f32 %v7053_v12, %v3379_v30  ;;  %v3392_v4 = vmul.f32 %v7055_v11, %v3359_v39  ;;  %v7057_v61 = vpop.eup %7056  ;;  %vm3397_vm3 = vweird.f32 %v7055_v11  ;;  %v3388_v30 = vor.u32 1.1754944e-38, %v3387_v55 }
 0x92f   :  { %v3407_v15 = vmul.f32 %v7057_v61, %v3360_v37  ;;  %v3369_v1 = vsel %vm3368_vm4, %v7051_v6, %v3365_v23  ;;  %vm3398_vm7 = vmor %vm3396_vm6, %vm3397_vm3  ;;  %vm3401_vm9 = vcmp.eq.f32.partialorder %v3400_v54, 8.507059e+37  ;;  %vm3412_vm10 = vweird.f32 %v7057_v61  ;;  %v14172_v23 = vld [vmem:[#allocation68_spill] sm:$0xff]  ;;  %v14175_v54 = vld [vmem:[#allocation58_spill] sm:$0xff] }
 0x930   :  { %v3393_v25 = vsub.f32 1.0, %v3392_v4  ;;  %v3384_v32 = vsel %vm3383_vm2, %v7053_v12, %v3380_v40  ;;  %v3403_v4 = vor.u32 1.1754944e-38, %v3402_v34  ;;  %v3374_v53 = vsel %vm3371_vm8, %v3373_v26, %v3369_v1  ;;  %v14137_v40 = vld [vmem:[#allocation44_spill] sm:$0xff]  ;;  %vm3413_vm12 = vmor %vm3411_vm11, %vm3412_vm10  ;;  %v14173_v34 = vld [vmem:[#allocation47_spill] sm:$0xff] }
 0x931   :  { %v3408_v51 = vsub.f32 1.0, %v3407_v15  ;;  %v3389_v28 = vsel %vm3386_vm5, %v3388_v30, %v3384_v32  ;;  %v3417_v55 = vand.u32 2147483648, %v3360_v37  ;;  %v2208_v32 = vadd.f32 %v14173_v34, %v14172_v23 }
 0x932   :  { %v3394_v31 = vmul.f32 %v7055_v11, %v3393_v25  ;;  %v3421_v25 = vmul.f32 %v3389_v28, %v14137_v40 }
 0x933   :  { %v3409_v12 = vmul.f32 %v7057_v61, %v3408_v51  ;;  %v3418_v9 = vor.u32 1.1754944e-38, %v3417_v55 }
 0x934   :  { %v3395_v41 = vadd.f32 %v7055_v11, %v3394_v31  ;;  %v14174_v31 = vld [vmem:[#allocation54_spill] sm:$0xff] }
 0x935   :  { %v3410_v15 = vadd.f32 %v7057_v61, %v3409_v12  ;;  %v2237_v30 = vadd.f32 %v14175_v54, %v14174_v31 }
 0x936   :  { %v3399_v20 = vsel %vm3398_vm7, %v7055_v11, %v3395_v41 }
 0x937   :  { %v3404_v22 = vsel %vm3401_vm9, %v3403_v4, %v3399_v20  ;;  %v3414_v6 = vsel %vm3413_vm12, %v7057_v61, %v3410_v15 }
 0x938   :  { %v3422_v36 = vmul.f32 %v3404_v22, %v3374_v53  ;;  %v3419_v1 = vsel %vm3416_vm13, %v3418_v9, %v3414_v6  ;;  %v14169_v22 = vld [vmem:[#allocation50_spill] sm:$0xff] }
 0x93a   :  { %v10708_v14 = vadd.f32 %v3422_v36, %v3421_v25  ;;  %v14168_v36 = vld [vmem:[#allocation42_spill] sm:$0xff] }
 0x93b   :  { %v2150_v51 = vadd.f32 %v14169_v22, %v14168_v36 }
 0x93c   :  { %7058 = vtanh.f32 %v10708_v14 }
 0x942   :  { %v7059_v41 = vpop.eup %7058 }
 0x943   :  { %v3425_v20 = vmul.f32 %v7059_v41, %v3419_v1 }
 0x945   :  { %3447 = vmatmul.f32.vlgmr.msra.gmra.mxu0 %v3425_v20  ;;  %3467 = vmatmul.f32.vlgmr.msrb.gmra.mxu1 %v3425_v20 }
 0x946   :  { %3487 = vmatmul.f32.vlgmr.msrb.gmra.mxu2 %v3425_v20  ;;  %3507 = vmatmul.f32.vlgmr.msrb.gmra.mxu3 %v3425_v20 }
 0x947   :  { %3771 = vmatpush.msra.mxu0 %v14109_v58  ;;  %3791 = vmatpush.msrb.mxu1 %v14110_v52  ;;  %v14171_v58 = vld [vmem:[#allocation57_spill] sm:$0xff] }
 0x948   :  { %3811 = vmatpush.msrb.mxu2 %v14111_v16  ;;  %3831 = vmatpush.msrb.mxu3 %v14112_v56  ;;  %v14170_v56 = vld [vmem:[#allocation43_spill] sm:$0xff] }
 0x949   :  { %3772 = vmatpush.msra.mxu0 %v10073_v44  ;;  %3792 = vmatpush.msrb.mxu1 %v10080_v21  ;;  %v14139_v44 = vld [vmem:[#allocation20_spill] sm:$0xff]  ;;  %v14140_v21 = vld [vmem:[#allocation22_spill] sm:$0xff]  ;;  %v2179_v52 = vadd.f32 %v14171_v58, %v14170_v56 }
 0x94a   :  { %3812 = vmatpush.msrb.mxu2 %v10068_v47  ;;  %3832 = vmatpush.msrb.mxu3 %v10085_v49  ;;  %v14138_v47 = vld [vmem:[#allocation19_spill] sm:$0xff]  ;;  %v14141_v49 = vld [vmem:[#allocation21_spill] sm:$0xff] }
 0x94b   :  { %3773 = vmatpush.msra.mxu0 %v10097_v38  ;;  %3793 = vmatpush.msrb.mxu1 %v10104_v10  ;;  %v14143_v38 = vld [vmem:[#allocation23_spill] sm:$0xff]  ;;  %v14144_v10 = vld [vmem:[#allocation25_spill] sm:$0xff] }
 0x94c   :  { %3813 = vmatpush.msrb.mxu2 %v10092_v24  ;;  %3833 = vmatpush.msrb.mxu3 %v10109_v48  ;;  %v14142_v24 = vld [vmem:[#allocation10_spill] sm:$0xff]  ;;  %v14145_v48 = vld [vmem:[#allocation24_spill] sm:$0xff] }
 0x94d   :  { %3774 = vmatpush.msra.mxu0 %v10121_v59  ;;  %3794 = vmatpush.msrb.mxu1 %v10128_v63  ;;  %v14147_v59 = vld [vmem:[#allocation26_spill] sm:$0xff]  ;;  %v14148_v63 = vld [vmem:[#allocation28_spill] sm:$0xff] }
 0x94e   :  { %3814 = vmatpush.msrb.mxu2 %v10116_v50  ;;  %3834 = vmatpush.msrb.mxu3 %v10133_v29  ;;  %v14146_v50 = vld [vmem:[#allocation11_spill] sm:$0xff] }
 0x94f   :  { %3775 = vmatpush.msra.mxu0 %v10156_v35  ;;  %3795 = vmatpush.msrb.mxu1 %v10163_v2  ;;  %v14149_v29 = vld [vmem:[#allocation27_spill] sm:$0xff]  ;;  %v14151_v35 = vld [vmem:[#allocation29_spill] sm:$0xff] }
 0x950   :  { %3815 = vmatpush.msrb.mxu2 %v10151_v7  ;;  %3835 = vmatpush.msrb.mxu3 %v10168_v45  ;;  %v14150_v7 = vld [vmem:[#allocation12_spill] sm:$0xff]  ;;  %v14152_v2 = vld [vmem:[#allocation31_spill] sm:$0xff]  ;;  %v14153_v45 = vld [vmem:[#allocation30_spill] sm:$0xff] }
 0x951   :  { %3776 = vmatpush.msra.mxu0 %v10180_v42  ;;  %3796 = vmatpush.msrb.mxu1 %v10187_v57  ;;  %v14155_v42 = vld [vmem:[#allocation32_spill] sm:$0xff]  ;;  %v14156_v57 = vld [vmem:[#allocation33_spill] sm:$0xff] }
 0x952   :  { %3816 = vmatpush.msrb.mxu2 %v10175_v62  ;;  %3836 = vmatpush.msrb.mxu3 %v10192_v43  ;;  %v14154_v62 = vld [vmem:[#allocation13_spill] sm:$0xff]  ;;  %v14157_v43 = vld [vmem:[#allocation34_spill] sm:$0xff] }
 0x953   :  { %3777 = vmatpush.msra.mxu0 %v10204_v0  ;;  %3797 = vmatpush.msrb.mxu1 %v10211_v18  ;;  %v14159_v0 = vld [vmem:[#allocation35_spill] sm:$0xff]  ;;  %v14160_v18 = vld [vmem:[#allocation36_spill] sm:$0xff] }
 0x954   :  { %3817 = vmatpush.msrb.mxu2 %v10199_v60  ;;  %3837 = vmatpush.msrb.mxu3 %v10216_v8  ;;  %v14158_v60 = vld [vmem:[#allocation14_spill] sm:$0xff] }
 0x955   :  { %3778 = vmatpush.msra.mxu0 %v10228_v3  ;;  %3798 = vmatpush.msrb.mxu1 %v10239_v27  ;;  %v14161_v8 = vld [vmem:[#allocation62_spill] sm:$0xff] }
 0x956   :  { %3818 = vmatpush.msrb.mxu2 %v10223_v46  ;;  %3838 = vmatpush.msrb.mxu3 %v10244_v17  ;;  %v14162_v46 = vld [vmem:[#allocation55_spill] sm:$0xff]  ;;  %v14163_v3 = vld [vmem:[#allocation6_spill] sm:$0xff] }
 0x957   :  { %3779 = vmatpush.msra.mxu0 %v10263_v19  ;;  %3799 = vmatpush.msrb.mxu1 %v10270_v33  ;;  %v14164_v27 = vld [vmem:[#allocation38_spill] sm:$0xff]  ;;  %v14165_v17 = vld [vmem:[#allocation67_spill] sm:$0xff]  ;;  %v14166_v19 = vld [vmem:[#allocation65_spill] sm:$0xff] }
 0x958   :  { %3819 = vmatpush.msrb.mxu2 %v14138_v47  ;;  %3839 = vmatpush.msrb.mxu3 %v14139_v44  ;;  %v14167_v33 = vld [vmem:[#allocation53_spill] sm:$0xff] }
 0x959   :  { %3780 = vmatpush.msra.mxu0 %v14140_v21  ;;  %3800 = vmatpush.msrb.mxu1 %v14141_v49 }
 0x95a   :  { %3820 = vmatpush.msrb.mxu2 %v14142_v24  ;;  %3840 = vmatpush.msrb.mxu3 %v14143_v38 }
 0x95b   :  { %3781 = vmatpush.msra.mxu0 %v14144_v10  ;;  %3801 = vmatpush.msrb.mxu1 %v14145_v48 }
 0x95c   :  { %3821 = vmatpush.msrb.mxu2 %v14146_v50  ;;  %3841 = vmatpush.msrb.mxu3 %v14147_v59 }
 0x95d   :  { %3782 = vmatpush.msra.mxu0 %v14148_v63  ;;  %3802 = vmatpush.msrb.mxu1 %v14149_v29 }
 0x95e   :  { %3822 = vmatpush.msrb.mxu2 %v14150_v7  ;;  %3842 = vmatpush.msrb.mxu3 %v14151_v35 }
 0x95f   :  { %3783 = vmatpush.msra.mxu0 %v14152_v2  ;;  %3803 = vmatpush.msrb.mxu1 %v14153_v45 }
 0x960   :  { %3823 = vmatpush.msrb.mxu2 %v14154_v62  ;;  %3843 = vmatpush.msrb.mxu3 %v14155_v42 }
 0x961   :  { %3784 = vmatpush.msra.mxu0 %v14156_v57  ;;  %3804 = vmatpush.msrb.mxu1 %v14157_v43 }
 0x962   :  { %3824 = vmatpush.msrb.mxu2 %v14158_v60  ;;  %3844 = vmatpush.msrb.mxu3 %v14159_v0 }
 0x963   :  { %3785 = vmatpush.msra.mxu0 %v14160_v18  ;;  %3805 = vmatpush.msrb.mxu1 %v14161_v8 }
 0x964   :  { %3825 = vmatpush.msrb.mxu2 %v14162_v46  ;;  %3845 = vmatpush.msrb.mxu3 %v14163_v3 }
 0x965   :  { %3786 = vmatpush.msra.mxu0 %v14164_v27  ;;  %3806 = vmatpush.msrb.mxu1 %v14165_v17 }
 0x966   :  { %3826 = vmatpush.msrb.mxu2 %v14166_v19  ;;  %3846 = vmatpush.msrb.mxu3 %v14167_v33 }
 0x9c2   :  { %v3448_v16 = vpop.f32.mrf.mxu0  ;;  %v3468_v39 = vpop.f32.mrf.mxu1 }
 0x9c3   :  { %v3511_v37 = vadd.f32 %v3448_v16, %v2150_v51  ;;  %v3512_v11 = vadd.f32 %v3468_v39, %v2179_v52 }
 0x9c5   :  { %v6703_v61 = vmul.f32 -1.442695, %v3511_v37  ;;  %v6704_v13 = vmul.f32 -1.442695, %v3512_v11 }
 0x9c7   :  { %7060 = vpow2.f32 %v6703_v61 }
 0x9c8   :  { %7062 = vpow2.f32 %v6704_v13 }
 0x9c9   :  { %v3488_v26 = vpop.f32.mrf.mxu2  ;;  %v3508_v28 = vpop.f32.mrf.mxu3 }
 0x9ca   :  { %v3513_v4 = vadd.f32 %v3488_v26, %v2208_v32  ;;  %v3514_v53 = vadd.f32 %v3508_v28, %v2237_v30  ;;  %v14177_v28 = vld [vmem:[#allocation60_spill] sm:$0xff] }
 0x9cc   :  { %v6705_v12 = vmul.f32 -1.442695, %v3513_v4  ;;  %v6706_v40 = vmul.f32 -1.442695, %v3514_v53  ;;  %v2182_v4 = vadd.f32 %v14177_v28, %v14170_v56 }
 0x9cd   :  { %v7061_v25 = vpop.eup %7060 }
 0x9ce   :  { %v7063_v15 = vpop.eup %7062  ;;  %v3527_v55 = vadd.f32 1.0, %v7061_v25  ;;  %7064 = vpow2.f32 %v6705_v12 }
 0x9cf   :  { %v3528_v5 = vadd.f32 1.0, %v7063_v15  ;;  %7066 = vpow2.f32 %v6706_v40 }
 0x9d0   :  { %7068 = vrcp.f32 %v3527_v55  ;;  %vm3536_vm3 = vweird.f32 %v3527_v55  ;;  %v3540_v62 = vand.u32 2147483647, %v3527_v55  ;;  %v3542_v42 = vand.u32 2147483648, %v3527_v55 }
 0x9d1   :  { %7070 = vrcp.f32 %v3528_v5  ;;  %vm3551_vm15 = vweird.f32 %v3528_v5  ;;  %v3555_v29 = vand.u32 2147483647, %v3528_v5  ;;  %v3557_v7 = vand.u32 2147483648, %v3528_v5 }
 0x9d2   :  { %v3543_v27 = vor.u32 1.1754944e-38, %v3542_v42  ;;  %vm3541_vm10 = vcmp.eq.f32.partialorder %v3540_v62, 8.507059e+37 }
 0x9d3   :  { %v3558_v18 = vor.u32 1.1754944e-38, %v3557_v7  ;;  %vm3556_vm7 = vcmp.eq.f32.partialorder %v3555_v29, 8.507059e+37 }
 0x9d4   :  { %v7065_v6 = vpop.eup %7064 }
 0x9d5   :  { %v7067_v9 = vpop.eup %7066  ;;  %v3529_v41 = vadd.f32 1.0, %v7065_v6 }
 0x9d6   :  { %v7069_v1 = vpop.eup %7068  ;;  %v3530_v20 = vadd.f32 1.0, %v7067_v9  ;;  %v14179_v9 = vld [vmem:[#allocation61_spill] sm:$0xff] }
 0x9d7   :  { %v7071_v47 = vpop.eup %7070  ;;  %v3532_v44 = vmul.f32 %v7069_v1, %v3527_v55  ;;  %7072 = vrcp.f32 %v3529_v41  ;;  %vm3537_vm2 = vweird.f32 %v7069_v1  ;;  %v3572_v57 = vand.u32 2147483648, %v3529_v41 }
 0x9d8   :  { %v3547_v21 = vmul.f32 %v7071_v47, %v3528_v5  ;;  %7074 = vrcp.f32 %v3530_v20  ;;  %vm3552_vm14 = vweird.f32 %v7071_v47  ;;  %v3570_v0 = vand.u32 2147483647, %v3529_v41  ;;  %vm3538_vm6 = vmor %vm3536_vm3, %vm3537_vm2  ;;  %v14178_v5 = vld [vmem:[#allocation51_spill] sm:$0xff] }
 0x9d9   :  { %v3533_v49 = vsub.f32 1.0, %v3532_v44  ;;  %vm3553_vm4 = vmor %vm3551_vm15, %vm3552_vm14  ;;  %vm3566_vm8 = vweird.f32 %v3529_v41  ;;  %v3573_v19 = vor.u32 1.1754944e-38, %v3572_v57  ;;  %v3587_v11 = vand.u32 2147483648, %v3530_v20 }
 0x9da   :  { %v3548_v24 = vsub.f32 1.0, %v3547_v21  ;;  %vm3571_vm11 = vcmp.eq.f32.partialorder %v3570_v0, 8.507059e+37  ;;  %vm3581_vm13 = vweird.f32 %v3530_v20  ;;  %v3585_v61 = vand.u32 2147483647, %v3530_v20 }
 0x9db   :  { %v3534_v38 = vmul.f32 %v7069_v1, %v3533_v49  ;;  %v3588_v34 = vor.u32 1.1754944e-38, %v3587_v11  ;;  %v2211_v6 = vadd.f32 %v14178_v5, %v14172_v23 }
 0x9dc   :  { %v3549_v10 = vmul.f32 %v7071_v47, %v3548_v24  ;;  %vm3586_vm15 = vcmp.eq.f32.partialorder %v3585_v61, 8.507059e+37 }
 0x9dd   :  { %v7073_v48 = vpop.eup %7072  ;;  %v3535_v35 = vadd.f32 %v7069_v1, %v3534_v38 }
 0x9de   :  { %v3550_v50 = vadd.f32 %v7071_v47, %v3549_v10  ;;  %v3562_v59 = vmul.f32 %v7073_v48, %v3529_v41  ;;  %v7075_v63 = vpop.eup %7074  ;;  %vm3567_vm5 = vweird.f32 %v7073_v48  ;;  %v2240_v41 = vadd.f32 %v14179_v9, %v14174_v31 }
 0x9df   :  { %v3577_v45 = vmul.f32 %v7075_v63, %v3530_v20  ;;  %v3539_v46 = vsel %vm3538_vm6, %v7069_v1, %v3535_v35  ;;  %vm3568_vm9 = vmor %vm3566_vm8, %vm3567_vm5  ;;  %vm3582_vm12 = vweird.f32 %v7075_v63 }
 0x9e0   :  { %v3563_v2 = vsub.f32 1.0, %v3562_v59  ;;  %v3554_v43 = vsel %vm3553_vm4, %v7071_v47, %v3550_v50  ;;  %v3544_v22 = vsel %vm3541_vm10, %v3543_v27, %v3539_v46  ;;  %vm3583_vm14 = vmor %vm3581_vm13, %vm3582_vm12 }
 0x9e1   :  { %v3578_v8 = vsub.f32 1.0, %v3577_v45  ;;  %v3559_v17 = vsel %vm3556_vm7, %v3558_v18, %v3554_v43 }
 0x9e2   :  { %v3564_v60 = vmul.f32 %v7073_v48, %v3563_v2  ;;  %v3591_v52 = vmul.f32 %v3559_v17, %v10708_v14  ;;  %v14176_v14 = vld [vmem:[#allocation59_spill] sm:$0xff] }
 0x9e3   :  { %v3579_v58 = vmul.f32 %v7075_v63, %v3578_v8  ;;  %v2153_v26 = vadd.f32 %v14176_v14, %v14168_v36 }
 0x9e4   :  { %v3565_v3 = vadd.f32 %v7073_v48, %v3564_v60 }
 0x9e5   :  { %v3580_v37 = vadd.f32 %v7075_v63, %v3579_v58 }
 0x9e6   :  { %v3569_v33 = vsel %vm3568_vm9, %v7073_v48, %v3565_v3 }
 0x9e7   :  { %v3574_v51 = vsel %vm3571_vm11, %v3573_v19, %v3569_v33  ;;  %v3584_v13 = vsel %vm3583_vm14, %v7075_v63, %v3580_v37 }
 0x9e8   :  { %v3592_v16 = vmul.f32 %v3574_v51, %v3544_v22  ;;  %v3589_v54 = vsel %vm3586_vm15, %v3588_v34, %v3584_v13 }
 0x9ea   :  { %v10784_v39 = vadd.f32 %v3592_v16, %v3591_v52 }
 0x9ec   :  { %7076 = vtanh.f32 %v10784_v39 }
 0x9f2   :  { %v7077_v32 = vpop.eup %7076 }
 0x9f3   :  { %v3595_v30 = vmul.f32 %v7077_v32, %v3589_v54 }
 0x9f5   :  { %3617 = vmatmul.f32.vlgmr.msrb.gmra.mxu0 %v3595_v30  ;;  %3637 = vmatmul.f32.vlgmr.msra.gmra.mxu1 %v3595_v30 }
 0x9f6   :  { %3657 = vmatmul.f32.vlgmr.msra.gmra.mxu2 %v3595_v30  ;;  %3677 = vmatmul.f32.vlgmr.msra.gmra.mxu3 %v3595_v30 }
 0xa72   :  { %v3618_v53 = vpop.f32.mrf.mxu0  ;;  %v3638_v12 = vpop.f32.mrf.mxu1 }
 0xa73   :  { %v3681_v40 = vadd.f32 %v3618_v53, %v2153_v26  ;;  %v3682_v25 = vadd.f32 %v3638_v12, %v2182_v4 }
 0xa75   :  { %v6707_v15 = vmul.f32 -1.442695, %v3681_v40  ;;  %v6708_v55 = vmul.f32 -1.442695, %v3682_v25 }
 0xa77   :  { %7078 = vpow2.f32 %v6707_v15 }
 0xa78   :  { %7080 = vpow2.f32 %v6708_v55 }
 0xa79   :  { %v3658_v1 = vpop.f32.mrf.mxu2  ;;  %v3678_v20 = vpop.f32.mrf.mxu3 }
 0xa7a   :  { %v3683_v47 = vadd.f32 %v3658_v1, %v2211_v6  ;;  %v3684_v44 = vadd.f32 %v3678_v20, %v2240_v41  ;;  %v3953_v1 = vld [vmem:[%s13124_s1 + $0x60] sm:$0xf]  ;;  %v3954_v20 = vld [vmem:[%s13124_s1 + $0x68] sm:$0xf] }
 0xa7b   :  { %6719 = vmatpush.msk.msrb.mxu0 %vm67_vm0, %v3953_v1  ;;  %6724 = vmatpush.msk.msra.mxu1 %vm67_vm0, %v3954_v20  ;;  %v11057_v20 = vld [vmem:[%s13126_s3 + $0x118] sm:$0xff] }
 0xa7c   :  { %v6709_v21 = vmul.f32 -1.442695, %v3683_v47  ;;  %v6710_v49 = vmul.f32 -1.442695, %v3684_v44  ;;  %v3956_v47 = vld [vmem:[%s13124_s1 + $0x78] sm:$0xf] }
 0xa7d   :  { %v7079_v24 = vpop.eup %7078  ;;  %6734 = vmatpush.msk.msra.mxu3 %vm67_vm0, %v3956_v47  ;;  %v3951_v44 = vld [vmem:[%s13124_s1 + $0x50] sm:$0xff] }
 0xa7e   :  { %v7081_v38 = vpop.eup %7080  ;;  %v3697_v10 = vadd.f32 1.0, %v7079_v24  ;;  %7082 = vpow2.f32 %v6709_v21  ;;  %v3949_v21 = vld [vmem:[%s13124_s1 + $0x40] sm:$0xff]  ;;  %v3952_v24 = vld [vmem:[%s13124_s1 + $0x58] sm:$0xff] }
 0xa7f   :  { %v3698_v48 = vadd.f32 1.0, %v7081_v38  ;;  %7084 = vpow2.f32 %v6710_v49  ;;  %v3950_v49 = vld [vmem:[%s13124_s1 + $0x48] sm:$0xff]  ;;  %4004 = vmatpush.msrb.mxu0 %v3949_v21  ;;  %4091 = vmatpush.msra.mxu3 %v3952_v24  ;;  %v3947_v38 = vld [vmem:[%s13124_s1 + $0x30] sm:$0xff] }
 0xa80   :  { %7086 = vrcp.f32 %v3697_v10  ;;  %vm3706_vm5 = vweird.f32 %v3697_v10  ;;  %v3710_v33 = vand.u32 2147483647, %v3697_v10  ;;  %v3712_v22 = vand.u32 2147483648, %v3697_v10  ;;  %4033 = vmatpush.msra.mxu1 %v3950_v49  ;;  %v6717_v21 = vld [vmem:[%s13123_s0 + $0xb0] sm:$0xff] }
 0xa81   :  { %7088 = vrcp.f32 %v3698_v48  ;;  %vm3721_vm3 = vweird.f32 %v3698_v48  ;;  %v3725_v46 = vand.u32 2147483647, %v3698_v48  ;;  %v3727_v3 = vand.u32 2147483648, %v3698_v48 }
 0xa82   :  { %v3713_v34 = vor.u32 1.1754944e-38, %v3712_v22  ;;  %vm3711_vm12 = vcmp.eq.f32.partialorder %v3710_v33, 8.507059e+37  ;;  %v10946_v33 = vld [vmem:[%s13126_s3 + $0x198] sm:$0xff]  ;;  %v6716_v22 = vld [vmem:[%s13123_s0 + $0xa8] sm:$0xff] }
 0xa83   :  { %v3728_v37 = vor.u32 1.1754944e-38, %v3727_v3  ;;  %vm3726_vm9 = vcmp.eq.f32.partialorder %v3725_v46, 8.507059e+37  ;;  %v10917_v46 = vld [vmem:[%s13126_s3 + $0x1a8] sm:$0xff]  ;;  %v10922_v3 = vld [vmem:[%s13126_s3 + $0x1b8] sm:$0xff] }
 0xa84   :  { %v7083_v50 = vpop.eup %7082 }
 0xa85   :  { %v7085_v59 = vpop.eup %7084  ;;  %v3699_v63 = vadd.f32 1.0, %v7083_v50  ;;  %v3948_v50 = vld [vmem:[%s13124_s1 + $0x38] sm:$0xff] }
 0xa86   :  { %v7087_v29 = vpop.eup %7086  ;;  %v3700_v7 = vadd.f32 1.0, %v7085_v59  ;;  %4092 = vmatpush.msra.mxu3 %v3948_v50  ;;  %v3943_v59 = vld [vmem:[%s13124_s1 + $0x10] sm:$0xff]  ;;  %v11083_v50 = vld [vmem:[%s13126_s3 + $0xe8] sm:$0xff] }
 0xa87   :  { %v7089_v35 = vpop.eup %7088  ;;  %v3702_v2 = vmul.f32 %v7087_v29, %v3697_v10  ;;  %7090 = vrcp.f32 %v3699_v63  ;;  %vm3707_vm4 = vweird.f32 %v7087_v29  ;;  %v3742_v51 = vand.u32 2147483648, %v3699_v63  ;;  %v3945_v10 = vld [vmem:[%s13124_s1 + $0x20] sm:$0xff] }
 0xa88   :  { %v3717_v45 = vmul.f32 %v7089_v35, %v3698_v48  ;;  %7092 = vrcp.f32 %v3700_v7  ;;  %vm3722_vm2 = vweird.f32 %v7089_v35  ;;  %v3740_v16 = vand.u32 2147483647, %v3699_v63  ;;  %vm3708_vm8 = vmor %vm3706_vm5, %vm3707_vm4  ;;  %v3946_v48 = vld [vmem:[%s13124_s1 + $0x28] sm:$0xff]  ;;  %4005 = vmatpush.msrb.mxu0 %v3945_v10  ;;  %v11076_v10 = vld [vmem:[%s13126_s3 + $0xe0] sm:$0xff] }
 0xa89   :  { %v3703_v62 = vsub.f32 1.0, %v3702_v2  ;;  %vm3723_vm6 = vmor %vm3721_vm3, %vm3722_vm2  ;;  %vm3736_vm10 = vweird.f32 %v3699_v63  ;;  %v3743_v54 = vor.u32 1.1754944e-38, %v3742_v51  ;;  %v3757_v25 = vand.u32 2147483648, %v3700_v7  ;;  %4034 = vmatpush.msra.mxu1 %v3946_v48  ;;  %v10857_v2 = vld [vmem:[%s13126_s3 + $0x1f0] sm:$0xff] }
 0xa8a   :  { %v3718_v42 = vsub.f32 1.0, %v3717_v45  ;;  %vm3741_vm13 = vcmp.eq.f32.partialorder %v3740_v16, 8.507059e+37  ;;  %vm3751_vm15 = vweird.f32 %v3700_v7  ;;  %v3755_v15 = vand.u32 2147483647, %v3700_v7  ;;  %v10862_v45 = vld [vmem:[%s13126_s3 + $0x1e0] sm:$0xff]  ;;  %v14182_v51 = vld [vmem:[#allocation63_spill] sm:$0xff] }
 0xa8b   :  { %v3704_v57 = vmul.f32 %v7087_v29, %v3703_v62  ;;  %v3758_v5 = vor.u32 1.1754944e-38, %v3757_v25  ;;  %14180 = vst [vmem:[#allocation39_spill] sm:$0xff] %v10862_v45  ;;  %v10869_v62 = vld [vmem:[%s13126_s3 + $0x1e8] sm:$0xff] }
 0xa8c   :  { %v3719_v43 = vmul.f32 %v7089_v35, %v3718_v42  ;;  %vm3756_vm3 = vcmp.eq.f32.partialorder %v3755_v15, 8.507059e+37  ;;  %14181 = vst [vmem:[#allocation56_spill] sm:$0xff] %v10869_v62  ;;  %v10874_v42 = vld [vmem:[%s13126_s3 + $0x1f8] sm:$0xff]  ;;  %v11024_v25 = vld [vmem:[%s13126_s3 + $0x128] sm:$0xff] }
 0xa8d   :  { %v7091_v60 = vpop.eup %7090  ;;  %v3705_v27 = vadd.f32 %v7087_v29, %v3704_v57  ;;  %v10881_v57 = vld [vmem:[%s13126_s3 + $0x1d0] sm:$0xff]  ;;  %v11029_v15 = vld [vmem:[%s13126_s3 + $0x138] sm:$0xff] }
 0xa8e   :  { %v3720_v0 = vadd.f32 %v7089_v35, %v3719_v43  ;;  %v3732_v18 = vmul.f32 %v7091_v60, %v3699_v63  ;;  %v7093_v8 = vpop.eup %7092  ;;  %vm3737_vm7 = vweird.f32 %v7091_v60  ;;  %v3941_v63 = vld [vmem:[%s13124_s1] sm:$0xff] }
 0xa8f   :  { %v3747_v19 = vmul.f32 %v7093_v8, %v3700_v7  ;;  %v3709_v61 = vsel %vm3708_vm8, %v7087_v29, %v3705_v27  ;;  %vm3738_vm11 = vmor %vm3736_vm10, %vm3737_vm7  ;;  %vm3752_vm14 = vweird.f32 %v7093_v8  ;;  %v3942_v29 = vld [vmem:[%s13124_s1 + $0x8] sm:$0xff]  ;;  %4006 = vmatpush.msrb.mxu0 %v3941_v63  ;;  %v3944_v7 = vld [vmem:[%s13124_s1 + $0x18] sm:$0xff] }
 0xa90   :  { %v3733_v17 = vsub.f32 1.0, %v3732_v18  ;;  %v3724_v58 = vsel %vm3723_vm6, %v7089_v35, %v3720_v0  ;;  %v3714_v14 = vsel %vm3711_vm12, %v3713_v34, %v3709_v61  ;;  %vm3753_vm2 = vmor %vm3751_vm15, %vm3752_vm14  ;;  %v6715_v35 = vld [vmem:[%s13123_s0 + $0xa0] sm:$0xff]  ;;  %4035 = vmatpush.msra.mxu1 %v3942_v29  ;;  %4093 = vmatpush.msra.mxu3 %v3944_v7  ;;  %v10898_v0 = vld [vmem:[%s13126_s3 + $0x1d8] sm:$0xff] }
 0xa91   :  { %v3748_v11 = vsub.f32 1.0, %v3747_v19  ;;  %v3729_v32 = vsel %vm3726_vm9, %v3728_v37, %v3724_v58  ;;  %v10886_v43 = vld [vmem:[%s13126_s3 + $0x1c0] sm:$0xff]  ;;  %v10905_v18 = vld [vmem:[%s13126_s3 + $0x1b0] sm:$0xff]  ;;  %v10941_v19 = vld [vmem:[%s13126_s3 + $0x188] sm:$0xff]  ;;  %v2156_v58 = vadd.f32 %v14182_v51, %v14168_v36 }
 0xa92   :  { %v3734_v52 = vmul.f32 %v7091_v60, %v3733_v17  ;;  %v3761_v4 = vmul.f32 %v3729_v32, %v10784_v39  ;;  %v3955_v39 = vld [vmem:[%s13124_s1 + $0x70] sm:$0xf]  ;;  %v10934_v17 = vld [vmem:[%s13126_s3 + $0x180] sm:$0xff]  ;;  %v10976_v34 = vld [vmem:[%s13126_s3 + $0x168] sm:$0xff] }
 0xa93   :  { %v3749_v28 = vmul.f32 %v7093_v8, %v3748_v11  ;;  %6729 = vmatpush.msk.msra.mxu2 %vm67_vm0, %v3955_v39  ;;  %v10929_v27 = vld [vmem:[%s13126_s3 + $0x190] sm:$0xff]  ;;  %v10969_v36 = vld [vmem:[%s13126_s3 + $0x160] sm:$0xff]  ;;  %v10981_v32 = vld [vmem:[%s13126_s3 + $0x178] sm:$0xff] }
 0xa94   :  { %v3735_v13 = vadd.f32 %v7091_v60, %v3734_v52  ;;  %v14183_v52 = vld [vmem:[#allocation64_spill] sm:$0xff]  ;;  %v10964_v61 = vld [vmem:[%s13126_s3 + $0x170] sm:$0xff]  ;;  %v11045_v39 = vld [vmem:[%s13126_s3 + $0x100] sm:$0xff] }
 0xa95   :  { %v3750_v40 = vadd.f32 %v7093_v8, %v3749_v28  ;;  %4062 = vmatpush.msra.mxu2 %v3951_v44  ;;  %v2185_v16 = vadd.f32 %v14183_v52, %v14170_v56  ;;  %v11000_v28 = vld [vmem:[%s13126_s3 + $0x148] sm:$0xff]  ;;  %v11097_v7 = vld [vmem:[%s13126_s3 + $0xd0] sm:$0xff] }
 0xa96   :  { %v3739_v30 = vsel %vm3738_vm11, %v7091_v60, %v3735_v13  ;;  %v10893_v60 = vld [vmem:[%s13126_s3 + $0x1c8] sm:$0xff]  ;;  %14188 = vst [vmem:[#allocation20_spill] sm:$0xff] %v11097_v7  ;;  %v11124_v52 = vld [vmem:[%s13126_s3 + $0xb0] sm:$0xff] }
 0xa97   :  { %v3744_v26 = vsel %vm3741_vm13, %v3743_v54, %v3739_v30  ;;  %v3754_v55 = vsel %vm3753_vm2, %v7093_v8, %v3750_v40  ;;  %4063 = vmatpush.msra.mxu2 %v3947_v38  ;;  %v10910_v8 = vld [vmem:[%s13126_s3 + $0x1a0] sm:$0xff]  ;;  %v10988_v54 = vld [vmem:[%s13126_s3 + $0x150] sm:$0xff]  ;;  %v11111_v51 = vld [vmem:[%s13126_s3 + $0xc8] sm:$0xff]  ;;  %14192 = vst [vmem:[#allocation23_spill] sm:$0xff] %v11124_v52 }
 0xa98   :  { %v3762_v53 = vmul.f32 %v3744_v26, %v3714_v14  ;;  %v3759_v9 = vsel %vm3756_vm3, %v3758_v5, %v3754_v55  ;;  %v10993_v30 = vld [vmem:[%s13126_s3 + $0x140] sm:$0xff]  ;;  %v14184_v55 = vld [vmem:[#allocation52_spill] sm:$0xff]  ;;  %v11071_v38 = vld [vmem:[%s13126_s3 + $0xf0] sm:$0xff]  ;;  %14190 = vst [vmem:[#allocation21_spill] sm:$0xff] %v11111_v51 }
 0xa99   :  { %4064 = vmatpush.msra.mxu2 %v3943_v59  ;;  %v11017_v40 = vld [vmem:[%s13126_s3 + $0x120] sm:$0xff]  ;;  %v2214_v5 = vadd.f32 %v14184_v55, %v14172_v23  ;;  %14186 = vst [vmem:[#allocation44_spill] sm:$0xff] %v11071_v38  ;;  %v11088_v59 = vld [vmem:[%s13126_s3 + $0xf8] sm:$0xff] }
 0xa9a   :  { %v10796_v12 = vadd.f32 %v3762_v53, %v3761_v4  ;;  %v11005_v4 = vld [vmem:[%s13126_s3 + $0x158] sm:$0xff]  ;;  %v11012_v53 = vld [vmem:[%s13126_s3 + $0x130] sm:$0xff]  ;;  %14187 = vst [vmem:[#allocation19_spill] sm:$0xff] %v11088_v59 }
 0xa9c   :  { %7094 = vtanh.f32 %v10796_v12 }
 0xaa2   :  { %v7095_v6 = vpop.eup %7094 }
 0xaa3   :  { %v3765_v41 = vmul.f32 %v7095_v6, %v3759_v9  ;;  %v14185_v6 = vld [vmem:[#allocation18_spill] sm:$0xff] }
 0xaa4   :  { %v2243_v9 = vadd.f32 %v14185_v6, %v14174_v31  ;;  %v11052_v31 = vld [vmem:[%s13126_s3 + $0x108] sm:$0xff] }
 0xaa5   :  { %3787 = vmatmul.f32.vlgmr.msra.gmra.mxu0 %v3765_v41  ;;  %3807 = vmatmul.f32.vlgmr.msrb.gmra.mxu1 %v3765_v41 }
 0xaa6   :  { %3827 = vmatmul.f32.vlgmr.msrb.gmra.mxu2 %v3765_v41  ;;  %3847 = vmatmul.f32.vlgmr.msrb.gmra.mxu3 %v3765_v41  ;;  %v11040_v41 = vld [vmem:[%s13126_s3 + $0x110] sm:$0xff] }
 0xaa7   :  { %4232 = vmatpush.msrb.mxu2 %v10857_v2  ;;  %4192 = vmatpush.msra.mxu0 %v10862_v45 }
 0xaa8   :  { %4212 = vmatpush.msrb.mxu1 %v10869_v62  ;;  %4252 = vmatpush.msrb.mxu3 %v10874_v42 }
 0xaa9   :  { %4233 = vmatpush.msrb.mxu2 %v10881_v57  ;;  %4193 = vmatpush.msra.mxu0 %v10886_v43 }
 0xaaa   :  { %4213 = vmatpush.msrb.mxu1 %v10893_v60  ;;  %4253 = vmatpush.msrb.mxu3 %v10898_v0 }
 0xaab   :  { %4234 = vmatpush.msrb.mxu2 %v10905_v18  ;;  %4194 = vmatpush.msra.mxu0 %v10910_v8 }
 0xaac   :  { %4214 = vmatpush.msrb.mxu1 %v10917_v46  ;;  %4254 = vmatpush.msrb.mxu3 %v10922_v3 }
 0xaad   :  { %6720 = vmatmul.msk.f32.vlgmr.msrb.gmra.mxu0 %vm54_vm1, %v6715_v35  ;;  %6725 = vmatmul.msk.f32.vlgmr.msra.gmra.mxu1 %vm54_vm1, %v6715_v35 }
 0xaae   :  { %6730 = vmatmul.msk.f32.vlgmr.msra.gmra.mxu2 %vm54_vm1, %v6715_v35  ;;  %6735 = vmatmul.msk.f32.vlgmr.msra.gmra.mxu3 %vm54_vm1, %v6715_v35  ;;  %v11102_v35 = vld [vmem:[%s13126_s3 + $0xc0] sm:$0xff] }
 0xaaf   :  { %4235 = vmatpush.msrb.mxu2 %v10929_v27  ;;  %4195 = vmatpush.msra.mxu0 %v10934_v17  ;;  %14189 = vst [vmem:[#allocation22_spill] sm:$0xff] %v11102_v35 }
 0xab0   :  { %4215 = vmatpush.msrb.mxu1 %v10941_v19  ;;  %4255 = vmatpush.msrb.mxu3 %v10946_v33 }
 0xab1   :  { %4236 = vmatpush.msrb.mxu2 %v10964_v61  ;;  %4196 = vmatpush.msra.mxu0 %v10969_v36 }
 0xab2   :  { %4216 = vmatpush.msrb.mxu1 %v10976_v34  ;;  %4256 = vmatpush.msrb.mxu3 %v10981_v32 }
 0xab3   :  { %4237 = vmatpush.msrb.mxu2 %v10988_v54  ;;  %4197 = vmatpush.msra.mxu0 %v10993_v30 }
 0xab4   :  { %4217 = vmatpush.msrb.mxu1 %v11000_v28  ;;  %4257 = vmatpush.msrb.mxu3 %v11005_v4 }
 0xab5   :  { %6721 = vmatmul.msk.f32.gmra.mxu0 %vm54_vm1, %v6716_v22  ;;  %6726 = vmatmul.msk.f32.gmra.mxu1 %vm54_vm1, %v6716_v22 }
 0xab6   :  { %6731 = vmatmul.msk.f32.gmra.mxu2 %vm54_vm1, %v6716_v22  ;;  %6736 = vmatmul.msk.f32.gmra.mxu3 %vm54_vm1, %v6716_v22 }
 0xab7   :  { %4238 = vmatpush.msrb.mxu2 %v11012_v53  ;;  %4198 = vmatpush.msra.mxu0 %v11017_v40 }
 0xab8   :  { %4218 = vmatpush.msrb.mxu1 %v11024_v25  ;;  %4258 = vmatpush.msrb.mxu3 %v11029_v15 }
 0xab9   :  { %4239 = vmatpush.msrb.mxu2 %v11040_v41  ;;  %4199 = vmatpush.msra.mxu0 %v11045_v39 }
 0xaba   :  { %4219 = vmatpush.msrb.mxu1 %v11052_v31  ;;  %4259 = vmatpush.msrb.mxu3 %v11057_v20 }
 0xabb   :  { %4240 = vmatpush.msrb.mxu2 %v11071_v38  ;;  %4200 = vmatpush.msra.mxu0 %v11076_v10 }
 0xabc   :  { %4220 = vmatpush.msrb.mxu1 %v11083_v50  ;;  %4260 = vmatpush.msrb.mxu3 %v11088_v59 }
 0xabd   :  { %6722 = vmatmul.msk.f32.gmra.mxu0 %vm54_vm1, %v6717_v21  ;;  %6727 = vmatmul.msk.f32.gmra.mxu1 %vm54_vm1, %v6717_v21 }
 0xabe   :  { %6732 = vmatmul.msk.f32.gmra.mxu2 %vm54_vm1, %v6717_v21  ;;  %6737 = vmatmul.msk.f32.gmra.mxu3 %vm54_vm1, %v6717_v21 }
 0xabf   :  { %4241 = vmatpush.msrb.mxu2 %v11097_v7  ;;  %4201 = vmatpush.msra.mxu0 %v11102_v35 }
 0xac0   :  { %4221 = vmatpush.msrb.mxu1 %v11111_v51 }
 0xac1   :  { %4242 = vmatpush.msrb.mxu2 %v11124_v52 }
 0xb22   :  { %v3788_v37 = vpop.f32.mrf.mxu0  ;;  %v3808_v11 = vpop.f32.mrf.mxu1 }
 0xb23   :  { %v3851_v56 = vadd.f32 %v3788_v37, %v2156_v58  ;;  %v3852_v13 = vadd.f32 %v3808_v11, %v2185_v16  ;;  %v11116_v58 = vld [vmem:[%s13126_s3 + $0xd8] sm:$0xff]  ;;  %v11129_v16 = vld [vmem:[%s13126_s3 + $0xa0] sm:$0xff]  ;;  %v11137_v37 = vld [vmem:[%s13126_s3 + $0xa8] sm:$0xff] }
 0xb24   :  { %14191 = vst [vmem:[#allocation10_spill] sm:$0xff] %v11116_v58  ;;  %v11142_v11 = vld [vmem:[%s13126_s3 + $0xb8] sm:$0xff]  ;;  %4261 = vmatpush.msrb.mxu3 %v11116_v58  ;;  %4202 = vmatpush.msra.mxu0 %v11129_v16 }
 0xb25   :  { %v6711_v14 = vmul.f32 -1.442695, %v3851_v56  ;;  %v6712_v26 = vmul.f32 -1.442695, %v3852_v13  ;;  %14193 = vst [vmem:[#allocation25_spill] sm:$0xff] %v11129_v16  ;;  %v11149_v56 = vld [vmem:[%s13126_s3 + $0x90] sm:$0xff]  ;;  %4222 = vmatpush.msrb.mxu1 %v11137_v37 }
 0xb26   :  { %14194 = vst [vmem:[#allocation24_spill] sm:$0xff] %v11137_v37  ;;  %v11154_v13 = vld [vmem:[%s13126_s3 + $0x80] sm:$0xff]  ;;  %4262 = vmatpush.msrb.mxu3 %v11142_v11  ;;  %4243 = vmatpush.msrb.mxu2 %v11149_v56 }
 0xb27   :  { %7096 = vpow2.f32 %v6711_v14  ;;  %14195 = vst [vmem:[#allocation11_spill] sm:$0xff] %v11142_v11  ;;  %v11161_v14 = vld [vmem:[%s13126_s3 + $0x88] sm:$0xff]  ;;  %4203 = vmatpush.msra.mxu0 %v11154_v13 }
 0xb28   :  { %7098 = vpow2.f32 %v6712_v26  ;;  %14196 = vst [vmem:[#allocation26_spill] sm:$0xff] %v11149_v56  ;;  %v11166_v26 = vld [vmem:[%s13126_s3 + $0x98] sm:$0xff]  ;;  %4223 = vmatpush.msrb.mxu1 %v11161_v14 }
 0xb29   :  { %v3828_v1 = vpop.f32.mrf.mxu2  ;;  %v3848_v23 = vpop.f32.mrf.mxu3  ;;  %14197 = vst [vmem:[#allocation28_spill] sm:$0xff] %v11154_v13  ;;  %4263 = vmatpush.msrb.mxu3 %v11166_v26  ;;  %v11235_v56 = vld [vmem:[%s13126_s3 + $0x58] sm:$0xff] }
 0xb2a   :  { %v3853_v47 = vadd.f32 %v3828_v1, %v2214_v5  ;;  %v3854_v44 = vadd.f32 %v3848_v23, %v2243_v9  ;;  %14198 = vst [vmem:[#allocation27_spill] sm:$0xff] %v11161_v14  ;;  %v6718_v5 = vld [vmem:[%s13123_s0 + $0xb8] sm:$0xff] }
 0xb2b   :  { %14199 = vst [vmem:[#allocation12_spill] sm:$0xff] %v11166_v26  ;;  %6723 = vmatmul.msk.f32.gmra.mxu0 %vm54_vm1, %v6718_v5  ;;  %6728 = vmatmul.msk.f32.gmra.mxu1 %vm54_vm1, %v6718_v5 }
 0xb2c   :  { %v6713_v49 = vmul.f32 -1.442695, %v3853_v47  ;;  %v6714_v24 = vmul.f32 -1.442695, %v3854_v44  ;;  %v11186_v47 = vld [vmem:[%s13126_s3 + $0x70] sm:$0xff]  ;;  %v11191_v44 = vld [vmem:[%s13126_s3 + $0x60] sm:$0xff]  ;;  %6733 = vmatmul.msk.f32.gmra.mxu2 %vm54_vm1, %v6718_v5  ;;  %6738 = vmatmul.msk.f32.gmra.mxu3 %vm54_vm1, %v6718_v5 }
 0xb2d   :  { %v7097_v48 = vpop.eup %7096  ;;  %14200 = vst [vmem:[#allocation29_spill] sm:$0xff] %v11186_v47  ;;  %4244 = vmatpush.msrb.mxu2 %v11186_v47  ;;  %4204 = vmatpush.msra.mxu0 %v11191_v44  ;;  %v11230_v5 = vld [vmem:[%s13126_s3 + $0x48] sm:$0xff]  ;;  %v11247_v47 = vld [vmem:[%s13126_s3 + $0x20] sm:$0xff] }
 0xb2e   :  { %v7099_v63 = vpop.eup %7098  ;;  %v11090_v29 = vadd.f32 1.0, %v7097_v48  ;;  %7100 = vpow2.f32 %v6713_v49  ;;  %14201 = vst [vmem:[#allocation31_spill] sm:$0xff] %v11191_v44  ;;  %v11208_v48 = vld [vmem:[%s13126_s3 + $0x78] sm:$0xff] }
 0xb2f   :  { %v11104_v22 = vadd.f32 1.0, %v7099_v63  ;;  %7102 = vpow2.f32 %v6714_v24  ;;  %v11203_v24 = vld [vmem:[%s13126_s3 + $0x68] sm:$0xff]  ;;  %14203 = vst [vmem:[#allocation13_spill] sm:$0xff] %v11208_v48  ;;  %4264 = vmatpush.msrb.mxu3 %v11208_v48  ;;  %v11259_v48 = vld [vmem:[%s13126_s3 + $0x38] sm:$0xff] }
 0xb30   :  { %7104 = vrcp.f32 %v11090_v29  ;;  %14202 = vst [vmem:[#allocation30_spill] sm:$0xff] %v11203_v24  ;;  %4224 = vmatpush.msrb.mxu1 %v11203_v24  ;;  %vm3876_vm7 = vweird.f32 %v11090_v29 }
 0xb31   :  { %7106 = vrcp.f32 %v11104_v22  ;;  %14206 = vst [vmem:[#allocation34_spill] sm:$0xff] %v11230_v5  ;;  %4265 = vmatpush.msrb.mxu3 %v11235_v56  ;;  %vm3891_vm5 = vweird.f32 %v11104_v22  ;;  %v3897_v11 = vand.u32 2147483648, %v11104_v22 }
 0xb32   :  { %14207 = vst [vmem:[#allocation14_spill] sm:$0xff] %v11235_v56  ;;  %4225 = vmatpush.msrb.mxu1 %v11230_v5 }
 0xb33   :  { %14209 = vst [vmem:[#allocation36_spill] sm:$0xff] %v11247_v47  ;;  %4266 = vmatpush.msrb.mxu3 %v11259_v48 }
 0xb34   :  { %v7101_v55 = vpop.eup %7100  ;;  %14211 = vst [vmem:[#allocation55_spill] sm:$0xff] %v11259_v48 }
 0xb35   :  { %v7103_v6 = vpop.eup %7102  ;;  %v11173_v9 = vadd.f32 1.0, %v7101_v55  ;;  %v11217_v55 = vld [vmem:[%s13126_s3 + $0x50] sm:$0xff] }
 0xb36   :  { %v11177_v1 = vpop.eup %7104  ;;  %v11179_v23 = vadd.f32 1.0, %v7103_v6  ;;  %14204 = vst [vmem:[#allocation32_spill] sm:$0xff] %v11217_v55  ;;  %v11222_v6 = vld [vmem:[%s13126_s3 + $0x40] sm:$0xff]  ;;  %4245 = vmatpush.msrb.mxu2 %v11217_v55  ;;  %v11268_v55 = vld [vmem:[%s13126_s3 + $0x10] sm:$0xff] }
 0xb37   :  { %v11193_v21 = vpop.eup %7106  ;;  %v3872_v49 = vmul.f32 %v11177_v1, %v11090_v29  ;;  %7108 = vrcp.f32 %v11173_v9  ;;  %14205 = vst [vmem:[#allocation33_spill] sm:$0xff] %v11222_v6  ;;  %4205 = vmatpush.msra.mxu0 %v11222_v6  ;;  %v11273_v6 = vld [vmem:[%s13126_s3] sm:$0xff]  ;;  %vm3877_vm6 = vweird.f32 %v11177_v1  ;;  %vm3906_vm12 = vweird.f32 %v11173_v9 }
 0xb38   :  { %v3887_v63 = vmul.f32 %v11193_v21, %v11104_v22  ;;  %7110 = vrcp.f32 %v11179_v23  ;;  %14212 = vst [vmem:[#allocation6_spill] sm:$0xff] %v11268_v55  ;;  %vm3892_vm4 = vweird.f32 %v11193_v21  ;;  %vm11325_vm10 = vmor %vm3876_vm7, %vm3877_vm6  ;;  %vm3921_vm3 = vweird.f32 %v11179_v23 }
 0xb39   :  { %v3873_v26 = vsub.f32 1.0, %v3872_v49  ;;  %v11242_v49 = vld [vmem:[%s13126_s3 + $0x30] sm:$0xff]  ;;  %14213 = vst [vmem:[#allocation38_spill] sm:$0xff] %v11273_v6  ;;  %4206 = vmatpush.msra.mxu0 %v11247_v47  ;;  %v3895_v47 = vand.u32 2147483647, %v11104_v22  ;;  %vm11310_vm8 = vmor %vm3891_vm5, %vm3892_vm4 }
 0xb3a   :  { %v3888_v14 = vsub.f32 1.0, %v3887_v63  ;;  %14208 = vst [vmem:[#allocation35_spill] sm:$0xff] %v11242_v49  ;;  %v11254_v63 = vld [vmem:[%s13126_s3 + $0x28] sm:$0xff]  ;;  %4246 = vmatpush.msrb.mxu2 %v11242_v49  ;;  %v3880_v22 = vand.u32 2147483647, %v11090_v29 }
 0xb3b   :  { %14210 = vst [vmem:[#allocation62_spill] sm:$0xff] %v11254_v63  ;;  %v3874_v24 = vmul.f32 %v11177_v1, %v3873_v26  ;;  %v11285_v26 = vld [vmem:[%s13126_s3 + $0x18] sm:$0xff]  ;;  %4226 = vmatpush.msrb.mxu1 %v11254_v63  ;;  %4207 = vmatpush.msra.mxu0 %v11273_v6  ;;  %vm3896_vm11 = vcmp.eq.f32.partialorder %v3895_v47, 8.507059e+37  ;;  %v3925_v6 = vand.u32 2147483647, %v11179_v23 }
 0xb3c   :  { %v3889_v44 = vmul.f32 %v11193_v21, %v3888_v14  ;;  %v11280_v14 = vld [vmem:[%s13126_s3 + $0x8] sm:$0xff]  ;;  %14215 = vst [vmem:[#allocation65_spill] sm:$0xff] %v11285_v26  ;;  %4247 = vmatpush.msrb.mxu2 %v11268_v55  ;;  %4267 = vmatpush.msrb.mxu3 %v11285_v26  ;;  %v3882_v55 = vand.u32 2147483648, %v11090_v29  ;;  %v3910_v29 = vand.u32 2147483647, %v11173_v9  ;;  %vm3881_vm14 = vcmp.eq.f32.partialorder %v3880_v22, 8.507059e+37 }
 0xb3d   :  { %v7109_v13 = vpop.eup %7108  ;;  %14214 = vst [vmem:[#allocation67_spill] sm:$0xff] %v11280_v14  ;;  %4227 = vmatpush.msrb.mxu1 %v11280_v14  ;;  %4362 = vmatpush.msrb.mxu0 %v10862_v45  ;;  %v3898_v45 = vor.u32 1.1754944e-38, %v3897_v11  ;;  %vm3926_vm5 = vcmp.eq.f32.partialorder %v3925_v6, 8.507059e+37  ;;  %v14221_v22 = vld [vmem:[#allocation23_spill] sm:$0xff] }
 0xb3e   :  { %v3890_v56 = vadd.f32 %v11193_v21, %v3889_v44  ;;  %v3902_v5 = vmul.f32 %v7109_v13, %v11173_v9  ;;  %v11292_v49 = vpop.eup %7110  ;;  %v3875_v44 = vadd.f32 %v11177_v1, %v3874_v24  ;;  %vm3907_vm9 = vweird.f32 %v7109_v13  ;;  %4402 = vmatpush.msra.mxu2 %v10857_v2  ;;  %4422 = vmatpush.msra.mxu3 %v10874_v42  ;;  %v14237_v6 = vld [vmem:[#allocation55_spill] sm:$0xff] }
 0xb3f   :  { %v3917_v48 = vmul.f32 %v11292_v49, %v11179_v23  ;;  %4382 = vmatpush.msra.mxu1 %v10869_v62  ;;  %4363 = vmatpush.msrb.mxu0 %v10886_v43  ;;  %vm3908_vm13 = vmor %vm3906_vm12, %vm3907_vm9  ;;  %vm3911_vm15 = vcmp.eq.f32.partialorder %v3910_v29, 8.507059e+37  ;;  %vm3922_vm2 = vweird.f32 %v11292_v49  ;;  %v14223_v29 = vld [vmem:[#allocation28_spill] sm:$0xff] }
 0xb40   :  { %v3903_v52 = vsub.f32 1.0, %v3902_v5  ;;  %v3912_v5 = vand.u32 2147483648, %v11173_v9  ;;  %v3894_v26 = vsel %vm11310_vm8, %v11193_v21, %v3890_v56  ;;  %4403 = vmatpush.msra.mxu2 %v10881_v57  ;;  %4423 = vmatpush.msra.mxu3 %v10898_v0  ;;  %v3883_v21 = vor.u32 1.1754944e-38, %v3882_v55  ;;  %vm3923_vm4 = vmor %vm3921_vm3, %vm3922_vm2 }
 0xb41   :  { %v3918_v62 = vsub.f32 1.0, %v3917_v48  ;;  %4383 = vmatpush.msra.mxu1 %v10893_v60  ;;  %v3899_v24 = vsel %vm3896_vm11, %v3898_v45, %v3894_v26  ;;  %4364 = vmatpush.msrb.mxu0 %v10910_v8 }
 0xb42   :  { %v3904_v14 = vmul.f32 %v7109_v13, %v3903_v52  ;;  %v3879_v52 = vsel %vm11325_vm10, %v11177_v1, %v3875_v44  ;;  %v3913_v11 = vor.u32 1.1754944e-38, %v3912_v5  ;;  %4404 = vmatpush.msra.mxu2 %v10905_v18  ;;  %4424 = vmatpush.msra.mxu3 %v10922_v3  ;;  %v3931_v45 = vmul.f32 %v3899_v24, %v10796_v12  ;;  %v14222_v5 = vld [vmem:[#allocation11_spill] sm:$0xff] }
 0xb43   :  { %4384 = vmatpush.msra.mxu1 %v10917_v46  ;;  %v3884_v9 = vsel %vm3881_vm14, %v3883_v21, %v3879_v52  ;;  %v3919_v47 = vmul.f32 %v11292_v49, %v3918_v62  ;;  %4365 = vmatpush.msrb.mxu0 %v10934_v17  ;;  %v3927_v12 = vand.u32 2147483648, %v11179_v23  ;;  %v14224_v52 = vld [vmem:[#allocation27_spill] sm:$0xff]  ;;  %v14226_v21 = vld [vmem:[#allocation12_spill] sm:$0xff] }
 0xb44   :  { %v3905_v56 = vadd.f32 %v7109_v13, %v3904_v14  ;;  %4405 = vmatpush.msra.mxu2 %v10929_v27  ;;  %4425 = vmatpush.msra.mxu3 %v10946_v33  ;;  %v14227_v24 = vld [vmem:[#allocation31_spill] sm:$0xff] }
 0xb45   :  { %4385 = vmatpush.msra.mxu1 %v10941_v19  ;;  %4366 = vmatpush.msrb.mxu0 %v10969_v36  ;;  %v3920_v62 = vadd.f32 %v11292_v49, %v3919_v47  ;;  %v3928_v26 = vor.u32 1.1754944e-38, %v3927_v12  ;;  %v14232_v47 = vld [vmem:[#allocation34_spill] sm:$0xff]  ;;  %v14236_v12 = vld [vmem:[#allocation35_spill] sm:$0xff] }
 0xb46   :  { %v3909_v48 = vsel %vm3908_vm13, %v7109_v13, %v3905_v56  ;;  %4406 = vmatpush.msra.mxu2 %v10964_v61  ;;  %4426 = vmatpush.msra.mxu3 %v10981_v32  ;;  %v14225_v56 = vld [vmem:[#allocation26_spill] sm:$0xff] }
 0xb47   :  { %v3914_v1 = vsel %vm3911_vm15, %v3913_v11, %v3909_v48  ;;  %4386 = vmatpush.msra.mxu1 %v10976_v34  ;;  %4367 = vmatpush.msrb.mxu0 %v10993_v30  ;;  %v3924_v14 = vsel %vm3923_vm4, %v11292_v49, %v3920_v62  ;;  %v14228_v11 = vld [vmem:[#allocation30_spill] sm:$0xff]  ;;  %v14229_v48 = vld [vmem:[#allocation29_spill] sm:$0xff]  ;;  %v14235_v62 = vld [vmem:[#allocation36_spill] sm:$0xff] }
 0xb48   :  { %v3932_v55 = vmul.f32 %v3914_v1, %v3884_v9  ;;  %4407 = vmatpush.msra.mxu2 %v10988_v54  ;;  %4427 = vmatpush.msra.mxu3 %v11005_v4  ;;  %v3929_v44 = vsel %vm3926_vm5, %v3928_v26, %v3924_v14  ;;  %v14230_v9 = vld [vmem:[#allocation13_spill] sm:$0xff]  ;;  %v14238_v14 = vld [vmem:[#allocation38_spill] sm:$0xff]  ;;  %v14239_v26 = vld [vmem:[#allocation67_spill] sm:$0xff] }
 0xb49   :  { %4387 = vmatpush.msra.mxu1 %v11000_v28  ;;  %4368 = vmatpush.msrb.mxu0 %v11017_v40  ;;  %v14231_v1 = vld [vmem:[#allocation33_spill] sm:$0xff] }
 0xb4a   :  { %v11350_v13 = vadd.f32 %v3932_v55, %v3931_v45  ;;  %4408 = vmatpush.msra.mxu2 %v11012_v53  ;;  %4428 = vmatpush.msra.mxu3 %v11029_v15  ;;  %v14233_v45 = vld [vmem:[#allocation32_spill] sm:$0xff]  ;;  %v14234_v55 = vld [vmem:[#allocation14_spill] sm:$0xff] }
 0xb4b   :  { %4388 = vmatpush.msra.mxu1 %v11024_v25  ;;  %4369 = vmatpush.msrb.mxu0 %v11045_v39 }
 0xb4c   :  { %14220 = vst [vmem:[#allocation53_spill] sm:$0xff] %v11350_v13  ;;  %7112 = vtanh.f32 %v11350_v13  ;;  %4409 = vmatpush.msra.mxu2 %v11040_v41  ;;  %4429 = vmatpush.msra.mxu3 %v11057_v20  ;;  %v14243_v13 = vld [vmem:[#allocation56_spill] sm:$0xff] }
 0xb4d   :  { %4389 = vmatpush.msra.mxu1 %v11052_v31  ;;  %4370 = vmatpush.msrb.mxu0 %v11076_v10 }
 0xb4e   :  { %4410 = vmatpush.msra.mxu2 %v11071_v38  ;;  %4430 = vmatpush.msra.mxu3 %v11088_v59 }
 0xb4f   :  { %4390 = vmatpush.msra.mxu1 %v11083_v50  ;;  %4371 = vmatpush.msrb.mxu0 %v11102_v35 }
 0xb50   :  { %4411 = vmatpush.msra.mxu2 %v11097_v7  ;;  %4431 = vmatpush.msra.mxu3 %v11116_v58 }
 0xb51   :  { %4391 = vmatpush.msra.mxu1 %v11111_v51  ;;  %4372 = vmatpush.msrb.mxu0 %v11129_v16 }
 0xb52   :  { %v7113_v23 = vpop.eup %7112  ;;  %4412 = vmatpush.msra.mxu2 %v14221_v22  ;;  %4432 = vmatpush.msra.mxu3 %v14222_v5 }
 0xb53   :  { %v3935_v49 = vmul.f32 %v7113_v23, %v3929_v44  ;;  %4392 = vmatpush.msra.mxu1 %v11137_v37  ;;  %4373 = vmatpush.msrb.mxu0 %v14223_v29  ;;  %v14240_v23 = vld [vmem:[#allocation6_spill] sm:$0xff]  ;;  %v14241_v44 = vld [vmem:[#allocation65_spill] sm:$0xff] }
 0xb54   :  { %4413 = vmatpush.msra.mxu2 %v14225_v56  ;;  %4433 = vmatpush.msra.mxu3 %v14226_v21 }
 0xb55   :  { %4208 = vmatmul.f32.vlgmr.msra.gmra.mxu0 %v3935_v49  ;;  %4228 = vmatmul.f32.vlgmr.msrb.gmra.mxu1 %v3935_v49 }
 0xb56   :  { %4248 = vmatmul.f32.vlgmr.msrb.gmra.mxu2 %v3935_v49  ;;  %4268 = vmatmul.f32.vlgmr.msrb.gmra.mxu3 %v3935_v49  ;;  %v14242_v49 = vld [vmem:[#allocation39_spill] sm:$0xff] }
 0xb57   :  { %4393 = vmatpush.msra.mxu1 %v14224_v52  ;;  %4374 = vmatpush.msrb.mxu0 %v14227_v24 }
 0xb58   :  { %4414 = vmatpush.msra.mxu2 %v14229_v48  ;;  %4434 = vmatpush.msra.mxu3 %v14230_v9 }
 0xb59   :  { %4394 = vmatpush.msra.mxu1 %v14228_v11  ;;  %4375 = vmatpush.msrb.mxu0 %v14231_v1 }
 0xb5a   :  { %4415 = vmatpush.msra.mxu2 %v14233_v45  ;;  %4435 = vmatpush.msra.mxu3 %v14234_v55 }
 0xb5b   :  { %4395 = vmatpush.msra.mxu1 %v14232_v47  ;;  %4376 = vmatpush.msrb.mxu0 %v14235_v62 }
 0xb5c   :  { %4416 = vmatpush.msra.mxu2 %v14236_v12  ;;  %4436 = vmatpush.msra.mxu3 %v14237_v6 }
 0xb5d   :  { %4396 = vmatpush.msra.mxu1 %v11254_v63  ;;  %4377 = vmatpush.msrb.mxu0 %v14238_v14 }
 0xb5e   :  { %4417 = vmatpush.msra.mxu2 %v14240_v23  ;;  %4437 = vmatpush.msra.mxu3 %v14241_v44 }
 0xb5f   :  { %4397 = vmatpush.msra.mxu1 %v14239_v26  ;;  %4532 = vmatpush.msra.mxu0 %v14242_v49 }
 0xb60   :  { %4572 = vmatpush.msrb.mxu2 %v10857_v2  ;;  %4592 = vmatpush.msrb.mxu3 %v10874_v42 }
 0xb61   :  { %4552 = vmatpush.msrb.mxu1 %v14243_v13  ;;  %4533 = vmatpush.msra.mxu0 %v10886_v43 }
 0xb62   :  { %4573 = vmatpush.msrb.mxu2 %v10881_v57  ;;  %4593 = vmatpush.msrb.mxu3 %v10898_v0 }
 0xb63   :  { %4553 = vmatpush.msrb.mxu1 %v10893_v60  ;;  %4534 = vmatpush.msra.mxu0 %v10910_v8 }
 0xb64   :  { %4574 = vmatpush.msrb.mxu2 %v10905_v18  ;;  %4594 = vmatpush.msrb.mxu3 %v10922_v3 }
 0xb65   :  { %4554 = vmatpush.msrb.mxu1 %v10917_v46  ;;  %4535 = vmatpush.msra.mxu0 %v10934_v17 }
 0xb66   :  { %4575 = vmatpush.msrb.mxu2 %v10929_v27  ;;  %4595 = vmatpush.msrb.mxu3 %v10946_v33 }
 0xb67   :  { %4555 = vmatpush.msrb.mxu1 %v10941_v19  ;;  %4536 = vmatpush.msra.mxu0 %v10969_v36 }
 0xb68   :  { %4576 = vmatpush.msrb.mxu2 %v10964_v61  ;;  %4596 = vmatpush.msrb.mxu3 %v10981_v32 }
 0xb69   :  { %4556 = vmatpush.msrb.mxu1 %v10976_v34  ;;  %4537 = vmatpush.msra.mxu0 %v10993_v30 }
 0xb6a   :  { %4577 = vmatpush.msrb.mxu2 %v10988_v54  ;;  %4597 = vmatpush.msrb.mxu3 %v11005_v4 }
 0xb6b   :  { %4557 = vmatpush.msrb.mxu1 %v11000_v28  ;;  %4538 = vmatpush.msra.mxu0 %v11017_v40 }
 0xb6c   :  { %4578 = vmatpush.msrb.mxu2 %v11012_v53  ;;  %4598 = vmatpush.msrb.mxu3 %v11029_v15 }
 0xb6d   :  { %4558 = vmatpush.msrb.mxu1 %v11024_v25  ;;  %4539 = vmatpush.msra.mxu0 %v11045_v39 }
 0xb6e   :  { %4579 = vmatpush.msrb.mxu2 %v11040_v41  ;;  %4599 = vmatpush.msrb.mxu3 %v11057_v20 }
 0xb6f   :  { %4559 = vmatpush.msrb.mxu1 %v11052_v31  ;;  %4540 = vmatpush.msra.mxu0 %v11076_v10 }
 0xb70   :  { %4580 = vmatpush.msrb.mxu2 %v11071_v38  ;;  %4600 = vmatpush.msrb.mxu3 %v11088_v59 }
 0xb71   :  { %4560 = vmatpush.msrb.mxu1 %v11083_v50  ;;  %4541 = vmatpush.msra.mxu0 %v11102_v35 }
 0xb72   :  { %4581 = vmatpush.msrb.mxu2 %v11097_v7  ;;  %4601 = vmatpush.msrb.mxu3 %v11116_v58 }
 0xb73   :  { %4561 = vmatpush.msrb.mxu1 %v11111_v51  ;;  %4542 = vmatpush.msra.mxu0 %v11129_v16 }
 0xb74   :  { %4582 = vmatpush.msrb.mxu2 %v14221_v22  ;;  %4602 = vmatpush.msrb.mxu3 %v14222_v5 }
 0xb75   :  { %4562 = vmatpush.msrb.mxu1 %v11137_v37  ;;  %4543 = vmatpush.msra.mxu0 %v14223_v29 }
 0xb76   :  { %4583 = vmatpush.msrb.mxu2 %v14225_v56  ;;  %4603 = vmatpush.msrb.mxu3 %v14226_v21  ;;  %v14271_v56 = vld [vmem:[#allocation37_spill] sm:$0xff] }
 0xb77   :  { %4563 = vmatpush.msrb.mxu1 %v14224_v52  ;;  %4544 = vmatpush.msra.mxu0 %v14227_v24 }
 0xb78   :  { %4584 = vmatpush.msrb.mxu2 %v14229_v48  ;;  %4604 = vmatpush.msrb.mxu3 %v14230_v9 }
 0xb79   :  { %4564 = vmatpush.msrb.mxu1 %v14228_v11  ;;  %4545 = vmatpush.msra.mxu0 %v14231_v1 }
 0xb7a   :  { %4585 = vmatpush.msrb.mxu2 %v14233_v45  ;;  %4605 = vmatpush.msrb.mxu3 %v14234_v55  ;;  %v11471_v45 = vpop.f32.mrf.mxu1 }
 0xb7b   :  { %4565 = vmatpush.msrb.mxu1 %v14232_v47  ;;  %4546 = vmatpush.msra.mxu0 %v14235_v62  ;;  %v11469_v47 = vpop.f32.mrf.mxu0  ;;  %14245 = vst [vmem:[#allocation50_spill] sm:$0xff] %v11471_v45  ;;  %v11476_v62 = vpop.f32.mrf.mxu2 }
 0xb7c   :  { %4586 = vmatpush.msrb.mxu2 %v14236_v12  ;;  %4606 = vmatpush.msrb.mxu3 %v14237_v6  ;;  %14244 = vst [vmem:[#allocation42_spill] sm:$0xff] %v11469_v47  ;;  %v11478_v12 = vpop.f32.mrf.mxu3 }
 0xb7d   :  { %4566 = vmatpush.msrb.mxu1 %v11254_v63  ;;  %4547 = vmatpush.msra.mxu0 %v14238_v14  ;;  %v3957_v63 = vld [vmem:[%s13125_s2] sm:$0xf]  ;;  %14246 = vst [vmem:[#allocation43_spill] sm:$0xff] %v11476_v62 }
 0xb7e   :  { %4587 = vmatpush.msrb.mxu2 %v14240_v23  ;;  %4607 = vmatpush.msrb.mxu3 %v14241_v44  ;;  %14247 = vst [vmem:[#allocation57_spill] sm:$0xff] %v11478_v12  ;;  %v11480_v6 = vperm.slane %v3957_v63, 0  ;;  %v11482_v14 = vperm.slane %v3957_v63, 1  ;;  %v11490_v45 = vperm.slane %v3957_v63, 2  ;;  %v11492_v55 = vperm.slane %v3957_v63, 3 }
 0xb7f   :  { %4567 = vmatpush.msrb.mxu1 %v14239_v26 }
 0xb80   :  { %14248 = vst [vmem:[#allocation68_spill] sm:$0xff] %v11480_v6 }
 0xb81   :  { %14249 = vst [vmem:[#allocation47_spill] sm:$0xff] %v11482_v14 }
 0xb82   :  { %v4040_v23 = vpop.f32.mrf.mxu1  ;;  %14252 = vst [vmem:[#allocation59_spill] sm:$0xff] %v11490_v45 }
 0xb83   :  { %v4011_v26 = vpop.f32.mrf.mxu0  ;;  %v11488_v47 = vadd.f32 %v4040_v23, %v11482_v14  ;;  %14253 = vst [vmem:[#allocation60_spill] sm:$0xff] %v11492_v55  ;;  %v4069_v1 = vpop.f32.mrf.mxu2 }
 0xb84   :  { %v11485_v44 = vadd.f32 %v4011_v26, %v11480_v6  ;;  %v4098_v62 = vpop.f32.mrf.mxu3  ;;  %v11495_v12 = vadd.f32 %v4069_v1, %v11490_v45 }
 0xb85   :  { %14251 = vst [vmem:[#allocation58_spill] sm:$0xff] %v11488_v47  ;;  %v11498_v9 = vadd.f32 %v4098_v62, %v11492_v55 }
 0xb86   :  { %14250 = vst [vmem:[#allocation54_spill] sm:$0xff] %v11485_v44 }
 0xb87   :  { %14254 = vst [vmem:[#allocation51_spill] sm:$0xff] %v11495_v12 }
 0xb88   :  { %14255 = vst [vmem:[#allocation61_spill] sm:$0xff] %v11498_v9 }
 0xb8a   :  { %v4043_v11 = vpop.f32.mrf.mxu1 }
 0xb8b   :  { %v4014_v48 = vpop.f32.mrf.mxu0  ;;  %v11504_v23 = vadd.f32 %v4043_v11, %v11482_v14  ;;  %v4072_v47 = vpop.f32.mrf.mxu2 }
 0xb8c   :  { %v11501_v26 = vadd.f32 %v4014_v48, %v11480_v6  ;;  %v4101_v44 = vpop.f32.mrf.mxu3  ;;  %v11507_v63 = vadd.f32 %v4072_v47, %v11490_v45  ;;  %v3026_v47 = vld [vmem:[%s13125_s2] sm:$0xf] }
 0xb8d   :  { %14257 = vst [vmem:[#allocation64_spill] sm:$0xff] %v11504_v23  ;;  %v11510_v24 = vadd.f32 %v4101_v44, %v11492_v55  ;;  %v11527_v44 = vperm.slane %v3026_v47, 0 }
 0xb8e   :  { %14256 = vst [vmem:[#allocation63_spill] sm:$0xff] %v11501_v26 }
 0xb8f   :  { %14258 = vst [vmem:[#allocation52_spill] sm:$0xff] %v11507_v63 }
 0xb90   :  { %14259 = vst [vmem:[#allocation18_spill] sm:$0xff] %v11510_v24  ;;  %v11529_v24 = vperm.slane %v3026_v47, 1 }
 0xb91   :  { %14264 = vst [vmem:[#allocation73_spill] sm:$0xff] %v11527_v44 }
 0xb92   :  { %14265 = vst [vmem:[#allocation74_spill] sm:$0xff] %v11529_v24 }
 0xba8   :  { %v4017_v1 = vpop.f32.mrf.mxu0  ;;  %v4046_v12 = vpop.f32.mrf.mxu1 }
 0xba9   :  { %v11513_v62 = vadd.f32 %v4017_v1, %v11480_v6  ;;  %v11516_v9 = vadd.f32 %v4046_v12, %v11482_v14  ;;  %v14266_v1 = vld [vmem:[#allocation40_spill] sm:$0xff]  ;;  %v14270_v6 = vld [vmem:[#allocation66_spill] sm:$0xff] }
 0xbaa   :  { %v3078_v12 = vadd.f32 %v14266_v1, %v11527_v44 }
 0xbab   :  { %14260 = vst [vmem:[#allocation39_spill] sm:$0xff] %v11513_v62 }
 0xbac   :  { %14261 = vst [vmem:[#allocation56_spill] sm:$0xff] %v11516_v9  ;;  %v14267_v9 = vld [vmem:[#allocation45_spill] sm:$0xff] }
 0xbad   :  { %v3107_v62 = vadd.f32 %v14267_v9, %v11529_v24 }
 0xbaf   :  { %v4075_v48 = vpop.f32.mrf.mxu2  ;;  %v4104_v26 = vpop.f32.mrf.mxu3 }
 0xbb0   :  { %v11519_v11 = vadd.f32 %v4075_v48, %v11490_v45  ;;  %v11522_v23 = vadd.f32 %v4104_v26, %v11492_v55  ;;  %v11535_v26 = vperm.slane %v3026_v47, 2 }
 0xbb2   :  { %14262 = vst [vmem:[#allocation71_spill] sm:$0xff] %v11519_v11  ;;  %v3136_v21 = vadd.f32 %v14270_v6, %v11535_v26 }
 0xbb3   :  { %14263 = vst [vmem:[#allocation72_spill] sm:$0xff] %v11522_v23  ;;  %v11537_v23 = vperm.slane %v3026_v47, 3 }
 0xbb4   :  { %14268 = vst [vmem:[#allocation40_spill] sm:$0xff] %v11535_v26 }
 0xbb5   :  { %14269 = vst [vmem:[#allocation45_spill] sm:$0xff] %v11537_v23  ;;  %v3165_v1 = vadd.f32 %v14271_v56, %v11537_v23 }
 0xbd2   :  { %v4209_v63 = vpop.f32.mrf.mxu0  ;;  %v4229_v48 = vpop.f32.mrf.mxu1 }
 0xbd3   :  { %v4272_v11 = vadd.f32 %v4209_v63, %v3078_v12  ;;  %v4273_v45 = vadd.f32 %v4229_v48, %v3107_v62 }
 0xbd5   :  { %v6739_v55 = vmul.f32 -1.442695, %v4272_v11  ;;  %v6740_v14 = vmul.f32 -1.442695, %v4273_v45 }
 0xbd7   :  { %7114 = vpow2.f32 %v6739_v55 }
 0xbd8   :  { %7116 = vpow2.f32 %v6740_v14 }
 0xbd9   :  { %v4249_v44 = vpop.f32.mrf.mxu2  ;;  %v4269_v9 = vpop.f32.mrf.mxu3 }
 0xbda   :  { %v4274_v24 = vadd.f32 %v4249_v44, %v3136_v21  ;;  %v4275_v52 = vadd.f32 %v4269_v9, %v3165_v1 }
 0xbdc   :  { %v6741_v63 = vmul.f32 -1.442695, %v4274_v24  ;;  %v6742_v62 = vmul.f32 -1.442695, %v4275_v52 }
 0xbdd   :  { %v7115_v12 = vpop.eup %7114 }
 0xbde   :  { %v7117_v48 = vpop.eup %7116  ;;  %v4288_v47 = vadd.f32 1.0, %v7115_v12  ;;  %7118 = vpow2.f32 %v6741_v63 }
 0xbdf   :  { %v4289_v11 = vadd.f32 1.0, %v7117_v48  ;;  %7120 = vpow2.f32 %v6742_v62 }
 0xbe0   :  { %7122 = vrcp.f32 %v4288_v47  ;;  %vm4297_vm9 = vweird.f32 %v4288_v47  ;;  %v4301_v22 = vand.u32 2147483647, %v4288_v47  ;;  %v4303_v37 = vand.u32 2147483648, %v4288_v47 }
 0xbe1   :  { %7124 = vrcp.f32 %v4289_v11  ;;  %vm4312_vm7 = vweird.f32 %v4289_v11  ;;  %v4316_v48 = vand.u32 2147483647, %v4289_v11  ;;  %v4318_v29 = vand.u32 2147483648, %v4289_v11 }
 0xbe2   :  { %vm4302_vm2 = vcmp.eq.f32.partialorder %v4301_v22, 8.507059e+37 }
 0xbe3   :  { %vm4317_vm13 = vcmp.eq.f32.partialorder %v4316_v48, 8.507059e+37 }
 0xbe4   :  { %v7119_v45 = vpop.eup %7118 }
 0xbe5   :  { %v7121_v55 = vpop.eup %7120  ;;  %v4290_v6 = vadd.f32 1.0, %v7119_v45 }
 0xbe6   :  { %v7123_v26 = vpop.eup %7122  ;;  %v4291_v56 = vadd.f32 1.0, %v7121_v55 }
 0xbe7   :  { %v7125_v14 = vpop.eup %7124  ;;  %v4293_v23 = vmul.f32 %v7123_v26, %v4288_v47  ;;  %7126 = vrcp.f32 %v4290_v6  ;;  %vm4298_vm8 = vweird.f32 %v7123_v26  ;;  %vm4327_vm14 = vweird.f32 %v4290_v6 }
 0xbe8   :  { %v4308_v21 = vmul.f32 %v7125_v14, %v4289_v11  ;;  %7128 = vrcp.f32 %v4291_v56  ;;  %vm4313_vm6 = vweird.f32 %v7125_v14  ;;  %vm4299_vm12 = vmor %vm4297_vm9, %vm4298_vm8  ;;  %v4304_v11 = vor.u32 1.1754944e-38, %v4303_v37 }
 0xbe9   :  { %v4294_v44 = vsub.f32 1.0, %v4293_v23  ;;  %vm4314_vm10 = vmor %vm4312_vm7, %vm4313_vm6  ;;  %v4333_v23 = vand.u32 2147483648, %v4290_v6  ;;  %vm4342_vm5 = vweird.f32 %v4291_v56  ;;  %v4346_v37 = vand.u32 2147483647, %v4291_v56 }
 0xbea   :  { %v4309_v52 = vsub.f32 1.0, %v4308_v21 }
 0xbeb   :  { %v4295_v24 = vmul.f32 %v7123_v26, %v4294_v44  ;;  %vm4347_vm7 = vcmp.eq.f32.partialorder %v4346_v37, 8.507059e+37 }
 0xbec   :  { %v4310_v1 = vmul.f32 %v7125_v14, %v4309_v52  ;;  %v4331_v52 = vand.u32 2147483647, %v4290_v6 }
 0xbed   :  { %v7127_v9 = vpop.eup %7126  ;;  %v4296_v45 = vadd.f32 %v7123_v26, %v4295_v24 }
 0xbee   :  { %v4311_v63 = vadd.f32 %v7125_v14, %v4310_v1  ;;  %v4323_v62 = vmul.f32 %v7127_v9, %v4290_v6  ;;  %v7129_v12 = vpop.eup %7128  ;;  %vm4328_vm11 = vweird.f32 %v7127_v9  ;;  %v4319_v1 = vor.u32 1.1754944e-38, %v4318_v29 }
 0xbef   :  { %v4338_v5 = vmul.f32 %v7129_v12, %v4291_v56  ;;  %v4300_v58 = vsel %vm4299_vm12, %v7123_v26, %v4296_v45  ;;  %vm4329_vm15 = vmor %vm4327_vm14, %vm4328_vm11  ;;  %vm4332_vm3 = vcmp.eq.f32.partialorder %v4331_v52, 8.507059e+37  ;;  %vm4343_vm4 = vweird.f32 %v7129_v12  ;;  %v14307_v45 = vld [vmem:[#allocation40_spill] sm:$0xff]  ;;  %v14310_v52 = vld [vmem:[#allocation49_spill] sm:$0xff] }
 0xbf0   :  { %v4324_v55 = vsub.f32 1.0, %v4323_v62  ;;  %v4315_v21 = vsel %vm4314_vm10, %v7125_v14, %v4311_v63  ;;  %v4334_v62 = vor.u32 1.1754944e-38, %v4333_v23  ;;  %v4305_v47 = vsel %vm4302_vm2, %v4304_v11, %v4300_v58  ;;  %v14272_v63 = vld [vmem:[#allocation53_spill] sm:$0xff]  ;;  %vm4344_vm6 = vmor %vm4342_vm5, %vm4343_vm4  ;;  %v14308_v23 = vld [vmem:[#allocation48_spill] sm:$0xff] }
 0xbf1   :  { %v4339_v16 = vsub.f32 1.0, %v4338_v5  ;;  %v4320_v24 = vsel %vm4317_vm13, %v4319_v1, %v4315_v21  ;;  %v4348_v29 = vand.u32 2147483648, %v4291_v56  ;;  %v3139_v21 = vadd.f32 %v14308_v23, %v14307_v45 }
 0xbf2   :  { %v4325_v44 = vmul.f32 %v7127_v9, %v4324_v55  ;;  %v4352_v55 = vmul.f32 %v4320_v24, %v14272_v63 }
 0xbf3   :  { %v4340_v14 = vmul.f32 %v7129_v12, %v4339_v16  ;;  %v4349_v22 = vor.u32 1.1754944e-38, %v4348_v29  ;;  %v14306_v16 = vld [vmem:[#allocation46_spill] sm:$0xff] }
 0xbf4   :  { %v4326_v7 = vadd.f32 %v7127_v9, %v4325_v44  ;;  %v14309_v44 = vld [vmem:[#allocation45_spill] sm:$0xff] }
 0xbf5   :  { %v4341_v5 = vadd.f32 %v7129_v12, %v4340_v14  ;;  %v3168_v1 = vadd.f32 %v14310_v52, %v14309_v44 }
 0xbf6   :  { %v4330_v51 = vsel %vm4329_vm15, %v7127_v9, %v4326_v7 }
 0xbf7   :  { %v4335_v35 = vsel %vm4332_vm3, %v4334_v62, %v4330_v51  ;;  %v4345_v26 = vsel %vm4344_vm6, %v7129_v12, %v4341_v5 }
 0xbf8   :  { %v4353_v59 = vmul.f32 %v4335_v35, %v4305_v47  ;;  %v4350_v58 = vsel %vm4347_vm7, %v4349_v22, %v4345_v26  ;;  %v14305_v35 = vld [vmem:[#allocation74_spill] sm:$0xff] }
 0xbfa   :  { %v11544_v38 = vadd.f32 %v4353_v59, %v4352_v55 }
 0xbfc   :  { %7130 = vtanh.f32 %v11544_v38 }
 0xc02   :  { %v7131_v7 = vpop.eup %7130 }
 0xc03   :  { %v4356_v51 = vmul.f32 %v7131_v7, %v4350_v58 }
 0xc05   :  { %4378 = vmatmul.f32.vlgmr.msrb.gmra.mxu0 %v4356_v51  ;;  %4398 = vmatmul.f32.vlgmr.msra.gmra.mxu1 %v4356_v51 }
 0xc06   :  { %4418 = vmatmul.f32.vlgmr.msra.gmra.mxu2 %v4356_v51  ;;  %4438 = vmatmul.f32.vlgmr.msra.gmra.mxu3 %v4356_v51 }
 0xc07   :  { %4702 = vmatpush.msrb.mxu0 %v14242_v49  ;;  %4722 = vmatpush.msra.mxu1 %v14243_v13  ;;  %v3110_v13 = vadd.f32 %v14306_v16, %v14305_v35 }
 0xc08   :  { %4742 = vmatpush.msra.mxu2 %v10857_v2  ;;  %4762 = vmatpush.msra.mxu3 %v10874_v42  ;;  %v14273_v2 = vld [vmem:[#allocation44_spill] sm:$0xff]  ;;  %v14274_v42 = vld [vmem:[#allocation19_spill] sm:$0xff] }
 0xc09   :  { %4703 = vmatpush.msrb.mxu0 %v10886_v43  ;;  %4723 = vmatpush.msra.mxu1 %v10893_v60  ;;  %v14276_v43 = vld [vmem:[#allocation21_spill] sm:$0xff]  ;;  %v14277_v60 = vld [vmem:[#allocation20_spill] sm:$0xff] }
 0xc0a   :  { %4743 = vmatpush.msra.mxu2 %v10881_v57  ;;  %4763 = vmatpush.msra.mxu3 %v10898_v0  ;;  %v14275_v57 = vld [vmem:[#allocation22_spill] sm:$0xff] }
 0xc0b   :  { %4704 = vmatpush.msrb.mxu0 %v10910_v8  ;;  %4724 = vmatpush.msra.mxu1 %v10917_v46  ;;  %v14278_v0 = vld [vmem:[#allocation10_spill] sm:$0xff]  ;;  %v14280_v8 = vld [vmem:[#allocation24_spill] sm:$0xff]  ;;  %v14281_v46 = vld [vmem:[#allocation23_spill] sm:$0xff] }
 0xc0c   :  { %4744 = vmatpush.msra.mxu2 %v10905_v18  ;;  %4764 = vmatpush.msra.mxu3 %v10922_v3  ;;  %v14279_v18 = vld [vmem:[#allocation25_spill] sm:$0xff]  ;;  %v14282_v3 = vld [vmem:[#allocation11_spill] sm:$0xff] }
 0xc0d   :  { %4705 = vmatpush.msrb.mxu0 %v10934_v17  ;;  %4725 = vmatpush.msra.mxu1 %v10941_v19  ;;  %v14284_v17 = vld [vmem:[#allocation27_spill] sm:$0xff]  ;;  %v14285_v19 = vld [vmem:[#allocation26_spill] sm:$0xff] }
 0xc0e   :  { %4745 = vmatpush.msra.mxu2 %v10929_v27  ;;  %4765 = vmatpush.msra.mxu3 %v10946_v33  ;;  %v14283_v27 = vld [vmem:[#allocation28_spill] sm:$0xff] }
 0xc0f   :  { %4706 = vmatpush.msrb.mxu0 %v10969_v36  ;;  %4726 = vmatpush.msra.mxu1 %v10976_v34  ;;  %v14286_v33 = vld [vmem:[#allocation12_spill] sm:$0xff]  ;;  %v14288_v36 = vld [vmem:[#allocation30_spill] sm:$0xff]  ;;  %v14289_v34 = vld [vmem:[#allocation29_spill] sm:$0xff] }
 0xc10   :  { %4746 = vmatpush.msra.mxu2 %v10964_v61  ;;  %4766 = vmatpush.msra.mxu3 %v10981_v32  ;;  %v14287_v61 = vld [vmem:[#allocation31_spill] sm:$0xff]  ;;  %v14290_v32 = vld [vmem:[#allocation13_spill] sm:$0xff] }
 0xc11   :  { %4707 = vmatpush.msrb.mxu0 %v10993_v30  ;;  %4727 = vmatpush.msra.mxu1 %v11000_v28  ;;  %v14292_v30 = vld [vmem:[#allocation34_spill] sm:$0xff]  ;;  %v14293_v28 = vld [vmem:[#allocation32_spill] sm:$0xff] }
 0xc12   :  { %4747 = vmatpush.msra.mxu2 %v10988_v54  ;;  %4767 = vmatpush.msra.mxu3 %v11005_v4  ;;  %v14291_v54 = vld [vmem:[#allocation33_spill] sm:$0xff]  ;;  %v14294_v4 = vld [vmem:[#allocation14_spill] sm:$0xff] }
 0xc13   :  { %4708 = vmatpush.msrb.mxu0 %v11017_v40  ;;  %4728 = vmatpush.msra.mxu1 %v11024_v25  ;;  %v14296_v40 = vld [vmem:[#allocation62_spill] sm:$0xff]  ;;  %v14297_v25 = vld [vmem:[#allocation35_spill] sm:$0xff] }
 0xc14   :  { %4748 = vmatpush.msra.mxu2 %v11012_v53  ;;  %4768 = vmatpush.msra.mxu3 %v11029_v15  ;;  %v14295_v53 = vld [vmem:[#allocation36_spill] sm:$0xff]  ;;  %v14298_v15 = vld [vmem:[#allocation55_spill] sm:$0xff] }
 0xc15   :  { %4709 = vmatpush.msrb.mxu0 %v11045_v39  ;;  %4729 = vmatpush.msra.mxu1 %v11052_v31  ;;  %v14300_v39 = vld [vmem:[#allocation67_spill] sm:$0xff]  ;;  %v14301_v31 = vld [vmem:[#allocation6_spill] sm:$0xff] }
 0xc16   :  { %4749 = vmatpush.msra.mxu2 %v11040_v41  ;;  %4769 = vmatpush.msra.mxu3 %v11057_v20  ;;  %v14299_v41 = vld [vmem:[#allocation38_spill] sm:$0xff]  ;;  %v14302_v20 = vld [vmem:[#allocation65_spill] sm:$0xff] }
 0xc17   :  { %4710 = vmatpush.msrb.mxu0 %v11076_v10  ;;  %4730 = vmatpush.msra.mxu1 %v11083_v50  ;;  %v14303_v10 = vld [vmem:[#allocation73_spill] sm:$0xff] }
 0xc18   :  { %4750 = vmatpush.msra.mxu2 %v14273_v2  ;;  %4770 = vmatpush.msra.mxu3 %v14274_v42  ;;  %v14304_v50 = vld [vmem:[#allocation41_spill] sm:$0xff] }
 0xc19   :  { %4711 = vmatpush.msrb.mxu0 %v14275_v57  ;;  %4731 = vmatpush.msra.mxu1 %v14276_v43  ;;  %v3081_v59 = vadd.f32 %v14304_v50, %v14303_v10 }
 0xc1a   :  { %4751 = vmatpush.msra.mxu2 %v14277_v60  ;;  %4771 = vmatpush.msra.mxu3 %v14278_v0 }
 0xc1b   :  { %4712 = vmatpush.msrb.mxu0 %v14279_v18  ;;  %4732 = vmatpush.msra.mxu1 %v14280_v8 }
 0xc1c   :  { %4752 = vmatpush.msra.mxu2 %v14281_v46  ;;  %4772 = vmatpush.msra.mxu3 %v14282_v3 }
 0xc1d   :  { %4713 = vmatpush.msrb.mxu0 %v14283_v27  ;;  %4733 = vmatpush.msra.mxu1 %v14284_v17 }
 0xc1e   :  { %4753 = vmatpush.msra.mxu2 %v14285_v19  ;;  %4773 = vmatpush.msra.mxu3 %v14286_v33 }
 0xc1f   :  { %4714 = vmatpush.msrb.mxu0 %v14287_v61  ;;  %4734 = vmatpush.msra.mxu1 %v14288_v36 }
 0xc20   :  { %4754 = vmatpush.msra.mxu2 %v14289_v34  ;;  %4774 = vmatpush.msra.mxu3 %v14290_v32 }
 0xc21   :  { %4715 = vmatpush.msrb.mxu0 %v14291_v54  ;;  %4735 = vmatpush.msra.mxu1 %v14292_v30 }
 0xc22   :  { %4755 = vmatpush.msra.mxu2 %v14293_v28  ;;  %4775 = vmatpush.msra.mxu3 %v14294_v4 }
 0xc23   :  { %4716 = vmatpush.msrb.mxu0 %v14295_v53  ;;  %4736 = vmatpush.msra.mxu1 %v14296_v40 }
 0xc24   :  { %4756 = vmatpush.msra.mxu2 %v14297_v25  ;;  %4776 = vmatpush.msra.mxu3 %v14298_v15 }
 0xc25   :  { %4717 = vmatpush.msrb.mxu0 %v14299_v41  ;;  %4737 = vmatpush.msra.mxu1 %v14300_v39 }
 0xc26   :  { %4757 = vmatpush.msra.mxu2 %v14301_v31  ;;  %4777 = vmatpush.msra.mxu3 %v14302_v20 }
 0xc82   :  { %v4379_v49 = vpop.f32.mrf.mxu0  ;;  %v4399_v6 = vpop.f32.mrf.mxu1 }
 0xc83   :  { %v4442_v56 = vadd.f32 %v4379_v49, %v3081_v59  ;;  %v4443_v9 = vadd.f32 %v4399_v6, %v3110_v13 }
 0xc85   :  { %v6743_v12 = vmul.f32 -1.442695, %v4442_v56  ;;  %v6744_v48 = vmul.f32 -1.442695, %v4443_v9 }
 0xc87   :  { %7132 = vpow2.f32 %v6743_v12 }
 0xc88   :  { %7134 = vpow2.f32 %v6744_v48 }
 0xc89   :  { %v4419_v11 = vpop.f32.mrf.mxu2  ;;  %v4439_v24 = vpop.f32.mrf.mxu3 }
 0xc8a   :  { %v4444_v62 = vadd.f32 %v4419_v11, %v3139_v21  ;;  %v4445_v47 = vadd.f32 %v4439_v24, %v3168_v1  ;;  %v14312_v24 = vld [vmem:[#allocation17_spill] sm:$0xff] }
 0xc8c   :  { %v6745_v14 = vmul.f32 -1.442695, %v4444_v62  ;;  %v6746_v63 = vmul.f32 -1.442695, %v4445_v47  ;;  %v3113_v62 = vadd.f32 %v14312_v24, %v14305_v35 }
 0xc8d   :  { %v7133_v55 = vpop.eup %7132 }
 0xc8e   :  { %v7135_v5 = vpop.eup %7134  ;;  %v4458_v29 = vadd.f32 1.0, %v7133_v55  ;;  %7136 = vpow2.f32 %v6745_v14 }
 0xc8f   :  { %v4459_v37 = vadd.f32 1.0, %v7135_v5  ;;  %7138 = vpow2.f32 %v6746_v63 }
 0xc90   :  { %7140 = vrcp.f32 %v4458_v29  ;;  %vm4467_vm11 = vweird.f32 %v4458_v29  ;;  %v4471_v34 = vand.u32 2147483647, %v4458_v29  ;;  %v4473_v32 = vand.u32 2147483648, %v4458_v29 }
 0xc91   :  { %7142 = vrcp.f32 %v4459_v37  ;;  %vm4482_vm9 = vweird.f32 %v4459_v37  ;;  %v4486_v17 = vand.u32 2147483647, %v4459_v37  ;;  %v4488_v19 = vand.u32 2147483648, %v4459_v37 }
 0xc92   :  { %v4474_v41 = vor.u32 1.1754944e-38, %v4473_v32  ;;  %vm4472_vm4 = vcmp.eq.f32.partialorder %v4471_v34, 8.507059e+37 }
 0xc93   :  { %v4489_v53 = vor.u32 1.1754944e-38, %v4488_v19  ;;  %vm4487_vm15 = vcmp.eq.f32.partialorder %v4486_v17, 8.507059e+37 }
 0xc94   :  { %v7137_v26 = vpop.eup %7136 }
 0xc95   :  { %v7139_v22 = vpop.eup %7138  ;;  %v4460_v7 = vadd.f32 1.0, %v7137_v26 }
 0xc96   :  { %v7141_v58 = vpop.eup %7140  ;;  %v4461_v51 = vadd.f32 1.0, %v7139_v22  ;;  %v14314_v22 = vld [vmem:[#allocation16_spill] sm:$0xff] }
 0xc97   :  { %v7143_v2 = vpop.eup %7142  ;;  %v4463_v42 = vmul.f32 %v7141_v58, %v4458_v29  ;;  %7144 = vrcp.f32 %v4460_v7  ;;  %vm4468_vm10 = vweird.f32 %v7141_v58  ;;  %v4503_v54 = vand.u32 2147483648, %v4460_v7 }
 0xc98   :  { %v4478_v57 = vmul.f32 %v7143_v2, %v4459_v37  ;;  %7146 = vrcp.f32 %v4461_v51  ;;  %vm4483_vm8 = vweird.f32 %v7143_v2  ;;  %v4501_v4 = vand.u32 2147483647, %v4460_v7  ;;  %vm4469_vm14 = vmor %vm4467_vm11, %vm4468_vm10  ;;  %v14313_v37 = vld [vmem:[#allocation15_spill] sm:$0xff] }
 0xc99   :  { %v4464_v43 = vsub.f32 1.0, %v4463_v42  ;;  %vm4484_vm12 = vmor %vm4482_vm9, %vm4483_vm8  ;;  %vm4497_vm2 = vweird.f32 %v4460_v7  ;;  %v4504_v31 = vor.u32 1.1754944e-38, %v4503_v54  ;;  %v4518_v9 = vand.u32 2147483648, %v4461_v51 }
 0xc9a   :  { %v4479_v60 = vsub.f32 1.0, %v4478_v57  ;;  %vm4502_vm5 = vcmp.eq.f32.partialorder %v4501_v4, 8.507059e+37  ;;  %vm4512_vm7 = vweird.f32 %v4461_v51  ;;  %v4516_v12 = vand.u32 2147483647, %v4461_v51 }
 0xc9b   :  { %v4465_v0 = vmul.f32 %v7141_v58, %v4464_v43  ;;  %v4519_v23 = vor.u32 1.1754944e-38, %v4518_v9  ;;  %v3142_v26 = vadd.f32 %v14313_v37, %v14307_v45 }
 0xc9c   :  { %v4480_v18 = vmul.f32 %v7143_v2, %v4479_v60  ;;  %vm4517_vm9 = vcmp.eq.f32.partialorder %v4516_v12, 8.507059e+37 }
 0xc9d   :  { %v7145_v8 = vpop.eup %7144  ;;  %v4466_v33 = vadd.f32 %v7141_v58, %v4465_v0 }
 0xc9e   :  { %v4481_v46 = vadd.f32 %v7143_v2, %v4480_v18  ;;  %v4493_v3 = vmul.f32 %v7145_v8, %v4460_v7  ;;  %v7147_v27 = vpop.eup %7146  ;;  %vm4498_vm13 = vweird.f32 %v7145_v8  ;;  %v3171_v7 = vadd.f32 %v14314_v22, %v14309_v44 }
 0xc9f   :  { %v4508_v36 = vmul.f32 %v7147_v27, %v4461_v51  ;;  %v4470_v25 = vsel %vm4469_vm14, %v7141_v58, %v4466_v33  ;;  %vm4499_vm3 = vmor %vm4497_vm2, %vm4498_vm13  ;;  %vm4513_vm6 = vweird.f32 %v7147_v27 }
 0xca0   :  { %v4494_v61 = vsub.f32 1.0, %v4493_v3  ;;  %v4485_v30 = vsel %vm4484_vm12, %v7143_v2, %v4481_v46  ;;  %v4475_v50 = vsel %vm4472_vm4, %v4474_v41, %v4470_v25  ;;  %vm4514_vm8 = vmor %vm4512_vm7, %vm4513_vm6 }
 0xca1   :  { %v4509_v40 = vsub.f32 1.0, %v4508_v36  ;;  %v4490_v39 = vsel %vm4487_vm15, %v4489_v53, %v4485_v30 }
 0xca2   :  { %v4495_v28 = vmul.f32 %v7145_v8, %v4494_v61  ;;  %v4522_v13 = vmul.f32 %v4490_v39, %v11544_v38  ;;  %v14311_v38 = vld [vmem:[#allocation8_spill] sm:$0xff] }
 0xca3   :  { %v4510_v16 = vmul.f32 %v7147_v27, %v4509_v40  ;;  %v3084_v11 = vadd.f32 %v14311_v38, %v14303_v10 }
 0xca4   :  { %v4496_v15 = vadd.f32 %v7145_v8, %v4495_v28 }
 0xca5   :  { %v4511_v56 = vadd.f32 %v7147_v27, %v4510_v16 }
 0xca6   :  { %v4500_v20 = vsel %vm4499_vm3, %v7145_v8, %v4496_v15 }
 0xca7   :  { %v4505_v59 = vsel %vm4502_vm5, %v4504_v31, %v4500_v20  ;;  %v4515_v48 = vsel %vm4514_vm8, %v7147_v27, %v4511_v56 }
 0xca8   :  { %v4523_v49 = vmul.f32 %v4505_v59, %v4475_v50  ;;  %v4520_v52 = vsel %vm4517_vm9, %v4519_v23, %v4515_v48 }
 0xcaa   :  { %v11620_v6 = vadd.f32 %v4523_v49, %v4522_v13 }
 0xcac   :  { %7148 = vtanh.f32 %v11620_v6 }
 0xcb2   :  { %v7149_v21 = vpop.eup %7148 }
 0xcb3   :  { %v4526_v1 = vmul.f32 %v7149_v21, %v4520_v52 }
 0xcb5   :  { %4548 = vmatmul.f32.vlgmr.msra.gmra.mxu0 %v4526_v1  ;;  %4568 = vmatmul.f32.vlgmr.msrb.gmra.mxu1 %v4526_v1 }
 0xcb6   :  { %4588 = vmatmul.f32.vlgmr.msrb.gmra.mxu2 %v4526_v1  ;;  %4608 = vmatmul.f32.vlgmr.msrb.gmra.mxu3 %v4526_v1 }
 0xd32   :  { %v4549_v47 = vpop.f32.mrf.mxu0  ;;  %v4569_v14 = vpop.f32.mrf.mxu1 }
 0xd33   :  { %v4612_v63 = vadd.f32 %v4549_v47, %v3084_v11  ;;  %v4613_v55 = vadd.f32 %v4569_v14, %v3113_v62 }
 0xd35   :  { %v6747_v5 = vmul.f32 -1.442695, %v4612_v63  ;;  %v6748_v29 = vmul.f32 -1.442695, %v4613_v55 }
 0xd37   :  { %7150 = vpow2.f32 %v6747_v5 }
 0xd38   :  { %7152 = vpow2.f32 %v6748_v29 }
 0xd39   :  { %v4589_v58 = vpop.f32.mrf.mxu2  ;;  %v4609_v51 = vpop.f32.mrf.mxu3 }
 0xd3a   :  { %v4614_v2 = vadd.f32 %v4589_v58, %v3142_v26  ;;  %v4615_v42 = vadd.f32 %v4609_v51, %v3171_v7  ;;  %v4884_v58 = vld [vmem:[%s13124_s1 + $0x60] sm:$0xf]  ;;  %v4885_v51 = vld [vmem:[%s13124_s1 + $0x68] sm:$0xf] }
 0xd3b   :  { %6759 = vmatpush.msk.msra.mxu0 %vm67_vm0, %v4884_v58  ;;  %6764 = vmatpush.msk.msrb.mxu1 %vm67_vm0, %v4885_v51  ;;  %v11893_v51 = vld [vmem:[%s13126_s3 + $0x118] sm:$0xff] }
 0xd3c   :  { %v6749_v57 = vmul.f32 -1.442695, %v4614_v2  ;;  %v6750_v43 = vmul.f32 -1.442695, %v4615_v42  ;;  %v4887_v2 = vld [vmem:[%s13124_s1 + $0x78] sm:$0xf] }
 0xd3d   :  { %v7151_v60 = vpop.eup %7150  ;;  %6774 = vmatpush.msk.msrb.mxu3 %vm67_vm0, %v4887_v2  ;;  %v4882_v42 = vld [vmem:[%s13124_s1 + $0x50] sm:$0xff] }
 0xd3e   :  { %v7153_v0 = vpop.eup %7152  ;;  %v4628_v18 = vadd.f32 1.0, %v7151_v60  ;;  %7154 = vpow2.f32 %v6749_v57  ;;  %v4880_v57 = vld [vmem:[%s13124_s1 + $0x40] sm:$0xff]  ;;  %v4883_v60 = vld [vmem:[%s13124_s1 + $0x58] sm:$0xff] }
 0xd3f   :  { %v4629_v8 = vadd.f32 1.0, %v7153_v0  ;;  %7156 = vpow2.f32 %v6750_v43  ;;  %v4881_v43 = vld [vmem:[%s13124_s1 + $0x48] sm:$0xff]  ;;  %4935 = vmatpush.msra.mxu0 %v4880_v57  ;;  %5022 = vmatpush.msrb.mxu3 %v4883_v60  ;;  %v4878_v0 = vld [vmem:[%s13124_s1 + $0x30] sm:$0xff] }
 0xd40   :  { %7158 = vrcp.f32 %v4628_v18  ;;  %vm4637_vm13 = vweird.f32 %v4628_v18  ;;  %v4641_v20 = vand.u32 2147483647, %v4628_v18  ;;  %v4643_v50 = vand.u32 2147483648, %v4628_v18  ;;  %4964 = vmatpush.msrb.mxu1 %v4881_v43  ;;  %v6757_v57 = vld [vmem:[%s13123_s0 + $0xd0] sm:$0xff] }
 0xd41   :  { %7160 = vrcp.f32 %v4629_v8  ;;  %vm4652_vm11 = vweird.f32 %v4629_v8  ;;  %v4656_v25 = vand.u32 2147483647, %v4629_v8  ;;  %v4658_v15 = vand.u32 2147483648, %v4629_v8 }
 0xd42   :  { %v4644_v23 = vor.u32 1.1754944e-38, %v4643_v50  ;;  %vm4642_vm6 = vcmp.eq.f32.partialorder %v4641_v20, 8.507059e+37  ;;  %v11782_v20 = vld [vmem:[%s13126_s3 + $0x198] sm:$0xff]  ;;  %v6756_v50 = vld [vmem:[%s13123_s0 + $0xc8] sm:$0xff] }
 0xd43   :  { %v4659_v56 = vor.u32 1.1754944e-38, %v4658_v15  ;;  %vm4657_vm3 = vcmp.eq.f32.partialorder %v4656_v25, 8.507059e+37  ;;  %v11753_v25 = vld [vmem:[%s13126_s3 + $0x1a8] sm:$0xff]  ;;  %v11758_v15 = vld [vmem:[%s13126_s3 + $0x1b8] sm:$0xff] }
 0xd44   :  { %v7155_v46 = vpop.eup %7154 }
 0xd45   :  { %v7157_v3 = vpop.eup %7156  ;;  %v4630_v27 = vadd.f32 1.0, %v7155_v46  ;;  %v4879_v46 = vld [vmem:[%s13124_s1 + $0x38] sm:$0xff] }
 0xd46   :  { %v7159_v17 = vpop.eup %7158  ;;  %v4631_v19 = vadd.f32 1.0, %v7157_v3  ;;  %5023 = vmatpush.msrb.mxu3 %v4879_v46  ;;  %v4874_v3 = vld [vmem:[%s13124_s1 + $0x10] sm:$0xff]  ;;  %v11919_v46 = vld [vmem:[%s13126_s3 + $0xe8] sm:$0xff] }
 0xd47   :  { %v7161_v33 = vpop.eup %7160  ;;  %v4633_v61 = vmul.f32 %v7159_v17, %v4628_v18  ;;  %7162 = vrcp.f32 %v4630_v27  ;;  %vm4638_vm12 = vweird.f32 %v7159_v17  ;;  %v4673_v59 = vand.u32 2147483648, %v4630_v27  ;;  %v4876_v18 = vld [vmem:[%s13124_s1 + $0x20] sm:$0xff] }
 0xd48   :  { %v4648_v36 = vmul.f32 %v7161_v33, %v4629_v8  ;;  %7164 = vrcp.f32 %v4631_v19  ;;  %vm4653_vm10 = vweird.f32 %v7161_v33  ;;  %v4671_v49 = vand.u32 2147483647, %v4630_v27  ;;  %vm4639_vm2 = vmor %vm4637_vm13, %vm4638_vm12  ;;  %v4877_v8 = vld [vmem:[%s13124_s1 + $0x28] sm:$0xff]  ;;  %4936 = vmatpush.msra.mxu0 %v4876_v18  ;;  %v11912_v18 = vld [vmem:[%s13126_s3 + $0xe0] sm:$0xff] }
 0xd49   :  { %v4634_v34 = vsub.f32 1.0, %v4633_v61  ;;  %vm4654_vm14 = vmor %vm4652_vm11, %vm4653_vm10  ;;  %vm4667_vm4 = vweird.f32 %v4630_v27  ;;  %v4674_v52 = vor.u32 1.1754944e-38, %v4673_v59  ;;  %v4688_v55 = vand.u32 2147483648, %v4631_v19  ;;  %4965 = vmatpush.msrb.mxu1 %v4877_v8  ;;  %v11693_v61 = vld [vmem:[%s13126_s3 + $0x1f0] sm:$0xff]  ;;  %v14317_v59 = vld [vmem:[#allocation69_spill] sm:$0xff] }
 0xd4a   :  { %v4649_v32 = vsub.f32 1.0, %v4648_v36  ;;  %vm4672_vm7 = vcmp.eq.f32.partialorder %v4671_v49, 8.507059e+37  ;;  %vm4682_vm9 = vweird.f32 %v4631_v19  ;;  %v4686_v5 = vand.u32 2147483647, %v4631_v19  ;;  %v11698_v36 = vld [vmem:[%s13126_s3 + $0x1e0] sm:$0xff] }
 0xd4b   :  { %v4635_v54 = vmul.f32 %v7159_v17, %v4634_v34  ;;  %v4689_v37 = vor.u32 1.1754944e-38, %v4688_v55  ;;  %14315 = vst [vmem:[#allocation66_spill] sm:$0xff] %v11698_v36  ;;  %v11705_v34 = vld [vmem:[%s13126_s3 + $0x1e8] sm:$0xff] }
 0xd4c   :  { %v4650_v30 = vmul.f32 %v7161_v33, %v4649_v32  ;;  %vm4687_vm11 = vcmp.eq.f32.partialorder %v4686_v5, 8.507059e+37  ;;  %14316 = vst [vmem:[#allocation37_spill] sm:$0xff] %v11705_v34  ;;  %v11710_v32 = vld [vmem:[%s13126_s3 + $0x1f8] sm:$0xff]  ;;  %v11860_v55 = vld [vmem:[%s13126_s3 + $0x128] sm:$0xff] }
 0xd4d   :  { %v7163_v28 = vpop.eup %7162  ;;  %v4636_v41 = vadd.f32 %v7159_v17, %v4635_v54  ;;  %v11717_v54 = vld [vmem:[%s13126_s3 + $0x1d0] sm:$0xff]  ;;  %v11865_v5 = vld [vmem:[%s13126_s3 + $0x138] sm:$0xff] }
 0xd4e   :  { %v4651_v4 = vadd.f32 %v7161_v33, %v4650_v30  ;;  %v4663_v53 = vmul.f32 %v7163_v28, %v4630_v27  ;;  %v7165_v40 = vpop.eup %7164  ;;  %vm4668_vm15 = vweird.f32 %v7163_v28  ;;  %v4872_v27 = vld [vmem:[%s13124_s1] sm:$0xff] }
 0xd4f   :  { %v4678_v31 = vmul.f32 %v7165_v40, %v4631_v19  ;;  %v4640_v12 = vsel %vm4639_vm2, %v7159_v17, %v4636_v41  ;;  %vm4669_vm5 = vmor %vm4667_vm4, %vm4668_vm15  ;;  %vm4683_vm8 = vweird.f32 %v7165_v40  ;;  %v4873_v17 = vld [vmem:[%s13124_s1 + $0x8] sm:$0xff]  ;;  %4937 = vmatpush.msra.mxu0 %v4872_v27  ;;  %v4875_v19 = vld [vmem:[%s13124_s1 + $0x18] sm:$0xff] }
 0xd50   :  { %v4664_v39 = vsub.f32 1.0, %v4663_v53  ;;  %v4655_v16 = vsel %vm4654_vm14, %v7161_v33, %v4651_v4  ;;  %v4645_v38 = vsel %vm4642_vm6, %v4644_v23, %v4640_v12  ;;  %vm4684_vm10 = vmor %vm4682_vm9, %vm4683_vm8  ;;  %v6755_v33 = vld [vmem:[%s13123_s0 + $0xc0] sm:$0xff]  ;;  %4966 = vmatpush.msrb.mxu1 %v4873_v17  ;;  %5024 = vmatpush.msrb.mxu3 %v4875_v19  ;;  %v11734_v4 = vld [vmem:[%s13126_s3 + $0x1d8] sm:$0xff] }
 0xd51   :  { %v4679_v9 = vsub.f32 1.0, %v4678_v31  ;;  %v4660_v21 = vsel %vm4657_vm3, %v4659_v56, %v4655_v16  ;;  %v11722_v30 = vld [vmem:[%s13126_s3 + $0x1c0] sm:$0xff]  ;;  %v11741_v53 = vld [vmem:[%s13126_s3 + $0x1b0] sm:$0xff]  ;;  %v11777_v31 = vld [vmem:[%s13126_s3 + $0x188] sm:$0xff]  ;;  %v3087_v16 = vadd.f32 %v14317_v59, %v14303_v10 }
 0xd52   :  { %v4665_v13 = vmul.f32 %v7163_v28, %v4664_v39  ;;  %v4692_v62 = vmul.f32 %v4660_v21, %v11620_v6  ;;  %v4886_v6 = vld [vmem:[%s13124_s1 + $0x70] sm:$0xf]  ;;  %v11770_v39 = vld [vmem:[%s13126_s3 + $0x180] sm:$0xff]  ;;  %v11812_v23 = vld [vmem:[%s13126_s3 + $0x168] sm:$0xff] }
 0xd53   :  { %v4680_v24 = vmul.f32 %v7165_v40, %v4679_v9  ;;  %6769 = vmatpush.msk.msrb.mxu2 %vm67_vm0, %v4886_v6  ;;  %v11765_v41 = vld [vmem:[%s13126_s3 + $0x190] sm:$0xff]  ;;  %v11805_v10 = vld [vmem:[%s13126_s3 + $0x160] sm:$0xff]  ;;  %v11817_v21 = vld [vmem:[%s13126_s3 + $0x178] sm:$0xff] }
 0xd54   :  { %v4666_v48 = vadd.f32 %v7163_v28, %v4665_v13  ;;  %v14318_v13 = vld [vmem:[#allocation70_spill] sm:$0xff]  ;;  %v11800_v12 = vld [vmem:[%s13126_s3 + $0x170] sm:$0xff]  ;;  %v11881_v6 = vld [vmem:[%s13126_s3 + $0x100] sm:$0xff] }
 0xd55   :  { %v4681_v63 = vadd.f32 %v7165_v40, %v4680_v24  ;;  %4993 = vmatpush.msrb.mxu2 %v4882_v42  ;;  %v3116_v49 = vadd.f32 %v14318_v13, %v14305_v35  ;;  %v11836_v24 = vld [vmem:[%s13126_s3 + $0x148] sm:$0xff]  ;;  %v11933_v19 = vld [vmem:[%s13126_s3 + $0xd0] sm:$0xff] }
 0xd56   :  { %v4670_v1 = vsel %vm4669_vm5, %v7163_v28, %v4666_v48  ;;  %v11729_v28 = vld [vmem:[%s13126_s3 + $0x1c8] sm:$0xff]  ;;  %14323 = vst [vmem:[#allocation19_spill] sm:$0xff] %v11933_v19  ;;  %v11960_v13 = vld [vmem:[%s13126_s3 + $0xb0] sm:$0xff] }
 0xd57   :  { %v4675_v11 = vsel %vm4672_vm7, %v4674_v52, %v4670_v1  ;;  %v4685_v29 = vsel %vm4684_vm10, %v7165_v40, %v4681_v63  ;;  %4994 = vmatpush.msrb.mxu2 %v4878_v0  ;;  %v11746_v40 = vld [vmem:[%s13126_s3 + $0x1a0] sm:$0xff]  ;;  %v11824_v52 = vld [vmem:[%s13126_s3 + $0x150] sm:$0xff]  ;;  %v11947_v59 = vld [vmem:[%s13126_s3 + $0xc8] sm:$0xff]  ;;  %14327 = vst [vmem:[#allocation10_spill] sm:$0xff] %v11960_v13 }
 0xd58   :  { %v4693_v47 = vmul.f32 %v4675_v11, %v4645_v38  ;;  %v4690_v22 = vsel %vm4687_vm11, %v4689_v37, %v4685_v29  ;;  %v11829_v1 = vld [vmem:[%s13126_s3 + $0x140] sm:$0xff]  ;;  %v14319_v29 = vld [vmem:[#allocation7_spill] sm:$0xff]  ;;  %14325 = vst [vmem:[#allocation21_spill] sm:$0xff] %v11947_v59 }
 0xd59   :  { %4995 = vmatpush.msrb.mxu2 %v4874_v3  ;;  %v11853_v63 = vld [vmem:[%s13126_s3 + $0x120] sm:$0xff]  ;;  %v3145_v37 = vadd.f32 %v14319_v29, %v14307_v45  ;;  %v11907_v0 = vld [vmem:[%s13126_s3 + $0xf0] sm:$0xff]  ;;  %v11924_v3 = vld [vmem:[%s13126_s3 + $0xf8] sm:$0xff] }
 0xd5a   :  { %v11632_v14 = vadd.f32 %v4693_v47, %v4692_v62  ;;  %v11841_v62 = vld [vmem:[%s13126_s3 + $0x158] sm:$0xff]  ;;  %v11848_v47 = vld [vmem:[%s13126_s3 + $0x130] sm:$0xff]  ;;  %14321 = vst [vmem:[#allocation53_spill] sm:$0xff] %v11907_v0 }
 0xd5b   :  { %14322 = vst [vmem:[#allocation44_spill] sm:$0xff] %v11924_v3 }
 0xd5c   :  { %7166 = vtanh.f32 %v11632_v14 }
 0xd62   :  { %v7167_v26 = vpop.eup %7166 }
 0xd63   :  { %v4696_v7 = vmul.f32 %v7167_v26, %v4690_v22  ;;  %v14320_v26 = vld [vmem:[#allocation9_spill] sm:$0xff] }
 0xd64   :  { %v3174_v22 = vadd.f32 %v14320_v26, %v14309_v44  ;;  %v11888_v44 = vld [vmem:[%s13126_s3 + $0x108] sm:$0xff] }
 0xd65   :  { %4718 = vmatmul.f32.vlgmr.msrb.gmra.mxu0 %v4696_v7  ;;  %4738 = vmatmul.f32.vlgmr.msra.gmra.mxu1 %v4696_v7 }
 0xd66   :  { %4758 = vmatmul.f32.vlgmr.msra.gmra.mxu2 %v4696_v7  ;;  %4778 = vmatmul.f32.vlgmr.msra.gmra.mxu3 %v4696_v7  ;;  %v11876_v7 = vld [vmem:[%s13126_s3 + $0x110] sm:$0xff] }
 0xd67   :  { %5163 = vmatpush.msra.mxu2 %v11693_v61  ;;  %5123 = vmatpush.msrb.mxu0 %v11698_v36 }
 0xd68   :  { %5143 = vmatpush.msra.mxu1 %v11705_v34  ;;  %5183 = vmatpush.msra.mxu3 %v11710_v32 }
 0xd69   :  { %5164 = vmatpush.msra.mxu2 %v11717_v54  ;;  %5124 = vmatpush.msrb.mxu0 %v11722_v30 }
 0xd6a   :  { %5144 = vmatpush.msra.mxu1 %v11729_v28  ;;  %5184 = vmatpush.msra.mxu3 %v11734_v4 }
 0xd6b   :  { %5165 = vmatpush.msra.mxu2 %v11741_v53  ;;  %5125 = vmatpush.msrb.mxu0 %v11746_v40 }
 0xd6c   :  { %5145 = vmatpush.msra.mxu1 %v11753_v25  ;;  %5185 = vmatpush.msra.mxu3 %v11758_v15 }
 0xd6d   :  { %6760 = vmatmul.msk.f32.vlgmr.msra.gmra.mxu0 %vm54_vm1, %v6755_v33  ;;  %6765 = vmatmul.msk.f32.vlgmr.msrb.gmra.mxu1 %vm54_vm1, %v6755_v33 }
 0xd6e   :  { %6770 = vmatmul.msk.f32.vlgmr.msrb.gmra.mxu2 %vm54_vm1, %v6755_v33  ;;  %6775 = vmatmul.msk.f32.vlgmr.msrb.gmra.mxu3 %vm54_vm1, %v6755_v33  ;;  %v11938_v33 = vld [vmem:[%s13126_s3 + $0xc0] sm:$0xff] }
 0xd6f   :  { %5166 = vmatpush.msra.mxu2 %v11765_v41  ;;  %5126 = vmatpush.msrb.mxu0 %v11770_v39  ;;  %14324 = vst [vmem:[#allocation22_spill] sm:$0xff] %v11938_v33 }
 0xd70   :  { %5146 = vmatpush.msra.mxu1 %v11777_v31  ;;  %5186 = vmatpush.msra.mxu3 %v11782_v20 }
 0xd71   :  { %5167 = vmatpush.msra.mxu2 %v11800_v12  ;;  %5127 = vmatpush.msrb.mxu0 %v11805_v10 }
 0xd72   :  { %5147 = vmatpush.msra.mxu1 %v11812_v23  ;;  %5187 = vmatpush.msra.mxu3 %v11817_v21 }
 0xd73   :  { %5168 = vmatpush.msra.mxu2 %v11824_v52  ;;  %5128 = vmatpush.msrb.mxu0 %v11829_v1 }
 0xd74   :  { %5148 = vmatpush.msra.mxu1 %v11836_v24  ;;  %5188 = vmatpush.msra.mxu3 %v11841_v62 }
 0xd75   :  { %6761 = vmatmul.msk.f32.gmra.mxu0 %vm54_vm1, %v6756_v50  ;;  %6766 = vmatmul.msk.f32.gmra.mxu1 %vm54_vm1, %v6756_v50 }
 0xd76   :  { %6771 = vmatmul.msk.f32.gmra.mxu2 %vm54_vm1, %v6756_v50  ;;  %6776 = vmatmul.msk.f32.gmra.mxu3 %vm54_vm1, %v6756_v50 }
 0xd77   :  { %5169 = vmatpush.msra.mxu2 %v11848_v47  ;;  %5129 = vmatpush.msrb.mxu0 %v11853_v63 }
 0xd78   :  { %5149 = vmatpush.msra.mxu1 %v11860_v55  ;;  %5189 = vmatpush.msra.mxu3 %v11865_v5 }
 0xd79   :  { %5170 = vmatpush.msra.mxu2 %v11876_v7  ;;  %5130 = vmatpush.msrb.mxu0 %v11881_v6 }
 0xd7a   :  { %5150 = vmatpush.msra.mxu1 %v11888_v44  ;;  %5190 = vmatpush.msra.mxu3 %v11893_v51 }
 0xd7b   :  { %5171 = vmatpush.msra.mxu2 %v11907_v0  ;;  %5131 = vmatpush.msrb.mxu0 %v11912_v18 }
 0xd7c   :  { %5151 = vmatpush.msra.mxu1 %v11919_v46  ;;  %5191 = vmatpush.msra.mxu3 %v11924_v3 }
 0xd7d   :  { %6762 = vmatmul.msk.f32.gmra.mxu0 %vm54_vm1, %v6757_v57  ;;  %6767 = vmatmul.msk.f32.gmra.mxu1 %vm54_vm1, %v6757_v57 }
 0xd7e   :  { %6772 = vmatmul.msk.f32.gmra.mxu2 %vm54_vm1, %v6757_v57  ;;  %6777 = vmatmul.msk.f32.gmra.mxu3 %vm54_vm1, %v6757_v57 }
 0xd7f   :  { %5172 = vmatpush.msra.mxu2 %v11933_v19  ;;  %5132 = vmatpush.msrb.mxu0 %v11938_v33 }
 0xd80   :  { %5152 = vmatpush.msra.mxu1 %v11947_v59 }
 0xd81   :  { %5173 = vmatpush.msra.mxu2 %v11960_v13 }
 0xde2   :  { %v4719_v56 = vpop.f32.mrf.mxu0  ;;  %v4739_v9 = vpop.f32.mrf.mxu1 }
 0xde3   :  { %v4782_v35 = vadd.f32 %v4719_v56, %v3087_v16  ;;  %v4783_v48 = vadd.f32 %v4739_v9, %v3116_v49  ;;  %v11952_v16 = vld [vmem:[%s13126_s3 + $0xd8] sm:$0xff]  ;;  %v11965_v49 = vld [vmem:[%s13126_s3 + $0xa0] sm:$0xff]  ;;  %v11973_v56 = vld [vmem:[%s13126_s3 + $0xa8] sm:$0xff] }
 0xde4   :  { %14326 = vst [vmem:[#allocation20_spill] sm:$0xff] %v11952_v16  ;;  %v11978_v9 = vld [vmem:[%s13126_s3 + $0xb8] sm:$0xff]  ;;  %5192 = vmatpush.msra.mxu3 %v11952_v16  ;;  %5133 = vmatpush.msrb.mxu0 %v11965_v49 }
 0xde5   :  { %v6751_v38 = vmul.f32 -1.442695, %v4782_v35  ;;  %v6752_v11 = vmul.f32 -1.442695, %v4783_v48  ;;  %14328 = vst [vmem:[#allocation25_spill] sm:$0xff] %v11965_v49  ;;  %v11985_v35 = vld [vmem:[%s13126_s3 + $0x90] sm:$0xff]  ;;  %5153 = vmatpush.msra.mxu1 %v11973_v56 }
 0xde6   :  { %14329 = vst [vmem:[#allocation24_spill] sm:$0xff] %v11973_v56  ;;  %v11990_v48 = vld [vmem:[%s13126_s3 + $0x80] sm:$0xff]  ;;  %5193 = vmatpush.msra.mxu3 %v11978_v9  ;;  %5174 = vmatpush.msra.mxu2 %v11985_v35 }
 0xde7   :  { %7168 = vpow2.f32 %v6751_v38  ;;  %14330 = vst [vmem:[#allocation23_spill] sm:$0xff] %v11978_v9  ;;  %v11997_v38 = vld [vmem:[%s13126_s3 + $0x88] sm:$0xff]  ;;  %5134 = vmatpush.msrb.mxu0 %v11990_v48 }
 0xde8   :  { %7170 = vpow2.f32 %v6752_v11  ;;  %14331 = vst [vmem:[#allocation11_spill] sm:$0xff] %v11985_v35  ;;  %v12002_v11 = vld [vmem:[%s13126_s3 + $0x98] sm:$0xff]  ;;  %5154 = vmatpush.msra.mxu1 %v11997_v38 }
 0xde9   :  { %v4759_v58 = vpop.f32.mrf.mxu2  ;;  %v4779_v45 = vpop.f32.mrf.mxu3  ;;  %14332 = vst [vmem:[#allocation28_spill] sm:$0xff] %v11990_v48  ;;  %5194 = vmatpush.msra.mxu3 %v12002_v11  ;;  %v12071_v35 = vld [vmem:[%s13126_s3 + $0x58] sm:$0xff] }
 0xdea   :  { %v4784_v2 = vadd.f32 %v4759_v58, %v3145_v37  ;;  %v4785_v42 = vadd.f32 %v4779_v45, %v3174_v22  ;;  %14333 = vst [vmem:[#allocation27_spill] sm:$0xff] %v11997_v38  ;;  %v6758_v37 = vld [vmem:[%s13123_s0 + $0xd8] sm:$0xff] }
 0xdeb   :  { %14334 = vst [vmem:[#allocation26_spill] sm:$0xff] %v12002_v11  ;;  %6763 = vmatmul.msk.f32.gmra.mxu0 %vm54_vm1, %v6758_v37  ;;  %6768 = vmatmul.msk.f32.gmra.mxu1 %vm54_vm1, %v6758_v37 }
 0xdec   :  { %v6753_v43 = vmul.f32 -1.442695, %v4784_v2  ;;  %v6754_v60 = vmul.f32 -1.442695, %v4785_v42  ;;  %v12022_v2 = vld [vmem:[%s13126_s3 + $0x70] sm:$0xff]  ;;  %v12027_v42 = vld [vmem:[%s13126_s3 + $0x60] sm:$0xff]  ;;  %6773 = vmatmul.msk.f32.gmra.mxu2 %vm54_vm1, %v6758_v37  ;;  %6778 = vmatmul.msk.f32.gmra.mxu3 %vm54_vm1, %v6758_v37 }
 0xded   :  { %v7169_v8 = vpop.eup %7168  ;;  %14335 = vst [vmem:[#allocation12_spill] sm:$0xff] %v12022_v2  ;;  %5175 = vmatpush.msra.mxu2 %v12022_v2  ;;  %5135 = vmatpush.msrb.mxu0 %v12027_v42  ;;  %v12066_v37 = vld [vmem:[%s13126_s3 + $0x48] sm:$0xff]  ;;  %v12083_v2 = vld [vmem:[%s13126_s3 + $0x20] sm:$0xff] }
 0xdee   :  { %v7171_v27 = vpop.eup %7170  ;;  %v11926_v17 = vadd.f32 1.0, %v7169_v8  ;;  %7172 = vpow2.f32 %v6753_v43  ;;  %14336 = vst [vmem:[#allocation31_spill] sm:$0xff] %v12027_v42  ;;  %v12044_v8 = vld [vmem:[%s13126_s3 + $0x78] sm:$0xff] }
 0xdef   :  { %v11940_v50 = vadd.f32 1.0, %v7171_v27  ;;  %7174 = vpow2.f32 %v6754_v60  ;;  %v12039_v60 = vld [vmem:[%s13126_s3 + $0x68] sm:$0xff]  ;;  %14338 = vst [vmem:[#allocation29_spill] sm:$0xff] %v12044_v8  ;;  %5195 = vmatpush.msra.mxu3 %v12044_v8  ;;  %v12095_v8 = vld [vmem:[%s13126_s3 + $0x38] sm:$0xff] }
 0xdf0   :  { %7176 = vrcp.f32 %v11926_v17  ;;  %14337 = vst [vmem:[#allocation30_spill] sm:$0xff] %v12039_v60  ;;  %5155 = vmatpush.msra.mxu1 %v12039_v60  ;;  %vm4807_vm13 = vweird.f32 %v11926_v17 }
 0xdf1   :  { %7178 = vrcp.f32 %v11940_v50  ;;  %14341 = vst [vmem:[#allocation34_spill] sm:$0xff] %v12066_v37  ;;  %5196 = vmatpush.msra.mxu3 %v12071_v35  ;;  %vm4822_vm1 = vweird.f32 %v11940_v50  ;;  %v4828_v9 = vand.u32 2147483648, %v11940_v50 }
 0xdf2   :  { %14342 = vst [vmem:[#allocation32_spill] sm:$0xff] %v12071_v35  ;;  %5156 = vmatpush.msra.mxu1 %v12066_v37 }
 0xdf3   :  { %14344 = vst [vmem:[#allocation36_spill] sm:$0xff] %v12083_v2  ;;  %5197 = vmatpush.msra.mxu3 %v12095_v8 }
 0xdf4   :  { %v7173_v29 = vpop.eup %7172  ;;  %14346 = vst [vmem:[#allocation35_spill] sm:$0xff] %v12095_v8 }
 0xdf5   :  { %v7175_v26 = vpop.eup %7174  ;;  %v12009_v22 = vadd.f32 1.0, %v7173_v29  ;;  %v12053_v29 = vld [vmem:[%s13126_s3 + $0x50] sm:$0xff] }
 0xdf6   :  { %v12013_v58 = vpop.eup %7176  ;;  %v12015_v45 = vadd.f32 1.0, %v7175_v26  ;;  %14339 = vst [vmem:[#allocation13_spill] sm:$0xff] %v12053_v29  ;;  %v12058_v26 = vld [vmem:[%s13126_s3 + $0x40] sm:$0xff]  ;;  %5176 = vmatpush.msra.mxu2 %v12053_v29  ;;  %v12104_v29 = vld [vmem:[%s13126_s3 + $0x10] sm:$0xff] }
 0xdf7   :  { %v12029_v57 = vpop.eup %7178  ;;  %v4803_v43 = vmul.f32 %v12013_v58, %v11926_v17  ;;  %7180 = vrcp.f32 %v12009_v22  ;;  %14340 = vst [vmem:[#allocation33_spill] sm:$0xff] %v12058_v26  ;;  %5136 = vmatpush.msrb.mxu0 %v12058_v26  ;;  %v12109_v26 = vld [vmem:[%s13126_s3] sm:$0xff]  ;;  %vm4808_vm12 = vweird.f32 %v12013_v58  ;;  %vm4837_vm4 = vweird.f32 %v12009_v22 }
 0xdf8   :  { %v4818_v27 = vmul.f32 %v12029_v57, %v11940_v50  ;;  %7182 = vrcp.f32 %v12015_v45  ;;  %14347 = vst [vmem:[#allocation55_spill] sm:$0xff] %v12104_v29  ;;  %vm4823_vm0 = vweird.f32 %v12029_v57  ;;  %vm12161_vm2 = vmor %vm4807_vm13, %vm4808_vm12  ;;  %vm4852_vm9 = vweird.f32 %v12015_v45 }
 0xdf9   :  { %v4804_v11 = vsub.f32 1.0, %v4803_v43  ;;  %v12078_v43 = vld [vmem:[%s13126_s3 + $0x30] sm:$0xff]  ;;  %14348 = vst [vmem:[#allocation38_spill] sm:$0xff] %v12109_v26  ;;  %5137 = vmatpush.msrb.mxu0 %v12083_v2  ;;  %v4826_v2 = vand.u32 2147483647, %v11940_v50  ;;  %vm12146_vm14 = vmor %vm4822_vm1, %vm4823_vm0 }
 0xdfa   :  { %v4819_v38 = vsub.f32 1.0, %v4818_v27  ;;  %14343 = vst [vmem:[#allocation14_spill] sm:$0xff] %v12078_v43  ;;  %v12090_v27 = vld [vmem:[%s13126_s3 + $0x28] sm:$0xff]  ;;  %5177 = vmatpush.msra.mxu2 %v12078_v43  ;;  %v4811_v50 = vand.u32 2147483647, %v11926_v17 }
 0xdfb   :  { %14345 = vst [vmem:[#allocation62_spill] sm:$0xff] %v12090_v27  ;;  %v4805_v60 = vmul.f32 %v12013_v58, %v4804_v11  ;;  %v12121_v11 = vld [vmem:[%s13126_s3 + $0x18] sm:$0xff]  ;;  %5157 = vmatpush.msra.mxu1 %v12090_v27  ;;  %5138 = vmatpush.msrb.mxu0 %v12109_v26  ;;  %vm4827_vm3 = vcmp.eq.f32.partialorder %v4826_v2, 8.507059e+37  ;;  %v4856_v26 = vand.u32 2147483647, %v12015_v45 }
 0xdfc   :  { %v4820_v42 = vmul.f32 %v12029_v57, %v4819_v38  ;;  %v12116_v38 = vld [vmem:[%s13126_s3 + $0x8] sm:$0xff]  ;;  %14350 = vst [vmem:[#allocation6_spill] sm:$0xff] %v12121_v11  ;;  %5178 = vmatpush.msra.mxu2 %v12104_v29  ;;  %5198 = vmatpush.msra.mxu3 %v12121_v11  ;;  %v4813_v29 = vand.u32 2147483648, %v11926_v17  ;;  %v4841_v17 = vand.u32 2147483647, %v12009_v22  ;;  %vm4812_vm6 = vcmp.eq.f32.partialorder %v4811_v50, 8.507059e+37 }
 0xdfd   :  { %v7181_v48 = vpop.eup %7180  ;;  %14349 = vst [vmem:[#allocation67_spill] sm:$0xff] %v12116_v38  ;;  %5158 = vmatpush.msra.mxu1 %v12116_v38  ;;  %5293 = vmatpush.msra.mxu0 %v11698_v36  ;;  %v4829_v36 = vor.u32 1.1754944e-38, %v4828_v9  ;;  %vm4857_vm11 = vcmp.eq.f32.partialorder %v4856_v26, 8.507059e+37  ;;  %v14356_v50 = vld [vmem:[#allocation10_spill] sm:$0xff]  ;;  %v14372_v26 = vld [vmem:[#allocation35_spill] sm:$0xff] }
 0xdfe   :  { %v4821_v35 = vadd.f32 %v12029_v57, %v4820_v42  ;;  %v4833_v37 = vmul.f32 %v7181_v48, %v12009_v22  ;;  %v12128_v43 = vpop.eup %7182  ;;  %v4806_v42 = vadd.f32 %v12013_v58, %v4805_v60  ;;  %vm4838_vm15 = vweird.f32 %v7181_v48  ;;  %5333 = vmatpush.msrb.mxu2 %v11693_v61  ;;  %5353 = vmatpush.msrb.mxu3 %v11710_v32 }
 0xdff   :  { %v4848_v8 = vmul.f32 %v12128_v43, %v12015_v45  ;;  %5313 = vmatpush.msrb.mxu1 %v11705_v34  ;;  %5294 = vmatpush.msra.mxu0 %v11722_v30  ;;  %vm4839_vm5 = vmor %vm4837_vm4, %vm4838_vm15  ;;  %vm4842_vm7 = vcmp.eq.f32.partialorder %v4841_v17, 8.507059e+37  ;;  %vm4853_vm8 = vweird.f32 %v12128_v43  ;;  %v14358_v17 = vld [vmem:[#allocation28_spill] sm:$0xff] }
 0xe00   :  { %v4834_v13 = vsub.f32 1.0, %v4833_v37  ;;  %v4843_v37 = vand.u32 2147483648, %v12009_v22  ;;  %v4825_v11 = vsel %vm12146_vm14, %v12029_v57, %v4821_v35  ;;  %5334 = vmatpush.msrb.mxu2 %v11717_v54  ;;  %5354 = vmatpush.msrb.mxu3 %v11734_v4  ;;  %v4814_v57 = vor.u32 1.1754944e-38, %v4813_v29  ;;  %vm4854_vm10 = vmor %vm4852_vm9, %vm4853_vm8 }
 0xe01   :  { %v4849_v34 = vsub.f32 1.0, %v4848_v8  ;;  %5314 = vmatpush.msrb.mxu1 %v11729_v28  ;;  %v4830_v60 = vsel %vm4827_vm3, %v4829_v36, %v4825_v11  ;;  %5295 = vmatpush.msra.mxu0 %v11746_v40 }
 0xe02   :  { %v4835_v38 = vmul.f32 %v7181_v48, %v4834_v13  ;;  %v4810_v13 = vsel %vm12161_vm2, %v12013_v58, %v4806_v42  ;;  %v4844_v9 = vor.u32 1.1754944e-38, %v4843_v37  ;;  %5335 = vmatpush.msrb.mxu2 %v11741_v53  ;;  %5355 = vmatpush.msrb.mxu3 %v11758_v15  ;;  %v4862_v36 = vmul.f32 %v4830_v60, %v11632_v14  ;;  %v14357_v37 = vld [vmem:[#allocation23_spill] sm:$0xff] }
 0xe03   :  { %5315 = vmatpush.msrb.mxu1 %v11753_v25  ;;  %v4815_v22 = vsel %vm4812_vm6, %v4814_v57, %v4810_v13  ;;  %v4850_v2 = vmul.f32 %v12128_v43, %v4849_v34  ;;  %5296 = vmatpush.msra.mxu0 %v11770_v39  ;;  %v4858_v14 = vand.u32 2147483648, %v12015_v45  ;;  %v14359_v13 = vld [vmem:[#allocation27_spill] sm:$0xff]  ;;  %v14361_v57 = vld [vmem:[#allocation26_spill] sm:$0xff] }
 0xe04   :  { %v4836_v35 = vadd.f32 %v7181_v48, %v4835_v38  ;;  %5336 = vmatpush.msrb.mxu2 %v11765_v41  ;;  %5356 = vmatpush.msrb.mxu3 %v11782_v20  ;;  %v14362_v60 = vld [vmem:[#allocation31_spill] sm:$0xff] }
 0xe05   :  { %5316 = vmatpush.msrb.mxu1 %v11777_v31  ;;  %5297 = vmatpush.msra.mxu0 %v11805_v10  ;;  %v4851_v34 = vadd.f32 %v12128_v43, %v4850_v2  ;;  %v4859_v11 = vor.u32 1.1754944e-38, %v4858_v14  ;;  %v14367_v2 = vld [vmem:[#allocation34_spill] sm:$0xff] }
 0xe06   :  { %v4840_v8 = vsel %vm4839_vm5, %v7181_v48, %v4836_v35  ;;  %5337 = vmatpush.msrb.mxu2 %v11800_v12  ;;  %5357 = vmatpush.msrb.mxu3 %v11817_v21  ;;  %v14360_v35 = vld [vmem:[#allocation11_spill] sm:$0xff]  ;;  %v14371_v14 = vld [vmem:[#allocation14_spill] sm:$0xff] }
 0xe07   :  { %v4845_v58 = vsel %vm4842_vm7, %v4844_v9, %v4840_v8  ;;  %5317 = vmatpush.msrb.mxu1 %v11812_v23  ;;  %5298 = vmatpush.msra.mxu0 %v11829_v1  ;;  %v4855_v38 = vsel %vm4854_vm10, %v12128_v43, %v4851_v34  ;;  %v14363_v9 = vld [vmem:[#allocation30_spill] sm:$0xff]  ;;  %v14364_v8 = vld [vmem:[#allocation12_spill] sm:$0xff] }
 0xe08   :  { %v4863_v29 = vmul.f32 %v4845_v58, %v4815_v22  ;;  %5338 = vmatpush.msrb.mxu2 %v11824_v52  ;;  %5358 = vmatpush.msrb.mxu3 %v11841_v62  ;;  %v4860_v42 = vsel %vm4857_vm11, %v4859_v11, %v4855_v38  ;;  %v14365_v22 = vld [vmem:[#allocation29_spill] sm:$0xff]  ;;  %v14370_v34 = vld [vmem:[#allocation36_spill] sm:$0xff]  ;;  %v14373_v38 = vld [vmem:[#allocation38_spill] sm:$0xff] }
 0xe09   :  { %5318 = vmatpush.msrb.mxu1 %v11836_v24  ;;  %5299 = vmatpush.msra.mxu0 %v11853_v63  ;;  %v14366_v58 = vld [vmem:[#allocation33_spill] sm:$0xff]  ;;  %v14374_v11 = vld [vmem:[#allocation67_spill] sm:$0xff] }
 0xe0a   :  { %v12186_v48 = vadd.f32 %v4863_v29, %v4862_v36  ;;  %5339 = vmatpush.msrb.mxu2 %v11848_v47  ;;  %5359 = vmatpush.msrb.mxu3 %v11865_v5  ;;  %v14368_v36 = vld [vmem:[#allocation13_spill] sm:$0xff]  ;;  %v14369_v29 = vld [vmem:[#allocation32_spill] sm:$0xff] }
 0xe0b   :  { %5319 = vmatpush.msrb.mxu1 %v11860_v55  ;;  %5300 = vmatpush.msra.mxu0 %v11881_v6 }
 0xe0c   :  { %14355 = vst [vmem:[#allocation65_spill] sm:$0xff] %v12186_v48  ;;  %7184 = vtanh.f32 %v12186_v48  ;;  %5340 = vmatpush.msrb.mxu2 %v11876_v7  ;;  %5360 = vmatpush.msrb.mxu3 %v11893_v51  ;;  %v14378_v48 = vld [vmem:[#allocation37_spill] sm:$0xff] }
 0xe0d   :  { %5320 = vmatpush.msrb.mxu1 %v11888_v44  ;;  %5301 = vmatpush.msra.mxu0 %v11912_v18 }
 0xe0e   :  { %5341 = vmatpush.msrb.mxu2 %v11907_v0  ;;  %5361 = vmatpush.msrb.mxu3 %v11924_v3 }
 0xe0f   :  { %5321 = vmatpush.msrb.mxu1 %v11919_v46  ;;  %5302 = vmatpush.msra.mxu0 %v11938_v33 }
 0xe10   :  { %5342 = vmatpush.msrb.mxu2 %v11933_v19  ;;  %5362 = vmatpush.msrb.mxu3 %v11952_v16 }
 0xe11   :  { %5322 = vmatpush.msrb.mxu1 %v11947_v59  ;;  %5303 = vmatpush.msra.mxu0 %v11965_v49 }
 0xe12   :  { %v7185_v45 = vpop.eup %7184  ;;  %5343 = vmatpush.msrb.mxu2 %v14356_v50  ;;  %5363 = vmatpush.msrb.mxu3 %v14357_v37 }
 0xe13   :  { %v4866_v43 = vmul.f32 %v7185_v45, %v4860_v42  ;;  %5323 = vmatpush.msrb.mxu1 %v11973_v56  ;;  %5304 = vmatpush.msra.mxu0 %v14358_v17  ;;  %v14375_v45 = vld [vmem:[#allocation55_spill] sm:$0xff]  ;;  %v14376_v42 = vld [vmem:[#allocation6_spill] sm:$0xff] }
 0xe14   :  { %5344 = vmatpush.msrb.mxu2 %v14360_v35  ;;  %5364 = vmatpush.msrb.mxu3 %v14361_v57 }
 0xe15   :  { %5139 = vmatmul.f32.vlgmr.msrb.gmra.mxu0 %v4866_v43  ;;  %5159 = vmatmul.f32.vlgmr.msra.gmra.mxu1 %v4866_v43 }
 0xe16   :  { %5179 = vmatmul.f32.vlgmr.msra.gmra.mxu2 %v4866_v43  ;;  %5199 = vmatmul.f32.vlgmr.msra.gmra.mxu3 %v4866_v43  ;;  %v14377_v43 = vld [vmem:[#allocation66_spill] sm:$0xff] }
 0xe17   :  { %5324 = vmatpush.msrb.mxu1 %v14359_v13  ;;  %5305 = vmatpush.msra.mxu0 %v14362_v60 }
 0xe18   :  { %5345 = vmatpush.msrb.mxu2 %v14364_v8  ;;  %5365 = vmatpush.msrb.mxu3 %v14365_v22 }
 0xe19   :  { %5325 = vmatpush.msrb.mxu1 %v14363_v9  ;;  %5306 = vmatpush.msra.mxu0 %v14366_v58 }
 0xe1a   :  { %5346 = vmatpush.msrb.mxu2 %v14368_v36  ;;  %5366 = vmatpush.msrb.mxu3 %v14369_v29 }
 0xe1b   :  { %5326 = vmatpush.msrb.mxu1 %v14367_v2  ;;  %5307 = vmatpush.msra.mxu0 %v14370_v34 }
 0xe1c   :  { %5347 = vmatpush.msrb.mxu2 %v14371_v14  ;;  %5367 = vmatpush.msrb.mxu3 %v14372_v26 }
 0xe1d   :  { %5327 = vmatpush.msrb.mxu1 %v12090_v27  ;;  %5308 = vmatpush.msra.mxu0 %v14373_v38 }
 0xe1e   :  { %5348 = vmatpush.msrb.mxu2 %v14375_v45  ;;  %5368 = vmatpush.msrb.mxu3 %v14376_v42 }
 0xe1f   :  { %5328 = vmatpush.msrb.mxu1 %v14374_v11  ;;  %5463 = vmatpush.msrb.mxu0 %v14377_v43 }
 0xe20   :  { %5503 = vmatpush.msra.mxu2 %v11693_v61  ;;  %5523 = vmatpush.msra.mxu3 %v11710_v32 }
 0xe21   :  { %5483 = vmatpush.msra.mxu1 %v14378_v48  ;;  %5464 = vmatpush.msrb.mxu0 %v11722_v30 }
 0xe22   :  { %5504 = vmatpush.msra.mxu2 %v11717_v54  ;;  %5524 = vmatpush.msra.mxu3 %v11734_v4 }
 0xe23   :  { %5484 = vmatpush.msra.mxu1 %v11729_v28  ;;  %5465 = vmatpush.msrb.mxu0 %v11746_v40 }
 0xe24   :  { %5505 = vmatpush.msra.mxu2 %v11741_v53  ;;  %5525 = vmatpush.msra.mxu3 %v11758_v15 }
 0xe25   :  { %5485 = vmatpush.msra.mxu1 %v11753_v25  ;;  %5466 = vmatpush.msrb.mxu0 %v11770_v39 }
 0xe26   :  { %5506 = vmatpush.msra.mxu2 %v11765_v41  ;;  %5526 = vmatpush.msra.mxu3 %v11782_v20 }
 0xe27   :  { %5486 = vmatpush.msra.mxu1 %v11777_v31  ;;  %5467 = vmatpush.msrb.mxu0 %v11805_v10 }
 0xe28   :  { %5507 = vmatpush.msra.mxu2 %v11800_v12  ;;  %5527 = vmatpush.msra.mxu3 %v11817_v21 }
 0xe29   :  { %5487 = vmatpush.msra.mxu1 %v11812_v23  ;;  %5468 = vmatpush.msrb.mxu0 %v11829_v1 }
 0xe2a   :  { %5508 = vmatpush.msra.mxu2 %v11824_v52  ;;  %5528 = vmatpush.msra.mxu3 %v11841_v62 }
 0xe2b   :  { %5488 = vmatpush.msra.mxu1 %v11836_v24  ;;  %5469 = vmatpush.msrb.mxu0 %v11853_v63 }
 0xe2c   :  { %5509 = vmatpush.msra.mxu2 %v11848_v47  ;;  %5529 = vmatpush.msra.mxu3 %v11865_v5 }
 0xe2d   :  { %5489 = vmatpush.msra.mxu1 %v11860_v55  ;;  %5470 = vmatpush.msrb.mxu0 %v11881_v6 }
 0xe2e   :  { %5510 = vmatpush.msra.mxu2 %v11876_v7  ;;  %5530 = vmatpush.msra.mxu3 %v11893_v51 }
 0xe2f   :  { %5490 = vmatpush.msra.mxu1 %v11888_v44  ;;  %5471 = vmatpush.msrb.mxu0 %v11912_v18 }
 0xe30   :  { %5511 = vmatpush.msra.mxu2 %v11907_v0  ;;  %5531 = vmatpush.msra.mxu3 %v11924_v3 }
 0xe31   :  { %5491 = vmatpush.msra.mxu1 %v11919_v46  ;;  %5472 = vmatpush.msrb.mxu0 %v11938_v33 }
 0xe32   :  { %5512 = vmatpush.msra.mxu2 %v11933_v19  ;;  %5532 = vmatpush.msra.mxu3 %v11952_v16 }
 0xe33   :  { %5492 = vmatpush.msra.mxu1 %v11947_v59  ;;  %5473 = vmatpush.msrb.mxu0 %v11965_v49 }
 0xe34   :  { %5513 = vmatpush.msra.mxu2 %v14356_v50  ;;  %5533 = vmatpush.msra.mxu3 %v14357_v37 }
 0xe35   :  { %5493 = vmatpush.msra.mxu1 %v11973_v56  ;;  %5474 = vmatpush.msrb.mxu0 %v14358_v17  ;;  %v14404_v17 = vld [vmem:[#allocation43_spill] sm:$0xff] }
 0xe36   :  { %5514 = vmatpush.msra.mxu2 %v14360_v35  ;;  %5534 = vmatpush.msra.mxu3 %v14361_v57  ;;  %v14402_v57 = vld [vmem:[#allocation50_spill] sm:$0xff] }
 0xe37   :  { %5494 = vmatpush.msra.mxu1 %v14359_v13  ;;  %5475 = vmatpush.msrb.mxu0 %v14362_v60 }
 0xe38   :  { %5515 = vmatpush.msra.mxu2 %v14364_v8  ;;  %5535 = vmatpush.msra.mxu3 %v14365_v22 }
 0xe39   :  { %5495 = vmatpush.msra.mxu1 %v14363_v9  ;;  %5476 = vmatpush.msrb.mxu0 %v14366_v58 }
 0xe3a   :  { %5516 = vmatpush.msra.mxu2 %v14368_v36  ;;  %5536 = vmatpush.msra.mxu3 %v14369_v29  ;;  %v12307_v36 = vpop.f32.mrf.mxu1 }
 0xe3b   :  { %5496 = vmatpush.msra.mxu1 %v14367_v2  ;;  %5477 = vmatpush.msrb.mxu0 %v14370_v34  ;;  %v12305_v2 = vpop.f32.mrf.mxu0  ;;  %14380 = vst [vmem:[#allocation41_spill] sm:$0xff] %v12307_v36  ;;  %v12312_v34 = vpop.f32.mrf.mxu2 }
 0xe3c   :  { %5517 = vmatpush.msra.mxu2 %v14371_v14  ;;  %5537 = vmatpush.msra.mxu3 %v14372_v26  ;;  %14379 = vst [vmem:[#allocation73_spill] sm:$0xff] %v12305_v2  ;;  %v12314_v14 = vpop.f32.mrf.mxu3 }
 0xe3d   :  { %5497 = vmatpush.msra.mxu1 %v12090_v27  ;;  %5478 = vmatpush.msrb.mxu0 %v14373_v38  ;;  %v4888_v27 = vld [vmem:[%s13125_s2] sm:$0xf]  ;;  %14381 = vst [vmem:[#allocation74_spill] sm:$0xff] %v12312_v34 }
 0xe3e   :  { %5518 = vmatpush.msra.mxu2 %v14375_v45  ;;  %5538 = vmatpush.msra.mxu3 %v14376_v42  ;;  %14382 = vst [vmem:[#allocation46_spill] sm:$0xff] %v12314_v14  ;;  %v12316_v26 = vperm.slane %v4888_v27, 0  ;;  %v12318_v38 = vperm.slane %v4888_v27, 1  ;;  %v12326_v36 = vperm.slane %v4888_v27, 2  ;;  %v12328_v29 = vperm.slane %v4888_v27, 3 }
 0xe3f   :  { %5498 = vmatpush.msra.mxu1 %v14374_v11 }
 0xe40   :  { %14383 = vst [vmem:[#allocation40_spill] sm:$0xff] %v12316_v26 }
 0xe41   :  { %14384 = vst [vmem:[#allocation48_spill] sm:$0xff] %v12318_v38 }
 0xe42   :  { %v4971_v45 = vpop.f32.mrf.mxu1  ;;  %14387 = vst [vmem:[#allocation8_spill] sm:$0xff] %v12326_v36 }
 0xe43   :  { %v4942_v11 = vpop.f32.mrf.mxu0  ;;  %v12324_v2 = vadd.f32 %v4971_v45, %v12318_v38  ;;  %14388 = vst [vmem:[#allocation17_spill] sm:$0xff] %v12328_v29  ;;  %v5000_v58 = vpop.f32.mrf.mxu2 }
 0xe44   :  { %v12321_v42 = vadd.f32 %v4942_v11, %v12316_v26  ;;  %v5029_v34 = vpop.f32.mrf.mxu3  ;;  %v12331_v14 = vadd.f32 %v5000_v58, %v12326_v36 }
 0xe45   :  { %14386 = vst [vmem:[#allocation49_spill] sm:$0xff] %v12324_v2  ;;  %v12334_v22 = vadd.f32 %v5029_v34, %v12328_v29 }
 0xe46   :  { %14385 = vst [vmem:[#allocation45_spill] sm:$0xff] %v12321_v42 }
 0xe47   :  { %14389 = vst [vmem:[#allocation15_spill] sm:$0xff] %v12331_v14 }
 0xe48   :  { %14390 = vst [vmem:[#allocation16_spill] sm:$0xff] %v12334_v22 }
 0xe4a   :  { %v4974_v9 = vpop.f32.mrf.mxu1 }
 0xe4b   :  { %v4945_v8 = vpop.f32.mrf.mxu0  ;;  %v12340_v45 = vadd.f32 %v4974_v9, %v12318_v38  ;;  %v5003_v2 = vpop.f32.mrf.mxu2 }
 0xe4c   :  { %v12337_v11 = vadd.f32 %v4945_v8, %v12316_v26  ;;  %v5032_v42 = vpop.f32.mrf.mxu3  ;;  %v12343_v27 = vadd.f32 %v5003_v2, %v12326_v36  ;;  %v14399_v2 = vld [vmem:[#allocation68_spill] sm:$0xff] }
 0xe4d   :  { %14392 = vst [vmem:[#allocation70_spill] sm:$0xff] %v12340_v45  ;;  %v12346_v60 = vadd.f32 %v5032_v42, %v12328_v29 }
 0xe4e   :  { %14391 = vst [vmem:[#allocation69_spill] sm:$0xff] %v12337_v11 }
 0xe4f   :  { %14393 = vst [vmem:[#allocation7_spill] sm:$0xff] %v12343_v27  ;;  %v14400_v27 = vld [vmem:[#allocation42_spill] sm:$0xff] }
 0xe50   :  { %14394 = vst [vmem:[#allocation9_spill] sm:$0xff] %v12346_v60  ;;  %v4009_v42 = vadd.f32 %v14400_v27, %v14399_v2  ;;  %v14401_v60 = vld [vmem:[#allocation47_spill] sm:$0xff] }
 0xe51   :  { %v4038_v35 = vadd.f32 %v14402_v57, %v14401_v60 }
 0xe68   :  { %v4948_v58 = vpop.f32.mrf.mxu0  ;;  %v4977_v14 = vpop.f32.mrf.mxu1 }
 0xe69   :  { %v12349_v34 = vadd.f32 %v4948_v58, %v12316_v26  ;;  %v12352_v22 = vadd.f32 %v4977_v14, %v12318_v38  ;;  %v14403_v38 = vld [vmem:[#allocation59_spill] sm:$0xff] }
 0xe6b   :  { %14395 = vst [vmem:[#allocation66_spill] sm:$0xff] %v12349_v34 }
 0xe6c   :  { %14396 = vst [vmem:[#allocation37_spill] sm:$0xff] %v12352_v22 }
 0xe6f   :  { %v5006_v8 = vpop.f32.mrf.mxu2  ;;  %v5035_v11 = vpop.f32.mrf.mxu3 }
 0xe70   :  { %v12355_v9 = vadd.f32 %v5006_v8, %v12326_v36  ;;  %v12358_v45 = vadd.f32 %v5035_v11, %v12328_v29  ;;  %v4067_v8 = vadd.f32 %v14404_v17, %v14403_v38  ;;  %v14406_v36 = vld [vmem:[#allocation57_spill] sm:$0xff] }
 0xe72   :  { %14397 = vst [vmem:[#allocation75_spill] sm:$0xff] %v12355_v9  ;;  %v14405_v9 = vld [vmem:[#allocation60_spill] sm:$0xff] }
 0xe73   :  { %14398 = vst [vmem:[#allocation76_spill] sm:$0xff] %v12358_v45  ;;  %v4096_v11 = vadd.f32 %v14406_v36, %v14405_v9 }
 0xe92   :  { %v5140_v13 = vpop.f32.mrf.mxu0  ;;  %v5160_v58 = vpop.f32.mrf.mxu1 }
 0xe93   :  { %v5203_v34 = vadd.f32 %v5140_v13, %v4009_v42  ;;  %v5204_v26 = vadd.f32 %v5160_v58, %v4038_v35 }
 0xe95   :  { %v6779_v14 = vmul.f32 -1.442695, %v5203_v34  ;;  %v6780_v22 = vmul.f32 -1.442695, %v5204_v26 }
 0xe97   :  { %7186 = vpow2.f32 %v6779_v14 }
 0xe98   :  { %7188 = vpow2.f32 %v6780_v22 }
 0xe99   :  { %v5180_v45 = vpop.f32.mrf.mxu2  ;;  %v5200_v29 = vpop.f32.mrf.mxu3 }
 0xe9a   :  { %v5205_v27 = vadd.f32 %v5180_v45, %v4067_v8  ;;  %v5206_v2 = vadd.f32 %v5200_v29, %v4096_v11 }
 0xe9c   :  { %v6781_v37 = vmul.f32 -1.442695, %v5205_v27  ;;  %v6782_v57 = vmul.f32 -1.442695, %v5206_v2 }
 0xe9d   :  { %v7187_v60 = vpop.eup %7186 }
 0xe9e   :  { %v7189_v50 = vpop.eup %7188  ;;  %v5219_v13 = vadd.f32 1.0, %v7187_v60  ;;  %7190 = vpow2.f32 %v6781_v37 }
 0xe9f   :  { %v5220_v35 = vadd.f32 1.0, %v7189_v50  ;;  %7192 = vpow2.f32 %v6782_v57 }
 0xea0   :  { %7194 = vrcp.f32 %v5219_v13  ;;  %vm5228_vm13 = vweird.f32 %v5219_v13  ;;  %v5234_v56 = vand.u32 2147483648, %v5219_v13 }
 0xea1   :  { %7196 = vrcp.f32 %v5220_v35  ;;  %vm5243_vm1 = vweird.f32 %v5220_v35  ;;  %v5247_v27 = vand.u32 2147483647, %v5220_v35  ;;  %v5249_v2 = vand.u32 2147483648, %v5220_v35 }
 0xea3   :  { %vm5248_vm3 = vcmp.eq.f32.partialorder %v5247_v27, 8.507059e+37 }
 0xea4   :  { %v7191_v26 = vpop.eup %7190 }
 0xea5   :  { %v7193_v17 = vpop.eup %7192  ;;  %v5221_v38 = vadd.f32 1.0, %v7191_v26 }
 0xea6   :  { %v7195_v34 = vpop.eup %7194  ;;  %v5222_v36 = vadd.f32 1.0, %v7193_v17  ;;  %v5232_v17 = vand.u32 2147483647, %v5219_v13 }
 0xea7   :  { %v7197_v22 = vpop.eup %7196  ;;  %v5224_v9 = vmul.f32 %v7195_v34, %v5219_v13  ;;  %7198 = vrcp.f32 %v5221_v38  ;;  %vm5229_vm12 = vweird.f32 %v7195_v34  ;;  %vm5258_vm4 = vweird.f32 %v5221_v38 }
 0xea8   :  { %v5239_v45 = vmul.f32 %v7197_v22, %v5220_v35  ;;  %7200 = vrcp.f32 %v5222_v36  ;;  %vm5244_vm0 = vweird.f32 %v7197_v22  ;;  %vm5230_vm2 = vmor %vm5228_vm13, %vm5229_vm12  ;;  %v5235_v35 = vor.u32 1.1754944e-38, %v5234_v56 }
 0xea9   :  { %v5225_v29 = vsub.f32 1.0, %v5224_v9  ;;  %vm5245_vm14 = vmor %vm5243_vm1, %vm5244_vm0  ;;  %v5264_v9 = vand.u32 2147483648, %v5221_v38  ;;  %vm5233_vm6 = vcmp.eq.f32.partialorder %v5232_v17, 8.507059e+37  ;;  %v5279_v27 = vand.u32 2147483648, %v5222_v36  ;;  %v14441_v17 = vld [vmem:[#allocation61_spill] sm:$0xff] }
 0xeaa   :  { %v5240_v42 = vsub.f32 1.0, %v5239_v45  ;;  %vm5273_vm9 = vweird.f32 %v5222_v36  ;;  %v5277_v56 = vand.u32 2147483647, %v5222_v36 }
 0xeab   :  { %v5226_v58 = vmul.f32 %v7195_v34, %v5225_v29 }
 0xeac   :  { %v5241_v14 = vmul.f32 %v7197_v22, %v5240_v42  ;;  %v5262_v42 = vand.u32 2147483647, %v5221_v38  ;;  %vm5278_vm11 = vcmp.eq.f32.partialorder %v5277_v56, 8.507059e+37 }
 0xead   :  { %v7199_v8 = vpop.eup %7198  ;;  %v5227_v57 = vadd.f32 %v7195_v34, %v5226_v58 }
 0xeae   :  { %v5242_v37 = vadd.f32 %v7197_v22, %v5241_v14  ;;  %v5254_v50 = vmul.f32 %v7199_v8, %v5221_v38  ;;  %v7201_v11 = vpop.eup %7200  ;;  %vm5259_vm15 = vweird.f32 %v7199_v8  ;;  %v5250_v14 = vor.u32 1.1754944e-38, %v5249_v2 }
 0xeaf   :  { %v5269_v26 = vmul.f32 %v7201_v11, %v5222_v36  ;;  %v5231_v16 = vsel %vm5230_vm2, %v7195_v34, %v5227_v57  ;;  %vm5260_vm5 = vmor %vm5258_vm4, %vm5259_vm15  ;;  %vm5263_vm7 = vcmp.eq.f32.partialorder %v5262_v42, 8.507059e+37  ;;  %vm5274_vm8 = vweird.f32 %v7201_v11  ;;  %v14440_v57 = vld [vmem:[#allocation51_spill] sm:$0xff] }
 0xeb0   :  { %v5255_v60 = vsub.f32 1.0, %v5254_v50  ;;  %v5246_v45 = vsel %vm5245_vm14, %v7197_v22, %v5242_v37  ;;  %v5265_v50 = vor.u32 1.1754944e-38, %v5264_v9  ;;  %v5236_v13 = vsel %vm5233_vm6, %v5235_v35, %v5231_v16  ;;  %v14407_v37 = vld [vmem:[#allocation65_spill] sm:$0xff]  ;;  %vm5275_vm10 = vmor %vm5273_vm9, %vm5274_vm8 }
 0xeb1   :  { %v5270_v49 = vsub.f32 1.0, %v5269_v26  ;;  %v5251_v58 = vsel %vm5248_vm3, %v5250_v14, %v5246_v45  ;;  %v5280_v2 = vor.u32 1.1754944e-38, %v5279_v27 }
 0xeb2   :  { %v5256_v29 = vmul.f32 %v7199_v8, %v5255_v60  ;;  %v5283_v60 = vmul.f32 %v5251_v58, %v14407_v37 }
 0xeb3   :  { %v5271_v22 = vmul.f32 %v7201_v11, %v5270_v49  ;;  %v14439_v49 = vld [vmem:[#allocation58_spill] sm:$0xff] }
 0xeb4   :  { %v5257_v19 = vadd.f32 %v7199_v8, %v5256_v29 }
 0xeb5   :  { %v5272_v34 = vadd.f32 %v7201_v11, %v5271_v22 }
 0xeb6   :  { %v5261_v59 = vsel %vm5260_vm5, %v7199_v8, %v5257_v19 }
 0xeb7   :  { %v5266_v33 = vsel %vm5263_vm7, %v5265_v50, %v5261_v59  ;;  %v5276_v38 = vsel %vm5275_vm10, %v7201_v11, %v5272_v34 }
 0xeb8   :  { %v5284_v3 = vmul.f32 %v5266_v33, %v5236_v13  ;;  %v5281_v16 = vsel %vm5278_vm11, %v5280_v2, %v5276_v38 }
 0xeba   :  { %v12369_v0 = vadd.f32 %v5284_v3, %v5283_v60  ;;  %v14438_v3 = vld [vmem:[#allocation54_spill] sm:$0xff] }
 0xebc   :  { %7202 = vtanh.f32 %v12369_v0 }
 0xec2   :  { %v7203_v19 = vpop.eup %7202 }
 0xec3   :  { %v5287_v59 = vmul.f32 %v7203_v19, %v5281_v16 }
 0xec5   :  { %5309 = vmatmul.f32.vlgmr.msra.gmra.mxu0 %v5287_v59  ;;  %5329 = vmatmul.f32.vlgmr.msrb.gmra.mxu1 %v5287_v59 }
 0xec6   :  { %5349 = vmatmul.f32.vlgmr.msrb.gmra.mxu2 %v5287_v59  ;;  %5369 = vmatmul.f32.vlgmr.msrb.gmra.mxu3 %v5287_v59 }
 0xec7   :  { %5633 = vmatpush.msra.mxu0 %v14377_v43  ;;  %5653 = vmatpush.msrb.mxu1 %v14378_v48 }
 0xec8   :  { %5673 = vmatpush.msrb.mxu2 %v11693_v61  ;;  %5693 = vmatpush.msrb.mxu3 %v11710_v32  ;;  %v14408_v61 = vld [vmem:[#allocation53_spill] sm:$0xff]  ;;  %v14409_v32 = vld [vmem:[#allocation44_spill] sm:$0xff] }
 0xec9   :  { %5634 = vmatpush.msra.mxu0 %v11722_v30  ;;  %5654 = vmatpush.msrb.mxu1 %v11729_v28  ;;  %v14411_v30 = vld [vmem:[#allocation21_spill] sm:$0xff]  ;;  %v14412_v28 = vld [vmem:[#allocation19_spill] sm:$0xff] }
 0xeca   :  { %5674 = vmatpush.msrb.mxu2 %v11717_v54  ;;  %5694 = vmatpush.msrb.mxu3 %v11734_v4  ;;  %v14410_v54 = vld [vmem:[#allocation22_spill] sm:$0xff]  ;;  %v14413_v4 = vld [vmem:[#allocation20_spill] sm:$0xff] }
 0xecb   :  { %5635 = vmatpush.msra.mxu0 %v11746_v40  ;;  %5655 = vmatpush.msrb.mxu1 %v11753_v25  ;;  %v14415_v40 = vld [vmem:[#allocation24_spill] sm:$0xff]  ;;  %v14416_v25 = vld [vmem:[#allocation10_spill] sm:$0xff] }
 0xecc   :  { %5675 = vmatpush.msrb.mxu2 %v11741_v53  ;;  %5695 = vmatpush.msrb.mxu3 %v11758_v15  ;;  %v14414_v53 = vld [vmem:[#allocation25_spill] sm:$0xff]  ;;  %v14417_v15 = vld [vmem:[#allocation23_spill] sm:$0xff] }
 0xecd   :  { %5636 = vmatpush.msra.mxu0 %v11770_v39  ;;  %5656 = vmatpush.msrb.mxu1 %v11777_v31  ;;  %v14419_v39 = vld [vmem:[#allocation27_spill] sm:$0xff] }
 0xece   :  { %5676 = vmatpush.msrb.mxu2 %v11765_v41  ;;  %5696 = vmatpush.msrb.mxu3 %v11782_v20  ;;  %v14418_v41 = vld [vmem:[#allocation28_spill] sm:$0xff]  ;;  %v14420_v31 = vld [vmem:[#allocation11_spill] sm:$0xff]  ;;  %v14421_v20 = vld [vmem:[#allocation26_spill] sm:$0xff] }
 0xecf   :  { %5637 = vmatpush.msra.mxu0 %v11805_v10  ;;  %5657 = vmatpush.msrb.mxu1 %v11812_v23  ;;  %v14423_v10 = vld [vmem:[#allocation30_spill] sm:$0xff]  ;;  %v14424_v23 = vld [vmem:[#allocation12_spill] sm:$0xff] }
 0xed0   :  { %5677 = vmatpush.msrb.mxu2 %v11800_v12  ;;  %5697 = vmatpush.msrb.mxu3 %v11817_v21  ;;  %v14422_v12 = vld [vmem:[#allocation31_spill] sm:$0xff]  ;;  %v14425_v21 = vld [vmem:[#allocation29_spill] sm:$0xff] }
 0xed1   :  { %5638 = vmatpush.msra.mxu0 %v11829_v1  ;;  %5658 = vmatpush.msrb.mxu1 %v11836_v24  ;;  %v14427_v1 = vld [vmem:[#allocation34_spill] sm:$0xff]  ;;  %v14428_v24 = vld [vmem:[#allocation13_spill] sm:$0xff] }
 0xed2   :  { %5678 = vmatpush.msrb.mxu2 %v11824_v52  ;;  %5698 = vmatpush.msrb.mxu3 %v11841_v62  ;;  %v14426_v52 = vld [vmem:[#allocation33_spill] sm:$0xff]  ;;  %v14429_v62 = vld [vmem:[#allocation32_spill] sm:$0xff] }
 0xed3   :  { %5639 = vmatpush.msra.mxu0 %v11853_v63  ;;  %5659 = vmatpush.msrb.mxu1 %v11860_v55  ;;  %v14431_v63 = vld [vmem:[#allocation62_spill] sm:$0xff] }
 0xed4   :  { %5679 = vmatpush.msrb.mxu2 %v11848_v47  ;;  %5699 = vmatpush.msrb.mxu3 %v11865_v5  ;;  %v14430_v47 = vld [vmem:[#allocation36_spill] sm:$0xff]  ;;  %v14432_v55 = vld [vmem:[#allocation14_spill] sm:$0xff]  ;;  %v14433_v5 = vld [vmem:[#allocation35_spill] sm:$0xff] }
 0xed5   :  { %5640 = vmatpush.msra.mxu0 %v11881_v6  ;;  %5660 = vmatpush.msrb.mxu1 %v11888_v44  ;;  %v14435_v6 = vld [vmem:[#allocation67_spill] sm:$0xff] }
 0xed6   :  { %5680 = vmatpush.msrb.mxu2 %v11876_v7  ;;  %5700 = vmatpush.msrb.mxu3 %v11893_v51  ;;  %v14434_v7 = vld [vmem:[#allocation38_spill] sm:$0xff]  ;;  %v14436_v44 = vld [vmem:[#allocation55_spill] sm:$0xff] }
 0xed7   :  { %5641 = vmatpush.msra.mxu0 %v11912_v18  ;;  %5661 = vmatpush.msrb.mxu1 %v11919_v46  ;;  %v14437_v51 = vld [vmem:[#allocation6_spill] sm:$0xff] }
 0xed8   :  { %5681 = vmatpush.msrb.mxu2 %v14408_v61  ;;  %5701 = vmatpush.msrb.mxu3 %v14409_v32 }
 0xed9   :  { %5642 = vmatpush.msra.mxu0 %v14410_v54  ;;  %5662 = vmatpush.msrb.mxu1 %v14411_v30 }
 0xeda   :  { %5682 = vmatpush.msrb.mxu2 %v14412_v28  ;;  %5702 = vmatpush.msrb.mxu3 %v14413_v4 }
 0xedb   :  { %5643 = vmatpush.msra.mxu0 %v14414_v53  ;;  %5663 = vmatpush.msrb.mxu1 %v14415_v40 }
 0xedc   :  { %5683 = vmatpush.msrb.mxu2 %v14416_v25  ;;  %5703 = vmatpush.msrb.mxu3 %v14417_v15 }
 0xedd   :  { %5644 = vmatpush.msra.mxu0 %v14418_v41  ;;  %5664 = vmatpush.msrb.mxu1 %v14419_v39 }
 0xede   :  { %5684 = vmatpush.msrb.mxu2 %v14420_v31  ;;  %5704 = vmatpush.msrb.mxu3 %v14421_v20 }
 0xedf   :  { %5645 = vmatpush.msra.mxu0 %v14422_v12  ;;  %5665 = vmatpush.msrb.mxu1 %v14423_v10 }
 0xee0   :  { %5685 = vmatpush.msrb.mxu2 %v14424_v23  ;;  %5705 = vmatpush.msrb.mxu3 %v14425_v21 }
 0xee1   :  { %5646 = vmatpush.msra.mxu0 %v14426_v52  ;;  %5666 = vmatpush.msrb.mxu1 %v14427_v1 }
 0xee2   :  { %5686 = vmatpush.msrb.mxu2 %v14428_v24  ;;  %5706 = vmatpush.msrb.mxu3 %v14429_v62 }
 0xee3   :  { %5647 = vmatpush.msra.mxu0 %v14430_v47  ;;  %5667 = vmatpush.msrb.mxu1 %v14431_v63 }
 0xee4   :  { %5687 = vmatpush.msrb.mxu2 %v14432_v55  ;;  %5707 = vmatpush.msrb.mxu3 %v14433_v5 }
 0xee5   :  { %5648 = vmatpush.msra.mxu0 %v14434_v7  ;;  %5668 = vmatpush.msrb.mxu1 %v14435_v6 }
 0xee6   :  { %5688 = vmatpush.msrb.mxu2 %v14436_v44  ;;  %5708 = vmatpush.msrb.mxu3 %v14437_v51 }
 0xf42   :  { %v5310_v18 = vpop.f32.mrf.mxu0  ;;  %v5330_v46 = vpop.f32.mrf.mxu1 }
 0xf43   :  { %v5373_v33 = vadd.f32 %v5310_v18, %v14438_v3  ;;  %v5374_v48 = vadd.f32 %v5330_v46, %v14439_v49 }
 0xf45   :  { %v6783_v43 = vmul.f32 -1.442695, %v5373_v33  ;;  %v6784_v36 = vmul.f32 -1.442695, %v5374_v48 }
 0xf47   :  { %7204 = vpow2.f32 %v6783_v43  ;;  %v12453_v43 = vld [vmem:[%s13126_s3 + $0x1e8] sm:$0xff] }
 0xf48   :  { %7206 = vpow2.f32 %v6784_v36  ;;  %v12459_v36 = vld [vmem:[%s13126_s3 + $0x1f0] sm:$0xff] }
 0xf49   :  { %v5350_v8 = vpop.f32.mrf.mxu2  ;;  %v5370_v11 = vpop.f32.mrf.mxu3 }
 0xf4a   :  { %v5375_v26 = vadd.f32 %v5350_v8, %v14440_v57  ;;  %v5376_v9 = vadd.f32 %v5370_v11, %v14441_v17  ;;  %v12465_v8 = vld [vmem:[%s13126_s3 + $0x1f8] sm:$0xff]  ;;  %v12471_v11 = vld [vmem:[%s13126_s3 + $0x1c0] sm:$0xff]  ;;  %v12477_v57 = vld [vmem:[%s13126_s3 + $0x1c8] sm:$0xff] }
 0xf4b   :  { %v12489_v17 = vld [vmem:[%s13126_s3 + $0x1d8] sm:$0xff] }
 0xf4c   :  { %v6785_v45 = vmul.f32 -1.442695, %v5375_v26  ;;  %v6786_v29 = vmul.f32 -1.442695, %v5376_v9  ;;  %v12483_v26 = vld [vmem:[%s13126_s3 + $0x1d0] sm:$0xff]  ;;  %v12495_v9 = vld [vmem:[%s13126_s3 + $0x1a0] sm:$0xff] }
 0xf4d   :  { %v7205_v42 = vpop.eup %7204 }
 0xf4e   :  { %v7207_v14 = vpop.eup %7206  ;;  %v5389_v35 = vadd.f32 1.0, %v7205_v42  ;;  %7208 = vpow2.f32 %v6785_v45  ;;  %v12501_v45 = vld [vmem:[%s13126_s3 + $0x1a8] sm:$0xff]  ;;  %v12513_v42 = vld [vmem:[%s13126_s3 + $0x1b8] sm:$0xff] }
 0xf4f   :  { %v5390_v58 = vadd.f32 1.0, %v7207_v14  ;;  %7210 = vpow2.f32 %v6786_v29  ;;  %v12507_v29 = vld [vmem:[%s13126_s3 + $0x1b0] sm:$0xff]  ;;  %v12519_v14 = vld [vmem:[%s13126_s3 + $0x180] sm:$0xff] }
 0xf50   :  { %7212 = vrcp.f32 %v5389_v35  ;;  %vm5398_vm13 = vweird.f32 %v5389_v35  ;;  %v5402_v25 = vand.u32 2147483647, %v5389_v35  ;;  %v5404_v15 = vand.u32 2147483648, %v5389_v35 }
 0xf51   :  { %7214 = vrcp.f32 %v5390_v58  ;;  %vm5413_vm1 = vweird.f32 %v5390_v58  ;;  %v5417_v30 = vand.u32 2147483647, %v5390_v58  ;;  %v5419_v28 = vand.u32 2147483648, %v5390_v58 }
 0xf52   :  { %v5405_v52 = vor.u32 1.1754944e-38, %v5404_v15  ;;  %vm5403_vm6 = vcmp.eq.f32.partialorder %v5402_v25, 8.507059e+37  ;;  %v12663_v25 = vld [vmem:[%s13126_s3 + $0xc0] sm:$0xff]  ;;  %v12669_v15 = vld [vmem:[%s13126_s3 + $0xc8] sm:$0xff] }
 0xf53   :  { %v5420_v12 = vor.u32 1.1754944e-38, %v5419_v28  ;;  %vm5418_vm3 = vcmp.eq.f32.partialorder %v5417_v30, 8.507059e+37  ;;  %v12633_v30 = vld [vmem:[%s13126_s3 + $0x118] sm:$0xff]  ;;  %v12639_v28 = vld [vmem:[%s13126_s3 + $0xe0] sm:$0xff]  ;;  %14444 = vst [vmem:[#allocation47_spill] sm:$0xff] %v12663_v25 }
 0xf54   :  { %v7209_v50 = vpop.eup %7208  ;;  %14445 = vst [vmem:[#allocation50_spill] sm:$0xff] %v12669_v15 }
 0xf55   :  { %v7211_v13 = vpop.eup %7210  ;;  %v5391_v22 = vadd.f32 1.0, %v7209_v50  ;;  %v12537_v50 = vld [vmem:[%s13126_s3 + $0x198] sm:$0xff] }
 0xf56   :  { %v7213_v37 = vpop.eup %7212  ;;  %v5392_v60 = vadd.f32 1.0, %v7211_v13  ;;  %v12543_v13 = vld [vmem:[%s13126_s3 + $0x160] sm:$0xff] }
 0xf57   :  { %v7215_v34 = vpop.eup %7214  ;;  %v5394_v27 = vmul.f32 %v7213_v37, %v5389_v35  ;;  %7216 = vrcp.f32 %v5391_v22  ;;  %vm5399_vm12 = vweird.f32 %v7213_v37  ;;  %v5434_v41 = vand.u32 2147483648, %v5391_v22  ;;  %v12525_v35 = vld [vmem:[%s13126_s3 + $0x188] sm:$0xff] }
 0xf58   :  { %v5409_v56 = vmul.f32 %v7215_v34, %v5390_v58  ;;  %7218 = vrcp.f32 %v5392_v60  ;;  %vm5414_vm0 = vweird.f32 %v7215_v34  ;;  %v5432_v20 = vand.u32 2147483647, %v5391_v22  ;;  %vm5400_vm2 = vmor %vm5398_vm13, %vm5399_vm12  ;;  %v12531_v58 = vld [vmem:[%s13126_s3 + $0x190] sm:$0xff] }
 0xf59   :  { %v5395_v38 = vsub.f32 1.0, %v5394_v27  ;;  %vm5415_vm14 = vmor %vm5413_vm1, %vm5414_vm0  ;;  %vm5428_vm4 = vweird.f32 %v5391_v22  ;;  %v5435_v24 = vor.u32 1.1754944e-38, %v5434_v41  ;;  %v5449_v51 = vand.u32 2147483648, %v5392_v60  ;;  %v12573_v27 = vld [vmem:[%s13126_s3 + $0x148] sm:$0xff]  ;;  %v12675_v41 = vld [vmem:[%s13126_s3 + $0xd0] sm:$0xff] }
 0xf5a   :  { %v5410_v2 = vsub.f32 1.0, %v5409_v56  ;;  %vm5433_vm7 = vcmp.eq.f32.partialorder %v5432_v20, 8.507059e+37  ;;  %vm5443_vm9 = vweird.f32 %v5392_v60  ;;  %v5447_v18 = vand.u32 2147483647, %v5392_v60  ;;  %v12579_v56 = vld [vmem:[%s13126_s3 + $0x150] sm:$0xff]  ;;  %14446 = vst [vmem:[#allocation59_spill] sm:$0xff] %v12675_v41 }
 0xf5b   :  { %v5396_v19 = vmul.f32 %v7213_v37, %v5395_v38  ;;  %v5450_v3 = vor.u32 1.1754944e-38, %v5449_v51  ;;  %v12585_v38 = vld [vmem:[%s13126_s3 + $0x158] sm:$0xff]  ;;  %v12693_v20 = vld [vmem:[%s13126_s3 + $0xa8] sm:$0xff]  ;;  %v12783_v51 = vld [vmem:[%s13126_s3 + $0x20] sm:$0xff] }
 0xf5c   :  { %v5411_v16 = vmul.f32 %v7215_v34, %v5410_v2  ;;  %vm5448_vm11 = vcmp.eq.f32.partialorder %v5447_v18, 8.507059e+37  ;;  %v12591_v2 = vld [vmem:[%s13126_s3 + $0x120] sm:$0xff]  ;;  %14449 = vst [vmem:[#allocation57_spill] sm:$0xff] %v12693_v20  ;;  %v12789_v18 = vld [vmem:[%s13126_s3 + $0x28] sm:$0xff] }
 0xf5d   :  { %v7217_v59 = vpop.eup %7216  ;;  %v5397_v4 = vadd.f32 %v7213_v37, %v5396_v19  ;;  %v12597_v19 = vld [vmem:[%s13126_s3 + $0x128] sm:$0xff]  ;;  %14464 = vst [vmem:[#allocation26_spill] sm:$0xff] %v12783_v51 }
 0xf5e   :  { %v5412_v61 = vadd.f32 %v7215_v34, %v5411_v16  ;;  %v5424_v32 = vmul.f32 %v7217_v59, %v5391_v22  ;;  %v7219_v54 = vpop.eup %7218  ;;  %vm5429_vm15 = vweird.f32 %v7217_v59  ;;  %v12549_v22 = vld [vmem:[%s13126_s3 + $0x168] sm:$0xff]  ;;  %v12603_v16 = vld [vmem:[%s13126_s3 + $0x130] sm:$0xff]  ;;  %14465 = vst [vmem:[#allocation31_spill] sm:$0xff] %v12789_v18 }
 0xf5f   :  { %v5439_v40 = vmul.f32 %v7219_v54, %v5392_v60  ;;  %v5401_v23 = vsel %vm5400_vm2, %v7213_v37, %v5397_v4  ;;  %vm5430_vm5 = vmor %vm5428_vm4, %vm5429_vm15  ;;  %vm5444_vm8 = vweird.f32 %v7219_v54  ;;  %v12555_v37 = vld [vmem:[%s13126_s3 + $0x170] sm:$0xff]  ;;  %v12561_v60 = vld [vmem:[%s13126_s3 + $0x178] sm:$0xff] }
 0xf60   :  { %v5425_v53 = vsub.f32 1.0, %v5424_v32  ;;  %v5416_v39 = vsel %vm5415_vm14, %v7215_v34, %v5412_v61  ;;  %v5406_v47 = vsel %vm5403_vm6, %v5405_v52, %v5401_v23  ;;  %vm5445_vm10 = vmor %vm5443_vm9, %vm5444_vm8  ;;  %v12567_v34 = vld [vmem:[%s13126_s3 + $0x140] sm:$0xff]  ;;  %v12621_v32 = vld [vmem:[%s13126_s3 + $0x108] sm:$0xff] }
 0xf61   :  { %v5440_v10 = vsub.f32 1.0, %v5439_v40  ;;  %v5421_v1 = vsel %vm5418_vm3, %v5420_v12, %v5416_v39  ;;  %v12615_v61 = vld [vmem:[%s13126_s3 + $0x100] sm:$0xff]  ;;  %v12645_v4 = vld [vmem:[%s13126_s3 + $0xe8] sm:$0xff]  ;;  %v12657_v40 = vld [vmem:[%s13126_s3 + $0xf8] sm:$0xff] }
 0xf62   :  { %v5426_v31 = vmul.f32 %v7217_v59, %v5425_v53  ;;  %v5453_v5 = vmul.f32 %v5421_v1, %v12369_v0  ;;  %v12447_v0 = vld [vmem:[%s13126_s3 + $0x1e0] sm:$0xff]  ;;  %v12651_v53 = vld [vmem:[%s13126_s3 + $0xf0] sm:$0xff]  ;;  %14443 = vst [vmem:[#allocation42_spill] sm:$0xff] %v12657_v40  ;;  %v12681_v39 = vld [vmem:[%s13126_s3 + $0xd8] sm:$0xff] }
 0xf63   :  { %v5441_v55 = vmul.f32 %v7219_v54, %v5440_v10  ;;  %14442 = vst [vmem:[#allocation68_spill] sm:$0xff] %v12651_v53  ;;  %v12699_v12 = vld [vmem:[%s13126_s3 + $0xb0] sm:$0xff]  ;;  %v12705_v10 = vld [vmem:[%s13126_s3 + $0xb8] sm:$0xff]  ;;  %v12711_v23 = vld [vmem:[%s13126_s3 + $0x80] sm:$0xff] }
 0xf64   :  { %v5427_v21 = vadd.f32 %v7217_v59, %v5426_v31  ;;  %14447 = vst [vmem:[#allocation43_spill] sm:$0xff] %v12681_v39  ;;  %v12687_v31 = vld [vmem:[%s13126_s3 + $0xa0] sm:$0xff]  ;;  %v12723_v52 = vld [vmem:[%s13126_s3 + $0x90] sm:$0xff]  ;;  %v12729_v1 = vld [vmem:[%s13126_s3 + $0x98] sm:$0xff] }
 0xf65   :  { %v5442_v44 = vadd.f32 %v7219_v54, %v5441_v55  ;;  %14448 = vst [vmem:[#allocation60_spill] sm:$0xff] %v12687_v31  ;;  %v12759_v55 = vld [vmem:[%s13126_s3 + $0x40] sm:$0xff] }
 0xf66   :  { %v5431_v62 = vsel %vm5430_vm5, %v7217_v59, %v5427_v21  ;;  %v12609_v59 = vld [vmem:[%s13126_s3 + $0x138] sm:$0xff]  ;;  %14450 = vst [vmem:[#allocation65_spill] sm:$0xff] %v12699_v12  ;;  %v12717_v21 = vld [vmem:[%s13126_s3 + $0x88] sm:$0xff] }
 0xf67   :  { %v5436_v63 = vsel %vm5433_vm7, %v5435_v24, %v5431_v62  ;;  %v5446_v46 = vsel %vm5445_vm10, %v7219_v54, %v5442_v44  ;;  %v12627_v54 = vld [vmem:[%s13126_s3 + $0x110] sm:$0xff]  ;;  %14451 = vst [vmem:[#allocation53_spill] sm:$0xff] %v12705_v10  ;;  %v12735_v24 = vld [vmem:[%s13126_s3 + $0x60] sm:$0xff]  ;;  %v12741_v62 = vld [vmem:[%s13126_s3 + $0x68] sm:$0xff] }
 0xf68   :  { %v5454_v7 = vmul.f32 %v5436_v63, %v5406_v47  ;;  %v5451_v49 = vsel %vm5448_vm11, %v5450_v3, %v5446_v46  ;;  %14452 = vst [vmem:[#allocation44_spill] sm:$0xff] %v12711_v23  ;;  %v12747_v47 = vld [vmem:[%s13126_s3 + $0x70] sm:$0xff]  ;;  %v12753_v63 = vld [vmem:[%s13126_s3 + $0x78] sm:$0xff] }
 0xf69   :  { %14453 = vst [vmem:[#allocation22_spill] sm:$0xff] %v12717_v21  ;;  %v12777_v44 = vld [vmem:[%s13126_s3 + $0x58] sm:$0xff]  ;;  %v12795_v46 = vld [vmem:[%s13126_s3 + $0x30] sm:$0xff] }
 0xf6a   :  { %v12441_v6 = vadd.f32 %v5454_v7, %v5453_v5  ;;  %14454 = vst [vmem:[#allocation21_spill] sm:$0xff] %v12723_v52  ;;  %v12765_v5 = vld [vmem:[%s13126_s3 + $0x48] sm:$0xff]  ;;  %v12771_v7 = vld [vmem:[%s13126_s3 + $0x50] sm:$0xff]  ;;  %v12801_v3 = vld [vmem:[%s13126_s3 + $0x38] sm:$0xff] }
 0xf6b   :  { %14455 = vst [vmem:[#allocation19_spill] sm:$0xff] %v12729_v1 }
 0xf6c   :  { %7220 = vtanh.f32 %v12441_v6  ;;  %14456 = vst [vmem:[#allocation20_spill] sm:$0xff] %v12735_v24 }
 0xf6d   :  { %14457 = vst [vmem:[#allocation25_spill] sm:$0xff] %v12741_v62 }
 0xf6e   :  { %14458 = vst [vmem:[#allocation24_spill] sm:$0xff] %v12747_v47 }
 0xf6f   :  { %14459 = vst [vmem:[#allocation10_spill] sm:$0xff] %v12753_v63 }
 0xf70   :  { %14460 = vst [vmem:[#allocation23_spill] sm:$0xff] %v12759_v55 }
 0xf71   :  { %14461 = vst [vmem:[#allocation28_spill] sm:$0xff] %v12765_v5 }
 0xf72   :  { %v7221_v33 = vpop.eup %7220  ;;  %14462 = vst [vmem:[#allocation27_spill] sm:$0xff] %v12771_v7 }
 0xf73   :  { %v5457_v48 = vmul.f32 %v7221_v33, %v5451_v49  ;;  %14463 = vst [vmem:[#allocation11_spill] sm:$0xff] %v12777_v44  ;;  %v12807_v33 = vld [vmem:[%s13126_s3] sm:$0xff]  ;;  %v12813_v49 = vld [vmem:[%s13126_s3 + $0x8] sm:$0xff] }
 0xf74   :  { %14466 = vst [vmem:[#allocation30_spill] sm:$0xff] %v12795_v46 }
 0xf75   :  { %5479 = vmatmul.f32.vlgmr.msrb.gmra.mxu0 %v5457_v48  ;;  %5499 = vmatmul.f32.vlgmr.msra.gmra.mxu1 %v5457_v48  ;;  %14467 = vst [vmem:[#allocation12_spill] sm:$0xff] %v12801_v3 }
 0xf76   :  { %5519 = vmatmul.f32.vlgmr.msra.gmra.mxu2 %v5457_v48  ;;  %5539 = vmatmul.f32.vlgmr.msra.gmra.mxu3 %v5457_v48  ;;  %14468 = vst [vmem:[#allocation29_spill] sm:$0xff] %v12807_v33  ;;  %v12819_v48 = vld [vmem:[%s13126_s3 + $0x10] sm:$0xff] }
 0xf77   :  { %5802 = vmatpush.msrb.mxu0 %v12447_v0  ;;  %5822 = vmatpush.msra.mxu1 %v12453_v43  ;;  %14469 = vst [vmem:[#allocation33_spill] sm:$0xff] %v12813_v49 }
 0xf78   :  { %5842 = vmatpush.msra.mxu2 %v12459_v36  ;;  %5862 = vmatpush.msra.mxu3 %v12465_v8  ;;  %14470 = vst [vmem:[#allocation34_spill] sm:$0xff] %v12819_v48 }
 0xf79   :  { %5803 = vmatpush.msrb.mxu0 %v12471_v11  ;;  %5823 = vmatpush.msra.mxu1 %v12477_v57 }
 0xf7a   :  { %5843 = vmatpush.msra.mxu2 %v12483_v26  ;;  %5863 = vmatpush.msra.mxu3 %v12489_v17 }
 0xf7b   :  { %5804 = vmatpush.msrb.mxu0 %v12495_v9  ;;  %5824 = vmatpush.msra.mxu1 %v12501_v45 }
 0xf7c   :  { %5844 = vmatpush.msra.mxu2 %v12507_v29  ;;  %5864 = vmatpush.msra.mxu3 %v12513_v42 }
 0xf7d   :  { %5805 = vmatpush.msrb.mxu0 %v12519_v14  ;;  %5825 = vmatpush.msra.mxu1 %v12525_v35 }
 0xf7e   :  { %5845 = vmatpush.msra.mxu2 %v12531_v58  ;;  %5865 = vmatpush.msra.mxu3 %v12537_v50 }
 0xf7f   :  { %5806 = vmatpush.msrb.mxu0 %v12543_v13  ;;  %5826 = vmatpush.msra.mxu1 %v12549_v22 }
 0xf80   :  { %5846 = vmatpush.msra.mxu2 %v12555_v37  ;;  %5866 = vmatpush.msra.mxu3 %v12561_v60 }
 0xf81   :  { %5807 = vmatpush.msrb.mxu0 %v12567_v34  ;;  %5827 = vmatpush.msra.mxu1 %v12573_v27 }
 0xf82   :  { %5847 = vmatpush.msra.mxu2 %v12579_v56  ;;  %5867 = vmatpush.msra.mxu3 %v12585_v38 }
 0xf83   :  { %5808 = vmatpush.msrb.mxu0 %v12591_v2  ;;  %5828 = vmatpush.msra.mxu1 %v12597_v19 }
 0xf84   :  { %5848 = vmatpush.msra.mxu2 %v12603_v16  ;;  %5868 = vmatpush.msra.mxu3 %v12609_v59 }
 0xf85   :  { %5809 = vmatpush.msrb.mxu0 %v12615_v61  ;;  %5829 = vmatpush.msra.mxu1 %v12621_v32 }
 0xf86   :  { %5849 = vmatpush.msra.mxu2 %v12627_v54  ;;  %5869 = vmatpush.msra.mxu3 %v12633_v30 }
 0xf87   :  { %5810 = vmatpush.msrb.mxu0 %v12639_v28  ;;  %5830 = vmatpush.msra.mxu1 %v12645_v4 }
 0xf88   :  { %5850 = vmatpush.msra.mxu2 %v12651_v53  ;;  %5870 = vmatpush.msra.mxu3 %v12657_v40 }
 0xf89   :  { %5811 = vmatpush.msrb.mxu0 %v12663_v25  ;;  %5831 = vmatpush.msra.mxu1 %v12669_v15 }
 0xf8a   :  { %5851 = vmatpush.msra.mxu2 %v12675_v41  ;;  %5871 = vmatpush.msra.mxu3 %v12681_v39 }
 0xf8b   :  { %5812 = vmatpush.msrb.mxu0 %v12687_v31  ;;  %5832 = vmatpush.msra.mxu1 %v12693_v20 }
 0xf8c   :  { %5852 = vmatpush.msra.mxu2 %v12699_v12  ;;  %5872 = vmatpush.msra.mxu3 %v12705_v10 }
 0xf8d   :  { %5813 = vmatpush.msrb.mxu0 %v12711_v23  ;;  %5833 = vmatpush.msra.mxu1 %v12717_v21 }
 0xf8e   :  { %5853 = vmatpush.msra.mxu2 %v12723_v52  ;;  %5873 = vmatpush.msra.mxu3 %v12729_v1 }
 0xf8f   :  { %5814 = vmatpush.msrb.mxu0 %v12735_v24  ;;  %5834 = vmatpush.msra.mxu1 %v12741_v62  ;;  %v14475_v62 = vld [vmem:[#allocation18_spill] sm:$0xff] }
 0xf90   :  { %5854 = vmatpush.msra.mxu2 %v12747_v47  ;;  %5874 = vmatpush.msra.mxu3 %v12753_v63 }
 0xf91   :  { %5815 = vmatpush.msrb.mxu0 %v12759_v55  ;;  %5835 = vmatpush.msra.mxu1 %v12765_v5 }
 0xf92   :  { %5855 = vmatpush.msra.mxu2 %v12771_v7  ;;  %5875 = vmatpush.msra.mxu3 %v12777_v44  ;;  %v14473_v44 = vld [vmem:[#allocation64_spill] sm:$0xff] }
 0xf93   :  { %5816 = vmatpush.msrb.mxu0 %v12783_v51  ;;  %5836 = vmatpush.msra.mxu1 %v12789_v18  ;;  %v14472_v18 = vld [vmem:[#allocation63_spill] sm:$0xff] }
 0xf94   :  { %5856 = vmatpush.msra.mxu2 %v12795_v46  ;;  %5876 = vmatpush.msra.mxu3 %v12801_v3  ;;  %v12825_v3 = vld [vmem:[%s13126_s3 + $0x18] sm:$0xff] }
 0xf95   :  { %5817 = vmatpush.msrb.mxu0 %v12807_v33  ;;  %5837 = vmatpush.msra.mxu1 %v12813_v49  ;;  %14471 = vst [vmem:[#allocation13_spill] sm:$0xff] %v12825_v3 }
 0xf96   :  { %5857 = vmatpush.msra.mxu2 %v12819_v48  ;;  %5877 = vmatpush.msra.mxu3 %v12825_v3  ;;  %v14474_v48 = vld [vmem:[#allocation52_spill] sm:$0xff] }
 0xff2   :  { %v5480_v33 = vpop.f32.mrf.mxu0  ;;  %v5500_v46 = vpop.f32.mrf.mxu1 }
 0xff3   :  { %v5543_v51 = vadd.f32 %v5480_v33, %v14472_v18  ;;  %v5544_v49 = vadd.f32 %v5500_v46, %v14473_v44 }
 0xff5   :  { %v6787_v7 = vmul.f32 -1.442695, %v5543_v51  ;;  %v6788_v5 = vmul.f32 -1.442695, %v5544_v49 }
 0xff7   :  { %7222 = vpow2.f32 %v6787_v7 }
 0xff8   :  { %7224 = vpow2.f32 %v6788_v5 }
 0xff9   :  { %v5520_v55 = vpop.f32.mrf.mxu2  ;;  %v5540_v63 = vpop.f32.mrf.mxu3 }
 0xffa   :  { %v5545_v47 = vadd.f32 %v5520_v55, %v14474_v48  ;;  %v5546_v24 = vadd.f32 %v5540_v63, %v14475_v62 }
 0xffc   :  { %v6789_v1 = vmul.f32 -1.442695, %v5545_v47  ;;  %v6790_v52 = vmul.f32 -1.442695, %v5546_v24 }
 0xffd   :  { %v7223_v21 = vpop.eup %7222 }
 0xffe   :  { %v7225_v3 = vpop.eup %7224  ;;  %v5559_v23 = vadd.f32 1.0, %v7223_v21  ;;  %7226 = vpow2.f32 %v6789_v1 }
 0xfff   :  { %v5560_v10 = vadd.f32 1.0, %v7225_v3  ;;  %7228 = vpow2.f32 %v6790_v52 }
0x1000   :  { %7230 = vrcp.f32 %v5559_v23  ;;  %vm5568_vm13 = vweird.f32 %v5559_v23  ;;  %v5572_v20 = vand.u32 2147483647, %v5559_v23  ;;  %v5574_v31 = vand.u32 2147483648, %v5559_v23 }
0x1001   :  { %7232 = vrcp.f32 %v5560_v10  ;;  %vm5583_vm1 = vweird.f32 %v5560_v10  ;;  %v5587_v49 = vand.u32 2147483647, %v5560_v10  ;;  %v5589_v48 = vand.u32 2147483648, %v5560_v10 }
0x1002   :  { %vm5573_vm6 = vcmp.eq.f32.partialorder %v5572_v20, 8.507059e+37 }
0x1003   :  { %vm5588_vm3 = vcmp.eq.f32.partialorder %v5587_v49, 8.507059e+37  ;;  %v14482_v49 = vld [vmem:[#allocation60_spill] sm:$0xff] }
0x1004   :  { %v7227_v44 = vpop.eup %7226 }
0x1005   :  { %v7229_v51 = vpop.eup %7228  ;;  %v5561_v7 = vadd.f32 1.0, %v7227_v44 }
0x1006   :  { %v7231_v5 = vpop.eup %7230  ;;  %v5562_v18 = vadd.f32 1.0, %v7229_v51 }
0x1007   :  { %v7233_v46 = vpop.eup %7232  ;;  %v5564_v33 = vmul.f32 %v7231_v5, %v5559_v23  ;;  %7234 = vrcp.f32 %v5561_v7  ;;  %vm5569_vm12 = vweird.f32 %v7231_v5  ;;  %vm5598_vm4 = vweird.f32 %v5561_v7 }
0x1008   :  { %v5579_v55 = vmul.f32 %v7233_v46, %v5560_v10  ;;  %7236 = vrcp.f32 %v5562_v18  ;;  %vm5584_vm0 = vweird.f32 %v7233_v46  ;;  %vm5570_vm2 = vmor %vm5568_vm13, %vm5569_vm12  ;;  %v5575_v10 = vor.u32 1.1754944e-38, %v5574_v31 }
0x1009   :  { %v5565_v62 = vsub.f32 1.0, %v5564_v33  ;;  %vm5585_vm14 = vmor %vm5583_vm1, %vm5584_vm0  ;;  %v5604_v33 = vand.u32 2147483648, %v5561_v7  ;;  %vm5613_vm9 = vweird.f32 %v5562_v18  ;;  %v5617_v31 = vand.u32 2147483647, %v5562_v18 }
0x100a   :  { %v5580_v24 = vsub.f32 1.0, %v5579_v55 }
0x100b   :  { %v5566_v47 = vmul.f32 %v7231_v5, %v5565_v62  ;;  %vm5618_vm11 = vcmp.eq.f32.partialorder %v5617_v31, 8.507059e+37  ;;  %v14499_v31 = vld [vmem:[#allocation31_spill] sm:$0xff] }
0x100c   :  { %v5581_v63 = vmul.f32 %v7233_v46, %v5580_v24  ;;  %v5602_v24 = vand.u32 2147483647, %v5561_v7 }
0x100d   :  { %v7235_v21 = vpop.eup %7234  ;;  %v5567_v44 = vadd.f32 %v7231_v5, %v5566_v47 }
0x100e   :  { %v5582_v1 = vadd.f32 %v7233_v46, %v5581_v63  ;;  %v5594_v52 = vmul.f32 %v7235_v21, %v5561_v7  ;;  %v7237_v3 = vpop.eup %7236  ;;  %vm5599_vm15 = vweird.f32 %v7235_v21  ;;  %v5590_v63 = vor.u32 1.1754944e-38, %v5589_v48  ;;  %v14483_v48 = vld [vmem:[#allocation57_spill] sm:$0xff] }
0x100f   :  { %v5609_v12 = vmul.f32 %v7237_v3, %v5562_v18  ;;  %v5571_v41 = vsel %vm5570_vm2, %v7231_v5, %v5567_v44  ;;  %vm5600_vm5 = vmor %vm5598_vm4, %vm5599_vm15  ;;  %vm5603_vm7 = vcmp.eq.f32.partialorder %v5602_v24, 8.507059e+37  ;;  %vm5614_vm8 = vweird.f32 %v7237_v3  ;;  %v14484_v44 = vld [vmem:[#allocation65_spill] sm:$0xff] }
0x1010   :  { %v5595_v51 = vsub.f32 1.0, %v5594_v52  ;;  %v5586_v55 = vsel %vm5585_vm14, %v7233_v46, %v5582_v1  ;;  %v5605_v52 = vor.u32 1.1754944e-38, %v5604_v33  ;;  %v5576_v23 = vsel %vm5573_vm6, %v5575_v10, %v5571_v41  ;;  %vm5615_vm10 = vmor %vm5613_vm9, %vm5614_vm8  ;;  %v14485_v33 = vld [vmem:[#allocation53_spill] sm:$0xff]  ;;  %v14490_v10 = vld [vmem:[#allocation20_spill] sm:$0xff] }
0x1011   :  { %v5610_v39 = vsub.f32 1.0, %v5609_v12  ;;  %v5591_v47 = vsel %vm5588_vm3, %v5590_v63, %v5586_v55  ;;  %v5619_v5 = vand.u32 2147483648, %v5562_v18  ;;  %v14479_v18 = vld [vmem:[#allocation50_spill] sm:$0xff]  ;;  %v14486_v55 = vld [vmem:[#allocation44_spill] sm:$0xff]  ;;  %v14488_v24 = vld [vmem:[#allocation21_spill] sm:$0xff] }
0x1012   :  { %v5596_v62 = vmul.f32 %v7235_v21, %v5595_v51  ;;  %v5623_v1 = vmul.f32 %v5591_v47, %v12441_v6  ;;  %v14476_v6 = vld [vmem:[#allocation68_spill] sm:$0xff]  ;;  %v14489_v63 = vld [vmem:[#allocation19_spill] sm:$0xff]  ;;  %v14491_v47 = vld [vmem:[#allocation25_spill] sm:$0xff] }
0x1013   :  { %v5611_v46 = vmul.f32 %v7237_v3, %v5610_v39  ;;  %v5620_v20 = vor.u32 1.1754944e-38, %v5619_v5  ;;  %v14478_v39 = vld [vmem:[#allocation47_spill] sm:$0xff]  ;;  %v14498_v5 = vld [vmem:[#allocation26_spill] sm:$0xff] }
0x1014   :  { %v5597_v15 = vadd.f32 %v7235_v21, %v5596_v62  ;;  %v14487_v62 = vld [vmem:[#allocation22_spill] sm:$0xff] }
0x1015   :  { %v5612_v12 = vadd.f32 %v7237_v3, %v5611_v46  ;;  %v14494_v46 = vld [vmem:[#allocation23_spill] sm:$0xff] }
0x1016   :  { %v5601_v25 = vsel %vm5600_vm5, %v7235_v21, %v5597_v15  ;;  %v14480_v21 = vld [vmem:[#allocation59_spill] sm:$0xff] }
0x1017   :  { %v5606_v40 = vsel %vm5603_vm7, %v5605_v52, %v5601_v25  ;;  %v5616_v7 = vsel %vm5615_vm10, %v7237_v3, %v5612_v12  ;;  %v14481_v3 = vld [vmem:[#allocation43_spill] sm:$0xff]  ;;  %v14492_v52 = vld [vmem:[#allocation24_spill] sm:$0xff] }
0x1018   :  { %v5624_v51 = vmul.f32 %v5606_v40, %v5576_v23  ;;  %v5621_v41 = vsel %vm5618_vm11, %v5620_v20, %v5616_v7  ;;  %v14477_v40 = vld [vmem:[#allocation42_spill] sm:$0xff]  ;;  %v14497_v12 = vld [vmem:[#allocation11_spill] sm:$0xff]  ;;  %v14501_v20 = vld [vmem:[#allocation12_spill] sm:$0xff] }
0x1019   :  { %v14493_v23 = vld [vmem:[#allocation10_spill] sm:$0xff] }
0x101a   :  { %v12833_v53 = vadd.f32 %v5624_v51, %v5623_v1  ;;  %v14495_v1 = vld [vmem:[#allocation28_spill] sm:$0xff]  ;;  %v14496_v51 = vld [vmem:[#allocation27_spill] sm:$0xff]  ;;  %v14500_v7 = vld [vmem:[#allocation30_spill] sm:$0xff] }
0x101c   :  { %7238 = vtanh.f32 %v12833_v53 }
0x1022   :  { %v7239_v15 = vpop.eup %7238 }
0x1023   :  { %v5627_v25 = vmul.f32 %v7239_v15, %v5621_v41  ;;  %v14502_v15 = vld [vmem:[#allocation29_spill] sm:$0xff] }
0x1024   :  { %v14503_v41 = vld [vmem:[#allocation33_spill] sm:$0xff] }
0x1025   :  { %5649 = vmatmul.f32.vlgmr.msra.gmra.mxu0 %v5627_v25  ;;  %5669 = vmatmul.f32.vlgmr.msrb.gmra.mxu1 %v5627_v25 }
0x1026   :  { %5689 = vmatmul.f32.vlgmr.msrb.gmra.mxu2 %v5627_v25  ;;  %5709 = vmatmul.f32.vlgmr.msrb.gmra.mxu3 %v5627_v25  ;;  %v14504_v25 = vld [vmem:[#allocation34_spill] sm:$0xff] }
0x1027   :  { %5972 = vmatpush.msra.mxu0 %v12447_v0  ;;  %5992 = vmatpush.msrb.mxu1 %v12453_v43 }
0x1028   :  { %6012 = vmatpush.msrb.mxu2 %v12459_v36  ;;  %6032 = vmatpush.msrb.mxu3 %v12465_v8 }
0x1029   :  { %5973 = vmatpush.msra.mxu0 %v12471_v11  ;;  %5993 = vmatpush.msrb.mxu1 %v12477_v57 }
0x102a   :  { %6013 = vmatpush.msrb.mxu2 %v12483_v26  ;;  %6033 = vmatpush.msrb.mxu3 %v12489_v17 }
0x102b   :  { %5974 = vmatpush.msra.mxu0 %v12495_v9  ;;  %5994 = vmatpush.msrb.mxu1 %v12501_v45 }
0x102c   :  { %6014 = vmatpush.msrb.mxu2 %v12507_v29  ;;  %6034 = vmatpush.msrb.mxu3 %v12513_v42 }
0x102d   :  { %5975 = vmatpush.msra.mxu0 %v12519_v14  ;;  %5995 = vmatpush.msrb.mxu1 %v12525_v35 }
0x102e   :  { %6015 = vmatpush.msrb.mxu2 %v12531_v58  ;;  %6035 = vmatpush.msrb.mxu3 %v12537_v50 }
0x102f   :  { %5976 = vmatpush.msra.mxu0 %v12543_v13  ;;  %5996 = vmatpush.msrb.mxu1 %v12549_v22 }
0x1030   :  { %6016 = vmatpush.msrb.mxu2 %v12555_v37  ;;  %6036 = vmatpush.msrb.mxu3 %v12561_v60 }
0x1031   :  { %5977 = vmatpush.msra.mxu0 %v12567_v34  ;;  %5997 = vmatpush.msrb.mxu1 %v12573_v27 }
0x1032   :  { %6017 = vmatpush.msrb.mxu2 %v12579_v56  ;;  %6037 = vmatpush.msrb.mxu3 %v12585_v38 }
0x1033   :  { %5978 = vmatpush.msra.mxu0 %v12591_v2  ;;  %5998 = vmatpush.msrb.mxu1 %v12597_v19 }
0x1034   :  { %6018 = vmatpush.msrb.mxu2 %v12603_v16  ;;  %6038 = vmatpush.msrb.mxu3 %v12609_v59 }
0x1035   :  { %5979 = vmatpush.msra.mxu0 %v12615_v61  ;;  %5999 = vmatpush.msrb.mxu1 %v12621_v32 }
0x1036   :  { %6019 = vmatpush.msrb.mxu2 %v12627_v54  ;;  %6039 = vmatpush.msrb.mxu3 %v12633_v30 }
0x1037   :  { %5980 = vmatpush.msra.mxu0 %v12639_v28  ;;  %6000 = vmatpush.msrb.mxu1 %v12645_v4 }
0x1038   :  { %6020 = vmatpush.msrb.mxu2 %v14476_v6  ;;  %6040 = vmatpush.msrb.mxu3 %v14477_v40 }
0x1039   :  { %5981 = vmatpush.msra.mxu0 %v14478_v39  ;;  %6001 = vmatpush.msrb.mxu1 %v14479_v18 }
0x103a   :  { %6021 = vmatpush.msrb.mxu2 %v14480_v21  ;;  %6041 = vmatpush.msrb.mxu3 %v14481_v3 }
0x103b   :  { %5982 = vmatpush.msra.mxu0 %v14482_v49  ;;  %6002 = vmatpush.msrb.mxu1 %v14483_v48 }
0x103c   :  { %6022 = vmatpush.msrb.mxu2 %v14484_v44  ;;  %6042 = vmatpush.msrb.mxu3 %v14485_v33 }
0x103d   :  { %5983 = vmatpush.msra.mxu0 %v14486_v55  ;;  %6003 = vmatpush.msrb.mxu1 %v14487_v62 }
0x103e   :  { %6023 = vmatpush.msrb.mxu2 %v14488_v24  ;;  %6043 = vmatpush.msrb.mxu3 %v14489_v63  ;;  %v14509_v63 = vld [vmem:[#allocation72_spill] sm:$0xff] }
0x103f   :  { %5984 = vmatpush.msra.mxu0 %v14490_v10  ;;  %6004 = vmatpush.msrb.mxu1 %v14491_v47  ;;  %v14508_v10 = vld [vmem:[#allocation71_spill] sm:$0xff] }
0x1040   :  { %6024 = vmatpush.msrb.mxu2 %v14492_v52  ;;  %6044 = vmatpush.msrb.mxu3 %v14493_v23  ;;  %v14506_v23 = vld [vmem:[#allocation39_spill] sm:$0xff]  ;;  %v14507_v52 = vld [vmem:[#allocation56_spill] sm:$0xff] }
0x1041   :  { %5985 = vmatpush.msra.mxu0 %v14494_v46  ;;  %6005 = vmatpush.msrb.mxu1 %v14495_v1  ;;  %v14505_v46 = vld [vmem:[#allocation13_spill] sm:$0xff] }
0x1042   :  { %6025 = vmatpush.msrb.mxu2 %v14496_v51  ;;  %6045 = vmatpush.msrb.mxu3 %v14497_v12 }
0x1043   :  { %5986 = vmatpush.msra.mxu0 %v14498_v5  ;;  %6006 = vmatpush.msrb.mxu1 %v14499_v31 }
0x1044   :  { %6026 = vmatpush.msrb.mxu2 %v14500_v7  ;;  %6046 = vmatpush.msrb.mxu3 %v14501_v20 }
0x1045   :  { %5987 = vmatpush.msra.mxu0 %v14502_v15  ;;  %6007 = vmatpush.msrb.mxu1 %v14503_v41 }
0x1046   :  { %6027 = vmatpush.msrb.mxu2 %v14504_v25  ;;  %6047 = vmatpush.msrb.mxu3 %v14505_v46 }
0x10a2   :  { %v5650_v1 = vpop.f32.mrf.mxu0  ;;  %v5670_v51 = vpop.f32.mrf.mxu1 }
0x10a3   :  { %v5713_v12 = vadd.f32 %v5650_v1, %v14506_v23  ;;  %v5714_v5 = vadd.f32 %v5670_v51, %v14507_v52 }
0x10a5   :  { %v6791_v47 = vmul.f32 -1.442695, %v5713_v12  ;;  %v6792_v31 = vmul.f32 -1.442695, %v5714_v5 }
0x10a7   :  { %7240 = vpow2.f32 %v6791_v47 }
0x10a8   :  { %7242 = vpow2.f32 %v6792_v31 }
0x10a9   :  { %v5690_v7 = vpop.f32.mrf.mxu2  ;;  %v5710_v20 = vpop.f32.mrf.mxu3 }
0x10aa   :  { %v5715_v15 = vadd.f32 %v5690_v7, %v14508_v10  ;;  %v5716_v41 = vadd.f32 %v5710_v20, %v14509_v63 }
0x10ac   :  { %v6793_v24 = vmul.f32 -1.442695, %v5715_v15  ;;  %v6794_v25 = vmul.f32 -1.442695, %v5716_v41 }
0x10ad   :  { %v7241_v62 = vpop.eup %7240 }
0x10ae   :  { %v7243_v46 = vpop.eup %7242  ;;  %v5729_v55 = vadd.f32 1.0, %v7241_v62  ;;  %7244 = vpow2.f32 %v6793_v24 }
0x10af   :  { %v5730_v33 = vadd.f32 1.0, %v7243_v46  ;;  %7246 = vpow2.f32 %v6794_v25 }
0x10b0   :  { %7248 = vrcp.f32 %v5729_v55  ;;  %vm5738_vm13 = vweird.f32 %v5729_v55  ;;  %v5742_v48 = vand.u32 2147483647, %v5729_v55  ;;  %v5744_v49 = vand.u32 2147483648, %v5729_v55 }
0x10b1   :  { %7250 = vrcp.f32 %v5730_v33  ;;  %vm5753_vm1 = vweird.f32 %v5730_v33  ;;  %v5757_v41 = vand.u32 2147483647, %v5730_v33  ;;  %v5759_v25 = vand.u32 2147483648, %v5730_v33 }
0x10b2   :  { %vm5743_vm6 = vcmp.eq.f32.partialorder %v5742_v48, 8.507059e+37 }
0x10b3   :  { %vm5758_vm3 = vcmp.eq.f32.partialorder %v5757_v41, 8.507059e+37  ;;  %v14516_v41 = vld [vmem:[#allocation60_spill] sm:$0xff] }
0x10b4   :  { %v7245_v52 = vpop.eup %7244 }
0x10b5   :  { %v7247_v23 = vpop.eup %7246  ;;  %v5731_v47 = vadd.f32 1.0, %v7245_v52 }
0x10b6   :  { %v7249_v1 = vpop.eup %7248  ;;  %v5732_v51 = vadd.f32 1.0, %v7247_v23 }
0x10b7   :  { %v7251_v12 = vpop.eup %7250  ;;  %v5734_v5 = vmul.f32 %v7249_v1, %v5729_v55  ;;  %7252 = vrcp.f32 %v5731_v47  ;;  %vm5739_vm12 = vweird.f32 %v7249_v1  ;;  %vm5768_vm4 = vweird.f32 %v5731_v47 }
0x10b8   :  { %v5749_v10 = vmul.f32 %v7251_v12, %v5730_v33  ;;  %7254 = vrcp.f32 %v5732_v51  ;;  %vm5754_vm0 = vweird.f32 %v7251_v12  ;;  %vm5740_vm2 = vmor %vm5738_vm13, %vm5739_vm12  ;;  %v5745_v33 = vor.u32 1.1754944e-38, %v5744_v49 }
0x10b9   :  { %v5735_v63 = vsub.f32 1.0, %v5734_v5  ;;  %vm5755_vm14 = vmor %vm5753_vm1, %vm5754_vm0  ;;  %v5774_v5 = vand.u32 2147483648, %v5731_v47  ;;  %vm5783_vm9 = vweird.f32 %v5732_v51  ;;  %v5787_v49 = vand.u32 2147483647, %v5732_v51 }
0x10ba   :  { %v5750_v31 = vsub.f32 1.0, %v5749_v10 }
0x10bb   :  { %v5736_v7 = vmul.f32 %v7249_v1, %v5735_v63  ;;  %vm5788_vm11 = vcmp.eq.f32.partialorder %v5787_v49, 8.507059e+37  ;;  %v14533_v49 = vld [vmem:[#allocation31_spill] sm:$0xff] }
0x10bc   :  { %v5751_v20 = vmul.f32 %v7251_v12, %v5750_v31  ;;  %v5772_v31 = vand.u32 2147483647, %v5731_v47 }
0x10bd   :  { %v7253_v62 = vpop.eup %7252  ;;  %v5737_v52 = vadd.f32 %v7249_v1, %v5736_v7 }
0x10be   :  { %v5752_v24 = vadd.f32 %v7251_v12, %v5751_v20  ;;  %v5764_v46 = vmul.f32 %v7253_v62, %v5731_v47  ;;  %v7255_v15 = vpop.eup %7254  ;;  %vm5769_vm15 = vweird.f32 %v7253_v62  ;;  %v5760_v20 = vor.u32 1.1754944e-38, %v5759_v25  ;;  %v14517_v25 = vld [vmem:[#allocation57_spill] sm:$0xff] }
0x10bf   :  { %v5779_v44 = vmul.f32 %v7255_v15, %v5732_v51  ;;  %v5741_v21 = vsel %vm5740_vm2, %v7249_v1, %v5737_v52  ;;  %vm5770_vm5 = vmor %vm5768_vm4, %vm5769_vm15  ;;  %vm5773_vm7 = vcmp.eq.f32.partialorder %v5772_v31, 8.507059e+37  ;;  %vm5784_vm8 = vweird.f32 %v7255_v15  ;;  %v14518_v52 = vld [vmem:[#allocation65_spill] sm:$0xff] }
0x10c0   :  { %v5765_v23 = vsub.f32 1.0, %v5764_v46  ;;  %v5756_v10 = vsel %vm5755_vm14, %v7251_v12, %v5752_v24  ;;  %v5775_v46 = vor.u32 1.1754944e-38, %v5774_v5  ;;  %v5746_v55 = vsel %vm5743_vm6, %v5745_v33, %v5741_v21  ;;  %vm5785_vm10 = vmor %vm5783_vm9, %vm5784_vm8  ;;  %v14519_v5 = vld [vmem:[#allocation53_spill] sm:$0xff]  ;;  %v14524_v33 = vld [vmem:[#allocation20_spill] sm:$0xff] }
0x10c1   :  { %v5780_v3 = vsub.f32 1.0, %v5779_v44  ;;  %v5761_v7 = vsel %vm5758_vm3, %v5760_v20, %v5756_v10  ;;  %v5789_v1 = vand.u32 2147483648, %v5732_v51  ;;  %v14513_v51 = vld [vmem:[#allocation50_spill] sm:$0xff]  ;;  %v14520_v10 = vld [vmem:[#allocation44_spill] sm:$0xff]  ;;  %v14522_v31 = vld [vmem:[#allocation21_spill] sm:$0xff] }
0x10c2   :  { %v5766_v63 = vmul.f32 %v7253_v62, %v5765_v23  ;;  %v5793_v24 = vmul.f32 %v5761_v7, %v12833_v53  ;;  %v14510_v53 = vld [vmem:[#allocation68_spill] sm:$0xff]  ;;  %v14523_v20 = vld [vmem:[#allocation19_spill] sm:$0xff]  ;;  %v14525_v7 = vld [vmem:[#allocation25_spill] sm:$0xff] }
0x10c3   :  { %v5781_v12 = vmul.f32 %v7255_v15, %v5780_v3  ;;  %v5790_v48 = vor.u32 1.1754944e-38, %v5789_v1  ;;  %v14512_v3 = vld [vmem:[#allocation47_spill] sm:$0xff]  ;;  %v14532_v1 = vld [vmem:[#allocation26_spill] sm:$0xff] }
0x10c4   :  { %v5767_v18 = vadd.f32 %v7253_v62, %v5766_v63  ;;  %v14521_v63 = vld [vmem:[#allocation22_spill] sm:$0xff] }
0x10c5   :  { %v5782_v44 = vadd.f32 %v7255_v15, %v5781_v12  ;;  %v14528_v12 = vld [vmem:[#allocation23_spill] sm:$0xff] }
0x10c6   :  { %v5771_v39 = vsel %vm5770_vm5, %v7253_v62, %v5767_v18  ;;  %v14514_v62 = vld [vmem:[#allocation59_spill] sm:$0xff] }
0x10c7   :  { %v5776_v40 = vsel %vm5773_vm7, %v5775_v46, %v5771_v39  ;;  %v5786_v47 = vsel %vm5785_vm10, %v7255_v15, %v5782_v44  ;;  %v14515_v15 = vld [vmem:[#allocation43_spill] sm:$0xff]  ;;  %v14526_v46 = vld [vmem:[#allocation24_spill] sm:$0xff] }
0x10c8   :  { %v5794_v23 = vmul.f32 %v5776_v40, %v5746_v55  ;;  %v5791_v21 = vsel %vm5788_vm11, %v5790_v48, %v5786_v47  ;;  %v14511_v40 = vld [vmem:[#allocation42_spill] sm:$0xff]  ;;  %v14531_v44 = vld [vmem:[#allocation11_spill] sm:$0xff]  ;;  %v14535_v48 = vld [vmem:[#allocation12_spill] sm:$0xff] }
0x10c9   :  { %v14527_v55 = vld [vmem:[#allocation10_spill] sm:$0xff] }
0x10ca   :  { %v12905_v6 = vadd.f32 %v5794_v23, %v5793_v24  ;;  %v14529_v24 = vld [vmem:[#allocation28_spill] sm:$0xff]  ;;  %v14530_v23 = vld [vmem:[#allocation27_spill] sm:$0xff]  ;;  %v14534_v47 = vld [vmem:[#allocation30_spill] sm:$0xff] }
0x10cc   :  { %7256 = vtanh.f32 %v12905_v6 }
0x10d2   :  { %v7257_v18 = vpop.eup %7256 }
0x10d3   :  { %v5797_v39 = vmul.f32 %v7257_v18, %v5791_v21  ;;  %v14536_v18 = vld [vmem:[#allocation29_spill] sm:$0xff] }
0x10d4   :  { %v14537_v21 = vld [vmem:[#allocation33_spill] sm:$0xff] }
0x10d5   :  { %5818 = vmatmul.f32.vlgmr.msrb.gmra.mxu0 %v5797_v39  ;;  %5838 = vmatmul.f32.vlgmr.msra.gmra.mxu1 %v5797_v39 }
0x10d6   :  { %5858 = vmatmul.f32.vlgmr.msra.gmra.mxu2 %v5797_v39  ;;  %5878 = vmatmul.f32.vlgmr.msra.gmra.mxu3 %v5797_v39  ;;  %v14538_v39 = vld [vmem:[#allocation34_spill] sm:$0xff] }
0x10d7   :  { %6142 = vmatpush.msrb.mxu0 %v12447_v0  ;;  %6162 = vmatpush.msra.mxu1 %v12453_v43 }
0x10d8   :  { %6182 = vmatpush.msra.mxu2 %v12459_v36  ;;  %6202 = vmatpush.msra.mxu3 %v12465_v8 }
0x10d9   :  { %6143 = vmatpush.msrb.mxu0 %v12471_v11  ;;  %6163 = vmatpush.msra.mxu1 %v12477_v57 }
0x10da   :  { %6183 = vmatpush.msra.mxu2 %v12483_v26  ;;  %6203 = vmatpush.msra.mxu3 %v12489_v17 }
0x10db   :  { %6144 = vmatpush.msrb.mxu0 %v12495_v9  ;;  %6164 = vmatpush.msra.mxu1 %v12501_v45 }
0x10dc   :  { %6184 = vmatpush.msra.mxu2 %v12507_v29  ;;  %6204 = vmatpush.msra.mxu3 %v12513_v42 }
0x10dd   :  { %6145 = vmatpush.msrb.mxu0 %v12519_v14  ;;  %6165 = vmatpush.msra.mxu1 %v12525_v35 }
0x10de   :  { %6185 = vmatpush.msra.mxu2 %v12531_v58  ;;  %6205 = vmatpush.msra.mxu3 %v12537_v50 }
0x10df   :  { %6146 = vmatpush.msrb.mxu0 %v12543_v13  ;;  %6166 = vmatpush.msra.mxu1 %v12549_v22 }
0x10e0   :  { %6186 = vmatpush.msra.mxu2 %v12555_v37  ;;  %6206 = vmatpush.msra.mxu3 %v12561_v60 }
0x10e1   :  { %6147 = vmatpush.msrb.mxu0 %v12567_v34  ;;  %6167 = vmatpush.msra.mxu1 %v12573_v27 }
0x10e2   :  { %6187 = vmatpush.msra.mxu2 %v12579_v56  ;;  %6207 = vmatpush.msra.mxu3 %v12585_v38 }
0x10e3   :  { %6148 = vmatpush.msrb.mxu0 %v12591_v2  ;;  %6168 = vmatpush.msra.mxu1 %v12597_v19 }
0x10e4   :  { %6188 = vmatpush.msra.mxu2 %v12603_v16  ;;  %6208 = vmatpush.msra.mxu3 %v12609_v59 }
0x10e5   :  { %6149 = vmatpush.msrb.mxu0 %v12615_v61  ;;  %6169 = vmatpush.msra.mxu1 %v12621_v32 }
0x10e6   :  { %6189 = vmatpush.msra.mxu2 %v12627_v54  ;;  %6209 = vmatpush.msra.mxu3 %v12633_v30 }
0x10e7   :  { %6150 = vmatpush.msrb.mxu0 %v12639_v28  ;;  %6170 = vmatpush.msra.mxu1 %v12645_v4 }
0x10e8   :  { %6190 = vmatpush.msra.mxu2 %v14510_v53  ;;  %6210 = vmatpush.msra.mxu3 %v14511_v40 }
0x10e9   :  { %6151 = vmatpush.msrb.mxu0 %v14512_v3  ;;  %6171 = vmatpush.msra.mxu1 %v14513_v51 }
0x10ea   :  { %6191 = vmatpush.msra.mxu2 %v14514_v62  ;;  %6211 = vmatpush.msra.mxu3 %v14515_v15 }
0x10eb   :  { %6152 = vmatpush.msrb.mxu0 %v14516_v41  ;;  %6172 = vmatpush.msra.mxu1 %v14517_v25 }
0x10ec   :  { %6192 = vmatpush.msra.mxu2 %v14518_v52  ;;  %6212 = vmatpush.msra.mxu3 %v14519_v5 }
0x10ed   :  { %6153 = vmatpush.msrb.mxu0 %v14520_v10  ;;  %6173 = vmatpush.msra.mxu1 %v14521_v63  ;;  %v14546_v63 = vld [vmem:[#allocation17_spill] sm:$0xff] }
0x10ee   :  { %6193 = vmatpush.msra.mxu2 %v14522_v31  ;;  %6213 = vmatpush.msra.mxu3 %v14523_v20  ;;  %v14545_v31 = vld [vmem:[#allocation74_spill] sm:$0xff] }
0x10ef   :  { %6154 = vmatpush.msrb.mxu0 %v14524_v33  ;;  %6174 = vmatpush.msra.mxu1 %v14525_v7 }
0x10f0   :  { %6194 = vmatpush.msra.mxu2 %v14526_v46  ;;  %6214 = vmatpush.msra.mxu3 %v14527_v55  ;;  %v14543_v46 = vld [vmem:[#allocation41_spill] sm:$0xff] }
0x10f1   :  { %6155 = vmatpush.msrb.mxu0 %v14528_v12  ;;  %6175 = vmatpush.msra.mxu1 %v14529_v24  ;;  %v14539_v12 = vld [vmem:[#allocation13_spill] sm:$0xff]  ;;  %v14540_v24 = vld [vmem:[#allocation40_spill] sm:$0xff] }
0x10f2   :  { %6195 = vmatpush.msra.mxu2 %v14530_v23  ;;  %6215 = vmatpush.msra.mxu3 %v14531_v44  ;;  %v14541_v23 = vld [vmem:[#allocation73_spill] sm:$0xff]  ;;  %v14542_v44 = vld [vmem:[#allocation48_spill] sm:$0xff] }
0x10f3   :  { %6156 = vmatpush.msrb.mxu0 %v14532_v1  ;;  %6176 = vmatpush.msra.mxu1 %v14533_v49  ;;  %v4940_v55 = vadd.f32 %v14541_v23, %v14540_v24  ;;  %v4969_v1 = vadd.f32 %v14543_v46, %v14542_v44 }
0x10f4   :  { %6196 = vmatpush.msra.mxu2 %v14534_v47  ;;  %6216 = vmatpush.msra.mxu3 %v14535_v48 }
0x10f5   :  { %6157 = vmatpush.msrb.mxu0 %v14536_v18  ;;  %6177 = vmatpush.msra.mxu1 %v14537_v21  ;;  %v14544_v18 = vld [vmem:[#allocation8_spill] sm:$0xff] }
0x10f6   :  { %6197 = vmatpush.msra.mxu2 %v14538_v39  ;;  %6217 = vmatpush.msra.mxu3 %v14539_v12  ;;  %v4998_v21 = vadd.f32 %v14545_v31, %v14544_v18  ;;  %v14547_v39 = vld [vmem:[#allocation46_spill] sm:$0xff] }
0x10f7   :  { %v5027_v10 = vadd.f32 %v14547_v39, %v14546_v63 }
0x1152   :  { %v5819_v7 = vpop.f32.mrf.mxu0  ;;  %v5839_v49 = vpop.f32.mrf.mxu1 }
0x1153   :  { %v5882_v33 = vadd.f32 %v5819_v7, %v4940_v55  ;;  %v5883_v47 = vadd.f32 %v5839_v49, %v4969_v1 }
0x1155   :  { %v6795_v20 = vmul.f32 -1.442695, %v5882_v33  ;;  %v6796_v48 = vmul.f32 -1.442695, %v5883_v47 }
0x1157   :  { %7258 = vpow2.f32 %v6795_v20 }
0x1158   :  { %7260 = vpow2.f32 %v6796_v48 }
0x1159   :  { %v5859_v12 = vpop.f32.mrf.mxu2  ;;  %v5879_v5 = vpop.f32.mrf.mxu3 }
0x115a   :  { %v5884_v24 = vadd.f32 %v5859_v12, %v4998_v21  ;;  %v5885_v23 = vadd.f32 %v5879_v5, %v5027_v10 }
0x115c   :  { %v6797_v52 = vmul.f32 -1.442695, %v5884_v24  ;;  %v6798_v46 = vmul.f32 -1.442695, %v5885_v23 }
0x115d   :  { %v7259_v44 = vpop.eup %7258 }
0x115e   :  { %v7261_v25 = vpop.eup %7260  ;;  %v5898_v7 = vadd.f32 1.0, %v7259_v44  ;;  %7262 = vpow2.f32 %v6797_v52 }
0x115f   :  { %v5899_v33 = vadd.f32 1.0, %v7261_v25  ;;  %7264 = vpow2.f32 %v6798_v46 }
0x1160   :  { %7266 = vrcp.f32 %v5898_v7  ;;  %vm5907_vm13 = vweird.f32 %v5898_v7  ;;  %v5913_v41 = vand.u32 2147483648, %v5898_v7 }
0x1161   :  { %7268 = vrcp.f32 %v5899_v33  ;;  %vm5922_vm1 = vweird.f32 %v5899_v33  ;;  %v5926_v24 = vand.u32 2147483647, %v5899_v33  ;;  %v5928_v23 = vand.u32 2147483648, %v5899_v33 }
0x1163   :  { %vm5927_vm3 = vcmp.eq.f32.partialorder %v5926_v24, 8.507059e+37 }
0x1164   :  { %v7263_v20 = vpop.eup %7262 }
0x1165   :  { %v7265_v31 = vpop.eup %7264  ;;  %v5900_v55 = vadd.f32 1.0, %v7263_v20 }
0x1166   :  { %v7267_v1 = vpop.eup %7266  ;;  %v5901_v63 = vadd.f32 1.0, %v7265_v31  ;;  %v5911_v31 = vand.u32 2147483647, %v5898_v7 }
0x1167   :  { %v7269_v49 = vpop.eup %7268  ;;  %v5903_v47 = vmul.f32 %v7267_v1, %v5898_v7  ;;  %7270 = vrcp.f32 %v5900_v55  ;;  %vm5908_vm12 = vweird.f32 %v7267_v1  ;;  %vm5937_vm4 = vweird.f32 %v5900_v55 }
0x1168   :  { %v5918_v12 = vmul.f32 %v7269_v49, %v5899_v33  ;;  %7272 = vrcp.f32 %v5901_v63  ;;  %vm5923_vm0 = vweird.f32 %v7269_v49  ;;  %vm5909_vm2 = vmor %vm5907_vm13, %vm5908_vm12  ;;  %v5914_v33 = vor.u32 1.1754944e-38, %v5913_v41 }
0x1169   :  { %v5904_v5 = vsub.f32 1.0, %v5903_v47  ;;  %vm5924_vm14 = vmor %vm5922_vm1, %vm5923_vm0  ;;  %v5943_v47 = vand.u32 2147483648, %v5900_v55  ;;  %vm5912_vm6 = vcmp.eq.f32.partialorder %v5911_v31, 8.507059e+37  ;;  %v5958_v24 = vand.u32 2147483648, %v5901_v63  ;;  %v14581_v31 = vld [vmem:[#allocation16_spill] sm:$0xff] }
0x116a   :  { %v5919_v10 = vsub.f32 1.0, %v5918_v12  ;;  %vm5952_vm9 = vweird.f32 %v5901_v63  ;;  %v5956_v41 = vand.u32 2147483647, %v5901_v63 }
0x116b   :  { %v5905_v48 = vmul.f32 %v7267_v1, %v5904_v5 }
0x116c   :  { %v5920_v18 = vmul.f32 %v7269_v49, %v5919_v10  ;;  %v5941_v10 = vand.u32 2147483647, %v5900_v55  ;;  %vm5957_vm11 = vcmp.eq.f32.partialorder %v5956_v41, 8.507059e+37 }
0x116d   :  { %v7271_v21 = vpop.eup %7270  ;;  %v5906_v46 = vadd.f32 %v7267_v1, %v5905_v48 }
0x116e   :  { %v5921_v52 = vadd.f32 %v7269_v49, %v5920_v18  ;;  %v5933_v25 = vmul.f32 %v7271_v21, %v5900_v55  ;;  %v7273_v39 = vpop.eup %7272  ;;  %vm5938_vm15 = vweird.f32 %v7271_v21  ;;  %v5929_v18 = vor.u32 1.1754944e-38, %v5928_v23 }
0x116f   :  { %v5948_v20 = vmul.f32 %v7273_v39, %v5901_v63  ;;  %v5910_v62 = vsel %vm5909_vm2, %v7267_v1, %v5906_v46  ;;  %vm5939_vm5 = vmor %vm5937_vm4, %vm5938_vm15  ;;  %vm5942_vm7 = vcmp.eq.f32.partialorder %v5941_v10, 8.507059e+37  ;;  %vm5953_vm8 = vweird.f32 %v7273_v39  ;;  %v14580_v46 = vld [vmem:[#allocation15_spill] sm:$0xff] }
0x1170   :  { %v5934_v44 = vsub.f32 1.0, %v5933_v25  ;;  %v5925_v12 = vsel %vm5924_vm14, %v7269_v49, %v5921_v52  ;;  %v5944_v25 = vor.u32 1.1754944e-38, %v5943_v47  ;;  %v5915_v7 = vsel %vm5912_vm6, %v5914_v33, %v5910_v62  ;;  %vm5954_vm10 = vmor %vm5952_vm9, %vm5953_vm8 }
0x1171   :  { %v5949_v15 = vsub.f32 1.0, %v5948_v20  ;;  %v5930_v48 = vsel %vm5927_vm3, %v5929_v18, %v5925_v12  ;;  %v5959_v23 = vor.u32 1.1754944e-38, %v5958_v24 }
0x1172   :  { %v5935_v5 = vmul.f32 %v7271_v21, %v5934_v44  ;;  %v5962_v52 = vmul.f32 %v5930_v48, %v12905_v6  ;;  %v14579_v6 = vld [vmem:[#allocation49_spill] sm:$0xff] }
0x1173   :  { %v5950_v49 = vmul.f32 %v7273_v39, %v5949_v15 }
0x1174   :  { %v5936_v51 = vadd.f32 %v7271_v21, %v5935_v5 }
0x1175   :  { %v5951_v1 = vadd.f32 %v7273_v39, %v5950_v49 }
0x1176   :  { %v5940_v3 = vsel %vm5939_vm5, %v7271_v21, %v5936_v51 }
0x1177   :  { %v5945_v40 = vsel %vm5942_vm7, %v5944_v25, %v5940_v3  ;;  %v5955_v55 = vsel %vm5954_vm10, %v7273_v39, %v5951_v1 }
0x1178   :  { %v5963_v44 = vmul.f32 %v5945_v40, %v5915_v7  ;;  %v5960_v62 = vsel %vm5957_vm11, %v5959_v23, %v5955_v55 }
0x117a   :  { %v12981_v53 = vadd.f32 %v5963_v44, %v5962_v52 }
0x117c   :  { %7274 = vtanh.f32 %v12981_v53 }
0x1182   :  { %v7275_v51 = vpop.eup %7274 }
0x1183   :  { %v5966_v3 = vmul.f32 %v7275_v51, %v5960_v62 }
0x1185   :  { %5988 = vmatmul.f32.vlgmr.msra.gmra.mxu0 %v5966_v3  ;;  %6008 = vmatmul.f32.vlgmr.msrb.gmra.mxu1 %v5966_v3 }
0x1186   :  { %6028 = vmatmul.f32.vlgmr.msrb.gmra.mxu2 %v5966_v3  ;;  %6048 = vmatmul.f32.vlgmr.msrb.gmra.mxu3 %v5966_v3 }
0x1187   :  { %6312 = vmatpush.msra.mxu0 %v12447_v0  ;;  %6332 = vmatpush.msrb.mxu1 %v12453_v43  ;;  %v14548_v0 = vld [vmem:[#allocation68_spill] sm:$0xff]  ;;  %v14549_v43 = vld [vmem:[#allocation42_spill] sm:$0xff] }
0x1188   :  { %6352 = vmatpush.msrb.mxu2 %v12459_v36  ;;  %6372 = vmatpush.msrb.mxu3 %v12465_v8  ;;  %v14550_v36 = vld [vmem:[#allocation47_spill] sm:$0xff]  ;;  %v14551_v8 = vld [vmem:[#allocation50_spill] sm:$0xff] }
0x1189   :  { %6313 = vmatpush.msra.mxu0 %v12471_v11  ;;  %6333 = vmatpush.msrb.mxu1 %v12477_v57  ;;  %v14552_v11 = vld [vmem:[#allocation59_spill] sm:$0xff] }
0x118a   :  { %6353 = vmatpush.msrb.mxu2 %v12483_v26  ;;  %6373 = vmatpush.msrb.mxu3 %v12489_v17  ;;  %v14553_v57 = vld [vmem:[#allocation43_spill] sm:$0xff]  ;;  %v14554_v26 = vld [vmem:[#allocation60_spill] sm:$0xff]  ;;  %v14555_v17 = vld [vmem:[#allocation57_spill] sm:$0xff] }
0x118b   :  { %6314 = vmatpush.msra.mxu0 %v12495_v9  ;;  %6334 = vmatpush.msrb.mxu1 %v12501_v45  ;;  %v14556_v9 = vld [vmem:[#allocation65_spill] sm:$0xff] }
0x118c   :  { %6354 = vmatpush.msrb.mxu2 %v12507_v29  ;;  %6374 = vmatpush.msrb.mxu3 %v12513_v42  ;;  %v14557_v45 = vld [vmem:[#allocation53_spill] sm:$0xff]  ;;  %v14558_v29 = vld [vmem:[#allocation44_spill] sm:$0xff]  ;;  %v14559_v42 = vld [vmem:[#allocation22_spill] sm:$0xff] }
0x118d   :  { %6315 = vmatpush.msra.mxu0 %v12519_v14  ;;  %6335 = vmatpush.msrb.mxu1 %v12525_v35  ;;  %v14560_v14 = vld [vmem:[#allocation21_spill] sm:$0xff]  ;;  %v14561_v35 = vld [vmem:[#allocation19_spill] sm:$0xff] }
0x118e   :  { %6355 = vmatpush.msrb.mxu2 %v12531_v58  ;;  %6375 = vmatpush.msrb.mxu3 %v12537_v50  ;;  %v14562_v58 = vld [vmem:[#allocation20_spill] sm:$0xff]  ;;  %v14563_v50 = vld [vmem:[#allocation25_spill] sm:$0xff] }
0x118f   :  { %6316 = vmatpush.msra.mxu0 %v12543_v13  ;;  %6336 = vmatpush.msrb.mxu1 %v12549_v22  ;;  %v14564_v13 = vld [vmem:[#allocation24_spill] sm:$0xff]  ;;  %v14565_v22 = vld [vmem:[#allocation10_spill] sm:$0xff] }
0x1190   :  { %6356 = vmatpush.msrb.mxu2 %v12555_v37  ;;  %6376 = vmatpush.msrb.mxu3 %v12561_v60  ;;  %v14566_v37 = vld [vmem:[#allocation23_spill] sm:$0xff]  ;;  %v14567_v60 = vld [vmem:[#allocation28_spill] sm:$0xff] }
0x1191   :  { %6317 = vmatpush.msra.mxu0 %v12567_v34  ;;  %6337 = vmatpush.msrb.mxu1 %v12573_v27  ;;  %v14568_v34 = vld [vmem:[#allocation27_spill] sm:$0xff] }
0x1192   :  { %6357 = vmatpush.msrb.mxu2 %v12579_v56  ;;  %6377 = vmatpush.msrb.mxu3 %v12585_v38  ;;  %v14569_v27 = vld [vmem:[#allocation11_spill] sm:$0xff]  ;;  %v14570_v56 = vld [vmem:[#allocation26_spill] sm:$0xff] }
0x1193   :  { %6318 = vmatpush.msra.mxu0 %v12591_v2  ;;  %6338 = vmatpush.msrb.mxu1 %v12597_v19  ;;  %v14571_v38 = vld [vmem:[#allocation31_spill] sm:$0xff]  ;;  %v14572_v2 = vld [vmem:[#allocation30_spill] sm:$0xff]  ;;  %v14573_v19 = vld [vmem:[#allocation12_spill] sm:$0xff] }
0x1194   :  { %6358 = vmatpush.msrb.mxu2 %v12603_v16  ;;  %6378 = vmatpush.msrb.mxu3 %v12609_v59  ;;  %v14574_v16 = vld [vmem:[#allocation29_spill] sm:$0xff] }
0x1195   :  { %6319 = vmatpush.msra.mxu0 %v12615_v61  ;;  %6339 = vmatpush.msrb.mxu1 %v12621_v32  ;;  %v14575_v59 = vld [vmem:[#allocation33_spill] sm:$0xff]  ;;  %v14576_v61 = vld [vmem:[#allocation34_spill] sm:$0xff] }
0x1196   :  { %6359 = vmatpush.msrb.mxu2 %v12627_v54  ;;  %6379 = vmatpush.msrb.mxu3 %v12633_v30  ;;  %v14577_v32 = vld [vmem:[#allocation13_spill] sm:$0xff] }
0x1197   :  { %6320 = vmatpush.msra.mxu0 %v12639_v28  ;;  %6340 = vmatpush.msrb.mxu1 %v12645_v4  ;;  %v14578_v28 = vld [vmem:[#allocation45_spill] sm:$0xff] }
0x1198   :  { %6360 = vmatpush.msrb.mxu2 %v14548_v0  ;;  %6380 = vmatpush.msrb.mxu3 %v14549_v43 }
0x1199   :  { %6321 = vmatpush.msra.mxu0 %v14550_v36  ;;  %6341 = vmatpush.msrb.mxu1 %v14551_v8 }
0x119a   :  { %6361 = vmatpush.msrb.mxu2 %v14552_v11  ;;  %6381 = vmatpush.msrb.mxu3 %v14553_v57 }
0x119b   :  { %6322 = vmatpush.msra.mxu0 %v14554_v26  ;;  %6342 = vmatpush.msrb.mxu1 %v14555_v17 }
0x119c   :  { %6362 = vmatpush.msrb.mxu2 %v14556_v9  ;;  %6382 = vmatpush.msrb.mxu3 %v14557_v45 }
0x119d   :  { %6323 = vmatpush.msra.mxu0 %v14558_v29  ;;  %6343 = vmatpush.msrb.mxu1 %v14559_v42 }
0x119e   :  { %6363 = vmatpush.msrb.mxu2 %v14560_v14  ;;  %6383 = vmatpush.msrb.mxu3 %v14561_v35 }
0x119f   :  { %6324 = vmatpush.msra.mxu0 %v14562_v58  ;;  %6344 = vmatpush.msrb.mxu1 %v14563_v50 }
0x11a0   :  { %6364 = vmatpush.msrb.mxu2 %v14564_v13  ;;  %6384 = vmatpush.msrb.mxu3 %v14565_v22 }
0x11a1   :  { %6325 = vmatpush.msra.mxu0 %v14566_v37  ;;  %6345 = vmatpush.msrb.mxu1 %v14567_v60 }
0x11a2   :  { %6365 = vmatpush.msrb.mxu2 %v14568_v34  ;;  %6385 = vmatpush.msrb.mxu3 %v14569_v27 }
0x11a3   :  { %6326 = vmatpush.msra.mxu0 %v14570_v56  ;;  %6346 = vmatpush.msrb.mxu1 %v14571_v38 }
0x11a4   :  { %6366 = vmatpush.msrb.mxu2 %v14572_v2  ;;  %6386 = vmatpush.msrb.mxu3 %v14573_v19 }
0x11a5   :  { %6327 = vmatpush.msra.mxu0 %v14574_v16  ;;  %6347 = vmatpush.msrb.mxu1 %v14575_v59 }
0x11a6   :  { %6367 = vmatpush.msrb.mxu2 %v14576_v61  ;;  %6387 = vmatpush.msrb.mxu3 %v14577_v32 }
0x1202   :  { %v5989_v54 = vpop.f32.mrf.mxu0  ;;  %v6009_v30 = vpop.f32.mrf.mxu1 }
0x1203   :  { %v6052_v4 = vadd.f32 %v5989_v54, %v14578_v28  ;;  %v6053_v40 = vadd.f32 %v6009_v30, %v14579_v6 }
0x1205   :  { %v6799_v15 = vmul.f32 -1.442695, %v6052_v4  ;;  %v6800_v63 = vmul.f32 -1.442695, %v6053_v40 }
0x1207   :  { %7276 = vpow2.f32 %v6799_v15 }
0x1208   :  { %7278 = vpow2.f32 %v6800_v63  ;;  %v14582_v63 = vld [vmem:[#allocation69_spill] sm:$0xff] }
0x1209   :  { %v6029_v21 = vpop.f32.mrf.mxu2  ;;  %v6049_v39 = vpop.f32.mrf.mxu3 }
0x120a   :  { %v6054_v20 = vadd.f32 %v6029_v21, %v14580_v46  ;;  %v6055_v47 = vadd.f32 %v6049_v39, %v14581_v31  ;;  %v14583_v39 = vld [vmem:[#allocation70_spill] sm:$0xff] }
0x120c   :  { %v6801_v12 = vmul.f32 -1.442695, %v6054_v20  ;;  %v6802_v5 = vmul.f32 -1.442695, %v6055_v47 }
0x120d   :  { %v7277_v10 = vpop.eup %7276 }
0x120e   :  { %v7279_v18 = vpop.eup %7278  ;;  %v6068_v33 = vadd.f32 1.0, %v7277_v10  ;;  %7280 = vpow2.f32 %v6801_v12 }
0x120f   :  { %v6069_v48 = vadd.f32 1.0, %v7279_v18  ;;  %7282 = vpow2.f32 %v6802_v5  ;;  %v14584_v5 = vld [vmem:[#allocation7_spill] sm:$0xff]  ;;  %v14585_v18 = vld [vmem:[#allocation9_spill] sm:$0xff] }
0x1210   :  { %7284 = vrcp.f32 %v6068_v33  ;;  %vm6077_vm13 = vweird.f32 %v6068_v33  ;;  %v6081_v9 = vand.u32 2147483647, %v6068_v33  ;;  %v6083_v45 = vand.u32 2147483648, %v6068_v33 }
0x1211   :  { %7286 = vrcp.f32 %v6069_v48  ;;  %vm6092_vm1 = vweird.f32 %v6069_v48  ;;  %v6096_v8 = vand.u32 2147483647, %v6069_v48  ;;  %v6098_v11 = vand.u32 2147483648, %v6069_v48 }
0x1212   :  { %v6084_v37 = vor.u32 1.1754944e-38, %v6083_v45  ;;  %vm6082_vm6 = vcmp.eq.f32.partialorder %v6081_v9, 8.507059e+37 }
0x1213   :  { %v6099_v58 = vor.u32 1.1754944e-38, %v6098_v11  ;;  %vm6097_vm3 = vcmp.eq.f32.partialorder %v6096_v8, 8.507059e+37 }
0x1214   :  { %v7281_v25 = vpop.eup %7280 }
0x1215   :  { %v7283_v7 = vpop.eup %7282  ;;  %v6070_v49 = vadd.f32 1.0, %v7281_v25 }
0x1216   :  { %v7285_v52 = vpop.eup %7284  ;;  %v6071_v44 = vadd.f32 1.0, %v7283_v7 }
0x1217   :  { %v7287_v1 = vpop.eup %7286  ;;  %v6073_v24 = vmul.f32 %v7285_v52, %v6068_v33  ;;  %7288 = vrcp.f32 %v6070_v49  ;;  %vm6078_vm12 = vweird.f32 %v7285_v52  ;;  %v6113_v29 = vand.u32 2147483648, %v6070_v49 }
0x1218   :  { %v6088_v41 = vmul.f32 %v7287_v1, %v6069_v48  ;;  %7290 = vrcp.f32 %v6071_v44  ;;  %vm6093_vm0 = vweird.f32 %v7287_v1  ;;  %v6111_v35 = vand.u32 2147483647, %v6070_v49  ;;  %vm6079_vm2 = vmor %vm6077_vm13, %vm6078_vm12 }
0x1219   :  { %v6074_v55 = vsub.f32 1.0, %v6073_v24  ;;  %vm6094_vm14 = vmor %vm6092_vm1, %vm6093_vm0  ;;  %vm6107_vm4 = vweird.f32 %v6070_v49  ;;  %v6114_v34 = vor.u32 1.1754944e-38, %v6113_v29  ;;  %v6128_v32 = vand.u32 2147483648, %v6071_v44 }
0x121a   :  { %v6089_v23 = vsub.f32 1.0, %v6088_v41  ;;  %vm6112_vm7 = vcmp.eq.f32.partialorder %v6111_v35, 8.507059e+37  ;;  %vm6122_vm9 = vweird.f32 %v6071_v44  ;;  %v6126_v54 = vand.u32 2147483647, %v6071_v44 }
0x121b   :  { %v6075_v51 = vmul.f32 %v7285_v52, %v6074_v55  ;;  %v6129_v28 = vor.u32 1.1754944e-38, %v6128_v32 }
0x121c   :  { %v6090_v62 = vmul.f32 %v7287_v1, %v6089_v23  ;;  %vm6127_vm11 = vcmp.eq.f32.partialorder %v6126_v54, 8.507059e+37 }
0x121d   :  { %v7289_v3 = vpop.eup %7288  ;;  %v6076_v57 = vadd.f32 %v7285_v52, %v6075_v51 }
0x121e   :  { %v6091_v0 = vadd.f32 %v7287_v1, %v6090_v62  ;;  %v6103_v43 = vmul.f32 %v7289_v3, %v6070_v49  ;;  %v7291_v36 = vpop.eup %7290  ;;  %vm6108_vm15 = vweird.f32 %v7289_v3 }
0x121f   :  { %v6118_v17 = vmul.f32 %v7291_v36, %v6071_v44  ;;  %v6080_v13 = vsel %vm6079_vm2, %v7285_v52, %v6076_v57  ;;  %vm6109_vm5 = vmor %vm6107_vm4, %vm6108_vm15  ;;  %vm6123_vm8 = vweird.f32 %v7291_v36 }
0x1220   :  { %v6104_v26 = vsub.f32 1.0, %v6103_v43  ;;  %v6095_v42 = vsel %vm6094_vm14, %v7287_v1, %v6091_v0  ;;  %v6085_v56 = vsel %vm6082_vm6, %v6084_v37, %v6080_v13  ;;  %vm6124_vm10 = vmor %vm6122_vm9, %vm6123_vm8 }
0x1221   :  { %v6119_v50 = vsub.f32 1.0, %v6118_v17  ;;  %v6100_v60 = vsel %vm6097_vm3, %v6099_v58, %v6095_v42 }
0x1222   :  { %v6105_v14 = vmul.f32 %v7289_v3, %v6104_v26  ;;  %v6132_v19 = vmul.f32 %v6100_v60, %v12981_v53 }
0x1223   :  { %v6120_v2 = vmul.f32 %v7291_v36, %v6119_v50 }
0x1224   :  { %v6106_v22 = vadd.f32 %v7289_v3, %v6105_v14 }
0x1225   :  { %v6121_v61 = vadd.f32 %v7291_v36, %v6120_v2 }
0x1226   :  { %v6110_v27 = vsel %vm6109_vm5, %v7289_v3, %v6106_v22 }
0x1227   :  { %v6115_v38 = vsel %vm6112_vm7, %v6114_v34, %v6110_v27  ;;  %v6125_v30 = vsel %vm6124_vm10, %v7291_v36, %v6121_v61 }
0x1228   :  { %v6133_v16 = vmul.f32 %v6115_v38, %v6085_v56  ;;  %v6130_v6 = vsel %vm6127_vm11, %v6129_v28, %v6125_v30 }
0x122a   :  { %v13053_v59 = vadd.f32 %v6133_v16, %v6132_v19 }
0x122c   :  { %7292 = vtanh.f32 %v13053_v59 }
0x1232   :  { %v7293_v4 = vpop.eup %7292 }
0x1233   :  { %v6136_v40 = vmul.f32 %v7293_v4, %v6130_v6 }
0x1235   :  { %6158 = vmatmul.f32.vlgmr.msrb.gmra.mxu0 %v6136_v40  ;;  %6178 = vmatmul.f32.vlgmr.msra.gmra.mxu1 %v6136_v40 }
0x1236   :  { %6198 = vmatmul.f32.vlgmr.msra.gmra.mxu2 %v6136_v40  ;;  %6218 = vmatmul.f32.vlgmr.msra.gmra.mxu3 %v6136_v40 }
0x12b2   :  { %v6159_v53 = vpop.f32.mrf.mxu0  ;;  %v6179_v15 = vpop.f32.mrf.mxu1 }
0x12b3   :  { %v6222_v21 = vadd.f32 %v6159_v53, %v14582_v63  ;;  %v6223_v46 = vadd.f32 %v6179_v15, %v14583_v39 }
0x12b5   :  { %v6803_v20 = vmul.f32 -1.442695, %v6222_v21  ;;  %v6804_v31 = vmul.f32 -1.442695, %v6223_v46 }
0x12b7   :  { %7294 = vpow2.f32 %v6803_v20  ;;  %v6491_v20 = vld [vmem:[%s13127_s4 + $0x70] sm:$0xff] }
0x12b8   :  { %7296 = vpow2.f32 %v6804_v31  ;;  %v6490_v31 = vld [vmem:[%s13127_s4 + $0x68] sm:$0xff] }
0x12b9   :  { %v6199_v47 = vpop.f32.mrf.mxu2  ;;  %v6219_v12 = vpop.f32.mrf.mxu3 }
0x12ba   :  { %v6224_v10 = vadd.f32 %v6199_v47, %v14584_v5  ;;  %v6225_v33 = vadd.f32 %v6219_v12, %v14585_v18  ;;  %v6489_v47 = vld [vmem:[%s13127_s4 + $0x60] sm:$0xff]  ;;  %v6488_v12 = vld [vmem:[%s13127_s4 + $0x58] sm:$0xff]  ;;  %v6487_v18 = vld [vmem:[%s13127_s4 + $0x50] sm:$0xff] }
0x12bc   :  { %v6805_v48 = vmul.f32 -1.442695, %v6224_v10  ;;  %v6806_v25 = vmul.f32 -1.442695, %v6225_v33  ;;  %v14586_v33 = vld [vmem:[#allocation66_spill] sm:$0xff] }
0x12bd   :  { %v7295_v7 = vpop.eup %7294 }
0x12be   :  { %v7297_v49 = vpop.eup %7296  ;;  %v6238_v52 = vadd.f32 1.0, %v7295_v7  ;;  %7298 = vpow2.f32 %v6805_v48 }
0x12bf   :  { %v6239_v44 = vadd.f32 1.0, %v7297_v49  ;;  %7300 = vpow2.f32 %v6806_v25  ;;  %v14587_v25 = vld [vmem:[#allocation37_spill] sm:$0xff]  ;;  %v6486_v49 = vld [vmem:[%s13127_s4 + $0x48] sm:$0xff] }
0x12c0   :  { %7302 = vrcp.f32 %v6238_v52  ;;  %vm6247_vm13 = vweird.f32 %v6238_v52  ;;  %v6251_v35 = vand.u32 2147483647, %v6238_v52  ;;  %v6253_v58 = vand.u32 2147483648, %v6238_v52 }
0x12c1   :  { %7304 = vrcp.f32 %v6239_v44  ;;  %vm6262_vm1 = vweird.f32 %v6239_v44  ;;  %v6266_v9 = vand.u32 2147483647, %v6239_v44  ;;  %v6268_v45 = vand.u32 2147483648, %v6239_v44 }
0x12c2   :  { %v6254_v38 = vor.u32 1.1754944e-38, %v6253_v58  ;;  %vm6252_vm6 = vcmp.eq.f32.partialorder %v6251_v35, 8.507059e+37  ;;  %v6477_v35 = vld [vmem:[%s13127_s4] sm:$0xff] }
0x12c3   :  { %v6269_v60 = vor.u32 1.1754944e-38, %v6268_v45  ;;  %vm6267_vm3 = vcmp.eq.f32.partialorder %v6266_v9, 8.507059e+37  ;;  %v6480_v9 = vld [vmem:[%s13127_s4 + $0x18] sm:$0xff] }
0x12c4   :  { %v7299_v1 = vpop.eup %7298 }
0x12c5   :  { %v7301_v24 = vpop.eup %7300  ;;  %v6240_v41 = vadd.f32 1.0, %v7299_v1  ;;  %v6485_v1 = vld [vmem:[%s13127_s4 + $0x40] sm:$0xff] }
0x12c6   :  { %v7303_v55 = vpop.eup %7302  ;;  %v6241_v23 = vadd.f32 1.0, %v7301_v24  ;;  %v6484_v24 = vld [vmem:[%s13127_s4 + $0x38] sm:$0xff] }
0x12c7   :  { %v7305_v51 = vpop.eup %7304  ;;  %v6243_v62 = vmul.f32 %v7303_v55, %v6238_v52  ;;  %7306 = vrcp.f32 %v6240_v41  ;;  %vm6248_vm12 = vweird.f32 %v7303_v55  ;;  %v6283_v50 = vand.u32 2147483648, %v6240_v41 }
0x12c8   :  { %v6258_v3 = vmul.f32 %v7305_v51, %v6239_v44  ;;  %7308 = vrcp.f32 %v6241_v23  ;;  %vm6263_vm0 = vweird.f32 %v7305_v51  ;;  %v6281_v37 = vand.u32 2147483647, %v6240_v41  ;;  %vm6249_vm2 = vmor %vm6247_vm13, %vm6248_vm12 }
0x12c9   :  { %v6244_v0 = vsub.f32 1.0, %v6243_v62  ;;  %vm6264_vm14 = vmor %vm6262_vm1, %vm6263_vm0  ;;  %vm6277_vm4 = vweird.f32 %v6240_v41  ;;  %v6284_v19 = vor.u32 1.1754944e-38, %v6283_v50  ;;  %v6298_v40 = vand.u32 2147483648, %v6241_v23 }
0x12ca   :  { %v6259_v43 = vsub.f32 1.0, %v6258_v3  ;;  %vm6282_vm7 = vcmp.eq.f32.partialorder %v6281_v37, 8.507059e+37  ;;  %vm6292_vm9 = vweird.f32 %v6241_v23  ;;  %v6296_v53 = vand.u32 2147483647, %v6241_v23  ;;  %v14589_v3 = vld [vmem:[#allocation76_spill] sm:$0xff] }
0x12cb   :  { %v6245_v36 = vmul.f32 %v7303_v55, %v6244_v0  ;;  %v6299_v63 = vor.u32 1.1754944e-38, %v6298_v40 }
0x12cc   :  { %v6260_v8 = vmul.f32 %v7305_v51, %v6259_v43  ;;  %vm6297_vm11 = vcmp.eq.f32.partialorder %v6296_v53, 8.507059e+37  ;;  %v6482_v43 = vld [vmem:[%s13127_s4 + $0x28] sm:$0xff] }
0x12cd   :  { %v7307_v11 = vpop.eup %7306  ;;  %v6246_v29 = vadd.f32 %v7303_v55, %v6245_v36 }
0x12ce   :  { %v6261_v57 = vadd.f32 %v7305_v51, %v6260_v8  ;;  %v6273_v26 = vmul.f32 %v7307_v11, %v6240_v41  ;;  %v7309_v17 = vpop.eup %7308  ;;  %vm6278_vm15 = vweird.f32 %v7307_v11  ;;  %v6483_v41 = vld [vmem:[%s13127_s4 + $0x30] sm:$0xff] }
0x12cf   :  { %v6288_v14 = vmul.f32 %v7309_v17, %v6241_v23  ;;  %v6250_v27 = vsel %vm6249_vm2, %v7303_v55, %v6246_v29  ;;  %vm6279_vm5 = vmor %vm6277_vm4, %vm6278_vm15  ;;  %vm6293_vm8 = vweird.f32 %v7309_v17  ;;  %v6479_v29 = vld [vmem:[%s13127_s4 + $0x10] sm:$0xff] }
0x12d0   :  { %v6274_v42 = vsub.f32 1.0, %v6273_v26  ;;  %v6265_v13 = vsel %vm6264_vm14, %v7305_v51, %v6261_v57  ;;  %v6255_v61 = vsel %vm6252_vm6, %v6254_v38, %v6250_v27  ;;  %vm6294_vm10 = vmor %vm6292_vm9, %vm6293_vm8  ;;  %v14588_v51 = vld [vmem:[#allocation75_spill] sm:$0xff] }
0x12d1   :  { %v6289_v34 = vsub.f32 1.0, %v6288_v14  ;;  %v6270_v2 = vsel %vm6267_vm3, %v6269_v60, %v6265_v13 }
0x12d2   :  { %v6275_v22 = vmul.f32 %v7307_v11, %v6274_v42  ;;  %v6302_v30 = vmul.f32 %v6270_v2, %v13053_v59  ;;  %v6492_v59 = vld [vmem:[%s13127_s4 + $0x78] sm:$0xff]  ;;  %v6478_v42 = vld [vmem:[%s13127_s4 + $0x8] sm:$0xff] }
0x12d3   :  { %v6290_v54 = vmul.f32 %v7309_v17, %v6289_v34  ;;  %6497 = vmatpush.msrb.mxu0 %v6492_v59 }
0x12d4   :  { %v6276_v56 = vadd.f32 %v7307_v11, %v6275_v22 }
0x12d5   :  { %v6291_v6 = vadd.f32 %v7309_v17, %v6290_v54  ;;  %6498 = vmatpush.msrb.mxu0 %v6491_v20 }
0x12d6   :  { %v6280_v16 = vsel %vm6279_vm5, %v7307_v11, %v6276_v56  ;;  %v6481_v11 = vld [vmem:[%s13127_s4 + $0x20] sm:$0xff] }
0x12d7   :  { %v6285_v32 = vsel %vm6282_vm7, %v6284_v19, %v6280_v16  ;;  %v6295_v15 = vsel %vm6294_vm10, %v7309_v17, %v6291_v6  ;;  %6499 = vmatpush.msrb.mxu0 %v6490_v31 }
0x12d8   :  { %v6303_v28 = vmul.f32 %v6285_v32, %v6255_v61  ;;  %v6300_v39 = vsel %vm6297_vm11, %v6299_v63, %v6295_v15 }
0x12d9   :  { %6500 = vmatpush.msrb.mxu0 %v6489_v47 }
0x12da   :  { %v13061_v4 = vadd.f32 %v6303_v28, %v6302_v30 }
0x12db   :  { %6501 = vmatpush.msrb.mxu0 %v6488_v12 }
0x12dc   :  { %7310 = vtanh.f32 %v13061_v4 }
0x12dd   :  { %6502 = vmatpush.msrb.mxu0 %v6487_v18 }
0x12df   :  { %6503 = vmatpush.msrb.mxu0 %v6486_v49 }
0x12e1   :  { %6504 = vmatpush.msrb.mxu0 %v6485_v1 }
0x12e2   :  { %v7311_v21 = vpop.eup %7310 }
0x12e3   :  { %v6306_v46 = vmul.f32 %v7311_v21, %v6300_v39  ;;  %6505 = vmatpush.msrb.mxu0 %v6484_v24 }
0x12e5   :  { %6328 = vmatmul.f32.vlgmr.msra.gmra.mxu0 %v6306_v46  ;;  %6348 = vmatmul.f32.vlgmr.msrb.gmra.mxu1 %v6306_v46 }
0x12e6   :  { %6368 = vmatmul.f32.vlgmr.msrb.gmra.mxu2 %v6306_v46  ;;  %6388 = vmatmul.f32.vlgmr.msrb.gmra.mxu3 %v6306_v46 }
0x12e7   :  { %6506 = vmatpush.msrb.mxu0 %v6483_v41 }
0x12e9   :  { %6507 = vmatpush.msrb.mxu0 %v6482_v43 }
0x12eb   :  { %6508 = vmatpush.msrb.mxu0 %v6481_v11 }
0x12ed   :  { %6509 = vmatpush.msrb.mxu0 %v6480_v9 }
0x12ef   :  { %6510 = vmatpush.msrb.mxu0 %v6479_v29 }
0x12f1   :  { %6511 = vmatpush.msrb.mxu0 %v6478_v42 }
0x12f3   :  { %6512 = vmatpush.msrb.mxu0 %v6477_v35 }
0x1362   :  { %v6329_v5 = vpop.f32.mrf.mxu0  ;;  %v6349_v10 = vpop.f32.mrf.mxu1 }
0x1363   :  { %v6392_v48 = vadd.f32 %v6329_v5, %v14586_v33  ;;  %v6393_v7 = vadd.f32 %v6349_v10, %v14587_v25 }
0x1365   :  { %v6807_v52 = vmul.f32 -1.442695, %v6392_v48  ;;  %v6808_v44 = vmul.f32 -1.442695, %v6393_v7 }
0x1367   :  { %7312 = vpow2.f32 %v6807_v52 }
0x1368   :  { %7314 = vpow2.f32 %v6808_v44 }
0x1369   :  { %v6369_v55 = vpop.f32.mrf.mxu2  ;;  %v6389_v23 = vpop.f32.mrf.mxu3 }
0x136a   :  { %v6394_v62 = vadd.f32 %v6369_v55, %v14588_v51  ;;  %v6395_v0 = vadd.f32 %v6389_v23, %v14589_v3 }
0x136c   :  { %v6809_v36 = vmul.f32 -1.442695, %v6394_v62  ;;  %v6810_v8 = vmul.f32 -1.442695, %v6395_v0 }
0x136d   :  { %v7313_v57 = vpop.eup %7312 }
0x136e   :  { %v7315_v26 = vpop.eup %7314  ;;  %v6408_v17 = vadd.f32 1.0, %v7313_v57  ;;  %7316 = vpow2.f32 %v6809_v36 }
0x136f   :  { %v6409_v45 = vadd.f32 1.0, %v7315_v26  ;;  %7318 = vpow2.f32 %v6810_v8 }
0x1370   :  { %7320 = vrcp.f32 %v6408_v17  ;;  %vm6417_vm13 = vweird.f32 %v6408_v17  ;;  %v6421_v53 = vand.u32 2147483647, %v6408_v17  ;;  %v6423_v15 = vand.u32 2147483648, %v6408_v17 }
0x1371   :  { %7322 = vrcp.f32 %v6409_v45  ;;  %vm6432_vm1 = vweird.f32 %v6409_v45  ;;  %v6436_v54 = vand.u32 2147483647, %v6409_v45  ;;  %v6438_v30 = vand.u32 2147483648, %v6409_v45 }
0x1372   :  { %v6424_v12 = vor.u32 1.1754944e-38, %v6423_v15  ;;  %vm6422_vm6 = vcmp.eq.f32.partialorder %v6421_v53, 8.507059e+37 }
0x1373   :  { %v6439_v59 = vor.u32 1.1754944e-38, %v6438_v30  ;;  %vm6437_vm3 = vcmp.eq.f32.partialorder %v6436_v54, 8.507059e+37 }
0x1374   :  { %v7317_v14 = vpop.eup %7316 }
0x1375   :  { %v7319_v58 = vpop.eup %7318  ;;  %v6410_v50 = vadd.f32 1.0, %v7317_v14 }
0x1376   :  { %v7321_v13 = vpop.eup %7320  ;;  %v6411_v22 = vadd.f32 1.0, %v7319_v58 }
0x1377   :  { %v7323_v37 = vpop.eup %7322  ;;  %v6413_v60 = vmul.f32 %v7321_v13, %v6408_v17  ;;  %7324 = vrcp.f32 %v6410_v50  ;;  %vm6418_vm12 = vweird.f32 %v7321_v13  ;;  %v6453_v63 = vand.u32 2147483648, %v6410_v50 }
0x1378   :  { %v6428_v34 = vmul.f32 %v7323_v37, %v6409_v45  ;;  %7326 = vrcp.f32 %v6411_v22  ;;  %vm6433_vm0 = vweird.f32 %v7323_v37  ;;  %v6451_v46 = vand.u32 2147483647, %v6410_v50  ;;  %vm6419_vm2 = vmor %vm6417_vm13, %vm6418_vm12 }
0x1379   :  { %v6414_v27 = vsub.f32 1.0, %v6413_v60  ;;  %vm6434_vm14 = vmor %vm6432_vm1, %vm6433_vm0  ;;  %vm6447_vm4 = vweird.f32 %v6410_v50  ;;  %v6454_v10 = vor.u32 1.1754944e-38, %v6453_v63  ;;  %v6468_v1 = vand.u32 2147483648, %v6411_v22 }
0x137a   :  { %v6429_v56 = vsub.f32 1.0, %v6428_v34  ;;  %vm6452_vm7 = vcmp.eq.f32.partialorder %v6451_v46, 8.507059e+37  ;;  %vm6462_vm9 = vweird.f32 %v6411_v22  ;;  %v6466_v24 = vand.u32 2147483647, %v6411_v22 }
0x137b   :  { %v6415_v38 = vmul.f32 %v7321_v13, %v6414_v27  ;;  %v6469_v55 = vor.u32 1.1754944e-38, %v6468_v1  ;;  %vm6517_vm0 = vcmask 80896  }
0x137c   :  { %v6430_v2 = vmul.f32 %v7323_v37, %v6429_v56  ;;  %vm6467_vm11 = vcmp.eq.f32.partialorder %v6466_v24, 8.507059e+37 }
0x137d   :  { %v7325_v19 = vpop.eup %7324  ;;  %v6416_v28 = vadd.f32 %v7321_v13, %v6415_v38 }
0x137e   :  { %v6431_v16 = vadd.f32 %v7323_v37, %v6430_v2  ;;  %v6443_v61 = vmul.f32 %v7325_v19, %v6410_v50  ;;  %v7327_v32 = vpop.eup %7326  ;;  %vm6448_vm15 = vweird.f32 %v7325_v19 }
0x137f   :  { %v6458_v40 = vmul.f32 %v7327_v32, %v6411_v22  ;;  %v6420_v31 = vsel %vm6419_vm2, %v7321_v13, %v6416_v28  ;;  %vm6449_vm5 = vmor %vm6447_vm4, %vm6448_vm15  ;;  %vm6463_vm8 = vweird.f32 %v7327_v32 }
0x1380   :  { %v6444_v6 = vsub.f32 1.0, %v6443_v61  ;;  %v6435_v21 = vsel %vm6434_vm14, %v7323_v37, %v6431_v16  ;;  %v6425_v33 = vsel %vm6422_vm6, %v6424_v12, %v6420_v31  ;;  %vm6464_vm10 = vmor %vm6462_vm9, %vm6463_vm8 }
0x1381   :  { %v6459_v20 = vsub.f32 1.0, %v6458_v40  ;;  %v6440_v5 = vsel %vm6437_vm3, %v6439_v59, %v6435_v21 }
0x1382   :  { %v6445_v39 = vmul.f32 %v7325_v19, %v6444_v6  ;;  %v6472_v7 = vmul.f32 %v6440_v5, %v13061_v4  ;;  %v6825_v4 = vld [vmem:[%s13128_s5] ss:$0 sm:$0xff] }
0x1383   :  { %v6460_v25 = vmul.f32 %v7327_v32, %v6459_v20 }
0x1384   :  { %v6446_v47 = vadd.f32 %v7325_v19, %v6445_v39 }
0x1385   :  { %v6461_v44 = vadd.f32 %v7327_v32, %v6460_v25 }
0x1386   :  { %v6450_v18 = vsel %vm6449_vm5, %v7325_v19, %v6446_v47 }
0x1387   :  { %v6455_v48 = vsel %vm6452_vm7, %v6454_v10, %v6450_v18  ;;  %v6465_v41 = vsel %vm6464_vm10, %v7327_v32, %v6461_v44 }
0x1388   :  { %v6473_v49 = vmul.f32 %v6455_v48, %v6425_v33  ;;  %v6470_v51 = vsel %vm6467_vm11, %v6469_v55, %v6465_v41 }
0x138a   :  { %v6474_v52 = vadd.f32 %v6473_v49, %v6472_v7 }
0x138c   :  { %7328 = vtanh.f32 %v6474_v52 }
0x1392   :  { %v7329_v23 = vpop.eup %7328 }
0x1393   :  { %v6476_v62 = vmul.f32 %v7329_v23, %v6470_v51 }
0x1395   :  { %6513 = vmatmul.f32.vlgmr.msrb.gmra.mxu0 %v6476_v62 }
0x1412   :  { %v6514_v3 = vpop.f32.mrf.mxu0 }
0x1413   :  { %v6515_v0 = vadd.f32 %v6825_v4, %v6514_v3 }
0x1415   :  { %6518 = vst.msk [vmem:[#allocation3] sm:$0xff] %vm6517_vm0, %v6515_v0 }
0x1416   :  { %6529 = dma.vmem_to_hbm [thread:$0]  %s6525_s17, 128, %s6527_s19, [#allocation4]  }
0x1417   :  { %7418 = dma.done.wait [#allocation4], 128  }
0x1418   :  { %7419 = vsyncadd [#allocation4], 4294967168 }
0x1419   :  { %6534 = vsyncpa [#allocation4], 1 }

</bundles_post_ra>
